<compile_context>
chip_gen: v7x
topology: tpu7x:2x2x1
jax: 0.10.0
libtpu: 0.0.40
codegen_flags: <defaults>
</compile_context>

<pallas_src>
import numpy as np

import jax
import jax.numpy as jnp
from jax.experimental import pallas as pl
from jax.experimental.pallas import tpu as pltpu

NEG_SLOPE = 0.2            # LeakyReLU(0.2) used throughout the UNet
BN_EPS = 1e-5              # PyTorch BatchNorm default eps
OUTPUT_CLASSES = 3         # output_classes (implicit=True -> UNet emits K+1 channels)
INPUT_CHANNELS = 1
IMG_H = IMG_W = 16
HW = IMG_H * IMG_W

ENC1_C, ENC2_C = 8, 16     # encoder feature counts
UP1_C, DEC1_C = 16, 8      # decoder feature counts
UP2_C, DEC2_C = 8, 8
FINAL_C = OUTPUT_CLASSES + 1   # implicit background class included in the UNet output
FINAL_PAD = 8                  # final-layer Cout padded to a full sublane group (aligned tap slices)

BATCH_BLOCK = 4                # images per grid step (amortizes per-step pipeline overhead)


# --------------------------------------------------------------------------- #
# Host-side constants: per-tap spatial gather/scatter matrices (0/1) and masks.
# Row index convention everywhere: r = h * width + w.
# --------------------------------------------------------------------------- #
def _conv_taps(h_in, w_in, stride):
    """Standard Conv2d, kernel 3, padding 1, given stride. S[t, out_row, in_row]."""
    h_out = (h_in + 2 - 3) // stride + 1
    w_out = (w_in + 2 - 3) // stride + 1
    s = np.zeros((9, h_out * w_out, h_in * w_in), np.float32)
    for ky in range(3):
        for kx in range(3):
            t = ky * 3 + kx
            for oy in range(h_out):
                iy = oy * stride - 1 + ky
                if not (0 <= iy < h_in):
                    continue
                for ox in range(w_out):
                    ix = ox * stride - 1 + kx
                    if 0 <= ix < w_in:
                        s[t, oy * w_out + ox, iy * w_in + ix] = 1.0
    return s


def _convT_taps(h_in, w_in):
    """ConvTranspose2d, kernel 3, stride 2, padding 1, output_padding 1 (out = 2x).
    Exact PyTorch scatter relation: out[2*iy - 1 + ky, 2*ix - 1 + kx] += in[iy, ix]."""
    h_out, w_out = 2 * h_in, 2 * w_in
    s = np.zeros((9, h_out * w_out, h_in * w_in), np.float32)
    for ky in range(3):
        for kx in range(3):
            t = ky * 3 + kx
            for iy in range(h_in):
                oy = 2 * iy - 1 + ky
                if not (0 <= oy < h_out):
                    continue
                for ix in range(w_in):
                    ox = 2 * ix - 1 + kx
                    if 0 <= ox < w_out:
                        s[t, oy * w_out + ox, iy * w_in + ix] = 1.0
    return s


def _roll_masks():
    """Boundary masks for the stride-1 16x16 roll-based taps.  mask[t, 0, r] = 1 iff
    the 3x3 neighbour (h + ky - 1, w + kx - 1) of output position r is inside the image."""
    m = np.zeros((9, 1, HW), np.float32)
    for t in range(9):
        dy, dx = t // 3 - 1, t % 3 - 1
        for h in range(IMG_H):
            for w in range(IMG_W):
                if 0 <= h + dy < IMG_H and 0 <= w + dx < IMG_W:
                    m[t, 0, h * IMG_W + w] = 1.0
    return m


# --------------------------------------------------------------------------- #
# In-kernel building blocks (traced Python, everything stays in VMEM/vregs)
# --------------------------------------------------------------------------- #
def _mix(xw_pairs):
    """Channel-mix stage (channels-major):  Y = sum_g  W_g (9*Cout, Cin_g) @ x_g (Cin_g, Mi)
    -> (9*Cout, Mi) f32.  One MXU matmul per input group (all 9 tap weights concatenated
    on sublane-aligned row blocks); skip-connection concats are merged here (sum over
    groups) so the spatial stage runs once.  x_g is already bf16 when Cin_g > 1."""
    acc = None
    for x, w_ref in xw_pairs:
        w = w_ref[...]
        if x.shape[0] == 1:
            # Cin == 1: K=1 contraction degenerates to an outer-product broadcast (VPU).
            y = w.astype(jnp.float32) * x.astype(jnp.float32)
        else:
            y = jnp.dot(w, x, preferred_element_type=jnp.float32)
        acc = y if acc is None else acc + y
    return acc


def _finish(acc, b_ref, leaky):
    out = acc if b_ref is None else acc + b_ref[...]
    if leaky:
        out = jnp.where(out >= 0.0, out, NEG_SLOPE * out)
    return out


def _spatial_mm(y_mix, st_ref, cout, b_ref, *, leaky=True):
    """Spatial stage via per-tap 0/1 gather/scatter matmuls (stride-2 convs, transposed
    convs, 8x8 decoder conv):  out = sum_t  Y_t (Cout, Mi) @ S_t^T (Mi, Mo)."""
    mo = st_ref.shape[2]
    yb = y_mix.astype(jnp.bfloat16)                 # single cast for all 9 taps
    acc = jnp.zeros((cout, mo), jnp.float32)
    for t in range(9):                              # unrolled; acc += dot (MRB-friendly)
        acc += jnp.dot(yb[t * cout:(t + 1) * cout, :], st_ref[t],
                       preferred_element_type=jnp.float32)
    return _finish(acc, b_ref, leaky)


def _spatial_roll(y_mix, mask_ref, cout, b_ref, *, leaky=True):
    """Spatial stage for the stride-1 16x16 layers: static lane rolls (XLU) with
    precomputed boundary masks replace the dense (256, 256) gather matmuls."""
    acc = jnp.zeros((cout, HW), jnp.float32)
    for t in range(9):
        dy, dx = t // 3 - 1, t % 3 - 1
        d = dy * IMG_W + dx                         # flattened gather offset of tap t
        y_t = y_mix[t * cout:(t + 1) * cout, :]
        if d == 0:
            acc += y_t                              # center tap: no shift, mask is all-ones
        else:
            # out[r] = y[r + d] (zero outside the image) == roll(y, -d) * mask_t
            acc += pltpu.roll(y_t, shift=(-d) % HW, axis=1) * mask_ref[t]
    return _finish(acc, b_ref, leaky)


def _segnet_kernel(x_ref,
                   st_enc1, st_enc2, st_up1, st_dec1, st_up2, mask16,
                   w_enc1, w_enc2, w_up1, w_dec1a, w_dec1b, w_up2,
                   w_dec2a, w_dec2b, w_fin,
                   b_enc1, b_enc2, b_up1, b_dec1, b_up2, b_dec2, b_fin,
                   o_ref):
    for i in range(x_ref.shape[0]):                 # unrolled loop over the batch block
        x0 = x_ref[i].astype(jnp.float32)                                   # (1, 256)

        # encoder (stride-2 convs): 16x16 -> 8x8 -> 4x4
        x1 = _spatial_mm(_mix([(x0, w_enc1)]), st_enc1, ENC1_C, b_enc1)     # (8, 64)
        x1b = x1.astype(jnp.bfloat16)
        x2 = _spatial_mm(_mix([(x1b, w_enc2)]), st_enc2, ENC2_C, b_enc2)    # (16, 16)

        # decoder: ConvTranspose up + skip-concat conv (concat folded into a mix-sum)
        u1 = _spatial_mm(_mix([(x2.astype(jnp.bfloat16), w_up1)]),
                         st_up1, UP1_C, b_up1)                              # (16, 64)
        d1 = _spatial_mm(_mix([(u1.astype(jnp.bfloat16), w_dec1a),
                               (x1b, w_dec1b)]),
                         st_dec1, DEC1_C, b_dec1)                           # (8, 64)
        u2 = _spatial_mm(_mix([(d1.astype(jnp.bfloat16), w_up2)]),
                         st_up2, UP2_C, b_up2)                              # (8, 256)
        d2 = _spatial_roll(_mix([(u2.astype(jnp.bfloat16), w_dec2a),
                                 (x0, w_dec2b)]),
                           mask16, DEC2_C, b_dec2)                          # (8, 256)

        # final conv (Cout padded 4 -> 8 for sublane-aligned tap slices), no BN / no act
        accf = _spatial_roll(_mix([(d2.astype(jnp.bfloat16), w_fin)]),
                             mask16, FINAL_PAD, None, leaky=False)          # (8, 256)
        logits = accf[:FINAL_C, :] + b_fin[...]                             # (4, 256)

        # Softmax over the channel (sublane) axis; exact division so probabilities
        # are properly normalized (review correctness concern).
        m = jnp.max(logits, axis=0, keepdims=True)
        e = jnp.exp(logits - m)
        p = e / jnp.sum(e, axis=0, keepdims=True)
        # implicit=True: drop the trailing background class before writing out
        o_ref[i] = p[:OUTPUT_CLASSES, :].astype(o_ref.dtype)


# --------------------------------------------------------------------------- #
# Parameters (deterministic synthetic init, PyTorch layouts) and packing
# --------------------------------------------------------------------------- #
def _conv_params(key, cout, cin, k=3, scale=0.1):
    kw_, kb_ = jax.random.split(key)
    w = scale * jax.random.normal(kw_, (cout, cin, k, k), jnp.float32)     # Conv2d layout
    b = scale * jax.random.normal(kb_, (cout,), jnp.float32)
    return w, b


def _convT_params(key, cin, cout, k=3, scale=0.1):
    kw_, kb_ = jax.random.split(key)
    w = scale * jax.random.normal(kw_, (cin, cout, k, k), jnp.float32)     # ConvTranspose2d layout
    b = scale * jax.random.normal(kb_, (cout,), jnp.float32)
    return w, b


def make_params(key):
    # TODO(synk): nitorch's exact default UNet encoder/decoder stacks are not available
    # here; this is a faithful small UNet (stride-2 encoder convs, ConvTranspose decoder
    # with skip concatenation, final conv + Softmax, implicit background class).
    ks = jax.random.split(key, 7)
    return {
        "enc1": _conv_params(ks[0], ENC1_C, INPUT_CHANNELS),          # 16x16 -> 8x8
        "enc2": _conv_params(ks[1], ENC2_C, ENC1_C),                  # 8x8   -> 4x4
        "up1": _convT_params(ks[2], ENC2_C, UP1_C),                   # 4x4   -> 8x8
        "dec1": _conv_params(ks[3], DEC1_C, UP1_C + ENC1_C),          # concat skip enc1
        "up2": _convT_params(ks[4], DEC1_C, UP2_C),                   # 8x8   -> 16x16
        "dec2": _conv_params(ks[5], DEC2_C, UP2_C + INPUT_CHANNELS),  # concat skip input
        "final": _conv_params(ks[6], FINAL_C, DEC2_C),                # implicit => K+1 channels
    }


def pack_params(params):
    """Fold eval-mode BN into weights/bias, concatenate the 9 tap weights into one
    (9*Cout, Cin) bf16 matrix per layer (channels-major mix), transpose the spatial
    gather matrices to (Mi, Mo), build roll boundary masks.  Done outside jit, once."""
    # TODO(synk): real BN running stats / affine params are not plumbed through; this
    # folds the fresh eval-mode stats (mean=0, var=1, gamma=1, beta=0). Real stats
    # would fold identically: scale=gamma/sqrt(var+eps), shift=beta-mean*scale.
    bn_scale = 1.0 / np.sqrt(1.0 + BN_EPS)

    def conv_w(w, bn=True):          # (Cout, Cin, 3, 3) -> (9*Cout, Cin), tap-major rows
        cout, cin = w.shape[0], w.shape[1]
        m = jnp.transpose(w, (2, 3, 0, 1)).reshape(9 * cout, cin)
        return ((m * bn_scale) if bn else m).astype(jnp.bfloat16)

    def convT_w(w, bn=True):         # (Cin, Cout, 3, 3) -> (9*Cout, Cin), tap-major rows
        cin, cout = w.shape[0], w.shape[1]
        m = jnp.transpose(w, (2, 3, 1, 0)).reshape(9 * cout, cin)
        return ((m * bn_scale) if bn else m).astype(jnp.bfloat16)

    def bias(b, bn=True):            # (Cout,) -> (Cout, 1) column (broadcast over lanes)
        b = (b * bn_scale) if bn else b
        return b.reshape(-1, 1).astype(jnp.float32)

    def st(s):                       # (9, Mo, Mi) -> (9, Mi, Mo) bf16 (right-multiply form)
        return jnp.asarray(np.transpose(s, (0, 2, 1)), jnp.bfloat16)

    w_dec1 = conv_w(params["dec1"][0])     # (72, 24): columns = [u1 (16) | skip x1 (8)]
    w_dec2 = conv_w(params["dec2"][0])     # (72, 9):  columns = [u2 (8)  | skip x0 (1)]

    # final conv: pad Cout 4 -> 8 per tap so in-kernel tap slices stay sublane-aligned
    wf = jnp.transpose(params["final"][0], (2, 3, 0, 1))                  # (3, 3, 4, 8)
    wf = jnp.pad(wf, ((0, 0), (0, 0), (0, FINAL_PAD - FINAL_C), (0, 0)))  # (3, 3, 8, 8)
    w_fin = wf.reshape(9 * FINAL_PAD, DEC2_C).astype(jnp.bfloat16)

    return (
        # spatial gather/scatter matrices (transposed), bf16
        st(_conv_taps(IMG_H, IMG_W, 2)),      # enc1: 16 -> 8     (9, 256, 64)
        st(_conv_taps(8, 8, 2)),              # enc2: 8  -> 4     (9, 64, 16)
        st(_convT_taps(4, 4)),                # up1:  4  -> 8     (9, 16, 64)
        st(_conv_taps(8, 8, 1)),              # dec1: 8x8 stride1 (9, 64, 64)
        st(_convT_taps(8, 8)),                # up2:  8  -> 16    (9, 64, 256)
        jnp.asarray(_roll_masks(), jnp.float32),   # 16x16 stride-1 boundary masks (9, 1, 256)
        # weights (BN folded, tap-concatenated), bf16
        conv_w(params["enc1"][0]),
        conv_w(params["enc2"][0]),
        convT_w(params["up1"][0]),
        w_dec1[:, :UP1_C], w_dec1[:, UP1_C:],      # split for folded skip concat
        convT_w(params["up2"][0]),
        w_dec2[:, :UP2_C], w_dec2[:, UP2_C:],      # split for folded skip concat
        w_fin,
        # biases (BN folded), f32 columns
        bias(params["enc1"][1]), bias(params["enc2"][1]), bias(params["up1"][1]),
        bias(params["dec1"][1]), bias(params["up2"][1]), bias(params["dec2"][1]),
        bias(params["final"][1], bn=False),
    )


# --------------------------------------------------------------------------- #
# Forward wrapper (NCHW in / NCHW out, like the PyTorch module)
# --------------------------------------------------------------------------- #
def _const_spec(arr):
    nd = arr.ndim
    return pl.BlockSpec(arr.shape, lambda b, _nd=nd: (0,) * _nd)


@jax.jit
def segnet_forward(image_nchw, packed):
    """SegNet.forward(image, ref=None): UNet -> Softmax -> drop implicit background.
    Kernel I/O stays channels-major (N, C, H*W): only reshapes, no NCHW<->NHWC transposes."""
    n = image_nchw.shape[0]
    x = image_nchw.reshape(n, INPUT_CHANNELS, HW).astype(jnp.float32)

    bb = min(n, BATCH_BLOCK)                      # images per grid step
    n_pad = -(-n // bb) * bb
    if n_pad != n:
        x = jnp.pad(x, ((0, n_pad - n), (0, 0), (0, 0)))

    in_specs = [pl.BlockSpec((bb, INPUT_CHANNELS, HW), lambda b: (b, 0, 0))]
    in_specs += [_const_spec(a) for a in packed]

    out = pl.pallas_call(
        _segnet_kernel,
        out_shape=jax.ShapeDtypeStruct((n_pad, OUTPUT_CLASSES, HW), jnp.float32),
        grid_spec=pltpu.PrefetchScalarGridSpec(
            num_scalar_prefetch=0,
            grid=(n_pad // bb,),                  # one grid step per batch block
            in_specs=in_specs,
            out_specs=pl.BlockSpec((bb, OUTPUT_CLASSES, HW), lambda b: (b, 0, 0)),
        ),
        compiler_params=pltpu.CompilerParams(
            dimension_semantics=("parallel",)),
    )(x, *packed)

    return out[:n].reshape(n, OUTPUT_CLASSES, IMG_H, IMG_W)


if __name__ == "__main__":
    key = jax.random.PRNGKey(0)
    k_img, k_par = jax.random.split(key)
    image = jax.random.normal(k_img, (2, INPUT_CHANNELS, IMG_H, IMG_W), jnp.float32)
    params = make_params(k_par)
    packed = pack_params(params)          # one-time: fold BN, concat taps, build S^T / masks

    out = segnet_forward(image, packed)
    out = jax.block_until_ready(out)

    assert out.shape == (2, OUTPUT_CLASSES, IMG_H, IMG_W), out.shape
    assert out.dtype == jnp.float32
    assert bool(jnp.all(jnp.isfinite(out)))
    # softmax probabilities (with the implicit class dropped) must be in (0, 1)
    assert bool(jnp.all(out > 0.0)) and bool(jnp.all(out < 1.0))
    print("KERNEL_OK")
</pallas_src>

<mosaic_0001>
module attributes {stable_mosaic.version = 11 : i64} {
  func.func @_segnet_kernel(%arg0: i32, %arg1: memref<2x1x256xf32, #tpu.memory_space<vmem>>, %arg2: memref<9x256x64xbf16, #tpu.memory_space<vmem>>, %arg3: memref<9x64x16xbf16, #tpu.memory_space<vmem>>, %arg4: memref<9x16x64xbf16, #tpu.memory_space<vmem>>, %arg5: memref<9x64x64xbf16, #tpu.memory_space<vmem>>, %arg6: memref<9x64x256xbf16, #tpu.memory_space<vmem>>, %arg7: memref<9x1x256xf32, #tpu.memory_space<vmem>>, %arg8: memref<72x1xbf16, #tpu.memory_space<vmem>>, %arg9: memref<144x8xbf16, #tpu.memory_space<vmem>>, %arg10: memref<144x16xbf16, #tpu.memory_space<vmem>>, %arg11: memref<72x16xbf16, #tpu.memory_space<vmem>>, %arg12: memref<72x8xbf16, #tpu.memory_space<vmem>>, %arg13: memref<72x8xbf16, #tpu.memory_space<vmem>>, %arg14: memref<72x8xbf16, #tpu.memory_space<vmem>>, %arg15: memref<72x1xbf16, #tpu.memory_space<vmem>>, %arg16: memref<72x8xbf16, #tpu.memory_space<vmem>>, %arg17: memref<8x1xf32, #tpu.memory_space<vmem>>, %arg18: memref<16x1xf32, #tpu.memory_space<vmem>>, %arg19: memref<16x1xf32, #tpu.memory_space<vmem>>, %arg20: memref<8x1xf32, #tpu.memory_space<vmem>>, %arg21: memref<8x1xf32, #tpu.memory_space<vmem>>, %arg22: memref<8x1xf32, #tpu.memory_space<vmem>>, %arg23: memref<4x1xf32, #tpu.memory_space<vmem>>, %arg24: memref<2x3x256xf32, #tpu.memory_space<vmem>>) attributes {dimension_semantics = [#tpu.dimension_semantics<parallel>], iteration_bounds = array<i64: 1>, scalar_prefetch = 0 : i64, scratch_operands = 0 : i64, tpu.core_type = #tpu.core_type<tc>, window_params = [{transform_indices = @transform_0, window_bounds = array<i64: 2, 1, 256>}, {pipeline_mode = #tpu.pipeline_mode<synchronous>, transform_indices = @transform_1, window_bounds = array<i64: 9, 256, 64>}, {pipeline_mode = #tpu.pipeline_mode<synchronous>, transform_indices = @transform_2, window_bounds = array<i64: 9, 64, 16>}, {pipeline_mode = #tpu.pipeline_mode<synchronous>, transform_indices = @transform_3, window_bounds = array<i64: 9, 16, 64>}, {pipeline_mode = #tpu.pipeline_mode<synchronous>, transform_indices = @transform_4, window_bounds = array<i64: 9, 64, 64>}, {pipeline_mode = #tpu.pipeline_mode<synchronous>, transform_indices = @transform_5, window_bounds = array<i64: 9, 64, 256>}, {pipeline_mode = #tpu.pipeline_mode<synchronous>, transform_indices = @transform_6, window_bounds = array<i64: 9, 1, 256>}, {pipeline_mode = #tpu.pipeline_mode<synchronous>, transform_indices = @transform_7, window_bounds = array<i64: 72, 1>}, {pipeline_mode = #tpu.pipeline_mode<synchronous>, transform_indices = @transform_8, window_bounds = array<i64: 144, 8>}, {pipeline_mode = #tpu.pipeline_mode<synchronous>, transform_indices = @transform_9, window_bounds = array<i64: 144, 16>}, {pipeline_mode = #tpu.pipeline_mode<synchronous>, transform_indices = @transform_10, window_bounds = array<i64: 72, 16>}, {pipeline_mode = #tpu.pipeline_mode<synchronous>, transform_indices = @transform_11, window_bounds = array<i64: 72, 8>}, {pipeline_mode = #tpu.pipeline_mode<synchronous>, transform_indices = @transform_12, window_bounds = array<i64: 72, 8>}, {pipeline_mode = #tpu.pipeline_mode<synchronous>, transform_indices = @transform_13, window_bounds = array<i64: 72, 8>}, {pipeline_mode = #tpu.pipeline_mode<synchronous>, transform_indices = @transform_14, window_bounds = array<i64: 72, 1>}, {pipeline_mode = #tpu.pipeline_mode<synchronous>, transform_indices = @transform_15, window_bounds = array<i64: 72, 8>}, {pipeline_mode = #tpu.pipeline_mode<synchronous>, transform_indices = @transform_16, window_bounds = array<i64: 8, 1>}, {pipeline_mode = #tpu.pipeline_mode<synchronous>, transform_indices = @transform_17, window_bounds = array<i64: 16, 1>}, {pipeline_mode = #tpu.pipeline_mode<synchronous>, transform_indices = @transform_18, window_bounds = array<i64: 16, 1>}, {pipeline_mode = #tpu.pipeline_mode<synchronous>, transform_indices = @transform_19, window_bounds = array<i64: 8, 1>}, {pipeline_mode = #tpu.pipeline_mode<synchronous>, transform_indices = @transform_20, window_bounds = array<i64: 8, 1>}, {pipeline_mode = #tpu.pipeline_mode<synchronous>, transform_indices = @transform_21, window_bounds = array<i64: 8, 1>}, {pipeline_mode = #tpu.pipeline_mode<synchronous>, transform_indices = @transform_22, window_bounds = array<i64: 4, 1>}, {transform_indices = @transform_23, window_bounds = array<i64: 2, 3, 256>}]} {
    %c0 = arith.constant 0 : index
    %c0_0 = arith.constant 0 : index
    %c0_1 = arith.constant 0 : index
    %0 = vector.load %arg1[%c0, %c0_0, %c0_1] : memref<2x1x256xf32, #tpu.memory_space<vmem>>, vector<1x1x256xf32>
    %1 = vector.shape_cast %0 : vector<1x1x256xf32> to vector<1x256xf32>
    %c0_2 = arith.constant 0 : index
    %c0_3 = arith.constant 0 : index
    %2 = vector.load %arg8[%c0_2, %c0_3] : memref<72x1xbf16, #tpu.memory_space<vmem>>, vector<72x1xbf16>
    %3 = arith.extf %2 : vector<72x1xbf16> to vector<72x1xf32>
    %4 = vector.broadcast %3 : vector<72x1xf32> to vector<72x256xf32>
    %5 = vector.broadcast %1 : vector<1x256xf32> to vector<72x256xf32>
    %6 = arith.mulf %4, %5 : vector<72x256xf32>
    %7 = arith.truncf %6 : vector<72x256xf32> to vector<72x256xbf16>
    %cst = arith.constant 0.000000e+00 : f32
    %8 = vector.broadcast %cst : f32 to vector<8x64xf32>
    %9 = vector.extract_strided_slice %7 {offsets = [0, 0], sizes = [8, 256], strides = [1, 1]} : vector<72x256xbf16> to vector<8x256xbf16>
    %c0_4 = arith.constant 0 : index
    %c0_5 = arith.constant 0 : index
    %c0_6 = arith.constant 0 : index
    %10 = vector.load %arg2[%c0_4, %c0_5, %c0_6] : memref<9x256x64xbf16, #tpu.memory_space<vmem>>, vector<1x256x64xbf16>
    %11 = vector.shape_cast %10 : vector<1x256x64xbf16> to vector<256x64xbf16>
    %cst_7 = arith.constant dense<0.000000e+00> : vector<8x64xf32>
    %12 = tpu.matmul %9, %11, %cst_7 {dimension_numbers = #tpu.dot_dimension_numbers<[1], [0], [0], [1], [0, 0, 1, 1], [], []>} : vector<8x256xbf16>, vector<256x64xbf16>, vector<8x64xf32> -> vector<8x64xf32>
    %13 = arith.addf %8, %12 : vector<8x64xf32>
    %14 = vector.extract_strided_slice %7 {offsets = [8, 0], sizes = [8, 256], strides = [1, 1]} : vector<72x256xbf16> to vector<8x256xbf16>
    %c1 = arith.constant 1 : index
    %c0_8 = arith.constant 0 : index
    %c0_9 = arith.constant 0 : index
    %15 = vector.load %arg2[%c1, %c0_8, %c0_9] : memref<9x256x64xbf16, #tpu.memory_space<vmem>>, vector<1x256x64xbf16>
    %16 = vector.shape_cast %15 : vector<1x256x64xbf16> to vector<256x64xbf16>
    %cst_10 = arith.constant dense<0.000000e+00> : vector<8x64xf32>
    %17 = tpu.matmul %14, %16, %cst_10 {dimension_numbers = #tpu.dot_dimension_numbers<[1], [0], [0], [1], [0, 0, 1, 1], [], []>} : vector<8x256xbf16>, vector<256x64xbf16>, vector<8x64xf32> -> vector<8x64xf32>
    %18 = arith.addf %13, %17 : vector<8x64xf32>
    %19 = vector.extract_strided_slice %7 {offsets = [16, 0], sizes = [8, 256], strides = [1, 1]} : vector<72x256xbf16> to vector<8x256xbf16>
    %c2 = arith.constant 2 : index
    %c0_11 = arith.constant 0 : index
    %c0_12 = arith.constant 0 : index
    %20 = vector.load %arg2[%c2, %c0_11, %c0_12] : memref<9x256x64xbf16, #tpu.memory_space<vmem>>, vector<1x256x64xbf16>
    %21 = vector.shape_cast %20 : vector<1x256x64xbf16> to vector<256x64xbf16>
    %cst_13 = arith.constant dense<0.000000e+00> : vector<8x64xf32>
    %22 = tpu.matmul %19, %21, %cst_13 {dimension_numbers = #tpu.dot_dimension_numbers<[1], [0], [0], [1], [0, 0, 1, 1], [], []>} : vector<8x256xbf16>, vector<256x64xbf16>, vector<8x64xf32> -> vector<8x64xf32>
    %23 = arith.addf %18, %22 : vector<8x64xf32>
    %24 = vector.extract_strided_slice %7 {offsets = [24, 0], sizes = [8, 256], strides = [1, 1]} : vector<72x256xbf16> to vector<8x256xbf16>
    %c3 = arith.constant 3 : index
    %c0_14 = arith.constant 0 : index
    %c0_15 = arith.constant 0 : index
    %25 = vector.load %arg2[%c3, %c0_14, %c0_15] : memref<9x256x64xbf16, #tpu.memory_space<vmem>>, vector<1x256x64xbf16>
    %26 = vector.shape_cast %25 : vector<1x256x64xbf16> to vector<256x64xbf16>
    %cst_16 = arith.constant dense<0.000000e+00> : vector<8x64xf32>
    %27 = tpu.matmul %24, %26, %cst_16 {dimension_numbers = #tpu.dot_dimension_numbers<[1], [0], [0], [1], [0, 0, 1, 1], [], []>} : vector<8x256xbf16>, vector<256x64xbf16>, vector<8x64xf32> -> vector<8x64xf32>
    %28 = arith.addf %23, %27 : vector<8x64xf32>
    %29 = vector.extract_strided_slice %7 {offsets = [32, 0], sizes = [8, 256], strides = [1, 1]} : vector<72x256xbf16> to vector<8x256xbf16>
    %c4 = arith.constant 4 : index
    %c0_17 = arith.constant 0 : index
    %c0_18 = arith.constant 0 : index
    %30 = vector.load %arg2[%c4, %c0_17, %c0_18] : memref<9x256x64xbf16, #tpu.memory_space<vmem>>, vector<1x256x64xbf16>
    %31 = vector.shape_cast %30 : vector<1x256x64xbf16> to vector<256x64xbf16>
    %cst_19 = arith.constant dense<0.000000e+00> : vector<8x64xf32>
    %32 = tpu.matmul %29, %31, %cst_19 {dimension_numbers = #tpu.dot_dimension_numbers<[1], [0], [0], [1], [0, 0, 1, 1], [], []>} : vector<8x256xbf16>, vector<256x64xbf16>, vector<8x64xf32> -> vector<8x64xf32>
    %33 = arith.addf %28, %32 : vector<8x64xf32>
    %34 = vector.extract_strided_slice %7 {offsets = [40, 0], sizes = [8, 256], strides = [1, 1]} : vector<72x256xbf16> to vector<8x256xbf16>
    %c5 = arith.constant 5 : index
    %c0_20 = arith.constant 0 : index
    %c0_21 = arith.constant 0 : index
    %35 = vector.load %arg2[%c5, %c0_20, %c0_21] : memref<9x256x64xbf16, #tpu.memory_space<vmem>>, vector<1x256x64xbf16>
    %36 = vector.shape_cast %35 : vector<1x256x64xbf16> to vector<256x64xbf16>
    %cst_22 = arith.constant dense<0.000000e+00> : vector<8x64xf32>
    %37 = tpu.matmul %34, %36, %cst_22 {dimension_numbers = #tpu.dot_dimension_numbers<[1], [0], [0], [1], [0, 0, 1, 1], [], []>} : vector<8x256xbf16>, vector<256x64xbf16>, vector<8x64xf32> -> vector<8x64xf32>
    %38 = arith.addf %33, %37 : vector<8x64xf32>
    %39 = vector.extract_strided_slice %7 {offsets = [48, 0], sizes = [8, 256], strides = [1, 1]} : vector<72x256xbf16> to vector<8x256xbf16>
    %c6 = arith.constant 6 : index
    %c0_23 = arith.constant 0 : index
    %c0_24 = arith.constant 0 : index
    %40 = vector.load %arg2[%c6, %c0_23, %c0_24] : memref<9x256x64xbf16, #tpu.memory_space<vmem>>, vector<1x256x64xbf16>
    %41 = vector.shape_cast %40 : vector<1x256x64xbf16> to vector<256x64xbf16>
    %cst_25 = arith.constant dense<0.000000e+00> : vector<8x64xf32>
    %42 = tpu.matmul %39, %41, %cst_25 {dimension_numbers = #tpu.dot_dimension_numbers<[1], [0], [0], [1], [0, 0, 1, 1], [], []>} : vector<8x256xbf16>, vector<256x64xbf16>, vector<8x64xf32> -> vector<8x64xf32>
    %43 = arith.addf %38, %42 : vector<8x64xf32>
    %44 = vector.extract_strided_slice %7 {offsets = [56, 0], sizes = [8, 256], strides = [1, 1]} : vector<72x256xbf16> to vector<8x256xbf16>
    %c7 = arith.constant 7 : index
    %c0_26 = arith.constant 0 : index
    %c0_27 = arith.constant 0 : index
    %45 = vector.load %arg2[%c7, %c0_26, %c0_27] : memref<9x256x64xbf16, #tpu.memory_space<vmem>>, vector<1x256x64xbf16>
    %46 = vector.shape_cast %45 : vector<1x256x64xbf16> to vector<256x64xbf16>
    %cst_28 = arith.constant dense<0.000000e+00> : vector<8x64xf32>
    %47 = tpu.matmul %44, %46, %cst_28 {dimension_numbers = #tpu.dot_dimension_numbers<[1], [0], [0], [1], [0, 0, 1, 1], [], []>} : vector<8x256xbf16>, vector<256x64xbf16>, vector<8x64xf32> -> vector<8x64xf32>
    %48 = arith.addf %43, %47 : vector<8x64xf32>
    %49 = vector.extract_strided_slice %7 {offsets = [64, 0], sizes = [8, 256], strides = [1, 1]} : vector<72x256xbf16> to vector<8x256xbf16>
    %c8 = arith.constant 8 : index
    %c0_29 = arith.constant 0 : index
    %c0_30 = arith.constant 0 : index
    %50 = vector.load %arg2[%c8, %c0_29, %c0_30] : memref<9x256x64xbf16, #tpu.memory_space<vmem>>, vector<1x256x64xbf16>
    %51 = vector.shape_cast %50 : vector<1x256x64xbf16> to vector<256x64xbf16>
    %cst_31 = arith.constant dense<0.000000e+00> : vector<8x64xf32>
    %52 = tpu.matmul %49, %51, %cst_31 {dimension_numbers = #tpu.dot_dimension_numbers<[1], [0], [0], [1], [0, 0, 1, 1], [], []>} : vector<8x256xbf16>, vector<256x64xbf16>, vector<8x64xf32> -> vector<8x64xf32>
    %53 = arith.addf %48, %52 : vector<8x64xf32>
    %c0_32 = arith.constant 0 : index
    %c0_33 = arith.constant 0 : index
    %54 = vector.load %arg17[%c0_32, %c0_33] : memref<8x1xf32, #tpu.memory_space<vmem>>, vector<8x1xf32>
    %55 = vector.broadcast %54 : vector<8x1xf32> to vector<8x64xf32>
    %56 = arith.addf %53, %55 : vector<8x64xf32>
    %cst_34 = arith.constant 0.000000e+00 : f32
    %57 = vector.broadcast %cst_34 : f32 to vector<8x64xf32>
    %58 = arith.cmpf oge, %56, %57 : vector<8x64xf32>
    %cst_35 = arith.constant 2.000000e-01 : f32
    %59 = vector.broadcast %cst_35 : f32 to vector<8x64xf32>
    %60 = arith.mulf %59, %56 : vector<8x64xf32>
    %61 = arith.select %58, %56, %60 : vector<8x64xi1>, vector<8x64xf32>
    %62 = arith.truncf %61 : vector<8x64xf32> to vector<8x64xbf16>
    %c0_36 = arith.constant 0 : index
    %c0_37 = arith.constant 0 : index
    %63 = vector.load %arg9[%c0_36, %c0_37] : memref<144x8xbf16, #tpu.memory_space<vmem>>, vector<144x8xbf16>
    %cst_38 = arith.constant dense<0.000000e+00> : vector<144x64xf32>
    %64 = tpu.matmul %63, %62, %cst_38 {dimension_numbers = #tpu.dot_dimension_numbers<[1], [0], [0], [1], [0, 0, 1, 1], [], []>} : vector<144x8xbf16>, vector<8x64xbf16>, vector<144x64xf32> -> vector<144x64xf32>
    %65 = arith.truncf %64 : vector<144x64xf32> to vector<144x64xbf16>
    %cst_39 = arith.constant 0.000000e+00 : f32
    %66 = vector.broadcast %cst_39 : f32 to vector<16x16xf32>
    %67 = vector.extract_strided_slice %65 {offsets = [0, 0], sizes = [16, 64], strides = [1, 1]} : vector<144x64xbf16> to vector<16x64xbf16>
    %c0_40 = arith.constant 0 : index
    %c0_41 = arith.constant 0 : index
    %c0_42 = arith.constant 0 : index
    %68 = vector.load %arg3[%c0_40, %c0_41, %c0_42] : memref<9x64x16xbf16, #tpu.memory_space<vmem>>, vector<1x64x16xbf16>
    %69 = vector.shape_cast %68 : vector<1x64x16xbf16> to vector<64x16xbf16>
    %cst_43 = arith.constant dense<0.000000e+00> : vector<16x16xf32>
    %70 = tpu.matmul %67, %69, %cst_43 {dimension_numbers = #tpu.dot_dimension_numbers<[1], [0], [0], [1], [0, 0, 1, 1], [], []>} : vector<16x64xbf16>, vector<64x16xbf16>, vector<16x16xf32> -> vector<16x16xf32>
    %71 = arith.addf %66, %70 : vector<16x16xf32>
    %72 = vector.extract_strided_slice %65 {offsets = [16, 0], sizes = [16, 64], strides = [1, 1]} : vector<144x64xbf16> to vector<16x64xbf16>
    %c1_44 = arith.constant 1 : index
    %c0_45 = arith.constant 0 : index
    %c0_46 = arith.constant 0 : index
    %73 = vector.load %arg3[%c1_44, %c0_45, %c0_46] : memref<9x64x16xbf16, #tpu.memory_space<vmem>>, vector<1x64x16xbf16>
    %74 = vector.shape_cast %73 : vector<1x64x16xbf16> to vector<64x16xbf16>
    %cst_47 = arith.constant dense<0.000000e+00> : vector<16x16xf32>
    %75 = tpu.matmul %72, %74, %cst_47 {dimension_numbers = #tpu.dot_dimension_numbers<[1], [0], [0], [1], [0, 0, 1, 1], [], []>} : vector<16x64xbf16>, vector<64x16xbf16>, vector<16x16xf32> -> vector<16x16xf32>
    %76 = arith.addf %71, %75 : vector<16x16xf32>
    %77 = vector.extract_strided_slice %65 {offsets = [32, 0], sizes = [16, 64], strides = [1, 1]} : vector<144x64xbf16> to vector<16x64xbf16>
    %c2_48 = arith.constant 2 : index
    %c0_49 = arith.constant 0 : index
    %c0_50 = arith.constant 0 : index
    %78 = vector.load %arg3[%c2_48, %c0_49, %c0_50] : memref<9x64x16xbf16, #tpu.memory_space<vmem>>, vector<1x64x16xbf16>
    %79 = vector.shape_cast %78 : vector<1x64x16xbf16> to vector<64x16xbf16>
    %cst_51 = arith.constant dense<0.000000e+00> : vector<16x16xf32>
    %80 = tpu.matmul %77, %79, %cst_51 {dimension_numbers = #tpu.dot_dimension_numbers<[1], [0], [0], [1], [0, 0, 1, 1], [], []>} : vector<16x64xbf16>, vector<64x16xbf16>, vector<16x16xf32> -> vector<16x16xf32>
    %81 = arith.addf %76, %80 : vector<16x16xf32>
    %82 = vector.extract_strided_slice %65 {offsets = [48, 0], sizes = [16, 64], strides = [1, 1]} : vector<144x64xbf16> to vector<16x64xbf16>
    %c3_52 = arith.constant 3 : index
    %c0_53 = arith.constant 0 : index
    %c0_54 = arith.constant 0 : index
    %83 = vector.load %arg3[%c3_52, %c0_53, %c0_54] : memref<9x64x16xbf16, #tpu.memory_space<vmem>>, vector<1x64x16xbf16>
    %84 = vector.shape_cast %83 : vector<1x64x16xbf16> to vector<64x16xbf16>
    %cst_55 = arith.constant dense<0.000000e+00> : vector<16x16xf32>
    %85 = tpu.matmul %82, %84, %cst_55 {dimension_numbers = #tpu.dot_dimension_numbers<[1], [0], [0], [1], [0, 0, 1, 1], [], []>} : vector<16x64xbf16>, vector<64x16xbf16>, vector<16x16xf32> -> vector<16x16xf32>
    %86 = arith.addf %81, %85 : vector<16x16xf32>
    %87 = vector.extract_strided_slice %65 {offsets = [64, 0], sizes = [16, 64], strides = [1, 1]} : vector<144x64xbf16> to vector<16x64xbf16>
    %c4_56 = arith.constant 4 : index
    %c0_57 = arith.constant 0 : index
    %c0_58 = arith.constant 0 : index
    %88 = vector.load %arg3[%c4_56, %c0_57, %c0_58] : memref<9x64x16xbf16, #tpu.memory_space<vmem>>, vector<1x64x16xbf16>
    %89 = vector.shape_cast %88 : vector<1x64x16xbf16> to vector<64x16xbf16>
    %cst_59 = arith.constant dense<0.000000e+00> : vector<16x16xf32>
    %90 = tpu.matmul %87, %89, %cst_59 {dimension_numbers = #tpu.dot_dimension_numbers<[1], [0], [0], [1], [0, 0, 1, 1], [], []>} : vector<16x64xbf16>, vector<64x16xbf16>, vector<16x16xf32> -> vector<16x16xf32>
    %91 = arith.addf %86, %90 : vector<16x16xf32>
    %92 = vector.extract_strided_slice %65 {offsets = [80, 0], sizes = [16, 64], strides = [1, 1]} : vector<144x64xbf16> to vector<16x64xbf16>
    %c5_60 = arith.constant 5 : index
    %c0_61 = arith.constant 0 : index
    %c0_62 = arith.constant 0 : index
    %93 = vector.load %arg3[%c5_60, %c0_61, %c0_62] : memref<9x64x16xbf16, #tpu.memory_space<vmem>>, vector<1x64x16xbf16>
    %94 = vector.shape_cast %93 : vector<1x64x16xbf16> to vector<64x16xbf16>
    %cst_63 = arith.constant dense<0.000000e+00> : vector<16x16xf32>
    %95 = tpu.matmul %92, %94, %cst_63 {dimension_numbers = #tpu.dot_dimension_numbers<[1], [0], [0], [1], [0, 0, 1, 1], [], []>} : vector<16x64xbf16>, vector<64x16xbf16>, vector<16x16xf32> -> vector<16x16xf32>
    %96 = arith.addf %91, %95 : vector<16x16xf32>
    %97 = vector.extract_strided_slice %65 {offsets = [96, 0], sizes = [16, 64], strides = [1, 1]} : vector<144x64xbf16> to vector<16x64xbf16>
    %c6_64 = arith.constant 6 : index
    %c0_65 = arith.constant 0 : index
    %c0_66 = arith.constant 0 : index
    %98 = vector.load %arg3[%c6_64, %c0_65, %c0_66] : memref<9x64x16xbf16, #tpu.memory_space<vmem>>, vector<1x64x16xbf16>
    %99 = vector.shape_cast %98 : vector<1x64x16xbf16> to vector<64x16xbf16>
    %cst_67 = arith.constant dense<0.000000e+00> : vector<16x16xf32>
    %100 = tpu.matmul %97, %99, %cst_67 {dimension_numbers = #tpu.dot_dimension_numbers<[1], [0], [0], [1], [0, 0, 1, 1], [], []>} : vector<16x64xbf16>, vector<64x16xbf16>, vector<16x16xf32> -> vector<16x16xf32>
    %101 = arith.addf %96, %100 : vector<16x16xf32>
    %102 = vector.extract_strided_slice %65 {offsets = [112, 0], sizes = [16, 64], strides = [1, 1]} : vector<144x64xbf16> to vector<16x64xbf16>
    %c7_68 = arith.constant 7 : index
    %c0_69 = arith.constant 0 : index
    %c0_70 = arith.constant 0 : index
    %103 = vector.load %arg3[%c7_68, %c0_69, %c0_70] : memref<9x64x16xbf16, #tpu.memory_space<vmem>>, vector<1x64x16xbf16>
    %104 = vector.shape_cast %103 : vector<1x64x16xbf16> to vector<64x16xbf16>
    %cst_71 = arith.constant dense<0.000000e+00> : vector<16x16xf32>
    %105 = tpu.matmul %102, %104, %cst_71 {dimension_numbers = #tpu.dot_dimension_numbers<[1], [0], [0], [1], [0, 0, 1, 1], [], []>} : vector<16x64xbf16>, vector<64x16xbf16>, vector<16x16xf32> -> vector<16x16xf32>
    %106 = arith.addf %101, %105 : vector<16x16xf32>
    %107 = vector.extract_strided_slice %65 {offsets = [128, 0], sizes = [16, 64], strides = [1, 1]} : vector<144x64xbf16> to vector<16x64xbf16>
    %c8_72 = arith.constant 8 : index
    %c0_73 = arith.constant 0 : index
    %c0_74 = arith.constant 0 : index
    %108 = vector.load %arg3[%c8_72, %c0_73, %c0_74] : memref<9x64x16xbf16, #tpu.memory_space<vmem>>, vector<1x64x16xbf16>
    %109 = vector.shape_cast %108 : vector<1x64x16xbf16> to vector<64x16xbf16>
    %cst_75 = arith.constant dense<0.000000e+00> : vector<16x16xf32>
    %110 = tpu.matmul %107, %109, %cst_75 {dimension_numbers = #tpu.dot_dimension_numbers<[1], [0], [0], [1], [0, 0, 1, 1], [], []>} : vector<16x64xbf16>, vector<64x16xbf16>, vector<16x16xf32> -> vector<16x16xf32>
    %111 = arith.addf %106, %110 : vector<16x16xf32>
    %c0_76 = arith.constant 0 : index
    %c0_77 = arith.constant 0 : index
    %112 = vector.load %arg18[%c0_76, %c0_77] : memref<16x1xf32, #tpu.memory_space<vmem>>, vector<16x1xf32>
    %113 = vector.broadcast %112 : vector<16x1xf32> to vector<16x16xf32>
    %114 = arith.addf %111, %113 : vector<16x16xf32>
    %cst_78 = arith.constant 0.000000e+00 : f32
    %115 = vector.broadcast %cst_78 : f32 to vector<16x16xf32>
    %116 = arith.cmpf oge, %114, %115 : vector<16x16xf32>
    %cst_79 = arith.constant 2.000000e-01 : f32
    %117 = vector.broadcast %cst_79 : f32 to vector<16x16xf32>
    %118 = arith.mulf %117, %114 : vector<16x16xf32>
    %119 = arith.select %116, %114, %118 : vector<16x16xi1>, vector<16x16xf32>
    %120 = arith.truncf %119 : vector<16x16xf32> to vector<16x16xbf16>
    %c0_80 = arith.constant 0 : index
    %c0_81 = arith.constant 0 : index
    %121 = vector.load %arg10[%c0_80, %c0_81] : memref<144x16xbf16, #tpu.memory_space<vmem>>, vector<144x16xbf16>
    %cst_82 = arith.constant dense<0.000000e+00> : vector<144x16xf32>
    %122 = tpu.matmul %121, %120, %cst_82 {dimension_numbers = #tpu.dot_dimension_numbers<[1], [0], [0], [1], [0, 0, 1, 1], [], []>} : vector<144x16xbf16>, vector<16x16xbf16>, vector<144x16xf32> -> vector<144x16xf32>
    %123 = arith.truncf %122 : vector<144x16xf32> to vector<144x16xbf16>
    %cst_83 = arith.constant 0.000000e+00 : f32
    %124 = vector.broadcast %cst_83 : f32 to vector<16x64xf32>
    %125 = vector.extract_strided_slice %123 {offsets = [0, 0], sizes = [16, 16], strides = [1, 1]} : vector<144x16xbf16> to vector<16x16xbf16>
    %c0_84 = arith.constant 0 : index
    %c0_85 = arith.constant 0 : index
    %c0_86 = arith.constant 0 : index
    %126 = vector.load %arg4[%c0_84, %c0_85, %c0_86] : memref<9x16x64xbf16, #tpu.memory_space<vmem>>, vector<1x16x64xbf16>
    %127 = vector.shape_cast %126 : vector<1x16x64xbf16> to vector<16x64xbf16>
    %cst_87 = arith.constant dense<0.000000e+00> : vector<16x64xf32>
    %128 = tpu.matmul %125, %127, %cst_87 {dimension_numbers = #tpu.dot_dimension_numbers<[1], [0], [0], [1], [0, 0, 1, 1], [], []>} : vector<16x16xbf16>, vector<16x64xbf16>, vector<16x64xf32> -> vector<16x64xf32>
    %129 = arith.addf %124, %128 : vector<16x64xf32>
    %130 = vector.extract_strided_slice %123 {offsets = [16, 0], sizes = [16, 16], strides = [1, 1]} : vector<144x16xbf16> to vector<16x16xbf16>
    %c1_88 = arith.constant 1 : index
    %c0_89 = arith.constant 0 : index
    %c0_90 = arith.constant 0 : index
    %131 = vector.load %arg4[%c1_88, %c0_89, %c0_90] : memref<9x16x64xbf16, #tpu.memory_space<vmem>>, vector<1x16x64xbf16>
    %132 = vector.shape_cast %131 : vector<1x16x64xbf16> to vector<16x64xbf16>
    %cst_91 = arith.constant dense<0.000000e+00> : vector<16x64xf32>
    %133 = tpu.matmul %130, %132, %cst_91 {dimension_numbers = #tpu.dot_dimension_numbers<[1], [0], [0], [1], [0, 0, 1, 1], [], []>} : vector<16x16xbf16>, vector<16x64xbf16>, vector<16x64xf32> -> vector<16x64xf32>
    %134 = arith.addf %129, %133 : vector<16x64xf32>
    %135 = vector.extract_strided_slice %123 {offsets = [32, 0], sizes = [16, 16], strides = [1, 1]} : vector<144x16xbf16> to vector<16x16xbf16>
    %c2_92 = arith.constant 2 : index
    %c0_93 = arith.constant 0 : index
    %c0_94 = arith.constant 0 : index
    %136 = vector.load %arg4[%c2_92, %c0_93, %c0_94] : memref<9x16x64xbf16, #tpu.memory_space<vmem>>, vector<1x16x64xbf16>
    %137 = vector.shape_cast %136 : vector<1x16x64xbf16> to vector<16x64xbf16>
    %cst_95 = arith.constant dense<0.000000e+00> : vector<16x64xf32>
    %138 = tpu.matmul %135, %137, %cst_95 {dimension_numbers = #tpu.dot_dimension_numbers<[1], [0], [0], [1], [0, 0, 1, 1], [], []>} : vector<16x16xbf16>, vector<16x64xbf16>, vector<16x64xf32> -> vector<16x64xf32>
    %139 = arith.addf %134, %138 : vector<16x64xf32>
    %140 = vector.extract_strided_slice %123 {offsets = [48, 0], sizes = [16, 16], strides = [1, 1]} : vector<144x16xbf16> to vector<16x16xbf16>
    %c3_96 = arith.constant 3 : index
    %c0_97 = arith.constant 0 : index
    %c0_98 = arith.constant 0 : index
    %141 = vector.load %arg4[%c3_96, %c0_97, %c0_98] : memref<9x16x64xbf16, #tpu.memory_space<vmem>>, vector<1x16x64xbf16>
    %142 = vector.shape_cast %141 : vector<1x16x64xbf16> to vector<16x64xbf16>
    %cst_99 = arith.constant dense<0.000000e+00> : vector<16x64xf32>
    %143 = tpu.matmul %140, %142, %cst_99 {dimension_numbers = #tpu.dot_dimension_numbers<[1], [0], [0], [1], [0, 0, 1, 1], [], []>} : vector<16x16xbf16>, vector<16x64xbf16>, vector<16x64xf32> -> vector<16x64xf32>
    %144 = arith.addf %139, %143 : vector<16x64xf32>
    %145 = vector.extract_strided_slice %123 {offsets = [64, 0], sizes = [16, 16], strides = [1, 1]} : vector<144x16xbf16> to vector<16x16xbf16>
    %c4_100 = arith.constant 4 : index
    %c0_101 = arith.constant 0 : index
    %c0_102 = arith.constant 0 : index
    %146 = vector.load %arg4[%c4_100, %c0_101, %c0_102] : memref<9x16x64xbf16, #tpu.memory_space<vmem>>, vector<1x16x64xbf16>
    %147 = vector.shape_cast %146 : vector<1x16x64xbf16> to vector<16x64xbf16>
    %cst_103 = arith.constant dense<0.000000e+00> : vector<16x64xf32>
    %148 = tpu.matmul %145, %147, %cst_103 {dimension_numbers = #tpu.dot_dimension_numbers<[1], [0], [0], [1], [0, 0, 1, 1], [], []>} : vector<16x16xbf16>, vector<16x64xbf16>, vector<16x64xf32> -> vector<16x64xf32>
    %149 = arith.addf %144, %148 : vector<16x64xf32>
    %150 = vector.extract_strided_slice %123 {offsets = [80, 0], sizes = [16, 16], strides = [1, 1]} : vector<144x16xbf16> to vector<16x16xbf16>
    %c5_104 = arith.constant 5 : index
    %c0_105 = arith.constant 0 : index
    %c0_106 = arith.constant 0 : index
    %151 = vector.load %arg4[%c5_104, %c0_105, %c0_106] : memref<9x16x64xbf16, #tpu.memory_space<vmem>>, vector<1x16x64xbf16>
    %152 = vector.shape_cast %151 : vector<1x16x64xbf16> to vector<16x64xbf16>
    %cst_107 = arith.constant dense<0.000000e+00> : vector<16x64xf32>
    %153 = tpu.matmul %150, %152, %cst_107 {dimension_numbers = #tpu.dot_dimension_numbers<[1], [0], [0], [1], [0, 0, 1, 1], [], []>} : vector<16x16xbf16>, vector<16x64xbf16>, vector<16x64xf32> -> vector<16x64xf32>
    %154 = arith.addf %149, %153 : vector<16x64xf32>
    %155 = vector.extract_strided_slice %123 {offsets = [96, 0], sizes = [16, 16], strides = [1, 1]} : vector<144x16xbf16> to vector<16x16xbf16>
    %c6_108 = arith.constant 6 : index
    %c0_109 = arith.constant 0 : index
    %c0_110 = arith.constant 0 : index
    %156 = vector.load %arg4[%c6_108, %c0_109, %c0_110] : memref<9x16x64xbf16, #tpu.memory_space<vmem>>, vector<1x16x64xbf16>
    %157 = vector.shape_cast %156 : vector<1x16x64xbf16> to vector<16x64xbf16>
    %cst_111 = arith.constant dense<0.000000e+00> : vector<16x64xf32>
    %158 = tpu.matmul %155, %157, %cst_111 {dimension_numbers = #tpu.dot_dimension_numbers<[1], [0], [0], [1], [0, 0, 1, 1], [], []>} : vector<16x16xbf16>, vector<16x64xbf16>, vector<16x64xf32> -> vector<16x64xf32>
    %159 = arith.addf %154, %158 : vector<16x64xf32>
    %160 = vector.extract_strided_slice %123 {offsets = [112, 0], sizes = [16, 16], strides = [1, 1]} : vector<144x16xbf16> to vector<16x16xbf16>
    %c7_112 = arith.constant 7 : index
    %c0_113 = arith.constant 0 : index
    %c0_114 = arith.constant 0 : index
    %161 = vector.load %arg4[%c7_112, %c0_113, %c0_114] : memref<9x16x64xbf16, #tpu.memory_space<vmem>>, vector<1x16x64xbf16>
    %162 = vector.shape_cast %161 : vector<1x16x64xbf16> to vector<16x64xbf16>
    %cst_115 = arith.constant dense<0.000000e+00> : vector<16x64xf32>
    %163 = tpu.matmul %160, %162, %cst_115 {dimension_numbers = #tpu.dot_dimension_numbers<[1], [0], [0], [1], [0, 0, 1, 1], [], []>} : vector<16x16xbf16>, vector<16x64xbf16>, vector<16x64xf32> -> vector<16x64xf32>
    %164 = arith.addf %159, %163 : vector<16x64xf32>
    %165 = vector.extract_strided_slice %123 {offsets = [128, 0], sizes = [16, 16], strides = [1, 1]} : vector<144x16xbf16> to vector<16x16xbf16>
    %c8_116 = arith.constant 8 : index
    %c0_117 = arith.constant 0 : index
    %c0_118 = arith.constant 0 : index
    %166 = vector.load %arg4[%c8_116, %c0_117, %c0_118] : memref<9x16x64xbf16, #tpu.memory_space<vmem>>, vector<1x16x64xbf16>
    %167 = vector.shape_cast %166 : vector<1x16x64xbf16> to vector<16x64xbf16>
    %cst_119 = arith.constant dense<0.000000e+00> : vector<16x64xf32>
    %168 = tpu.matmul %165, %167, %cst_119 {dimension_numbers = #tpu.dot_dimension_numbers<[1], [0], [0], [1], [0, 0, 1, 1], [], []>} : vector<16x16xbf16>, vector<16x64xbf16>, vector<16x64xf32> -> vector<16x64xf32>
    %169 = arith.addf %164, %168 : vector<16x64xf32>
    %c0_120 = arith.constant 0 : index
    %c0_121 = arith.constant 0 : index
    %170 = vector.load %arg19[%c0_120, %c0_121] : memref<16x1xf32, #tpu.memory_space<vmem>>, vector<16x1xf32>
    %171 = vector.broadcast %170 : vector<16x1xf32> to vector<16x64xf32>
    %172 = arith.addf %169, %171 : vector<16x64xf32>
    %cst_122 = arith.constant 0.000000e+00 : f32
    %173 = vector.broadcast %cst_122 : f32 to vector<16x64xf32>
    %174 = arith.cmpf oge, %172, %173 : vector<16x64xf32>
    %cst_123 = arith.constant 2.000000e-01 : f32
    %175 = vector.broadcast %cst_123 : f32 to vector<16x64xf32>
    %176 = arith.mulf %175, %172 : vector<16x64xf32>
    %177 = arith.select %174, %172, %176 : vector<16x64xi1>, vector<16x64xf32>
    %178 = arith.truncf %177 : vector<16x64xf32> to vector<16x64xbf16>
    %c0_124 = arith.constant 0 : index
    %c0_125 = arith.constant 0 : index
    %179 = vector.load %arg11[%c0_124, %c0_125] : memref<72x16xbf16, #tpu.memory_space<vmem>>, vector<72x16xbf16>
    %cst_126 = arith.constant dense<0.000000e+00> : vector<72x64xf32>
    %180 = tpu.matmul %179, %178, %cst_126 {dimension_numbers = #tpu.dot_dimension_numbers<[1], [0], [0], [1], [0, 0, 1, 1], [], []>} : vector<72x16xbf16>, vector<16x64xbf16>, vector<72x64xf32> -> vector<72x64xf32>
    %c0_127 = arith.constant 0 : index
    %c0_128 = arith.constant 0 : index
    %181 = vector.load %arg12[%c0_127, %c0_128] : memref<72x8xbf16, #tpu.memory_space<vmem>>, vector<72x8xbf16>
    %cst_129 = arith.constant dense<0.000000e+00> : vector<72x64xf32>
    %182 = tpu.matmul %181, %62, %cst_129 {dimension_numbers = #tpu.dot_dimension_numbers<[1], [0], [0], [1], [0, 0, 1, 1], [], []>} : vector<72x8xbf16>, vector<8x64xbf16>, vector<72x64xf32> -> vector<72x64xf32>
    %183 = arith.addf %180, %182 : vector<72x64xf32>
    %184 = arith.truncf %183 : vector<72x64xf32> to vector<72x64xbf16>
    %cst_130 = arith.constant 0.000000e+00 : f32
    %185 = vector.broadcast %cst_130 : f32 to vector<8x64xf32>
    %186 = vector.extract_strided_slice %184 {offsets = [0, 0], sizes = [8, 64], strides = [1, 1]} : vector<72x64xbf16> to vector<8x64xbf16>
    %c0_131 = arith.constant 0 : index
    %c0_132 = arith.constant 0 : index
    %c0_133 = arith.constant 0 : index
    %187 = vector.load %arg5[%c0_131, %c0_132, %c0_133] : memref<9x64x64xbf16, #tpu.memory_space<vmem>>, vector<1x64x64xbf16>
    %188 = vector.shape_cast %187 : vector<1x64x64xbf16> to vector<64x64xbf16>
    %cst_134 = arith.constant dense<0.000000e+00> : vector<8x64xf32>
    %189 = tpu.matmul %186, %188, %cst_134 {dimension_numbers = #tpu.dot_dimension_numbers<[1], [0], [0], [1], [0, 0, 1, 1], [], []>} : vector<8x64xbf16>, vector<64x64xbf16>, vector<8x64xf32> -> vector<8x64xf32>
    %190 = arith.addf %185, %189 : vector<8x64xf32>
    %191 = vector.extract_strided_slice %184 {offsets = [8, 0], sizes = [8, 64], strides = [1, 1]} : vector<72x64xbf16> to vector<8x64xbf16>
    %c1_135 = arith.constant 1 : index
    %c0_136 = arith.constant 0 : index
    %c0_137 = arith.constant 0 : index
    %192 = vector.load %arg5[%c1_135, %c0_136, %c0_137] : memref<9x64x64xbf16, #tpu.memory_space<vmem>>, vector<1x64x64xbf16>
    %193 = vector.shape_cast %192 : vector<1x64x64xbf16> to vector<64x64xbf16>
    %cst_138 = arith.constant dense<0.000000e+00> : vector<8x64xf32>
    %194 = tpu.matmul %191, %193, %cst_138 {dimension_numbers = #tpu.dot_dimension_numbers<[1], [0], [0], [1], [0, 0, 1, 1], [], []>} : vector<8x64xbf16>, vector<64x64xbf16>, vector<8x64xf32> -> vector<8x64xf32>
    %195 = arith.addf %190, %194 : vector<8x64xf32>
    %196 = vector.extract_strided_slice %184 {offsets = [16, 0], sizes = [8, 64], strides = [1, 1]} : vector<72x64xbf16> to vector<8x64xbf16>
    %c2_139 = arith.constant 2 : index
    %c0_140 = arith.constant 0 : index
    %c0_141 = arith.constant 0 : index
    %197 = vector.load %arg5[%c2_139, %c0_140, %c0_141] : memref<9x64x64xbf16, #tpu.memory_space<vmem>>, vector<1x64x64xbf16>
    %198 = vector.shape_cast %197 : vector<1x64x64xbf16> to vector<64x64xbf16>
    %cst_142 = arith.constant dense<0.000000e+00> : vector<8x64xf32>
    %199 = tpu.matmul %196, %198, %cst_142 {dimension_numbers = #tpu.dot_dimension_numbers<[1], [0], [0], [1], [0, 0, 1, 1], [], []>} : vector<8x64xbf16>, vector<64x64xbf16>, vector<8x64xf32> -> vector<8x64xf32>
    %200 = arith.addf %195, %199 : vector<8x64xf32>
    %201 = vector.extract_strided_slice %184 {offsets = [24, 0], sizes = [8, 64], strides = [1, 1]} : vector<72x64xbf16> to vector<8x64xbf16>
    %c3_143 = arith.constant 3 : index
    %c0_144 = arith.constant 0 : index
    %c0_145 = arith.constant 0 : index
    %202 = vector.load %arg5[%c3_143, %c0_144, %c0_145] : memref<9x64x64xbf16, #tpu.memory_space<vmem>>, vector<1x64x64xbf16>
    %203 = vector.shape_cast %202 : vector<1x64x64xbf16> to vector<64x64xbf16>
    %cst_146 = arith.constant dense<0.000000e+00> : vector<8x64xf32>
    %204 = tpu.matmul %201, %203, %cst_146 {dimension_numbers = #tpu.dot_dimension_numbers<[1], [0], [0], [1], [0, 0, 1, 1], [], []>} : vector<8x64xbf16>, vector<64x64xbf16>, vector<8x64xf32> -> vector<8x64xf32>
    %205 = arith.addf %200, %204 : vector<8x64xf32>
    %206 = vector.extract_strided_slice %184 {offsets = [32, 0], sizes = [8, 64], strides = [1, 1]} : vector<72x64xbf16> to vector<8x64xbf16>
    %c4_147 = arith.constant 4 : index
    %c0_148 = arith.constant 0 : index
    %c0_149 = arith.constant 0 : index
    %207 = vector.load %arg5[%c4_147, %c0_148, %c0_149] : memref<9x64x64xbf16, #tpu.memory_space<vmem>>, vector<1x64x64xbf16>
    %208 = vector.shape_cast %207 : vector<1x64x64xbf16> to vector<64x64xbf16>
    %cst_150 = arith.constant dense<0.000000e+00> : vector<8x64xf32>
    %209 = tpu.matmul %206, %208, %cst_150 {dimension_numbers = #tpu.dot_dimension_numbers<[1], [0], [0], [1], [0, 0, 1, 1], [], []>} : vector<8x64xbf16>, vector<64x64xbf16>, vector<8x64xf32> -> vector<8x64xf32>
    %210 = arith.addf %205, %209 : vector<8x64xf32>
    %211 = vector.extract_strided_slice %184 {offsets = [40, 0], sizes = [8, 64], strides = [1, 1]} : vector<72x64xbf16> to vector<8x64xbf16>
    %c5_151 = arith.constant 5 : index
    %c0_152 = arith.constant 0 : index
    %c0_153 = arith.constant 0 : index
    %212 = vector.load %arg5[%c5_151, %c0_152, %c0_153] : memref<9x64x64xbf16, #tpu.memory_space<vmem>>, vector<1x64x64xbf16>
    %213 = vector.shape_cast %212 : vector<1x64x64xbf16> to vector<64x64xbf16>
    %cst_154 = arith.constant dense<0.000000e+00> : vector<8x64xf32>
    %214 = tpu.matmul %211, %213, %cst_154 {dimension_numbers = #tpu.dot_dimension_numbers<[1], [0], [0], [1], [0, 0, 1, 1], [], []>} : vector<8x64xbf16>, vector<64x64xbf16>, vector<8x64xf32> -> vector<8x64xf32>
    %215 = arith.addf %210, %214 : vector<8x64xf32>
    %216 = vector.extract_strided_slice %184 {offsets = [48, 0], sizes = [8, 64], strides = [1, 1]} : vector<72x64xbf16> to vector<8x64xbf16>
    %c6_155 = arith.constant 6 : index
    %c0_156 = arith.constant 0 : index
    %c0_157 = arith.constant 0 : index
    %217 = vector.load %arg5[%c6_155, %c0_156, %c0_157] : memref<9x64x64xbf16, #tpu.memory_space<vmem>>, vector<1x64x64xbf16>
    %218 = vector.shape_cast %217 : vector<1x64x64xbf16> to vector<64x64xbf16>
    %cst_158 = arith.constant dense<0.000000e+00> : vector<8x64xf32>
    %219 = tpu.matmul %216, %218, %cst_158 {dimension_numbers = #tpu.dot_dimension_numbers<[1], [0], [0], [1], [0, 0, 1, 1], [], []>} : vector<8x64xbf16>, vector<64x64xbf16>, vector<8x64xf32> -> vector<8x64xf32>
    %220 = arith.addf %215, %219 : vector<8x64xf32>
    %221 = vector.extract_strided_slice %184 {offsets = [56, 0], sizes = [8, 64], strides = [1, 1]} : vector<72x64xbf16> to vector<8x64xbf16>
    %c7_159 = arith.constant 7 : index
    %c0_160 = arith.constant 0 : index
    %c0_161 = arith.constant 0 : index
    %222 = vector.load %arg5[%c7_159, %c0_160, %c0_161] : memref<9x64x64xbf16, #tpu.memory_space<vmem>>, vector<1x64x64xbf16>
    %223 = vector.shape_cast %222 : vector<1x64x64xbf16> to vector<64x64xbf16>
    %cst_162 = arith.constant dense<0.000000e+00> : vector<8x64xf32>
    %224 = tpu.matmul %221, %223, %cst_162 {dimension_numbers = #tpu.dot_dimension_numbers<[1], [0], [0], [1], [0, 0, 1, 1], [], []>} : vector<8x64xbf16>, vector<64x64xbf16>, vector<8x64xf32> -> vector<8x64xf32>
    %225 = arith.addf %220, %224 : vector<8x64xf32>
    %226 = vector.extract_strided_slice %184 {offsets = [64, 0], sizes = [8, 64], strides = [1, 1]} : vector<72x64xbf16> to vector<8x64xbf16>
    %c8_163 = arith.constant 8 : index
    %c0_164 = arith.constant 0 : index
    %c0_165 = arith.constant 0 : index
    %227 = vector.load %arg5[%c8_163, %c0_164, %c0_165] : memref<9x64x64xbf16, #tpu.memory_space<vmem>>, vector<1x64x64xbf16>
    %228 = vector.shape_cast %227 : vector<1x64x64xbf16> to vector<64x64xbf16>
    %cst_166 = arith.constant dense<0.000000e+00> : vector<8x64xf32>
    %229 = tpu.matmul %226, %228, %cst_166 {dimension_numbers = #tpu.dot_dimension_numbers<[1], [0], [0], [1], [0, 0, 1, 1], [], []>} : vector<8x64xbf16>, vector<64x64xbf16>, vector<8x64xf32> -> vector<8x64xf32>
    %230 = arith.addf %225, %229 : vector<8x64xf32>
    %c0_167 = arith.constant 0 : index
    %c0_168 = arith.constant 0 : index
    %231 = vector.load %arg20[%c0_167, %c0_168] : memref<8x1xf32, #tpu.memory_space<vmem>>, vector<8x1xf32>
    %232 = vector.broadcast %231 : vector<8x1xf32> to vector<8x64xf32>
    %233 = arith.addf %230, %232 : vector<8x64xf32>
    %cst_169 = arith.constant 0.000000e+00 : f32
    %234 = vector.broadcast %cst_169 : f32 to vector<8x64xf32>
    %235 = arith.cmpf oge, %233, %234 : vector<8x64xf32>
    %cst_170 = arith.constant 2.000000e-01 : f32
    %236 = vector.broadcast %cst_170 : f32 to vector<8x64xf32>
    %237 = arith.mulf %236, %233 : vector<8x64xf32>
    %238 = arith.select %235, %233, %237 : vector<8x64xi1>, vector<8x64xf32>
    %239 = arith.truncf %238 : vector<8x64xf32> to vector<8x64xbf16>
    %c0_171 = arith.constant 0 : index
    %c0_172 = arith.constant 0 : index
    %240 = vector.load %arg13[%c0_171, %c0_172] : memref<72x8xbf16, #tpu.memory_space<vmem>>, vector<72x8xbf16>
    %cst_173 = arith.constant dense<0.000000e+00> : vector<72x64xf32>
    %241 = tpu.matmul %240, %239, %cst_173 {dimension_numbers = #tpu.dot_dimension_numbers<[1], [0], [0], [1], [0, 0, 1, 1], [], []>} : vector<72x8xbf16>, vector<8x64xbf16>, vector<72x64xf32> -> vector<72x64xf32>
    %242 = arith.truncf %241 : vector<72x64xf32> to vector<72x64xbf16>
    %cst_174 = arith.constant 0.000000e+00 : f32
    %243 = vector.broadcast %cst_174 : f32 to vector<8x256xf32>
    %244 = vector.extract_strided_slice %242 {offsets = [0, 0], sizes = [8, 64], strides = [1, 1]} : vector<72x64xbf16> to vector<8x64xbf16>
    %c0_175 = arith.constant 0 : index
    %c0_176 = arith.constant 0 : index
    %c0_177 = arith.constant 0 : index
    %245 = vector.load %arg6[%c0_175, %c0_176, %c0_177] : memref<9x64x256xbf16, #tpu.memory_space<vmem>>, vector<1x64x256xbf16>
    %246 = vector.shape_cast %245 : vector<1x64x256xbf16> to vector<64x256xbf16>
    %cst_178 = arith.constant dense<0.000000e+00> : vector<8x256xf32>
    %247 = tpu.matmul %244, %246, %cst_178 {dimension_numbers = #tpu.dot_dimension_numbers<[1], [0], [0], [1], [0, 0, 1, 1], [], []>} : vector<8x64xbf16>, vector<64x256xbf16>, vector<8x256xf32> -> vector<8x256xf32>
    %248 = arith.addf %243, %247 : vector<8x256xf32>
    %249 = vector.extract_strided_slice %242 {offsets = [8, 0], sizes = [8, 64], strides = [1, 1]} : vector<72x64xbf16> to vector<8x64xbf16>
    %c1_179 = arith.constant 1 : index
    %c0_180 = arith.constant 0 : index
    %c0_181 = arith.constant 0 : index
    %250 = vector.load %arg6[%c1_179, %c0_180, %c0_181] : memref<9x64x256xbf16, #tpu.memory_space<vmem>>, vector<1x64x256xbf16>
    %251 = vector.shape_cast %250 : vector<1x64x256xbf16> to vector<64x256xbf16>
    %cst_182 = arith.constant dense<0.000000e+00> : vector<8x256xf32>
    %252 = tpu.matmul %249, %251, %cst_182 {dimension_numbers = #tpu.dot_dimension_numbers<[1], [0], [0], [1], [0, 0, 1, 1], [], []>} : vector<8x64xbf16>, vector<64x256xbf16>, vector<8x256xf32> -> vector<8x256xf32>
    %253 = arith.addf %248, %252 : vector<8x256xf32>
    %254 = vector.extract_strided_slice %242 {offsets = [16, 0], sizes = [8, 64], strides = [1, 1]} : vector<72x64xbf16> to vector<8x64xbf16>
    %c2_183 = arith.constant 2 : index
    %c0_184 = arith.constant 0 : index
    %c0_185 = arith.constant 0 : index
    %255 = vector.load %arg6[%c2_183, %c0_184, %c0_185] : memref<9x64x256xbf16, #tpu.memory_space<vmem>>, vector<1x64x256xbf16>
    %256 = vector.shape_cast %255 : vector<1x64x256xbf16> to vector<64x256xbf16>
    %cst_186 = arith.constant dense<0.000000e+00> : vector<8x256xf32>
    %257 = tpu.matmul %254, %256, %cst_186 {dimension_numbers = #tpu.dot_dimension_numbers<[1], [0], [0], [1], [0, 0, 1, 1], [], []>} : vector<8x64xbf16>, vector<64x256xbf16>, vector<8x256xf32> -> vector<8x256xf32>
    %258 = arith.addf %253, %257 : vector<8x256xf32>
    %259 = vector.extract_strided_slice %242 {offsets = [24, 0], sizes = [8, 64], strides = [1, 1]} : vector<72x64xbf16> to vector<8x64xbf16>
    %c3_187 = arith.constant 3 : index
    %c0_188 = arith.constant 0 : index
    %c0_189 = arith.constant 0 : index
    %260 = vector.load %arg6[%c3_187, %c0_188, %c0_189] : memref<9x64x256xbf16, #tpu.memory_space<vmem>>, vector<1x64x256xbf16>
    %261 = vector.shape_cast %260 : vector<1x64x256xbf16> to vector<64x256xbf16>
    %cst_190 = arith.constant dense<0.000000e+00> : vector<8x256xf32>
    %262 = tpu.matmul %259, %261, %cst_190 {dimension_numbers = #tpu.dot_dimension_numbers<[1], [0], [0], [1], [0, 0, 1, 1], [], []>} : vector<8x64xbf16>, vector<64x256xbf16>, vector<8x256xf32> -> vector<8x256xf32>
    %263 = arith.addf %258, %262 : vector<8x256xf32>
    %264 = vector.extract_strided_slice %242 {offsets = [32, 0], sizes = [8, 64], strides = [1, 1]} : vector<72x64xbf16> to vector<8x64xbf16>
    %c4_191 = arith.constant 4 : index
    %c0_192 = arith.constant 0 : index
    %c0_193 = arith.constant 0 : index
    %265 = vector.load %arg6[%c4_191, %c0_192, %c0_193] : memref<9x64x256xbf16, #tpu.memory_space<vmem>>, vector<1x64x256xbf16>
    %266 = vector.shape_cast %265 : vector<1x64x256xbf16> to vector<64x256xbf16>
    %cst_194 = arith.constant dense<0.000000e+00> : vector<8x256xf32>
    %267 = tpu.matmul %264, %266, %cst_194 {dimension_numbers = #tpu.dot_dimension_numbers<[1], [0], [0], [1], [0, 0, 1, 1], [], []>} : vector<8x64xbf16>, vector<64x256xbf16>, vector<8x256xf32> -> vector<8x256xf32>
    %268 = arith.addf %263, %267 : vector<8x256xf32>
    %269 = vector.extract_strided_slice %242 {offsets = [40, 0], sizes = [8, 64], strides = [1, 1]} : vector<72x64xbf16> to vector<8x64xbf16>
    %c5_195 = arith.constant 5 : index
    %c0_196 = arith.constant 0 : index
    %c0_197 = arith.constant 0 : index
    %270 = vector.load %arg6[%c5_195, %c0_196, %c0_197] : memref<9x64x256xbf16, #tpu.memory_space<vmem>>, vector<1x64x256xbf16>
    %271 = vector.shape_cast %270 : vector<1x64x256xbf16> to vector<64x256xbf16>
    %cst_198 = arith.constant dense<0.000000e+00> : vector<8x256xf32>
    %272 = tpu.matmul %269, %271, %cst_198 {dimension_numbers = #tpu.dot_dimension_numbers<[1], [0], [0], [1], [0, 0, 1, 1], [], []>} : vector<8x64xbf16>, vector<64x256xbf16>, vector<8x256xf32> -> vector<8x256xf32>
    %273 = arith.addf %268, %272 : vector<8x256xf32>
    %274 = vector.extract_strided_slice %242 {offsets = [48, 0], sizes = [8, 64], strides = [1, 1]} : vector<72x64xbf16> to vector<8x64xbf16>
    %c6_199 = arith.constant 6 : index
    %c0_200 = arith.constant 0 : index
    %c0_201 = arith.constant 0 : index
    %275 = vector.load %arg6[%c6_199, %c0_200, %c0_201] : memref<9x64x256xbf16, #tpu.memory_space<vmem>>, vector<1x64x256xbf16>
    %276 = vector.shape_cast %275 : vector<1x64x256xbf16> to vector<64x256xbf16>
    %cst_202 = arith.constant dense<0.000000e+00> : vector<8x256xf32>
    %277 = tpu.matmul %274, %276, %cst_202 {dimension_numbers = #tpu.dot_dimension_numbers<[1], [0], [0], [1], [0, 0, 1, 1], [], []>} : vector<8x64xbf16>, vector<64x256xbf16>, vector<8x256xf32> -> vector<8x256xf32>
    %278 = arith.addf %273, %277 : vector<8x256xf32>
    %279 = vector.extract_strided_slice %242 {offsets = [56, 0], sizes = [8, 64], strides = [1, 1]} : vector<72x64xbf16> to vector<8x64xbf16>
    %c7_203 = arith.constant 7 : index
    %c0_204 = arith.constant 0 : index
    %c0_205 = arith.constant 0 : index
    %280 = vector.load %arg6[%c7_203, %c0_204, %c0_205] : memref<9x64x256xbf16, #tpu.memory_space<vmem>>, vector<1x64x256xbf16>
    %281 = vector.shape_cast %280 : vector<1x64x256xbf16> to vector<64x256xbf16>
    %cst_206 = arith.constant dense<0.000000e+00> : vector<8x256xf32>
    %282 = tpu.matmul %279, %281, %cst_206 {dimension_numbers = #tpu.dot_dimension_numbers<[1], [0], [0], [1], [0, 0, 1, 1], [], []>} : vector<8x64xbf16>, vector<64x256xbf16>, vector<8x256xf32> -> vector<8x256xf32>
    %283 = arith.addf %278, %282 : vector<8x256xf32>
    %284 = vector.extract_strided_slice %242 {offsets = [64, 0], sizes = [8, 64], strides = [1, 1]} : vector<72x64xbf16> to vector<8x64xbf16>
    %c8_207 = arith.constant 8 : index
    %c0_208 = arith.constant 0 : index
    %c0_209 = arith.constant 0 : index
    %285 = vector.load %arg6[%c8_207, %c0_208, %c0_209] : memref<9x64x256xbf16, #tpu.memory_space<vmem>>, vector<1x64x256xbf16>
    %286 = vector.shape_cast %285 : vector<1x64x256xbf16> to vector<64x256xbf16>
    %cst_210 = arith.constant dense<0.000000e+00> : vector<8x256xf32>
    %287 = tpu.matmul %284, %286, %cst_210 {dimension_numbers = #tpu.dot_dimension_numbers<[1], [0], [0], [1], [0, 0, 1, 1], [], []>} : vector<8x64xbf16>, vector<64x256xbf16>, vector<8x256xf32> -> vector<8x256xf32>
    %288 = arith.addf %283, %287 : vector<8x256xf32>
    %c0_211 = arith.constant 0 : index
    %c0_212 = arith.constant 0 : index
    %289 = vector.load %arg21[%c0_211, %c0_212] : memref<8x1xf32, #tpu.memory_space<vmem>>, vector<8x1xf32>
    %290 = vector.broadcast %289 : vector<8x1xf32> to vector<8x256xf32>
    %291 = arith.addf %288, %290 : vector<8x256xf32>
    %cst_213 = arith.constant 0.000000e+00 : f32
    %292 = vector.broadcast %cst_213 : f32 to vector<8x256xf32>
    %293 = arith.cmpf oge, %291, %292 : vector<8x256xf32>
    %cst_214 = arith.constant 2.000000e-01 : f32
    %294 = vector.broadcast %cst_214 : f32 to vector<8x256xf32>
    %295 = arith.mulf %294, %291 : vector<8x256xf32>
    %296 = arith.select %293, %291, %295 : vector<8x256xi1>, vector<8x256xf32>
    %297 = arith.truncf %296 : vector<8x256xf32> to vector<8x256xbf16>
    %c0_215 = arith.constant 0 : index
    %c0_216 = arith.constant 0 : index
    %298 = vector.load %arg14[%c0_215, %c0_216] : memref<72x8xbf16, #tpu.memory_space<vmem>>, vector<72x8xbf16>
    %cst_217 = arith.constant dense<0.000000e+00> : vector<72x256xf32>
    %299 = tpu.matmul %298, %297, %cst_217 {dimension_numbers = #tpu.dot_dimension_numbers<[1], [0], [0], [1], [0, 0, 1, 1], [], []>} : vector<72x8xbf16>, vector<8x256xbf16>, vector<72x256xf32> -> vector<72x256xf32>
    %c0_218 = arith.constant 0 : index
    %c0_219 = arith.constant 0 : index
    %300 = vector.load %arg15[%c0_218, %c0_219] : memref<72x1xbf16, #tpu.memory_space<vmem>>, vector<72x1xbf16>
    %301 = arith.extf %300 : vector<72x1xbf16> to vector<72x1xf32>
    %302 = vector.broadcast %301 : vector<72x1xf32> to vector<72x256xf32>
    %303 = vector.broadcast %1 : vector<1x256xf32> to vector<72x256xf32>
    %304 = arith.mulf %302, %303 : vector<72x256xf32>
    %305 = arith.addf %299, %304 : vector<72x256xf32>
    %cst_220 = arith.constant 0.000000e+00 : f32
    %306 = vector.broadcast %cst_220 : f32 to vector<8x256xf32>
    %307 = vector.extract_strided_slice %305 {offsets = [0, 0], sizes = [8, 256], strides = [1, 1]} : vector<72x256xf32> to vector<8x256xf32>
    %c17_i32 = arith.constant 17 : i32
    %308 = tpu.dynamic_rotate %307 by %c17_i32 dim 1 : vector<8x256xf32>, i32 -> vector<8x256xf32>
    %c0_221 = arith.constant 0 : index
    %c0_222 = arith.constant 0 : index
    %c0_223 = arith.constant 0 : index
    %309 = vector.load %arg7[%c0_221, %c0_222, %c0_223] : memref<9x1x256xf32, #tpu.memory_space<vmem>>, vector<1x1x256xf32>
    %310 = vector.shape_cast %309 : vector<1x1x256xf32> to vector<1x256xf32>
    %311 = vector.broadcast %310 : vector<1x256xf32> to vector<8x256xf32>
    %312 = arith.mulf %308, %311 : vector<8x256xf32>
    %313 = arith.addf %306, %312 : vector<8x256xf32>
    %314 = vector.extract_strided_slice %305 {offsets = [8, 0], sizes = [8, 256], strides = [1, 1]} : vector<72x256xf32> to vector<8x256xf32>
    %c16_i32 = arith.constant 16 : i32
    %315 = tpu.dynamic_rotate %314 by %c16_i32 dim 1 : vector<8x256xf32>, i32 -> vector<8x256xf32>
    %c1_224 = arith.constant 1 : index
    %c0_225 = arith.constant 0 : index
    %c0_226 = arith.constant 0 : index
    %316 = vector.load %arg7[%c1_224, %c0_225, %c0_226] : memref<9x1x256xf32, #tpu.memory_space<vmem>>, vector<1x1x256xf32>
    %317 = vector.shape_cast %316 : vector<1x1x256xf32> to vector<1x256xf32>
    %318 = vector.broadcast %317 : vector<1x256xf32> to vector<8x256xf32>
    %319 = arith.mulf %315, %318 : vector<8x256xf32>
    %320 = arith.addf %313, %319 : vector<8x256xf32>
    %321 = vector.extract_strided_slice %305 {offsets = [16, 0], sizes = [8, 256], strides = [1, 1]} : vector<72x256xf32> to vector<8x256xf32>
    %c15_i32 = arith.constant 15 : i32
    %322 = tpu.dynamic_rotate %321 by %c15_i32 dim 1 : vector<8x256xf32>, i32 -> vector<8x256xf32>
    %c2_227 = arith.constant 2 : index
    %c0_228 = arith.constant 0 : index
    %c0_229 = arith.constant 0 : index
    %323 = vector.load %arg7[%c2_227, %c0_228, %c0_229] : memref<9x1x256xf32, #tpu.memory_space<vmem>>, vector<1x1x256xf32>
    %324 = vector.shape_cast %323 : vector<1x1x256xf32> to vector<1x256xf32>
    %325 = vector.broadcast %324 : vector<1x256xf32> to vector<8x256xf32>
    %326 = arith.mulf %322, %325 : vector<8x256xf32>
    %327 = arith.addf %320, %326 : vector<8x256xf32>
    %328 = vector.extract_strided_slice %305 {offsets = [24, 0], sizes = [8, 256], strides = [1, 1]} : vector<72x256xf32> to vector<8x256xf32>
    %c1_i32 = arith.constant 1 : i32
    %329 = tpu.dynamic_rotate %328 by %c1_i32 dim 1 : vector<8x256xf32>, i32 -> vector<8x256xf32>
    %c3_230 = arith.constant 3 : index
    %c0_231 = arith.constant 0 : index
    %c0_232 = arith.constant 0 : index
    %330 = vector.load %arg7[%c3_230, %c0_231, %c0_232] : memref<9x1x256xf32, #tpu.memory_space<vmem>>, vector<1x1x256xf32>
    %331 = vector.shape_cast %330 : vector<1x1x256xf32> to vector<1x256xf32>
    %332 = vector.broadcast %331 : vector<1x256xf32> to vector<8x256xf32>
    %333 = arith.mulf %329, %332 : vector<8x256xf32>
    %334 = arith.addf %327, %333 : vector<8x256xf32>
    %335 = vector.extract_strided_slice %305 {offsets = [32, 0], sizes = [8, 256], strides = [1, 1]} : vector<72x256xf32> to vector<8x256xf32>
    %336 = arith.addf %334, %335 : vector<8x256xf32>
    %337 = vector.extract_strided_slice %305 {offsets = [40, 0], sizes = [8, 256], strides = [1, 1]} : vector<72x256xf32> to vector<8x256xf32>
    %c255_i32 = arith.constant 255 : i32
    %338 = tpu.dynamic_rotate %337 by %c255_i32 dim 1 : vector<8x256xf32>, i32 -> vector<8x256xf32>
    %c5_233 = arith.constant 5 : index
    %c0_234 = arith.constant 0 : index
    %c0_235 = arith.constant 0 : index
    %339 = vector.load %arg7[%c5_233, %c0_234, %c0_235] : memref<9x1x256xf32, #tpu.memory_space<vmem>>, vector<1x1x256xf32>
    %340 = vector.shape_cast %339 : vector<1x1x256xf32> to vector<1x256xf32>
    %341 = vector.broadcast %340 : vector<1x256xf32> to vector<8x256xf32>
    %342 = arith.mulf %338, %341 : vector<8x256xf32>
    %343 = arith.addf %336, %342 : vector<8x256xf32>
    %344 = vector.extract_strided_slice %305 {offsets = [48, 0], sizes = [8, 256], strides = [1, 1]} : vector<72x256xf32> to vector<8x256xf32>
    %c241_i32 = arith.constant 241 : i32
    %345 = tpu.dynamic_rotate %344 by %c241_i32 dim 1 : vector<8x256xf32>, i32 -> vector<8x256xf32>
    %c6_236 = arith.constant 6 : index
    %c0_237 = arith.constant 0 : index
    %c0_238 = arith.constant 0 : index
    %346 = vector.load %arg7[%c6_236, %c0_237, %c0_238] : memref<9x1x256xf32, #tpu.memory_space<vmem>>, vector<1x1x256xf32>
    %347 = vector.shape_cast %346 : vector<1x1x256xf32> to vector<1x256xf32>
    %348 = vector.broadcast %347 : vector<1x256xf32> to vector<8x256xf32>
    %349 = arith.mulf %345, %348 : vector<8x256xf32>
    %350 = arith.addf %343, %349 : vector<8x256xf32>
    %351 = vector.extract_strided_slice %305 {offsets = [56, 0], sizes = [8, 256], strides = [1, 1]} : vector<72x256xf32> to vector<8x256xf32>
    %c240_i32 = arith.constant 240 : i32
    %352 = tpu.dynamic_rotate %351 by %c240_i32 dim 1 : vector<8x256xf32>, i32 -> vector<8x256xf32>
    %c7_239 = arith.constant 7 : index
    %c0_240 = arith.constant 0 : index
    %c0_241 = arith.constant 0 : index
    %353 = vector.load %arg7[%c7_239, %c0_240, %c0_241] : memref<9x1x256xf32, #tpu.memory_space<vmem>>, vector<1x1x256xf32>
    %354 = vector.shape_cast %353 : vector<1x1x256xf32> to vector<1x256xf32>
    %355 = vector.broadcast %354 : vector<1x256xf32> to vector<8x256xf32>
    %356 = arith.mulf %352, %355 : vector<8x256xf32>
    %357 = arith.addf %350, %356 : vector<8x256xf32>
    %358 = vector.extract_strided_slice %305 {offsets = [64, 0], sizes = [8, 256], strides = [1, 1]} : vector<72x256xf32> to vector<8x256xf32>
    %c239_i32 = arith.constant 239 : i32
    %359 = tpu.dynamic_rotate %358 by %c239_i32 dim 1 : vector<8x256xf32>, i32 -> vector<8x256xf32>
    %c8_242 = arith.constant 8 : index
    %c0_243 = arith.constant 0 : index
    %c0_244 = arith.constant 0 : index
    %360 = vector.load %arg7[%c8_242, %c0_243, %c0_244] : memref<9x1x256xf32, #tpu.memory_space<vmem>>, vector<1x1x256xf32>
    %361 = vector.shape_cast %360 : vector<1x1x256xf32> to vector<1x256xf32>
    %362 = vector.broadcast %361 : vector<1x256xf32> to vector<8x256xf32>
    %363 = arith.mulf %359, %362 : vector<8x256xf32>
    %364 = arith.addf %357, %363 : vector<8x256xf32>
    %c0_245 = arith.constant 0 : index
    %c0_246 = arith.constant 0 : index
    %365 = vector.load %arg22[%c0_245, %c0_246] : memref<8x1xf32, #tpu.memory_space<vmem>>, vector<8x1xf32>
    %366 = vector.broadcast %365 : vector<8x1xf32> to vector<8x256xf32>
    %367 = arith.addf %364, %366 : vector<8x256xf32>
    %cst_247 = arith.constant 0.000000e+00 : f32
    %368 = vector.broadcast %cst_247 : f32 to vector<8x256xf32>
    %369 = arith.cmpf oge, %367, %368 : vector<8x256xf32>
    %cst_248 = arith.constant 2.000000e-01 : f32
    %370 = vector.broadcast %cst_248 : f32 to vector<8x256xf32>
    %371 = arith.mulf %370, %367 : vector<8x256xf32>
    %372 = arith.select %369, %367, %371 : vector<8x256xi1>, vector<8x256xf32>
    %373 = arith.truncf %372 : vector<8x256xf32> to vector<8x256xbf16>
    %c0_249 = arith.constant 0 : index
    %c0_250 = arith.constant 0 : index
    %374 = vector.load %arg16[%c0_249, %c0_250] : memref<72x8xbf16, #tpu.memory_space<vmem>>, vector<72x8xbf16>
    %cst_251 = arith.constant dense<0.000000e+00> : vector<72x256xf32>
    %375 = tpu.matmul %374, %373, %cst_251 {dimension_numbers = #tpu.dot_dimension_numbers<[1], [0], [0], [1], [0, 0, 1, 1], [], []>} : vector<72x8xbf16>, vector<8x256xbf16>, vector<72x256xf32> -> vector<72x256xf32>
    %cst_252 = arith.constant 0.000000e+00 : f32
    %376 = vector.broadcast %cst_252 : f32 to vector<8x256xf32>
    %377 = vector.extract_strided_slice %375 {offsets = [0, 0], sizes = [8, 256], strides = [1, 1]} : vector<72x256xf32> to vector<8x256xf32>
    %c17_i32_253 = arith.constant 17 : i32
    %378 = tpu.dynamic_rotate %377 by %c17_i32_253 dim 1 : vector<8x256xf32>, i32 -> vector<8x256xf32>
    %c0_254 = arith.constant 0 : index
    %c0_255 = arith.constant 0 : index
    %c0_256 = arith.constant 0 : index
    %379 = vector.load %arg7[%c0_254, %c0_255, %c0_256] : memref<9x1x256xf32, #tpu.memory_space<vmem>>, vector<1x1x256xf32>
    %380 = vector.shape_cast %379 : vector<1x1x256xf32> to vector<1x256xf32>
    %381 = vector.broadcast %380 : vector<1x256xf32> to vector<8x256xf32>
    %382 = arith.mulf %378, %381 : vector<8x256xf32>
    %383 = arith.addf %376, %382 : vector<8x256xf32>
    %384 = vector.extract_strided_slice %375 {offsets = [8, 0], sizes = [8, 256], strides = [1, 1]} : vector<72x256xf32> to vector<8x256xf32>
    %c16_i32_257 = arith.constant 16 : i32
    %385 = tpu.dynamic_rotate %384 by %c16_i32_257 dim 1 : vector<8x256xf32>, i32 -> vector<8x256xf32>
    %c1_258 = arith.constant 1 : index
    %c0_259 = arith.constant 0 : index
    %c0_260 = arith.constant 0 : index
    %386 = vector.load %arg7[%c1_258, %c0_259, %c0_260] : memref<9x1x256xf32, #tpu.memory_space<vmem>>, vector<1x1x256xf32>
    %387 = vector.shape_cast %386 : vector<1x1x256xf32> to vector<1x256xf32>
    %388 = vector.broadcast %387 : vector<1x256xf32> to vector<8x256xf32>
    %389 = arith.mulf %385, %388 : vector<8x256xf32>
    %390 = arith.addf %383, %389 : vector<8x256xf32>
    %391 = vector.extract_strided_slice %375 {offsets = [16, 0], sizes = [8, 256], strides = [1, 1]} : vector<72x256xf32> to vector<8x256xf32>
    %c15_i32_261 = arith.constant 15 : i32
    %392 = tpu.dynamic_rotate %391 by %c15_i32_261 dim 1 : vector<8x256xf32>, i32 -> vector<8x256xf32>
    %c2_262 = arith.constant 2 : index
    %c0_263 = arith.constant 0 : index
    %c0_264 = arith.constant 0 : index
    %393 = vector.load %arg7[%c2_262, %c0_263, %c0_264] : memref<9x1x256xf32, #tpu.memory_space<vmem>>, vector<1x1x256xf32>
    %394 = vector.shape_cast %393 : vector<1x1x256xf32> to vector<1x256xf32>
    %395 = vector.broadcast %394 : vector<1x256xf32> to vector<8x256xf32>
    %396 = arith.mulf %392, %395 : vector<8x256xf32>
    %397 = arith.addf %390, %396 : vector<8x256xf32>
    %398 = vector.extract_strided_slice %375 {offsets = [24, 0], sizes = [8, 256], strides = [1, 1]} : vector<72x256xf32> to vector<8x256xf32>
    %c1_i32_265 = arith.constant 1 : i32
    %399 = tpu.dynamic_rotate %398 by %c1_i32_265 dim 1 : vector<8x256xf32>, i32 -> vector<8x256xf32>
    %c3_266 = arith.constant 3 : index
    %c0_267 = arith.constant 0 : index
    %c0_268 = arith.constant 0 : index
    %400 = vector.load %arg7[%c3_266, %c0_267, %c0_268] : memref<9x1x256xf32, #tpu.memory_space<vmem>>, vector<1x1x256xf32>
    %401 = vector.shape_cast %400 : vector<1x1x256xf32> to vector<1x256xf32>
    %402 = vector.broadcast %401 : vector<1x256xf32> to vector<8x256xf32>
    %403 = arith.mulf %399, %402 : vector<8x256xf32>
    %404 = arith.addf %397, %403 : vector<8x256xf32>
    %405 = vector.extract_strided_slice %375 {offsets = [32, 0], sizes = [8, 256], strides = [1, 1]} : vector<72x256xf32> to vector<8x256xf32>
    %406 = arith.addf %404, %405 : vector<8x256xf32>
    %407 = vector.extract_strided_slice %375 {offsets = [40, 0], sizes = [8, 256], strides = [1, 1]} : vector<72x256xf32> to vector<8x256xf32>
    %c255_i32_269 = arith.constant 255 : i32
    %408 = tpu.dynamic_rotate %407 by %c255_i32_269 dim 1 : vector<8x256xf32>, i32 -> vector<8x256xf32>
    %c5_270 = arith.constant 5 : index
    %c0_271 = arith.constant 0 : index
    %c0_272 = arith.constant 0 : index
    %409 = vector.load %arg7[%c5_270, %c0_271, %c0_272] : memref<9x1x256xf32, #tpu.memory_space<vmem>>, vector<1x1x256xf32>
    %410 = vector.shape_cast %409 : vector<1x1x256xf32> to vector<1x256xf32>
    %411 = vector.broadcast %410 : vector<1x256xf32> to vector<8x256xf32>
    %412 = arith.mulf %408, %411 : vector<8x256xf32>
    %413 = arith.addf %406, %412 : vector<8x256xf32>
    %414 = vector.extract_strided_slice %375 {offsets = [48, 0], sizes = [8, 256], strides = [1, 1]} : vector<72x256xf32> to vector<8x256xf32>
    %c241_i32_273 = arith.constant 241 : i32
    %415 = tpu.dynamic_rotate %414 by %c241_i32_273 dim 1 : vector<8x256xf32>, i32 -> vector<8x256xf32>
    %c6_274 = arith.constant 6 : index
    %c0_275 = arith.constant 0 : index
    %c0_276 = arith.constant 0 : index
    %416 = vector.load %arg7[%c6_274, %c0_275, %c0_276] : memref<9x1x256xf32, #tpu.memory_space<vmem>>, vector<1x1x256xf32>
    %417 = vector.shape_cast %416 : vector<1x1x256xf32> to vector<1x256xf32>
    %418 = vector.broadcast %417 : vector<1x256xf32> to vector<8x256xf32>
    %419 = arith.mulf %415, %418 : vector<8x256xf32>
    %420 = arith.addf %413, %419 : vector<8x256xf32>
    %421 = vector.extract_strided_slice %375 {offsets = [56, 0], sizes = [8, 256], strides = [1, 1]} : vector<72x256xf32> to vector<8x256xf32>
    %c240_i32_277 = arith.constant 240 : i32
    %422 = tpu.dynamic_rotate %421 by %c240_i32_277 dim 1 : vector<8x256xf32>, i32 -> vector<8x256xf32>
    %c7_278 = arith.constant 7 : index
    %c0_279 = arith.constant 0 : index
    %c0_280 = arith.constant 0 : index
    %423 = vector.load %arg7[%c7_278, %c0_279, %c0_280] : memref<9x1x256xf32, #tpu.memory_space<vmem>>, vector<1x1x256xf32>
    %424 = vector.shape_cast %423 : vector<1x1x256xf32> to vector<1x256xf32>
    %425 = vector.broadcast %424 : vector<1x256xf32> to vector<8x256xf32>
    %426 = arith.mulf %422, %425 : vector<8x256xf32>
    %427 = arith.addf %420, %426 : vector<8x256xf32>
    %428 = vector.extract_strided_slice %375 {offsets = [64, 0], sizes = [8, 256], strides = [1, 1]} : vector<72x256xf32> to vector<8x256xf32>
    %c239_i32_281 = arith.constant 239 : i32
    %429 = tpu.dynamic_rotate %428 by %c239_i32_281 dim 1 : vector<8x256xf32>, i32 -> vector<8x256xf32>
    %c8_282 = arith.constant 8 : index
    %c0_283 = arith.constant 0 : index
    %c0_284 = arith.constant 0 : index
    %430 = vector.load %arg7[%c8_282, %c0_283, %c0_284] : memref<9x1x256xf32, #tpu.memory_space<vmem>>, vector<1x1x256xf32>
    %431 = vector.shape_cast %430 : vector<1x1x256xf32> to vector<1x256xf32>
    %432 = vector.broadcast %431 : vector<1x256xf32> to vector<8x256xf32>
    %433 = arith.mulf %429, %432 : vector<8x256xf32>
    %434 = arith.addf %427, %433 : vector<8x256xf32>
    %435 = vector.extract_strided_slice %434 {offsets = [0, 0], sizes = [4, 256], strides = [1, 1]} : vector<8x256xf32> to vector<4x256xf32>
    %c0_285 = arith.constant 0 : index
    %c0_286 = arith.constant 0 : index
    %436 = vector.load %arg23[%c0_285, %c0_286] : memref<4x1xf32, #tpu.memory_space<vmem>>, vector<4x1xf32>
    %437 = vector.broadcast %436 : vector<4x1xf32> to vector<4x256xf32>
    %438 = arith.addf %435, %437 : vector<4x256xf32>
    %cst_287 = arith.constant dense<0xFF800000> : vector<256xf32>
    %439 = vector.multi_reduction <maximumf>, %438, %cst_287 [0] : vector<4x256xf32> to vector<256xf32>
    %440 = vector.shape_cast %439 : vector<256xf32> to vector<1x256xf32>
    %441 = vector.broadcast %440 : vector<1x256xf32> to vector<4x256xf32>
    %442 = arith.subf %438, %441 : vector<4x256xf32>
    %443 = math.exp %442 : vector<4x256xf32>
    %cst_288 = arith.constant dense<0.000000e+00> : vector<256xf32>
    %444 = vector.multi_reduction <add>, %443, %cst_288 [0] : vector<4x256xf32> to vector<256xf32>
    %445 = vector.shape_cast %444 : vector<256xf32> to vector<1x256xf32>
    %446 = vector.broadcast %445 : vector<1x256xf32> to vector<4x256xf32>
    %447 = arith.divf %443, %446 : vector<4x256xf32>
    %448 = vector.extract_strided_slice %447 {offsets = [0, 0], sizes = [3, 256], strides = [1, 1]} : vector<4x256xf32> to vector<3x256xf32>
    %c0_289 = arith.constant 0 : index
    %c0_290 = arith.constant 0 : index
    %c0_291 = arith.constant 0 : index
    %449 = vector.load %arg24[%c0_289, %c0_290, %c0_291] : memref<2x3x256xf32, #tpu.memory_space<vmem>>, vector<1x3x256xf32>
    %450 = vector.shape_cast %449 : vector<1x3x256xf32> to vector<3x256xf32>
    %451 = vector.shape_cast %448 : vector<3x256xf32> to vector<1x3x256xf32>
    tpu.vector_store %arg24[%c0_289, %c0_290, %c0_291], %451 {strides = array<i32>} : memref<2x3x256xf32, #tpu.memory_space<vmem>>, vector<1x3x256xf32>,
    %c1_292 = arith.constant 1 : index
    %c0_293 = arith.constant 0 : index
    %c0_294 = arith.constant 0 : index
    %452 = vector.load %arg1[%c1_292, %c0_293, %c0_294] : memref<2x1x256xf32, #tpu.memory_space<vmem>>, vector<1x1x256xf32>
    %453 = vector.shape_cast %452 : vector<1x1x256xf32> to vector<1x256xf32>
    %c0_295 = arith.constant 0 : index
    %c0_296 = arith.constant 0 : index
    %454 = vector.load %arg8[%c0_295, %c0_296] : memref<72x1xbf16, #tpu.memory_space<vmem>>, vector<72x1xbf16>
    %455 = arith.extf %454 : vector<72x1xbf16> to vector<72x1xf32>
    %456 = vector.broadcast %455 : vector<72x1xf32> to vector<72x256xf32>
    %457 = vector.broadcast %453 : vector<1x256xf32> to vector<72x256xf32>
    %458 = arith.mulf %456, %457 : vector<72x256xf32>
    %459 = arith.truncf %458 : vector<72x256xf32> to vector<72x256xbf16>
    %cst_297 = arith.constant 0.000000e+00 : f32
    %460 = vector.broadcast %cst_297 : f32 to vector<8x64xf32>
    %461 = vector.extract_strided_slice %459 {offsets = [0, 0], sizes = [8, 256], strides = [1, 1]} : vector<72x256xbf16> to vector<8x256xbf16>
    %c0_298 = arith.constant 0 : index
    %c0_299 = arith.constant 0 : index
    %c0_300 = arith.constant 0 : index
    %462 = vector.load %arg2[%c0_298, %c0_299, %c0_300] : memref<9x256x64xbf16, #tpu.memory_space<vmem>>, vector<1x256x64xbf16>
    %463 = vector.shape_cast %462 : vector<1x256x64xbf16> to vector<256x64xbf16>
    %cst_301 = arith.constant dense<0.000000e+00> : vector<8x64xf32>
    %464 = tpu.matmul %461, %463, %cst_301 {dimension_numbers = #tpu.dot_dimension_numbers<[1], [0], [0], [1], [0, 0, 1, 1], [], []>} : vector<8x256xbf16>, vector<256x64xbf16>, vector<8x64xf32> -> vector<8x64xf32>
    %465 = arith.addf %460, %464 : vector<8x64xf32>
    %466 = vector.extract_strided_slice %459 {offsets = [8, 0], sizes = [8, 256], strides = [1, 1]} : vector<72x256xbf16> to vector<8x256xbf16>
    %c1_302 = arith.constant 1 : index
    %c0_303 = arith.constant 0 : index
    %c0_304 = arith.constant 0 : index
    %467 = vector.load %arg2[%c1_302, %c0_303, %c0_304] : memref<9x256x64xbf16, #tpu.memory_space<vmem>>, vector<1x256x64xbf16>
    %468 = vector.shape_cast %467 : vector<1x256x64xbf16> to vector<256x64xbf16>
    %cst_305 = arith.constant dense<0.000000e+00> : vector<8x64xf32>
    %469 = tpu.matmul %466, %468, %cst_305 {dimension_numbers = #tpu.dot_dimension_numbers<[1], [0], [0], [1], [0, 0, 1, 1], [], []>} : vector<8x256xbf16>, vector<256x64xbf16>, vector<8x64xf32> -> vector<8x64xf32>
    %470 = arith.addf %465, %469 : vector<8x64xf32>
    %471 = vector.extract_strided_slice %459 {offsets = [16, 0], sizes = [8, 256], strides = [1, 1]} : vector<72x256xbf16> to vector<8x256xbf16>
    %c2_306 = arith.constant 2 : index
    %c0_307 = arith.constant 0 : index
    %c0_308 = arith.constant 0 : index
    %472 = vector.load %arg2[%c2_306, %c0_307, %c0_308] : memref<9x256x64xbf16, #tpu.memory_space<vmem>>, vector<1x256x64xbf16>
    %473 = vector.shape_cast %472 : vector<1x256x64xbf16> to vector<256x64xbf16>
    %cst_309 = arith.constant dense<0.000000e+00> : vector<8x64xf32>
    %474 = tpu.matmul %471, %473, %cst_309 {dimension_numbers = #tpu.dot_dimension_numbers<[1], [0], [0], [1], [0, 0, 1, 1], [], []>} : vector<8x256xbf16>, vector<256x64xbf16>, vector<8x64xf32> -> vector<8x64xf32>
    %475 = arith.addf %470, %474 : vector<8x64xf32>
    %476 = vector.extract_strided_slice %459 {offsets = [24, 0], sizes = [8, 256], strides = [1, 1]} : vector<72x256xbf16> to vector<8x256xbf16>
    %c3_310 = arith.constant 3 : index
    %c0_311 = arith.constant 0 : index
    %c0_312 = arith.constant 0 : index
    %477 = vector.load %arg2[%c3_310, %c0_311, %c0_312] : memref<9x256x64xbf16, #tpu.memory_space<vmem>>, vector<1x256x64xbf16>
    %478 = vector.shape_cast %477 : vector<1x256x64xbf16> to vector<256x64xbf16>
    %cst_313 = arith.constant dense<0.000000e+00> : vector<8x64xf32>
    %479 = tpu.matmul %476, %478, %cst_313 {dimension_numbers = #tpu.dot_dimension_numbers<[1], [0], [0], [1], [0, 0, 1, 1], [], []>} : vector<8x256xbf16>, vector<256x64xbf16>, vector<8x64xf32> -> vector<8x64xf32>
    %480 = arith.addf %475, %479 : vector<8x64xf32>
    %481 = vector.extract_strided_slice %459 {offsets = [32, 0], sizes = [8, 256], strides = [1, 1]} : vector<72x256xbf16> to vector<8x256xbf16>
    %c4_314 = arith.constant 4 : index
    %c0_315 = arith.constant 0 : index
    %c0_316 = arith.constant 0 : index
    %482 = vector.load %arg2[%c4_314, %c0_315, %c0_316] : memref<9x256x64xbf16, #tpu.memory_space<vmem>>, vector<1x256x64xbf16>
    %483 = vector.shape_cast %482 : vector<1x256x64xbf16> to vector<256x64xbf16>
    %cst_317 = arith.constant dense<0.000000e+00> : vector<8x64xf32>
    %484 = tpu.matmul %481, %483, %cst_317 {dimension_numbers = #tpu.dot_dimension_numbers<[1], [0], [0], [1], [0, 0, 1, 1], [], []>} : vector<8x256xbf16>, vector<256x64xbf16>, vector<8x64xf32> -> vector<8x64xf32>
    %485 = arith.addf %480, %484 : vector<8x64xf32>
    %486 = vector.extract_strided_slice %459 {offsets = [40, 0], sizes = [8, 256], strides = [1, 1]} : vector<72x256xbf16> to vector<8x256xbf16>
    %c5_318 = arith.constant 5 : index
    %c0_319 = arith.constant 0 : index
    %c0_320 = arith.constant 0 : index
    %487 = vector.load %arg2[%c5_318, %c0_319, %c0_320] : memref<9x256x64xbf16, #tpu.memory_space<vmem>>, vector<1x256x64xbf16>
    %488 = vector.shape_cast %487 : vector<1x256x64xbf16> to vector<256x64xbf16>
    %cst_321 = arith.constant dense<0.000000e+00> : vector<8x64xf32>
    %489 = tpu.matmul %486, %488, %cst_321 {dimension_numbers = #tpu.dot_dimension_numbers<[1], [0], [0], [1], [0, 0, 1, 1], [], []>} : vector<8x256xbf16>, vector<256x64xbf16>, vector<8x64xf32> -> vector<8x64xf32>
    %490 = arith.addf %485, %489 : vector<8x64xf32>
    %491 = vector.extract_strided_slice %459 {offsets = [48, 0], sizes = [8, 256], strides = [1, 1]} : vector<72x256xbf16> to vector<8x256xbf16>
    %c6_322 = arith.constant 6 : index
    %c0_323 = arith.constant 0 : index
    %c0_324 = arith.constant 0 : index
    %492 = vector.load %arg2[%c6_322, %c0_323, %c0_324] : memref<9x256x64xbf16, #tpu.memory_space<vmem>>, vector<1x256x64xbf16>
    %493 = vector.shape_cast %492 : vector<1x256x64xbf16> to vector<256x64xbf16>
    %cst_325 = arith.constant dense<0.000000e+00> : vector<8x64xf32>
    %494 = tpu.matmul %491, %493, %cst_325 {dimension_numbers = #tpu.dot_dimension_numbers<[1], [0], [0], [1], [0, 0, 1, 1], [], []>} : vector<8x256xbf16>, vector<256x64xbf16>, vector<8x64xf32> -> vector<8x64xf32>
    %495 = arith.addf %490, %494 : vector<8x64xf32>
    %496 = vector.extract_strided_slice %459 {offsets = [56, 0], sizes = [8, 256], strides = [1, 1]} : vector<72x256xbf16> to vector<8x256xbf16>
    %c7_326 = arith.constant 7 : index
    %c0_327 = arith.constant 0 : index
    %c0_328 = arith.constant 0 : index
    %497 = vector.load %arg2[%c7_326, %c0_327, %c0_328] : memref<9x256x64xbf16, #tpu.memory_space<vmem>>, vector<1x256x64xbf16>
    %498 = vector.shape_cast %497 : vector<1x256x64xbf16> to vector<256x64xbf16>
    %cst_329 = arith.constant dense<0.000000e+00> : vector<8x64xf32>
    %499 = tpu.matmul %496, %498, %cst_329 {dimension_numbers = #tpu.dot_dimension_numbers<[1], [0], [0], [1], [0, 0, 1, 1], [], []>} : vector<8x256xbf16>, vector<256x64xbf16>, vector<8x64xf32> -> vector<8x64xf32>
    %500 = arith.addf %495, %499 : vector<8x64xf32>
    %501 = vector.extract_strided_slice %459 {offsets = [64, 0], sizes = [8, 256], strides = [1, 1]} : vector<72x256xbf16> to vector<8x256xbf16>
    %c8_330 = arith.constant 8 : index
    %c0_331 = arith.constant 0 : index
    %c0_332 = arith.constant 0 : index
    %502 = vector.load %arg2[%c8_330, %c0_331, %c0_332] : memref<9x256x64xbf16, #tpu.memory_space<vmem>>, vector<1x256x64xbf16>
    %503 = vector.shape_cast %502 : vector<1x256x64xbf16> to vector<256x64xbf16>
    %cst_333 = arith.constant dense<0.000000e+00> : vector<8x64xf32>
    %504 = tpu.matmul %501, %503, %cst_333 {dimension_numbers = #tpu.dot_dimension_numbers<[1], [0], [0], [1], [0, 0, 1, 1], [], []>} : vector<8x256xbf16>, vector<256x64xbf16>, vector<8x64xf32> -> vector<8x64xf32>
    %505 = arith.addf %500, %504 : vector<8x64xf32>
    %c0_334 = arith.constant 0 : index
    %c0_335 = arith.constant 0 : index
    %506 = vector.load %arg17[%c0_334, %c0_335] : memref<8x1xf32, #tpu.memory_space<vmem>>, vector<8x1xf32>
    %507 = vector.broadcast %506 : vector<8x1xf32> to vector<8x64xf32>
    %508 = arith.addf %505, %507 : vector<8x64xf32>
    %cst_336 = arith.constant 0.000000e+00 : f32
    %509 = vector.broadcast %cst_336 : f32 to vector<8x64xf32>
    %510 = arith.cmpf oge, %508, %509 : vector<8x64xf32>
    %cst_337 = arith.constant 2.000000e-01 : f32
    %511 = vector.broadcast %cst_337 : f32 to vector<8x64xf32>
    %512 = arith.mulf %511, %508 : vector<8x64xf32>
    %513 = arith.select %510, %508, %512 : vector<8x64xi1>, vector<8x64xf32>
    %514 = arith.truncf %513 : vector<8x64xf32> to vector<8x64xbf16>
    %c0_338 = arith.constant 0 : index
    %c0_339 = arith.constant 0 : index
    %515 = vector.load %arg9[%c0_338, %c0_339] : memref<144x8xbf16, #tpu.memory_space<vmem>>, vector<144x8xbf16>
    %cst_340 = arith.constant dense<0.000000e+00> : vector<144x64xf32>
    %516 = tpu.matmul %515, %514, %cst_340 {dimension_numbers = #tpu.dot_dimension_numbers<[1], [0], [0], [1], [0, 0, 1, 1], [], []>} : vector<144x8xbf16>, vector<8x64xbf16>, vector<144x64xf32> -> vector<144x64xf32>
    %517 = arith.truncf %516 : vector<144x64xf32> to vector<144x64xbf16>
    %cst_341 = arith.constant 0.000000e+00 : f32
    %518 = vector.broadcast %cst_341 : f32 to vector<16x16xf32>
    %519 = vector.extract_strided_slice %517 {offsets = [0, 0], sizes = [16, 64], strides = [1, 1]} : vector<144x64xbf16> to vector<16x64xbf16>
    %c0_342 = arith.constant 0 : index
    %c0_343 = arith.constant 0 : index
    %c0_344 = arith.constant 0 : index
    %520 = vector.load %arg3[%c0_342, %c0_343, %c0_344] : memref<9x64x16xbf16, #tpu.memory_space<vmem>>, vector<1x64x16xbf16>
    %521 = vector.shape_cast %520 : vector<1x64x16xbf16> to vector<64x16xbf16>
    %cst_345 = arith.constant dense<0.000000e+00> : vector<16x16xf32>
    %522 = tpu.matmul %519, %521, %cst_345 {dimension_numbers = #tpu.dot_dimension_numbers<[1], [0], [0], [1], [0, 0, 1, 1], [], []>} : vector<16x64xbf16>, vector<64x16xbf16>, vector<16x16xf32> -> vector<16x16xf32>
    %523 = arith.addf %518, %522 : vector<16x16xf32>
    %524 = vector.extract_strided_slice %517 {offsets = [16, 0], sizes = [16, 64], strides = [1, 1]} : vector<144x64xbf16> to vector<16x64xbf16>
    %c1_346 = arith.constant 1 : index
    %c0_347 = arith.constant 0 : index
    %c0_348 = arith.constant 0 : index
    %525 = vector.load %arg3[%c1_346, %c0_347, %c0_348] : memref<9x64x16xbf16, #tpu.memory_space<vmem>>, vector<1x64x16xbf16>
    %526 = vector.shape_cast %525 : vector<1x64x16xbf16> to vector<64x16xbf16>
    %cst_349 = arith.constant dense<0.000000e+00> : vector<16x16xf32>
    %527 = tpu.matmul %524, %526, %cst_349 {dimension_numbers = #tpu.dot_dimension_numbers<[1], [0], [0], [1], [0, 0, 1, 1], [], []>} : vector<16x64xbf16>, vector<64x16xbf16>, vector<16x16xf32> -> vector<16x16xf32>
    %528 = arith.addf %523, %527 : vector<16x16xf32>
    %529 = vector.extract_strided_slice %517 {offsets = [32, 0], sizes = [16, 64], strides = [1, 1]} : vector<144x64xbf16> to vector<16x64xbf16>
    %c2_350 = arith.constant 2 : index
    %c0_351 = arith.constant 0 : index
    %c0_352 = arith.constant 0 : index
    %530 = vector.load %arg3[%c2_350, %c0_351, %c0_352] : memref<9x64x16xbf16, #tpu.memory_space<vmem>>, vector<1x64x16xbf16>
    %531 = vector.shape_cast %530 : vector<1x64x16xbf16> to vector<64x16xbf16>
    %cst_353 = arith.constant dense<0.000000e+00> : vector<16x16xf32>
    %532 = tpu.matmul %529, %531, %cst_353 {dimension_numbers = #tpu.dot_dimension_numbers<[1], [0], [0], [1], [0, 0, 1, 1], [], []>} : vector<16x64xbf16>, vector<64x16xbf16>, vector<16x16xf32> -> vector<16x16xf32>
    %533 = arith.addf %528, %532 : vector<16x16xf32>
    %534 = vector.extract_strided_slice %517 {offsets = [48, 0], sizes = [16, 64], strides = [1, 1]} : vector<144x64xbf16> to vector<16x64xbf16>
    %c3_354 = arith.constant 3 : index
    %c0_355 = arith.constant 0 : index
    %c0_356 = arith.constant 0 : index
    %535 = vector.load %arg3[%c3_354, %c0_355, %c0_356] : memref<9x64x16xbf16, #tpu.memory_space<vmem>>, vector<1x64x16xbf16>
    %536 = vector.shape_cast %535 : vector<1x64x16xbf16> to vector<64x16xbf16>
    %cst_357 = arith.constant dense<0.000000e+00> : vector<16x16xf32>
    %537 = tpu.matmul %534, %536, %cst_357 {dimension_numbers = #tpu.dot_dimension_numbers<[1], [0], [0], [1], [0, 0, 1, 1], [], []>} : vector<16x64xbf16>, vector<64x16xbf16>, vector<16x16xf32> -> vector<16x16xf32>
    %538 = arith.addf %533, %537 : vector<16x16xf32>
    %539 = vector.extract_strided_slice %517 {offsets = [64, 0], sizes = [16, 64], strides = [1, 1]} : vector<144x64xbf16> to vector<16x64xbf16>
    %c4_358 = arith.constant 4 : index
    %c0_359 = arith.constant 0 : index
    %c0_360 = arith.constant 0 : index
    %540 = vector.load %arg3[%c4_358, %c0_359, %c0_360] : memref<9x64x16xbf16, #tpu.memory_space<vmem>>, vector<1x64x16xbf16>
    %541 = vector.shape_cast %540 : vector<1x64x16xbf16> to vector<64x16xbf16>
    %cst_361 = arith.constant dense<0.000000e+00> : vector<16x16xf32>
    %542 = tpu.matmul %539, %541, %cst_361 {dimension_numbers = #tpu.dot_dimension_numbers<[1], [0], [0], [1], [0, 0, 1, 1], [], []>} : vector<16x64xbf16>, vector<64x16xbf16>, vector<16x16xf32> -> vector<16x16xf32>
    %543 = arith.addf %538, %542 : vector<16x16xf32>
    %544 = vector.extract_strided_slice %517 {offsets = [80, 0], sizes = [16, 64], strides = [1, 1]} : vector<144x64xbf16> to vector<16x64xbf16>
    %c5_362 = arith.constant 5 : index
    %c0_363 = arith.constant 0 : index
    %c0_364 = arith.constant 0 : index
    %545 = vector.load %arg3[%c5_362, %c0_363, %c0_364] : memref<9x64x16xbf16, #tpu.memory_space<vmem>>, vector<1x64x16xbf16>
    %546 = vector.shape_cast %545 : vector<1x64x16xbf16> to vector<64x16xbf16>
    %cst_365 = arith.constant dense<0.000000e+00> : vector<16x16xf32>
    %547 = tpu.matmul %544, %546, %cst_365 {dimension_numbers = #tpu.dot_dimension_numbers<[1], [0], [0], [1], [0, 0, 1, 1], [], []>} : vector<16x64xbf16>, vector<64x16xbf16>, vector<16x16xf32> -> vector<16x16xf32>
    %548 = arith.addf %543, %547 : vector<16x16xf32>
    %549 = vector.extract_strided_slice %517 {offsets = [96, 0], sizes = [16, 64], strides = [1, 1]} : vector<144x64xbf16> to vector<16x64xbf16>
    %c6_366 = arith.constant 6 : index
    %c0_367 = arith.constant 0 : index
    %c0_368 = arith.constant 0 : index
    %550 = vector.load %arg3[%c6_366, %c0_367, %c0_368] : memref<9x64x16xbf16, #tpu.memory_space<vmem>>, vector<1x64x16xbf16>
    %551 = vector.shape_cast %550 : vector<1x64x16xbf16> to vector<64x16xbf16>
    %cst_369 = arith.constant dense<0.000000e+00> : vector<16x16xf32>
    %552 = tpu.matmul %549, %551, %cst_369 {dimension_numbers = #tpu.dot_dimension_numbers<[1], [0], [0], [1], [0, 0, 1, 1], [], []>} : vector<16x64xbf16>, vector<64x16xbf16>, vector<16x16xf32> -> vector<16x16xf32>
    %553 = arith.addf %548, %552 : vector<16x16xf32>
    %554 = vector.extract_strided_slice %517 {offsets = [112, 0], sizes = [16, 64], strides = [1, 1]} : vector<144x64xbf16> to vector<16x64xbf16>
    %c7_370 = arith.constant 7 : index
    %c0_371 = arith.constant 0 : index
    %c0_372 = arith.constant 0 : index
    %555 = vector.load %arg3[%c7_370, %c0_371, %c0_372] : memref<9x64x16xbf16, #tpu.memory_space<vmem>>, vector<1x64x16xbf16>
    %556 = vector.shape_cast %555 : vector<1x64x16xbf16> to vector<64x16xbf16>
    %cst_373 = arith.constant dense<0.000000e+00> : vector<16x16xf32>
    %557 = tpu.matmul %554, %556, %cst_373 {dimension_numbers = #tpu.dot_dimension_numbers<[1], [0], [0], [1], [0, 0, 1, 1], [], []>} : vector<16x64xbf16>, vector<64x16xbf16>, vector<16x16xf32> -> vector<16x16xf32>
    %558 = arith.addf %553, %557 : vector<16x16xf32>
    %559 = vector.extract_strided_slice %517 {offsets = [128, 0], sizes = [16, 64], strides = [1, 1]} : vector<144x64xbf16> to vector<16x64xbf16>
    %c8_374 = arith.constant 8 : index
    %c0_375 = arith.constant 0 : index
    %c0_376 = arith.constant 0 : index
    %560 = vector.load %arg3[%c8_374, %c0_375, %c0_376] : memref<9x64x16xbf16, #tpu.memory_space<vmem>>, vector<1x64x16xbf16>
    %561 = vector.shape_cast %560 : vector<1x64x16xbf16> to vector<64x16xbf16>
    %cst_377 = arith.constant dense<0.000000e+00> : vector<16x16xf32>
    %562 = tpu.matmul %559, %561, %cst_377 {dimension_numbers = #tpu.dot_dimension_numbers<[1], [0], [0], [1], [0, 0, 1, 1], [], []>} : vector<16x64xbf16>, vector<64x16xbf16>, vector<16x16xf32> -> vector<16x16xf32>
    %563 = arith.addf %558, %562 : vector<16x16xf32>
    %c0_378 = arith.constant 0 : index
    %c0_379 = arith.constant 0 : index
    %564 = vector.load %arg18[%c0_378, %c0_379] : memref<16x1xf32, #tpu.memory_space<vmem>>, vector<16x1xf32>
    %565 = vector.broadcast %564 : vector<16x1xf32> to vector<16x16xf32>
    %566 = arith.addf %563, %565 : vector<16x16xf32>
    %cst_380 = arith.constant 0.000000e+00 : f32
    %567 = vector.broadcast %cst_380 : f32 to vector<16x16xf32>
    %568 = arith.cmpf oge, %566, %567 : vector<16x16xf32>
    %cst_381 = arith.constant 2.000000e-01 : f32
    %569 = vector.broadcast %cst_381 : f32 to vector<16x16xf32>
    %570 = arith.mulf %569, %566 : vector<16x16xf32>
    %571 = arith.select %568, %566, %570 : vector<16x16xi1>, vector<16x16xf32>
    %572 = arith.truncf %571 : vector<16x16xf32> to vector<16x16xbf16>
    %c0_382 = arith.constant 0 : index
    %c0_383 = arith.constant 0 : index
    %573 = vector.load %arg10[%c0_382, %c0_383] : memref<144x16xbf16, #tpu.memory_space<vmem>>, vector<144x16xbf16>
    %cst_384 = arith.constant dense<0.000000e+00> : vector<144x16xf32>
    %574 = tpu.matmul %573, %572, %cst_384 {dimension_numbers = #tpu.dot_dimension_numbers<[1], [0], [0], [1], [0, 0, 1, 1], [], []>} : vector<144x16xbf16>, vector<16x16xbf16>, vector<144x16xf32> -> vector<144x16xf32>
    %575 = arith.truncf %574 : vector<144x16xf32> to vector<144x16xbf16>
    %cst_385 = arith.constant 0.000000e+00 : f32
    %576 = vector.broadcast %cst_385 : f32 to vector<16x64xf32>
    %577 = vector.extract_strided_slice %575 {offsets = [0, 0], sizes = [16, 16], strides = [1, 1]} : vector<144x16xbf16> to vector<16x16xbf16>
    %c0_386 = arith.constant 0 : index
    %c0_387 = arith.constant 0 : index
    %c0_388 = arith.constant 0 : index
    %578 = vector.load %arg4[%c0_386, %c0_387, %c0_388] : memref<9x16x64xbf16, #tpu.memory_space<vmem>>, vector<1x16x64xbf16>
    %579 = vector.shape_cast %578 : vector<1x16x64xbf16> to vector<16x64xbf16>
    %cst_389 = arith.constant dense<0.000000e+00> : vector<16x64xf32>
    %580 = tpu.matmul %577, %579, %cst_389 {dimension_numbers = #tpu.dot_dimension_numbers<[1], [0], [0], [1], [0, 0, 1, 1], [], []>} : vector<16x16xbf16>, vector<16x64xbf16>, vector<16x64xf32> -> vector<16x64xf32>
    %581 = arith.addf %576, %580 : vector<16x64xf32>
    %582 = vector.extract_strided_slice %575 {offsets = [16, 0], sizes = [16, 16], strides = [1, 1]} : vector<144x16xbf16> to vector<16x16xbf16>
    %c1_390 = arith.constant 1 : index
    %c0_391 = arith.constant 0 : index
    %c0_392 = arith.constant 0 : index
    %583 = vector.load %arg4[%c1_390, %c0_391, %c0_392] : memref<9x16x64xbf16, #tpu.memory_space<vmem>>, vector<1x16x64xbf16>
    %584 = vector.shape_cast %583 : vector<1x16x64xbf16> to vector<16x64xbf16>
    %cst_393 = arith.constant dense<0.000000e+00> : vector<16x64xf32>
    %585 = tpu.matmul %582, %584, %cst_393 {dimension_numbers = #tpu.dot_dimension_numbers<[1], [0], [0], [1], [0, 0, 1, 1], [], []>} : vector<16x16xbf16>, vector<16x64xbf16>, vector<16x64xf32> -> vector<16x64xf32>
    %586 = arith.addf %581, %585 : vector<16x64xf32>
    %587 = vector.extract_strided_slice %575 {offsets = [32, 0], sizes = [16, 16], strides = [1, 1]} : vector<144x16xbf16> to vector<16x16xbf16>
    %c2_394 = arith.constant 2 : index
    %c0_395 = arith.constant 0 : index
    %c0_396 = arith.constant 0 : index
    %588 = vector.load %arg4[%c2_394, %c0_395, %c0_396] : memref<9x16x64xbf16, #tpu.memory_space<vmem>>, vector<1x16x64xbf16>
    %589 = vector.shape_cast %588 : vector<1x16x64xbf16> to vector<16x64xbf16>
    %cst_397 = arith.constant dense<0.000000e+00> : vector<16x64xf32>
    %590 = tpu.matmul %587, %589, %cst_397 {dimension_numbers = #tpu.dot_dimension_numbers<[1], [0], [0], [1], [0, 0, 1, 1], [], []>} : vector<16x16xbf16>, vector<16x64xbf16>, vector<16x64xf32> -> vector<16x64xf32>
    %591 = arith.addf %586, %590 : vector<16x64xf32>
    %592 = vector.extract_strided_slice %575 {offsets = [48, 0], sizes = [16, 16], strides = [1, 1]} : vector<144x16xbf16> to vector<16x16xbf16>
    %c3_398 = arith.constant 3 : index
    %c0_399 = arith.constant 0 : index
    %c0_400 = arith.constant 0 : index
    %593 = vector.load %arg4[%c3_398, %c0_399, %c0_400] : memref<9x16x64xbf16, #tpu.memory_space<vmem>>, vector<1x16x64xbf16>
    %594 = vector.shape_cast %593 : vector<1x16x64xbf16> to vector<16x64xbf16>
    %cst_401 = arith.constant dense<0.000000e+00> : vector<16x64xf32>
    %595 = tpu.matmul %592, %594, %cst_401 {dimension_numbers = #tpu.dot_dimension_numbers<[1], [0], [0], [1], [0, 0, 1, 1], [], []>} : vector<16x16xbf16>, vector<16x64xbf16>, vector<16x64xf32> -> vector<16x64xf32>
    %596 = arith.addf %591, %595 : vector<16x64xf32>
    %597 = vector.extract_strided_slice %575 {offsets = [64, 0], sizes = [16, 16], strides = [1, 1]} : vector<144x16xbf16> to vector<16x16xbf16>
    %c4_402 = arith.constant 4 : index
    %c0_403 = arith.constant 0 : index
    %c0_404 = arith.constant 0 : index
    %598 = vector.load %arg4[%c4_402, %c0_403, %c0_404] : memref<9x16x64xbf16, #tpu.memory_space<vmem>>, vector<1x16x64xbf16>
    %599 = vector.shape_cast %598 : vector<1x16x64xbf16> to vector<16x64xbf16>
    %cst_405 = arith.constant dense<0.000000e+00> : vector<16x64xf32>
    %600 = tpu.matmul %597, %599, %cst_405 {dimension_numbers = #tpu.dot_dimension_numbers<[1], [0], [0], [1], [0, 0, 1, 1], [], []>} : vector<16x16xbf16>, vector<16x64xbf16>, vector<16x64xf32> -> vector<16x64xf32>
    %601 = arith.addf %596, %600 : vector<16x64xf32>
    %602 = vector.extract_strided_slice %575 {offsets = [80, 0], sizes = [16, 16], strides = [1, 1]} : vector<144x16xbf16> to vector<16x16xbf16>
    %c5_406 = arith.constant 5 : index
    %c0_407 = arith.constant 0 : index
    %c0_408 = arith.constant 0 : index
    %603 = vector.load %arg4[%c5_406, %c0_407, %c0_408] : memref<9x16x64xbf16, #tpu.memory_space<vmem>>, vector<1x16x64xbf16>
    %604 = vector.shape_cast %603 : vector<1x16x64xbf16> to vector<16x64xbf16>
    %cst_409 = arith.constant dense<0.000000e+00> : vector<16x64xf32>
    %605 = tpu.matmul %602, %604, %cst_409 {dimension_numbers = #tpu.dot_dimension_numbers<[1], [0], [0], [1], [0, 0, 1, 1], [], []>} : vector<16x16xbf16>, vector<16x64xbf16>, vector<16x64xf32> -> vector<16x64xf32>
    %606 = arith.addf %601, %605 : vector<16x64xf32>
    %607 = vector.extract_strided_slice %575 {offsets = [96, 0], sizes = [16, 16], strides = [1, 1]} : vector<144x16xbf16> to vector<16x16xbf16>
    %c6_410 = arith.constant 6 : index
    %c0_411 = arith.constant 0 : index
    %c0_412 = arith.constant 0 : index
    %608 = vector.load %arg4[%c6_410, %c0_411, %c0_412] : memref<9x16x64xbf16, #tpu.memory_space<vmem>>, vector<1x16x64xbf16>
    %609 = vector.shape_cast %608 : vector<1x16x64xbf16> to vector<16x64xbf16>
    %cst_413 = arith.constant dense<0.000000e+00> : vector<16x64xf32>
    %610 = tpu.matmul %607, %609, %cst_413 {dimension_numbers = #tpu.dot_dimension_numbers<[1], [0], [0], [1], [0, 0, 1, 1], [], []>} : vector<16x16xbf16>, vector<16x64xbf16>, vector<16x64xf32> -> vector<16x64xf32>
    %611 = arith.addf %606, %610 : vector<16x64xf32>
    %612 = vector.extract_strided_slice %575 {offsets = [112, 0], sizes = [16, 16], strides = [1, 1]} : vector<144x16xbf16> to vector<16x16xbf16>
    %c7_414 = arith.constant 7 : index
    %c0_415 = arith.constant 0 : index
    %c0_416 = arith.constant 0 : index
    %613 = vector.load %arg4[%c7_414, %c0_415, %c0_416] : memref<9x16x64xbf16, #tpu.memory_space<vmem>>, vector<1x16x64xbf16>
    %614 = vector.shape_cast %613 : vector<1x16x64xbf16> to vector<16x64xbf16>
    %cst_417 = arith.constant dense<0.000000e+00> : vector<16x64xf32>
    %615 = tpu.matmul %612, %614, %cst_417 {dimension_numbers = #tpu.dot_dimension_numbers<[1], [0], [0], [1], [0, 0, 1, 1], [], []>} : vector<16x16xbf16>, vector<16x64xbf16>, vector<16x64xf32> -> vector<16x64xf32>
    %616 = arith.addf %611, %615 : vector<16x64xf32>
    %617 = vector.extract_strided_slice %575 {offsets = [128, 0], sizes = [16, 16], strides = [1, 1]} : vector<144x16xbf16> to vector<16x16xbf16>
    %c8_418 = arith.constant 8 : index
    %c0_419 = arith.constant 0 : index
    %c0_420 = arith.constant 0 : index
    %618 = vector.load %arg4[%c8_418, %c0_419, %c0_420] : memref<9x16x64xbf16, #tpu.memory_space<vmem>>, vector<1x16x64xbf16>
    %619 = vector.shape_cast %618 : vector<1x16x64xbf16> to vector<16x64xbf16>
    %cst_421 = arith.constant dense<0.000000e+00> : vector<16x64xf32>
    %620 = tpu.matmul %617, %619, %cst_421 {dimension_numbers = #tpu.dot_dimension_numbers<[1], [0], [0], [1], [0, 0, 1, 1], [], []>} : vector<16x16xbf16>, vector<16x64xbf16>, vector<16x64xf32> -> vector<16x64xf32>
    %621 = arith.addf %616, %620 : vector<16x64xf32>
    %c0_422 = arith.constant 0 : index
    %c0_423 = arith.constant 0 : index
    %622 = vector.load %arg19[%c0_422, %c0_423] : memref<16x1xf32, #tpu.memory_space<vmem>>, vector<16x1xf32>
    %623 = vector.broadcast %622 : vector<16x1xf32> to vector<16x64xf32>
    %624 = arith.addf %621, %623 : vector<16x64xf32>
    %cst_424 = arith.constant 0.000000e+00 : f32
    %625 = vector.broadcast %cst_424 : f32 to vector<16x64xf32>
    %626 = arith.cmpf oge, %624, %625 : vector<16x64xf32>
    %cst_425 = arith.constant 2.000000e-01 : f32
    %627 = vector.broadcast %cst_425 : f32 to vector<16x64xf32>
    %628 = arith.mulf %627, %624 : vector<16x64xf32>
    %629 = arith.select %626, %624, %628 : vector<16x64xi1>, vector<16x64xf32>
    %630 = arith.truncf %629 : vector<16x64xf32> to vector<16x64xbf16>
    %c0_426 = arith.constant 0 : index
    %c0_427 = arith.constant 0 : index
    %631 = vector.load %arg11[%c0_426, %c0_427] : memref<72x16xbf16, #tpu.memory_space<vmem>>, vector<72x16xbf16>
    %cst_428 = arith.constant dense<0.000000e+00> : vector<72x64xf32>
    %632 = tpu.matmul %631, %630, %cst_428 {dimension_numbers = #tpu.dot_dimension_numbers<[1], [0], [0], [1], [0, 0, 1, 1], [], []>} : vector<72x16xbf16>, vector<16x64xbf16>, vector<72x64xf32> -> vector<72x64xf32>
    %c0_429 = arith.constant 0 : index
    %c0_430 = arith.constant 0 : index
    %633 = vector.load %arg12[%c0_429, %c0_430] : memref<72x8xbf16, #tpu.memory_space<vmem>>, vector<72x8xbf16>
    %cst_431 = arith.constant dense<0.000000e+00> : vector<72x64xf32>
    %634 = tpu.matmul %633, %514, %cst_431 {dimension_numbers = #tpu.dot_dimension_numbers<[1], [0], [0], [1], [0, 0, 1, 1], [], []>} : vector<72x8xbf16>, vector<8x64xbf16>, vector<72x64xf32> -> vector<72x64xf32>
    %635 = arith.addf %632, %634 : vector<72x64xf32>
    %636 = arith.truncf %635 : vector<72x64xf32> to vector<72x64xbf16>
    %cst_432 = arith.constant 0.000000e+00 : f32
    %637 = vector.broadcast %cst_432 : f32 to vector<8x64xf32>
    %638 = vector.extract_strided_slice %636 {offsets = [0, 0], sizes = [8, 64], strides = [1, 1]} : vector<72x64xbf16> to vector<8x64xbf16>
    %c0_433 = arith.constant 0 : index
    %c0_434 = arith.constant 0 : index
    %c0_435 = arith.constant 0 : index
    %639 = vector.load %arg5[%c0_433, %c0_434, %c0_435] : memref<9x64x64xbf16, #tpu.memory_space<vmem>>, vector<1x64x64xbf16>
    %640 = vector.shape_cast %639 : vector<1x64x64xbf16> to vector<64x64xbf16>
    %cst_436 = arith.constant dense<0.000000e+00> : vector<8x64xf32>
    %641 = tpu.matmul %638, %640, %cst_436 {dimension_numbers = #tpu.dot_dimension_numbers<[1], [0], [0], [1], [0, 0, 1, 1], [], []>} : vector<8x64xbf16>, vector<64x64xbf16>, vector<8x64xf32> -> vector<8x64xf32>
    %642 = arith.addf %637, %641 : vector<8x64xf32>
    %643 = vector.extract_strided_slice %636 {offsets = [8, 0], sizes = [8, 64], strides = [1, 1]} : vector<72x64xbf16> to vector<8x64xbf16>
    %c1_437 = arith.constant 1 : index
    %c0_438 = arith.constant 0 : index
    %c0_439 = arith.constant 0 : index
    %644 = vector.load %arg5[%c1_437, %c0_438, %c0_439] : memref<9x64x64xbf16, #tpu.memory_space<vmem>>, vector<1x64x64xbf16>
    %645 = vector.shape_cast %644 : vector<1x64x64xbf16> to vector<64x64xbf16>
    %cst_440 = arith.constant dense<0.000000e+00> : vector<8x64xf32>
    %646 = tpu.matmul %643, %645, %cst_440 {dimension_numbers = #tpu.dot_dimension_numbers<[1], [0], [0], [1], [0, 0, 1, 1], [], []>} : vector<8x64xbf16>, vector<64x64xbf16>, vector<8x64xf32> -> vector<8x64xf32>
    %647 = arith.addf %642, %646 : vector<8x64xf32>
    %648 = vector.extract_strided_slice %636 {offsets = [16, 0], sizes = [8, 64], strides = [1, 1]} : vector<72x64xbf16> to vector<8x64xbf16>
    %c2_441 = arith.constant 2 : index
    %c0_442 = arith.constant 0 : index
    %c0_443 = arith.constant 0 : index
    %649 = vector.load %arg5[%c2_441, %c0_442, %c0_443] : memref<9x64x64xbf16, #tpu.memory_space<vmem>>, vector<1x64x64xbf16>
    %650 = vector.shape_cast %649 : vector<1x64x64xbf16> to vector<64x64xbf16>
    %cst_444 = arith.constant dense<0.000000e+00> : vector<8x64xf32>
    %651 = tpu.matmul %648, %650, %cst_444 {dimension_numbers = #tpu.dot_dimension_numbers<[1], [0], [0], [1], [0, 0, 1, 1], [], []>} : vector<8x64xbf16>, vector<64x64xbf16>, vector<8x64xf32> -> vector<8x64xf32>
    %652 = arith.addf %647, %651 : vector<8x64xf32>
    %653 = vector.extract_strided_slice %636 {offsets = [24, 0], sizes = [8, 64], strides = [1, 1]} : vector<72x64xbf16> to vector<8x64xbf16>
    %c3_445 = arith.constant 3 : index
    %c0_446 = arith.constant 0 : index
    %c0_447 = arith.constant 0 : index
    %654 = vector.load %arg5[%c3_445, %c0_446, %c0_447] : memref<9x64x64xbf16, #tpu.memory_space<vmem>>, vector<1x64x64xbf16>
    %655 = vector.shape_cast %654 : vector<1x64x64xbf16> to vector<64x64xbf16>
    %cst_448 = arith.constant dense<0.000000e+00> : vector<8x64xf32>
    %656 = tpu.matmul %653, %655, %cst_448 {dimension_numbers = #tpu.dot_dimension_numbers<[1], [0], [0], [1], [0, 0, 1, 1], [], []>} : vector<8x64xbf16>, vector<64x64xbf16>, vector<8x64xf32> -> vector<8x64xf32>
    %657 = arith.addf %652, %656 : vector<8x64xf32>
    %658 = vector.extract_strided_slice %636 {offsets = [32, 0], sizes = [8, 64], strides = [1, 1]} : vector<72x64xbf16> to vector<8x64xbf16>
    %c4_449 = arith.constant 4 : index
    %c0_450 = arith.constant 0 : index
    %c0_451 = arith.constant 0 : index
    %659 = vector.load %arg5[%c4_449, %c0_450, %c0_451] : memref<9x64x64xbf16, #tpu.memory_space<vmem>>, vector<1x64x64xbf16>
    %660 = vector.shape_cast %659 : vector<1x64x64xbf16> to vector<64x64xbf16>
    %cst_452 = arith.constant dense<0.000000e+00> : vector<8x64xf32>
    %661 = tpu.matmul %658, %660, %cst_452 {dimension_numbers = #tpu.dot_dimension_numbers<[1], [0], [0], [1], [0, 0, 1, 1], [], []>} : vector<8x64xbf16>, vector<64x64xbf16>, vector<8x64xf32> -> vector<8x64xf32>
    %662 = arith.addf %657, %661 : vector<8x64xf32>
    %663 = vector.extract_strided_slice %636 {offsets = [40, 0], sizes = [8, 64], strides = [1, 1]} : vector<72x64xbf16> to vector<8x64xbf16>
    %c5_453 = arith.constant 5 : index
    %c0_454 = arith.constant 0 : index
    %c0_455 = arith.constant 0 : index
    %664 = vector.load %arg5[%c5_453, %c0_454, %c0_455] : memref<9x64x64xbf16, #tpu.memory_space<vmem>>, vector<1x64x64xbf16>
    %665 = vector.shape_cast %664 : vector<1x64x64xbf16> to vector<64x64xbf16>
    %cst_456 = arith.constant dense<0.000000e+00> : vector<8x64xf32>
    %666 = tpu.matmul %663, %665, %cst_456 {dimension_numbers = #tpu.dot_dimension_numbers<[1], [0], [0], [1], [0, 0, 1, 1], [], []>} : vector<8x64xbf16>, vector<64x64xbf16>, vector<8x64xf32> -> vector<8x64xf32>
    %667 = arith.addf %662, %666 : vector<8x64xf32>
    %668 = vector.extract_strided_slice %636 {offsets = [48, 0], sizes = [8, 64], strides = [1, 1]} : vector<72x64xbf16> to vector<8x64xbf16>
    %c6_457 = arith.constant 6 : index
    %c0_458 = arith.constant 0 : index
    %c0_459 = arith.constant 0 : index
    %669 = vector.load %arg5[%c6_457, %c0_458, %c0_459] : memref<9x64x64xbf16, #tpu.memory_space<vmem>>, vector<1x64x64xbf16>
    %670 = vector.shape_cast %669 : vector<1x64x64xbf16> to vector<64x64xbf16>
    %cst_460 = arith.constant dense<0.000000e+00> : vector<8x64xf32>
    %671 = tpu.matmul %668, %670, %cst_460 {dimension_numbers = #tpu.dot_dimension_numbers<[1], [0], [0], [1], [0, 0, 1, 1], [], []>} : vector<8x64xbf16>, vector<64x64xbf16>, vector<8x64xf32> -> vector<8x64xf32>
    %672 = arith.addf %667, %671 : vector<8x64xf32>
    %673 = vector.extract_strided_slice %636 {offsets = [56, 0], sizes = [8, 64], strides = [1, 1]} : vector<72x64xbf16> to vector<8x64xbf16>
    %c7_461 = arith.constant 7 : index
    %c0_462 = arith.constant 0 : index
    %c0_463 = arith.constant 0 : index
    %674 = vector.load %arg5[%c7_461, %c0_462, %c0_463] : memref<9x64x64xbf16, #tpu.memory_space<vmem>>, vector<1x64x64xbf16>
    %675 = vector.shape_cast %674 : vector<1x64x64xbf16> to vector<64x64xbf16>
    %cst_464 = arith.constant dense<0.000000e+00> : vector<8x64xf32>
    %676 = tpu.matmul %673, %675, %cst_464 {dimension_numbers = #tpu.dot_dimension_numbers<[1], [0], [0], [1], [0, 0, 1, 1], [], []>} : vector<8x64xbf16>, vector<64x64xbf16>, vector<8x64xf32> -> vector<8x64xf32>
    %677 = arith.addf %672, %676 : vector<8x64xf32>
    %678 = vector.extract_strided_slice %636 {offsets = [64, 0], sizes = [8, 64], strides = [1, 1]} : vector<72x64xbf16> to vector<8x64xbf16>
    %c8_465 = arith.constant 8 : index
    %c0_466 = arith.constant 0 : index
    %c0_467 = arith.constant 0 : index
    %679 = vector.load %arg5[%c8_465, %c0_466, %c0_467] : memref<9x64x64xbf16, #tpu.memory_space<vmem>>, vector<1x64x64xbf16>
    %680 = vector.shape_cast %679 : vector<1x64x64xbf16> to vector<64x64xbf16>
    %cst_468 = arith.constant dense<0.000000e+00> : vector<8x64xf32>
    %681 = tpu.matmul %678, %680, %cst_468 {dimension_numbers = #tpu.dot_dimension_numbers<[1], [0], [0], [1], [0, 0, 1, 1], [], []>} : vector<8x64xbf16>, vector<64x64xbf16>, vector<8x64xf32> -> vector<8x64xf32>
    %682 = arith.addf %677, %681 : vector<8x64xf32>
    %c0_469 = arith.constant 0 : index
    %c0_470 = arith.constant 0 : index
    %683 = vector.load %arg20[%c0_469, %c0_470] : memref<8x1xf32, #tpu.memory_space<vmem>>, vector<8x1xf32>
    %684 = vector.broadcast %683 : vector<8x1xf32> to vector<8x64xf32>
    %685 = arith.addf %682, %684 : vector<8x64xf32>
    %cst_471 = arith.constant 0.000000e+00 : f32
    %686 = vector.broadcast %cst_471 : f32 to vector<8x64xf32>
    %687 = arith.cmpf oge, %685, %686 : vector<8x64xf32>
    %cst_472 = arith.constant 2.000000e-01 : f32
    %688 = vector.broadcast %cst_472 : f32 to vector<8x64xf32>
    %689 = arith.mulf %688, %685 : vector<8x64xf32>
    %690 = arith.select %687, %685, %689 : vector<8x64xi1>, vector<8x64xf32>
    %691 = arith.truncf %690 : vector<8x64xf32> to vector<8x64xbf16>
    %c0_473 = arith.constant 0 : index
    %c0_474 = arith.constant 0 : index
    %692 = vector.load %arg13[%c0_473, %c0_474] : memref<72x8xbf16, #tpu.memory_space<vmem>>, vector<72x8xbf16>
    %cst_475 = arith.constant dense<0.000000e+00> : vector<72x64xf32>
    %693 = tpu.matmul %692, %691, %cst_475 {dimension_numbers = #tpu.dot_dimension_numbers<[1], [0], [0], [1], [0, 0, 1, 1], [], []>} : vector<72x8xbf16>, vector<8x64xbf16>, vector<72x64xf32> -> vector<72x64xf32>
    %694 = arith.truncf %693 : vector<72x64xf32> to vector<72x64xbf16>
    %cst_476 = arith.constant 0.000000e+00 : f32
    %695 = vector.broadcast %cst_476 : f32 to vector<8x256xf32>
    %696 = vector.extract_strided_slice %694 {offsets = [0, 0], sizes = [8, 64], strides = [1, 1]} : vector<72x64xbf16> to vector<8x64xbf16>
    %c0_477 = arith.constant 0 : index
    %c0_478 = arith.constant 0 : index
    %c0_479 = arith.constant 0 : index
    %697 = vector.load %arg6[%c0_477, %c0_478, %c0_479] : memref<9x64x256xbf16, #tpu.memory_space<vmem>>, vector<1x64x256xbf16>
    %698 = vector.shape_cast %697 : vector<1x64x256xbf16> to vector<64x256xbf16>
    %cst_480 = arith.constant dense<0.000000e+00> : vector<8x256xf32>
    %699 = tpu.matmul %696, %698, %cst_480 {dimension_numbers = #tpu.dot_dimension_numbers<[1], [0], [0], [1], [0, 0, 1, 1], [], []>} : vector<8x64xbf16>, vector<64x256xbf16>, vector<8x256xf32> -> vector<8x256xf32>
    %700 = arith.addf %695, %699 : vector<8x256xf32>
    %701 = vector.extract_strided_slice %694 {offsets = [8, 0], sizes = [8, 64], strides = [1, 1]} : vector<72x64xbf16> to vector<8x64xbf16>
    %c1_481 = arith.constant 1 : index
    %c0_482 = arith.constant 0 : index
    %c0_483 = arith.constant 0 : index
    %702 = vector.load %arg6[%c1_481, %c0_482, %c0_483] : memref<9x64x256xbf16, #tpu.memory_space<vmem>>, vector<1x64x256xbf16>
    %703 = vector.shape_cast %702 : vector<1x64x256xbf16> to vector<64x256xbf16>
    %cst_484 = arith.constant dense<0.000000e+00> : vector<8x256xf32>
    %704 = tpu.matmul %701, %703, %cst_484 {dimension_numbers = #tpu.dot_dimension_numbers<[1], [0], [0], [1], [0, 0, 1, 1], [], []>} : vector<8x64xbf16>, vector<64x256xbf16>, vector<8x256xf32> -> vector<8x256xf32>
    %705 = arith.addf %700, %704 : vector<8x256xf32>
    %706 = vector.extract_strided_slice %694 {offsets = [16, 0], sizes = [8, 64], strides = [1, 1]} : vector<72x64xbf16> to vector<8x64xbf16>
    %c2_485 = arith.constant 2 : index
    %c0_486 = arith.constant 0 : index
    %c0_487 = arith.constant 0 : index
    %707 = vector.load %arg6[%c2_485, %c0_486, %c0_487] : memref<9x64x256xbf16, #tpu.memory_space<vmem>>, vector<1x64x256xbf16>
    %708 = vector.shape_cast %707 : vector<1x64x256xbf16> to vector<64x256xbf16>
    %cst_488 = arith.constant dense<0.000000e+00> : vector<8x256xf32>
    %709 = tpu.matmul %706, %708, %cst_488 {dimension_numbers = #tpu.dot_dimension_numbers<[1], [0], [0], [1], [0, 0, 1, 1], [], []>} : vector<8x64xbf16>, vector<64x256xbf16>, vector<8x256xf32> -> vector<8x256xf32>
    %710 = arith.addf %705, %709 : vector<8x256xf32>
    %711 = vector.extract_strided_slice %694 {offsets = [24, 0], sizes = [8, 64], strides = [1, 1]} : vector<72x64xbf16> to vector<8x64xbf16>
    %c3_489 = arith.constant 3 : index
    %c0_490 = arith.constant 0 : index
    %c0_491 = arith.constant 0 : index
    %712 = vector.load %arg6[%c3_489, %c0_490, %c0_491] : memref<9x64x256xbf16, #tpu.memory_space<vmem>>, vector<1x64x256xbf16>
    %713 = vector.shape_cast %712 : vector<1x64x256xbf16> to vector<64x256xbf16>
    %cst_492 = arith.constant dense<0.000000e+00> : vector<8x256xf32>
    %714 = tpu.matmul %711, %713, %cst_492 {dimension_numbers = #tpu.dot_dimension_numbers<[1], [0], [0], [1], [0, 0, 1, 1], [], []>} : vector<8x64xbf16>, vector<64x256xbf16>, vector<8x256xf32> -> vector<8x256xf32>
    %715 = arith.addf %710, %714 : vector<8x256xf32>
    %716 = vector.extract_strided_slice %694 {offsets = [32, 0], sizes = [8, 64], strides = [1, 1]} : vector<72x64xbf16> to vector<8x64xbf16>
    %c4_493 = arith.constant 4 : index
    %c0_494 = arith.constant 0 : index
    %c0_495 = arith.constant 0 : index
    %717 = vector.load %arg6[%c4_493, %c0_494, %c0_495] : memref<9x64x256xbf16, #tpu.memory_space<vmem>>, vector<1x64x256xbf16>
    %718 = vector.shape_cast %717 : vector<1x64x256xbf16> to vector<64x256xbf16>
    %cst_496 = arith.constant dense<0.000000e+00> : vector<8x256xf32>
    %719 = tpu.matmul %716, %718, %cst_496 {dimension_numbers = #tpu.dot_dimension_numbers<[1], [0], [0], [1], [0, 0, 1, 1], [], []>} : vector<8x64xbf16>, vector<64x256xbf16>, vector<8x256xf32> -> vector<8x256xf32>
    %720 = arith.addf %715, %719 : vector<8x256xf32>
    %721 = vector.extract_strided_slice %694 {offsets = [40, 0], sizes = [8, 64], strides = [1, 1]} : vector<72x64xbf16> to vector<8x64xbf16>
    %c5_497 = arith.constant 5 : index
    %c0_498 = arith.constant 0 : index
    %c0_499 = arith.constant 0 : index
    %722 = vector.load %arg6[%c5_497, %c0_498, %c0_499] : memref<9x64x256xbf16, #tpu.memory_space<vmem>>, vector<1x64x256xbf16>
    %723 = vector.shape_cast %722 : vector<1x64x256xbf16> to vector<64x256xbf16>
    %cst_500 = arith.constant dense<0.000000e+00> : vector<8x256xf32>
    %724 = tpu.matmul %721, %723, %cst_500 {dimension_numbers = #tpu.dot_dimension_numbers<[1], [0], [0], [1], [0, 0, 1, 1], [], []>} : vector<8x64xbf16>, vector<64x256xbf16>, vector<8x256xf32> -> vector<8x256xf32>
    %725 = arith.addf %720, %724 : vector<8x256xf32>
    %726 = vector.extract_strided_slice %694 {offsets = [48, 0], sizes = [8, 64], strides = [1, 1]} : vector<72x64xbf16> to vector<8x64xbf16>
    %c6_501 = arith.constant 6 : index
    %c0_502 = arith.constant 0 : index
    %c0_503 = arith.constant 0 : index
    %727 = vector.load %arg6[%c6_501, %c0_502, %c0_503] : memref<9x64x256xbf16, #tpu.memory_space<vmem>>, vector<1x64x256xbf16>
    %728 = vector.shape_cast %727 : vector<1x64x256xbf16> to vector<64x256xbf16>
    %cst_504 = arith.constant dense<0.000000e+00> : vector<8x256xf32>
    %729 = tpu.matmul %726, %728, %cst_504 {dimension_numbers = #tpu.dot_dimension_numbers<[1], [0], [0], [1], [0, 0, 1, 1], [], []>} : vector<8x64xbf16>, vector<64x256xbf16>, vector<8x256xf32> -> vector<8x256xf32>
    %730 = arith.addf %725, %729 : vector<8x256xf32>
    %731 = vector.extract_strided_slice %694 {offsets = [56, 0], sizes = [8, 64], strides = [1, 1]} : vector<72x64xbf16> to vector<8x64xbf16>
    %c7_505 = arith.constant 7 : index
    %c0_506 = arith.constant 0 : index
    %c0_507 = arith.constant 0 : index
    %732 = vector.load %arg6[%c7_505, %c0_506, %c0_507] : memref<9x64x256xbf16, #tpu.memory_space<vmem>>, vector<1x64x256xbf16>
    %733 = vector.shape_cast %732 : vector<1x64x256xbf16> to vector<64x256xbf16>
    %cst_508 = arith.constant dense<0.000000e+00> : vector<8x256xf32>
    %734 = tpu.matmul %731, %733, %cst_508 {dimension_numbers = #tpu.dot_dimension_numbers<[1], [0], [0], [1], [0, 0, 1, 1], [], []>} : vector<8x64xbf16>, vector<64x256xbf16>, vector<8x256xf32> -> vector<8x256xf32>
    %735 = arith.addf %730, %734 : vector<8x256xf32>
    %736 = vector.extract_strided_slice %694 {offsets = [64, 0], sizes = [8, 64], strides = [1, 1]} : vector<72x64xbf16> to vector<8x64xbf16>
    %c8_509 = arith.constant 8 : index
    %c0_510 = arith.constant 0 : index
    %c0_511 = arith.constant 0 : index
    %737 = vector.load %arg6[%c8_509, %c0_510, %c0_511] : memref<9x64x256xbf16, #tpu.memory_space<vmem>>, vector<1x64x256xbf16>
    %738 = vector.shape_cast %737 : vector<1x64x256xbf16> to vector<64x256xbf16>
    %cst_512 = arith.constant dense<0.000000e+00> : vector<8x256xf32>
    %739 = tpu.matmul %736, %738, %cst_512 {dimension_numbers = #tpu.dot_dimension_numbers<[1], [0], [0], [1], [0, 0, 1, 1], [], []>} : vector<8x64xbf16>, vector<64x256xbf16>, vector<8x256xf32> -> vector<8x256xf32>
    %740 = arith.addf %735, %739 : vector<8x256xf32>
    %c0_513 = arith.constant 0 : index
    %c0_514 = arith.constant 0 : index
    %741 = vector.load %arg21[%c0_513, %c0_514] : memref<8x1xf32, #tpu.memory_space<vmem>>, vector<8x1xf32>
    %742 = vector.broadcast %741 : vector<8x1xf32> to vector<8x256xf32>
    %743 = arith.addf %740, %742 : vector<8x256xf32>
    %cst_515 = arith.constant 0.000000e+00 : f32
    %744 = vector.broadcast %cst_515 : f32 to vector<8x256xf32>
    %745 = arith.cmpf oge, %743, %744 : vector<8x256xf32>
    %cst_516 = arith.constant 2.000000e-01 : f32
    %746 = vector.broadcast %cst_516 : f32 to vector<8x256xf32>
    %747 = arith.mulf %746, %743 : vector<8x256xf32>
    %748 = arith.select %745, %743, %747 : vector<8x256xi1>, vector<8x256xf32>
    %749 = arith.truncf %748 : vector<8x256xf32> to vector<8x256xbf16>
    %c0_517 = arith.constant 0 : index
    %c0_518 = arith.constant 0 : index
    %750 = vector.load %arg14[%c0_517, %c0_518] : memref<72x8xbf16, #tpu.memory_space<vmem>>, vector<72x8xbf16>
    %cst_519 = arith.constant dense<0.000000e+00> : vector<72x256xf32>
    %751 = tpu.matmul %750, %749, %cst_519 {dimension_numbers = #tpu.dot_dimension_numbers<[1], [0], [0], [1], [0, 0, 1, 1], [], []>} : vector<72x8xbf16>, vector<8x256xbf16>, vector<72x256xf32> -> vector<72x256xf32>
    %c0_520 = arith.constant 0 : index
    %c0_521 = arith.constant 0 : index
    %752 = vector.load %arg15[%c0_520, %c0_521] : memref<72x1xbf16, #tpu.memory_space<vmem>>, vector<72x1xbf16>
    %753 = arith.extf %752 : vector<72x1xbf16> to vector<72x1xf32>
    %754 = vector.broadcast %753 : vector<72x1xf32> to vector<72x256xf32>
    %755 = vector.broadcast %453 : vector<1x256xf32> to vector<72x256xf32>
    %756 = arith.mulf %754, %755 : vector<72x256xf32>
    %757 = arith.addf %751, %756 : vector<72x256xf32>
    %cst_522 = arith.constant 0.000000e+00 : f32
    %758 = vector.broadcast %cst_522 : f32 to vector<8x256xf32>
    %759 = vector.extract_strided_slice %757 {offsets = [0, 0], sizes = [8, 256], strides = [1, 1]} : vector<72x256xf32> to vector<8x256xf32>
    %c17_i32_523 = arith.constant 17 : i32
    %760 = tpu.dynamic_rotate %759 by %c17_i32_523 dim 1 : vector<8x256xf32>, i32 -> vector<8x256xf32>
    %c0_524 = arith.constant 0 : index
    %c0_525 = arith.constant 0 : index
    %c0_526 = arith.constant 0 : index
    %761 = vector.load %arg7[%c0_524, %c0_525, %c0_526] : memref<9x1x256xf32, #tpu.memory_space<vmem>>, vector<1x1x256xf32>
    %762 = vector.shape_cast %761 : vector<1x1x256xf32> to vector<1x256xf32>
    %763 = vector.broadcast %762 : vector<1x256xf32> to vector<8x256xf32>
    %764 = arith.mulf %760, %763 : vector<8x256xf32>
    %765 = arith.addf %758, %764 : vector<8x256xf32>
    %766 = vector.extract_strided_slice %757 {offsets = [8, 0], sizes = [8, 256], strides = [1, 1]} : vector<72x256xf32> to vector<8x256xf32>
    %c16_i32_527 = arith.constant 16 : i32
    %767 = tpu.dynamic_rotate %766 by %c16_i32_527 dim 1 : vector<8x256xf32>, i32 -> vector<8x256xf32>
    %c1_528 = arith.constant 1 : index
    %c0_529 = arith.constant 0 : index
    %c0_530 = arith.constant 0 : index
    %768 = vector.load %arg7[%c1_528, %c0_529, %c0_530] : memref<9x1x256xf32, #tpu.memory_space<vmem>>, vector<1x1x256xf32>
    %769 = vector.shape_cast %768 : vector<1x1x256xf32> to vector<1x256xf32>
    %770 = vector.broadcast %769 : vector<1x256xf32> to vector<8x256xf32>
    %771 = arith.mulf %767, %770 : vector<8x256xf32>
    %772 = arith.addf %765, %771 : vector<8x256xf32>
    %773 = vector.extract_strided_slice %757 {offsets = [16, 0], sizes = [8, 256], strides = [1, 1]} : vector<72x256xf32> to vector<8x256xf32>
    %c15_i32_531 = arith.constant 15 : i32
    %774 = tpu.dynamic_rotate %773 by %c15_i32_531 dim 1 : vector<8x256xf32>, i32 -> vector<8x256xf32>
    %c2_532 = arith.constant 2 : index
    %c0_533 = arith.constant 0 : index
    %c0_534 = arith.constant 0 : index
    %775 = vector.load %arg7[%c2_532, %c0_533, %c0_534] : memref<9x1x256xf32, #tpu.memory_space<vmem>>, vector<1x1x256xf32>
    %776 = vector.shape_cast %775 : vector<1x1x256xf32> to vector<1x256xf32>
    %777 = vector.broadcast %776 : vector<1x256xf32> to vector<8x256xf32>
    %778 = arith.mulf %774, %777 : vector<8x256xf32>
    %779 = arith.addf %772, %778 : vector<8x256xf32>
    %780 = vector.extract_strided_slice %757 {offsets = [24, 0], sizes = [8, 256], strides = [1, 1]} : vector<72x256xf32> to vector<8x256xf32>
    %c1_i32_535 = arith.constant 1 : i32
    %781 = tpu.dynamic_rotate %780 by %c1_i32_535 dim 1 : vector<8x256xf32>, i32 -> vector<8x256xf32>
    %c3_536 = arith.constant 3 : index
    %c0_537 = arith.constant 0 : index
    %c0_538 = arith.constant 0 : index
    %782 = vector.load %arg7[%c3_536, %c0_537, %c0_538] : memref<9x1x256xf32, #tpu.memory_space<vmem>>, vector<1x1x256xf32>
    %783 = vector.shape_cast %782 : vector<1x1x256xf32> to vector<1x256xf32>
    %784 = vector.broadcast %783 : vector<1x256xf32> to vector<8x256xf32>
    %785 = arith.mulf %781, %784 : vector<8x256xf32>
    %786 = arith.addf %779, %785 : vector<8x256xf32>
    %787 = vector.extract_strided_slice %757 {offsets = [32, 0], sizes = [8, 256], strides = [1, 1]} : vector<72x256xf32> to vector<8x256xf32>
    %788 = arith.addf %786, %787 : vector<8x256xf32>
    %789 = vector.extract_strided_slice %757 {offsets = [40, 0], sizes = [8, 256], strides = [1, 1]} : vector<72x256xf32> to vector<8x256xf32>
    %c255_i32_539 = arith.constant 255 : i32
    %790 = tpu.dynamic_rotate %789 by %c255_i32_539 dim 1 : vector<8x256xf32>, i32 -> vector<8x256xf32>
    %c5_540 = arith.constant 5 : index
    %c0_541 = arith.constant 0 : index
    %c0_542 = arith.constant 0 : index
    %791 = vector.load %arg7[%c5_540, %c0_541, %c0_542] : memref<9x1x256xf32, #tpu.memory_space<vmem>>, vector<1x1x256xf32>
    %792 = vector.shape_cast %791 : vector<1x1x256xf32> to vector<1x256xf32>
    %793 = vector.broadcast %792 : vector<1x256xf32> to vector<8x256xf32>
    %794 = arith.mulf %790, %793 : vector<8x256xf32>
    %795 = arith.addf %788, %794 : vector<8x256xf32>
    %796 = vector.extract_strided_slice %757 {offsets = [48, 0], sizes = [8, 256], strides = [1, 1]} : vector<72x256xf32> to vector<8x256xf32>
    %c241_i32_543 = arith.constant 241 : i32
    %797 = tpu.dynamic_rotate %796 by %c241_i32_543 dim 1 : vector<8x256xf32>, i32 -> vector<8x256xf32>
    %c6_544 = arith.constant 6 : index
    %c0_545 = arith.constant 0 : index
    %c0_546 = arith.constant 0 : index
    %798 = vector.load %arg7[%c6_544, %c0_545, %c0_546] : memref<9x1x256xf32, #tpu.memory_space<vmem>>, vector<1x1x256xf32>
    %799 = vector.shape_cast %798 : vector<1x1x256xf32> to vector<1x256xf32>
    %800 = vector.broadcast %799 : vector<1x256xf32> to vector<8x256xf32>
    %801 = arith.mulf %797, %800 : vector<8x256xf32>
    %802 = arith.addf %795, %801 : vector<8x256xf32>
    %803 = vector.extract_strided_slice %757 {offsets = [56, 0], sizes = [8, 256], strides = [1, 1]} : vector<72x256xf32> to vector<8x256xf32>
    %c240_i32_547 = arith.constant 240 : i32
    %804 = tpu.dynamic_rotate %803 by %c240_i32_547 dim 1 : vector<8x256xf32>, i32 -> vector<8x256xf32>
    %c7_548 = arith.constant 7 : index
    %c0_549 = arith.constant 0 : index
    %c0_550 = arith.constant 0 : index
    %805 = vector.load %arg7[%c7_548, %c0_549, %c0_550] : memref<9x1x256xf32, #tpu.memory_space<vmem>>, vector<1x1x256xf32>
    %806 = vector.shape_cast %805 : vector<1x1x256xf32> to vector<1x256xf32>
    %807 = vector.broadcast %806 : vector<1x256xf32> to vector<8x256xf32>
    %808 = arith.mulf %804, %807 : vector<8x256xf32>
    %809 = arith.addf %802, %808 : vector<8x256xf32>
    %810 = vector.extract_strided_slice %757 {offsets = [64, 0], sizes = [8, 256], strides = [1, 1]} : vector<72x256xf32> to vector<8x256xf32>
    %c239_i32_551 = arith.constant 239 : i32
    %811 = tpu.dynamic_rotate %810 by %c239_i32_551 dim 1 : vector<8x256xf32>, i32 -> vector<8x256xf32>
    %c8_552 = arith.constant 8 : index
    %c0_553 = arith.constant 0 : index
    %c0_554 = arith.constant 0 : index
    %812 = vector.load %arg7[%c8_552, %c0_553, %c0_554] : memref<9x1x256xf32, #tpu.memory_space<vmem>>, vector<1x1x256xf32>
    %813 = vector.shape_cast %812 : vector<1x1x256xf32> to vector<1x256xf32>
    %814 = vector.broadcast %813 : vector<1x256xf32> to vector<8x256xf32>
    %815 = arith.mulf %811, %814 : vector<8x256xf32>
    %816 = arith.addf %809, %815 : vector<8x256xf32>
    %c0_555 = arith.constant 0 : index
    %c0_556 = arith.constant 0 : index
    %817 = vector.load %arg22[%c0_555, %c0_556] : memref<8x1xf32, #tpu.memory_space<vmem>>, vector<8x1xf32>
    %818 = vector.broadcast %817 : vector<8x1xf32> to vector<8x256xf32>
    %819 = arith.addf %816, %818 : vector<8x256xf32>
    %cst_557 = arith.constant 0.000000e+00 : f32
    %820 = vector.broadcast %cst_557 : f32 to vector<8x256xf32>
    %821 = arith.cmpf oge, %819, %820 : vector<8x256xf32>
    %cst_558 = arith.constant 2.000000e-01 : f32
    %822 = vector.broadcast %cst_558 : f32 to vector<8x256xf32>
    %823 = arith.mulf %822, %819 : vector<8x256xf32>
    %824 = arith.select %821, %819, %823 : vector<8x256xi1>, vector<8x256xf32>
    %825 = arith.truncf %824 : vector<8x256xf32> to vector<8x256xbf16>
    %c0_559 = arith.constant 0 : index
    %c0_560 = arith.constant 0 : index
    %826 = vector.load %arg16[%c0_559, %c0_560] : memref<72x8xbf16, #tpu.memory_space<vmem>>, vector<72x8xbf16>
    %cst_561 = arith.constant dense<0.000000e+00> : vector<72x256xf32>
    %827 = tpu.matmul %826, %825, %cst_561 {dimension_numbers = #tpu.dot_dimension_numbers<[1], [0], [0], [1], [0, 0, 1, 1], [], []>} : vector<72x8xbf16>, vector<8x256xbf16>, vector<72x256xf32> -> vector<72x256xf32>
    %cst_562 = arith.constant 0.000000e+00 : f32
    %828 = vector.broadcast %cst_562 : f32 to vector<8x256xf32>
    %829 = vector.extract_strided_slice %827 {offsets = [0, 0], sizes = [8, 256], strides = [1, 1]} : vector<72x256xf32> to vector<8x256xf32>
    %c17_i32_563 = arith.constant 17 : i32
    %830 = tpu.dynamic_rotate %829 by %c17_i32_563 dim 1 : vector<8x256xf32>, i32 -> vector<8x256xf32>
    %c0_564 = arith.constant 0 : index
    %c0_565 = arith.constant 0 : index
    %c0_566 = arith.constant 0 : index
    %831 = vector.load %arg7[%c0_564, %c0_565, %c0_566] : memref<9x1x256xf32, #tpu.memory_space<vmem>>, vector<1x1x256xf32>
    %832 = vector.shape_cast %831 : vector<1x1x256xf32> to vector<1x256xf32>
    %833 = vector.broadcast %832 : vector<1x256xf32> to vector<8x256xf32>
    %834 = arith.mulf %830, %833 : vector<8x256xf32>
    %835 = arith.addf %828, %834 : vector<8x256xf32>
    %836 = vector.extract_strided_slice %827 {offsets = [8, 0], sizes = [8, 256], strides = [1, 1]} : vector<72x256xf32> to vector<8x256xf32>
    %c16_i32_567 = arith.constant 16 : i32
    %837 = tpu.dynamic_rotate %836 by %c16_i32_567 dim 1 : vector<8x256xf32>, i32 -> vector<8x256xf32>
    %c1_568 = arith.constant 1 : index
    %c0_569 = arith.constant 0 : index
    %c0_570 = arith.constant 0 : index
    %838 = vector.load %arg7[%c1_568, %c0_569, %c0_570] : memref<9x1x256xf32, #tpu.memory_space<vmem>>, vector<1x1x256xf32>
    %839 = vector.shape_cast %838 : vector<1x1x256xf32> to vector<1x256xf32>
    %840 = vector.broadcast %839 : vector<1x256xf32> to vector<8x256xf32>
    %841 = arith.mulf %837, %840 : vector<8x256xf32>
    %842 = arith.addf %835, %841 : vector<8x256xf32>
    %843 = vector.extract_strided_slice %827 {offsets = [16, 0], sizes = [8, 256], strides = [1, 1]} : vector<72x256xf32> to vector<8x256xf32>
    %c15_i32_571 = arith.constant 15 : i32
    %844 = tpu.dynamic_rotate %843 by %c15_i32_571 dim 1 : vector<8x256xf32>, i32 -> vector<8x256xf32>
    %c2_572 = arith.constant 2 : index
    %c0_573 = arith.constant 0 : index
    %c0_574 = arith.constant 0 : index
    %845 = vector.load %arg7[%c2_572, %c0_573, %c0_574] : memref<9x1x256xf32, #tpu.memory_space<vmem>>, vector<1x1x256xf32>
    %846 = vector.shape_cast %845 : vector<1x1x256xf32> to vector<1x256xf32>
    %847 = vector.broadcast %846 : vector<1x256xf32> to vector<8x256xf32>
    %848 = arith.mulf %844, %847 : vector<8x256xf32>
    %849 = arith.addf %842, %848 : vector<8x256xf32>
    %850 = vector.extract_strided_slice %827 {offsets = [24, 0], sizes = [8, 256], strides = [1, 1]} : vector<72x256xf32> to vector<8x256xf32>
    %c1_i32_575 = arith.constant 1 : i32
    %851 = tpu.dynamic_rotate %850 by %c1_i32_575 dim 1 : vector<8x256xf32>, i32 -> vector<8x256xf32>
    %c3_576 = arith.constant 3 : index
    %c0_577 = arith.constant 0 : index
    %c0_578 = arith.constant 0 : index
    %852 = vector.load %arg7[%c3_576, %c0_577, %c0_578] : memref<9x1x256xf32, #tpu.memory_space<vmem>>, vector<1x1x256xf32>
    %853 = vector.shape_cast %852 : vector<1x1x256xf32> to vector<1x256xf32>
    %854 = vector.broadcast %853 : vector<1x256xf32> to vector<8x256xf32>
    %855 = arith.mulf %851, %854 : vector<8x256xf32>
    %856 = arith.addf %849, %855 : vector<8x256xf32>
    %857 = vector.extract_strided_slice %827 {offsets = [32, 0], sizes = [8, 256], strides = [1, 1]} : vector<72x256xf32> to vector<8x256xf32>
    %858 = arith.addf %856, %857 : vector<8x256xf32>
    %859 = vector.extract_strided_slice %827 {offsets = [40, 0], sizes = [8, 256], strides = [1, 1]} : vector<72x256xf32> to vector<8x256xf32>
    %c255_i32_579 = arith.constant 255 : i32
    %860 = tpu.dynamic_rotate %859 by %c255_i32_579 dim 1 : vector<8x256xf32>, i32 -> vector<8x256xf32>
    %c5_580 = arith.constant 5 : index
    %c0_581 = arith.constant 0 : index
    %c0_582 = arith.constant 0 : index
    %861 = vector.load %arg7[%c5_580, %c0_581, %c0_582] : memref<9x1x256xf32, #tpu.memory_space<vmem>>, vector<1x1x256xf32>
    %862 = vector.shape_cast %861 : vector<1x1x256xf32> to vector<1x256xf32>
    %863 = vector.broadcast %862 : vector<1x256xf32> to vector<8x256xf32>
    %864 = arith.mulf %860, %863 : vector<8x256xf32>
    %865 = arith.addf %858, %864 : vector<8x256xf32>
    %866 = vector.extract_strided_slice %827 {offsets = [48, 0], sizes = [8, 256], strides = [1, 1]} : vector<72x256xf32> to vector<8x256xf32>
    %c241_i32_583 = arith.constant 241 : i32
    %867 = tpu.dynamic_rotate %866 by %c241_i32_583 dim 1 : vector<8x256xf32>, i32 -> vector<8x256xf32>
    %c6_584 = arith.constant 6 : index
    %c0_585 = arith.constant 0 : index
    %c0_586 = arith.constant 0 : index
    %868 = vector.load %arg7[%c6_584, %c0_585, %c0_586] : memref<9x1x256xf32, #tpu.memory_space<vmem>>, vector<1x1x256xf32>
    %869 = vector.shape_cast %868 : vector<1x1x256xf32> to vector<1x256xf32>
    %870 = vector.broadcast %869 : vector<1x256xf32> to vector<8x256xf32>
    %871 = arith.mulf %867, %870 : vector<8x256xf32>
    %872 = arith.addf %865, %871 : vector<8x256xf32>
    %873 = vector.extract_strided_slice %827 {offsets = [56, 0], sizes = [8, 256], strides = [1, 1]} : vector<72x256xf32> to vector<8x256xf32>
    %c240_i32_587 = arith.constant 240 : i32
    %874 = tpu.dynamic_rotate %873 by %c240_i32_587 dim 1 : vector<8x256xf32>, i32 -> vector<8x256xf32>
    %c7_588 = arith.constant 7 : index
    %c0_589 = arith.constant 0 : index
    %c0_590 = arith.constant 0 : index
    %875 = vector.load %arg7[%c7_588, %c0_589, %c0_590] : memref<9x1x256xf32, #tpu.memory_space<vmem>>, vector<1x1x256xf32>
    %876 = vector.shape_cast %875 : vector<1x1x256xf32> to vector<1x256xf32>
    %877 = vector.broadcast %876 : vector<1x256xf32> to vector<8x256xf32>
    %878 = arith.mulf %874, %877 : vector<8x256xf32>
    %879 = arith.addf %872, %878 : vector<8x256xf32>
    %880 = vector.extract_strided_slice %827 {offsets = [64, 0], sizes = [8, 256], strides = [1, 1]} : vector<72x256xf32> to vector<8x256xf32>
    %c239_i32_591 = arith.constant 239 : i32
    %881 = tpu.dynamic_rotate %880 by %c239_i32_591 dim 1 : vector<8x256xf32>, i32 -> vector<8x256xf32>
    %c8_592 = arith.constant 8 : index
    %c0_593 = arith.constant 0 : index
    %c0_594 = arith.constant 0 : index
    %882 = vector.load %arg7[%c8_592, %c0_593, %c0_594] : memref<9x1x256xf32, #tpu.memory_space<vmem>>, vector<1x1x256xf32>
    %883 = vector.shape_cast %882 : vector<1x1x256xf32> to vector<1x256xf32>
    %884 = vector.broadcast %883 : vector<1x256xf32> to vector<8x256xf32>
    %885 = arith.mulf %881, %884 : vector<8x256xf32>
    %886 = arith.addf %879, %885 : vector<8x256xf32>
    %887 = vector.extract_strided_slice %886 {offsets = [0, 0], sizes = [4, 256], strides = [1, 1]} : vector<8x256xf32> to vector<4x256xf32>
    %c0_595 = arith.constant 0 : index
    %c0_596 = arith.constant 0 : index
    %888 = vector.load %arg23[%c0_595, %c0_596] : memref<4x1xf32, #tpu.memory_space<vmem>>, vector<4x1xf32>
    %889 = vector.broadcast %888 : vector<4x1xf32> to vector<4x256xf32>
    %890 = arith.addf %887, %889 : vector<4x256xf32>
    %cst_597 = arith.constant dense<0xFF800000> : vector<256xf32>
    %891 = vector.multi_reduction <maximumf>, %890, %cst_597 [0] : vector<4x256xf32> to vector<256xf32>
    %892 = vector.shape_cast %891 : vector<256xf32> to vector<1x256xf32>
    %893 = vector.broadcast %892 : vector<1x256xf32> to vector<4x256xf32>
    %894 = arith.subf %890, %893 : vector<4x256xf32>
    %895 = math.exp %894 : vector<4x256xf32>
    %cst_598 = arith.constant dense<0.000000e+00> : vector<256xf32>
    %896 = vector.multi_reduction <add>, %895, %cst_598 [0] : vector<4x256xf32> to vector<256xf32>
    %897 = vector.shape_cast %896 : vector<256xf32> to vector<1x256xf32>
    %898 = vector.broadcast %897 : vector<1x256xf32> to vector<4x256xf32>
    %899 = arith.divf %895, %898 : vector<4x256xf32>
    %900 = vector.extract_strided_slice %899 {offsets = [0, 0], sizes = [3, 256], strides = [1, 1]} : vector<4x256xf32> to vector<3x256xf32>
    %c1_599 = arith.constant 1 : index
    %c0_600 = arith.constant 0 : index
    %c0_601 = arith.constant 0 : index
    %901 = vector.load %arg24[%c1_599, %c0_600, %c0_601] : memref<2x3x256xf32, #tpu.memory_space<vmem>>, vector<1x3x256xf32>
    %902 = vector.shape_cast %901 : vector<1x3x256xf32> to vector<3x256xf32>
    %903 = vector.shape_cast %900 : vector<3x256xf32> to vector<1x3x256xf32>
    tpu.vector_store %arg24[%c1_599, %c0_600, %c0_601], %903 {strides = array<i32>} : memref<2x3x256xf32, #tpu.memory_space<vmem>>, vector<1x3x256xf32>,
    return
  }
  func.func @transform_0(%arg0: i32) -> (i32, i32, i32) {
    %c0_i32 = arith.constant 0 : i32
    %c0_i32_0 = arith.constant 0 : i32
    %c0_i32_1 = arith.constant 0 : i32
    return %arg0, %c0_i32, %c0_i32_0 : i32, i32, i32
  }
  func.func @transform_1(%arg0: i32) -> (i32, i32, i32) {
    %c0_i32 = arith.constant 0 : i32
    %c0_i32_0 = arith.constant 0 : i32
    %c0_i32_1 = arith.constant 0 : i32
    %c0_i32_2 = arith.constant 0 : i32
    return %c0_i32, %c0_i32_0, %c0_i32_1 : i32, i32, i32
  }
  func.func @transform_2(%arg0: i32) -> (i32, i32, i32) {
    %c0_i32 = arith.constant 0 : i32
    %c0_i32_0 = arith.constant 0 : i32
    %c0_i32_1 = arith.constant 0 : i32
    %c0_i32_2 = arith.constant 0 : i32
    return %c0_i32, %c0_i32_0, %c0_i32_1 : i32, i32, i32
  }
  func.func @transform_3(%arg0: i32) -> (i32, i32, i32) {
    %c0_i32 = arith.constant 0 : i32
    %c0_i32_0 = arith.constant 0 : i32
    %c0_i32_1 = arith.constant 0 : i32
    %c0_i32_2 = arith.constant 0 : i32
    return %c0_i32, %c0_i32_0, %c0_i32_1 : i32, i32, i32
  }
  func.func @transform_4(%arg0: i32) -> (i32, i32, i32) {
    %c0_i32 = arith.constant 0 : i32
    %c0_i32_0 = arith.constant 0 : i32
    %c0_i32_1 = arith.constant 0 : i32
    %c0_i32_2 = arith.constant 0 : i32
    return %c0_i32, %c0_i32_0, %c0_i32_1 : i32, i32, i32
  }
  func.func @transform_5(%arg0: i32) -> (i32, i32, i32) {
    %c0_i32 = arith.constant 0 : i32
    %c0_i32_0 = arith.constant 0 : i32
    %c0_i32_1 = arith.constant 0 : i32
    %c0_i32_2 = arith.constant 0 : i32
    return %c0_i32, %c0_i32_0, %c0_i32_1 : i32, i32, i32
  }
  func.func @transform_6(%arg0: i32) -> (i32, i32, i32) {
    %c0_i32 = arith.constant 0 : i32
    %c0_i32_0 = arith.constant 0 : i32
    %c0_i32_1 = arith.constant 0 : i32
    %c0_i32_2 = arith.constant 0 : i32
    return %c0_i32, %c0_i32_0, %c0_i32_1 : i32, i32, i32
  }
  func.func @transform_7(%arg0: i32) -> (i32, i32) {
    %c0_i32 = arith.constant 0 : i32
    %c0_i32_0 = arith.constant 0 : i32
    %c0_i32_1 = arith.constant 0 : i32
    return %c0_i32, %c0_i32_0 : i32, i32
  }
  func.func @transform_8(%arg0: i32) -> (i32, i32) {
    %c0_i32 = arith.constant 0 : i32
    %c0_i32_0 = arith.constant 0 : i32
    %c0_i32_1 = arith.constant 0 : i32
    return %c0_i32, %c0_i32_0 : i32, i32
  }
  func.func @transform_9(%arg0: i32) -> (i32, i32) {
    %c0_i32 = arith.constant 0 : i32
    %c0_i32_0 = arith.constant 0 : i32
    %c0_i32_1 = arith.constant 0 : i32
    return %c0_i32, %c0_i32_0 : i32, i32
  }
  func.func @transform_10(%arg0: i32) -> (i32, i32) {
    %c0_i32 = arith.constant 0 : i32
    %c0_i32_0 = arith.constant 0 : i32
    %c0_i32_1 = arith.constant 0 : i32
    return %c0_i32, %c0_i32_0 : i32, i32
  }
  func.func @transform_11(%arg0: i32) -> (i32, i32) {
    %c0_i32 = arith.constant 0 : i32
    %c0_i32_0 = arith.constant 0 : i32
    %c0_i32_1 = arith.constant 0 : i32
    return %c0_i32, %c0_i32_0 : i32, i32
  }
  func.func @transform_12(%arg0: i32) -> (i32, i32) {
    %c0_i32 = arith.constant 0 : i32
    %c0_i32_0 = arith.constant 0 : i32
    %c0_i32_1 = arith.constant 0 : i32
    return %c0_i32, %c0_i32_0 : i32, i32
  }
  func.func @transform_13(%arg0: i32) -> (i32, i32) {
    %c0_i32 = arith.constant 0 : i32
    %c0_i32_0 = arith.constant 0 : i32
    %c0_i32_1 = arith.constant 0 : i32
    return %c0_i32, %c0_i32_0 : i32, i32
  }
  func.func @transform_14(%arg0: i32) -> (i32, i32) {
    %c0_i32 = arith.constant 0 : i32
    %c0_i32_0 = arith.constant 0 : i32
    %c0_i32_1 = arith.constant 0 : i32
    return %c0_i32, %c0_i32_0 : i32, i32
  }
  func.func @transform_15(%arg0: i32) -> (i32, i32) {
    %c0_i32 = arith.constant 0 : i32
    %c0_i32_0 = arith.constant 0 : i32
    %c0_i32_1 = arith.constant 0 : i32
    return %c0_i32, %c0_i32_0 : i32, i32
  }
  func.func @transform_16(%arg0: i32) -> (i32, i32) {
    %c0_i32 = arith.constant 0 : i32
    %c0_i32_0 = arith.constant 0 : i32
    %c0_i32_1 = arith.constant 0 : i32
    return %c0_i32, %c0_i32_0 : i32, i32
  }
  func.func @transform_17(%arg0: i32) -> (i32, i32) {
    %c0_i32 = arith.constant 0 : i32
    %c0_i32_0 = arith.constant 0 : i32
    %c0_i32_1 = arith.constant 0 : i32
    return %c0_i32, %c0_i32_0 : i32, i32
  }
  func.func @transform_18(%arg0: i32) -> (i32, i32) {
    %c0_i32 = arith.constant 0 : i32
    %c0_i32_0 = arith.constant 0 : i32
    %c0_i32_1 = arith.constant 0 : i32
    return %c0_i32, %c0_i32_0 : i32, i32
  }
  func.func @transform_19(%arg0: i32) -> (i32, i32) {
    %c0_i32 = arith.constant 0 : i32
    %c0_i32_0 = arith.constant 0 : i32
    %c0_i32_1 = arith.constant 0 : i32
    return %c0_i32, %c0_i32_0 : i32, i32
  }
  func.func @transform_20(%arg0: i32) -> (i32, i32) {
    %c0_i32 = arith.constant 0 : i32
    %c0_i32_0 = arith.constant 0 : i32
    %c0_i32_1 = arith.constant 0 : i32
    return %c0_i32, %c0_i32_0 : i32, i32
  }
  func.func @transform_21(%arg0: i32) -> (i32, i32) {
    %c0_i32 = arith.constant 0 : i32
    %c0_i32_0 = arith.constant 0 : i32
    %c0_i32_1 = arith.constant 0 : i32
    return %c0_i32, %c0_i32_0 : i32, i32
  }
  func.func @transform_22(%arg0: i32) -> (i32, i32) {
    %c0_i32 = arith.constant 0 : i32
    %c0_i32_0 = arith.constant 0 : i32
    %c0_i32_1 = arith.constant 0 : i32
    return %c0_i32, %c0_i32_0 : i32, i32
  }
  func.func @transform_23(%arg0: i32) -> (i32, i32, i32) {
    %c0_i32 = arith.constant 0 : i32
    %c0_i32_0 = arith.constant 0 : i32
    %c0_i32_1 = arith.constant 0 : i32
    return %arg0, %c0_i32, %c0_i32_0 : i32, i32, i32
  }
}

</mosaic_0001>

<bundles_post_ra>
// kernel: segnet_forward.1
= control target key start
LH: loop header
LB: loop body
LE: loop exit
PB: predicated region body
PF: predicated region fallthrough
CT: control target
= control target key end

     0   :  { %v19919_v0 = vmov 0   ;;  %vm16195_vm0 = vmmov 0   ;;  %vm1831_vm2 = vcmask 1043456   ;;  %vm1803_vm3 = vcmask 64512   ;;  %s19911_s26 = smov 16   ;;  %s19905_s28 = smov 1   ;;  %s19870_s7 = inlined_call_operand.vmem [shape: bf16[72,1], index: 7, kind: input, shape index: {}]   ;;  %s19871_s1 = inlined_call_operand.vmem [shape: bf16[9,256,64], index: 1, kind: input, shape index: {}]   ;;  %s19872_s16 = inlined_call_operand.vmem [shape: f32[8,1], index: 16, kind: input, shape index: {}]   ;;  %s19873_s17 = inlined_call_operand.vmem [shape: f32[16,1], index: 17, kind: input, shape index: {}]   ;;  %s19874_s18 = inlined_call_operand.vmem [shape: f32[16,1], index: 18, kind: input, shape index: {}]   ;;  %s19875_s14 = inlined_call_operand.vmem [shape: bf16[72,1], index: 14, kind: input, shape index: {}]   ;;  %s19876_s19 = inlined_call_operand.vmem [shape: f32[8,1], index: 19, kind: input, shape index: {}]   ;;  %s19877_s20 = inlined_call_operand.vmem [shape: f32[8,1], index: 20, kind: input, shape index: {}]   ;;  %s19878_s21 = inlined_call_operand.vmem [shape: f32[8,1], index: 21, kind: input, shape index: {}]   ;;  %s19879_s0 = inlined_call_operand.vmem [shape: f32[2,1,256], index: 0, kind: input, shape index: {}]   ;;  %s19880_s8 = inlined_call_operand.vmem [shape: bf16[144,8], index: 8, kind: input, shape index: {}]   ;;  %s19881_s2 = inlined_call_operand.vmem [shape: bf16[9,64,16], index: 2, kind: input, shape index: {}]   ;;  %s19882_s9 = inlined_call_operand.vmem [shape: bf16[144,16], index: 9, kind: input, shape index: {}]   ;;  %s19883_s3 = inlined_call_operand.vmem [shape: bf16[9,16,64], index: 3, kind: input, shape index: {}]   ;;  %s19884_s11 = inlined_call_operand.vmem [shape: bf16[72,8], index: 11, kind: input, shape index: {}]   ;;  %s19885_s10 = inlined_call_operand.vmem [shape: bf16[72,16], index: 10, kind: input, shape index: {}]   ;;  %s19886_s4 = inlined_call_operand.vmem [shape: bf16[9,64,64], index: 4, kind: input, shape index: {}]   ;;  %s19887_s12 = inlined_call_operand.vmem [shape: bf16[72,8], index: 12, kind: input, shape index: {}]   ;;  %s19888_s5 = inlined_call_operand.vmem [shape: bf16[9,64,256], index: 5, kind: input, shape index: {}]   ;;  %s19889_s13 = inlined_call_operand.vmem [shape: bf16[72,8], index: 13, kind: input, shape index: {}]   ;;  %s19890_s15 = inlined_call_operand.vmem [shape: bf16[72,8], index: 15, kind: input, shape index: {}]   ;;  %s19891_s6 = inlined_call_operand.vmem [shape: f32[9,1,256], index: 6, kind: input, shape index: {}]   ;;  %s19892_s22 = inlined_call_operand.vmem [shape: f32[4,1], index: 22, kind: input, shape index: {}]   ;;  %s19893_s23 = inlined_call_operand.vmem [shape: f32[2,3,256], index: 23, kind: output, shape index: {}]  }
   0x1   :  { %19925 = sst [smem:[#allocation4_spill]] %s19870_s7  ;;  %15373 = vset.pattern.permute.xlu0 %v19919_v0  ;;  %15384 = vset.pattern.permute.xlu1 %v19919_v0  ;;  %vm1990_vm4 = vcmask 523264   ;;  %vm2740_vm7 = vcmask 130048   ;;  %s19907_s29 = smov 127  }
   0x2   :  { %19926 = sst [smem:[#allocation5_spill]] %s19871_s1  ;;  %s19936_s24 = sld [smem:[#allocation4_spill]] }
   0x3   :  { %19927 = sst [smem:[#allocation6_spill]] %s19872_s16  ;;  %s16196_s1 = smov 17  }
   0x4   :  { %19928 = sst [smem:[#allocation7_spill]] %s19873_s17  ;;  %s19937_s17 = sld [smem:[#allocation5_spill]] }
   0x5   :  { %19929 = sst [smem:[#allocation8_spill]] %s19874_s18  ;;  %s19939_s30 = sld [smem:[#allocation7_spill]] }
   0x6   :  { %19930 = sst [smem:[#allocation9_spill]] %s19875_s14  ;;  %s19940_s14 = sld [smem:[#allocation8_spill]] }
   0x7   :  { %19931 = sst [smem:[#allocation10_spill]] %s19876_s19  ;;  %s19913_s27 = smov 113  }
   0x8   :  { %19932 = sst [smem:[#allocation11_spill]] %s19877_s20  ;;  %v13735_v1 = vld [vmem:[%s19936_s24] sm:$0xff]   ;;  %v13798_v2 = vld [vmem:[%s19936_s24 + $0x8] sm:$0xff]   ;;  %v13799_v7 = vld [vmem:[%s19936_s24 + $0x10] sm:$0xff]   ;;  %s19938_s20 = sld [smem:[#allocation6_spill]] }
   0x9   :  { %19933 = sst [smem:[#allocation12_spill]] %s19890_s15  ;;  %v13736_v3 = vunpack.c.l.bf16 %v13735_v1  ;;  %v13737_v4 = vunpack.c.h.bf16 %v13735_v1  ;;  %v13740_v5 = vunpack.c.l.bf16 %v13798_v2  ;;  %v13741_v6 = vunpack.c.h.bf16 %v13798_v2  ;;  %v13800_v9 = vld [vmem:[%s19936_s24 + $0x18] sm:$0xff]   ;;  %v84_v13 = vld [vmem:[%s19936_s24 + $0x20] sm:$0xf]  ;;  %s19943_s16 = sld [smem:[#allocation11_spill]] }
   0xa   :  { %19934 = sst [smem:[#allocation13_spill]] %s19892_s22  ;;  %v13744_v10 = vunpack.c.l.bf16 %v13799_v7  ;;  %v13745_v11 = vunpack.c.h.bf16 %v13799_v7  ;;  %v13748_v14 = vunpack.c.l.bf16 %v13800_v9  ;;  %v13749_v15 = vunpack.c.h.bf16 %v13800_v9  ;;  %v15425_v17 = vld [vmem:[%s19937_s17 + $0x40] sm:$0xff]   ;;  %v15429_v23 = vld [vmem:[%s19937_s17 + $0x48] sm:$0xff]   ;;  %v15433_v29 = vld [vmem:[%s19937_s17 + $0x50] sm:$0xff]   ;;  %s19942_s22 = sld [smem:[#allocation10_spill]] }
   0xb   :  { %19935 = sst [smem:[#allocation14_spill]] %s19893_s23  ;;  %v15374_v8 = vpack.i.bf16 %v13737_v4, %v13736_v3  ;;  %v15379_v12 = vpack.i.bf16 %v13741_v6, %v13740_v5  ;;  %v15426_v18 = vld [vmem:[%s19937_s17] sm:$0xff]   ;;  %13832 = vmatprep.subr.bf16.mxu1 %v15425_v17  ;;  %v93_v21 = vunpack.c.l.bf16 %v84_v13  ;;  %v15430_v25 = vld [vmem:[%s19937_s17 + $0x8] sm:$0xff]   ;;  %v15434_v31 = vld [vmem:[%s19937_s17 + $0x10] sm:$0xff]   ;;  %s19941_s23 = sld [smem:[#allocation9_spill]]  ;;  %v140_v13 = vlaneseq }
   0xc   :  { %v15385_v16 = vpack.i.bf16 %v13745_v11, %v13744_v10  ;;  %v15390_v19 = vpack.i.bf16 %v13749_v15, %v13748_v14  ;;  %v15427_v20 = vld [vmem:[%s19937_s17 + $0xc0] sm:$0xff]   ;;  %13833 = vmatpush3.bf16.msra.mxu1 %v15426_v18  ;;  %v15431_v27 = vld [vmem:[%s19937_s17 + $0xc8] sm:$0xff]   ;;  %v15435_v34 = vld [vmem:[%s19937_s17 + $0xd0] sm:$0xff]   ;;  %s19909_s15 = smov 15   ;;  %s19952_s7 = smov 127  }
   0xd   :  { %15375 = vperm.xlu0 %15373, %v15374_v8   ;;  %v15428_v22 = vld [vmem:[%s19937_s17 + $0x80] sm:$0xff]   ;;  %13810 = vmatprep.subr.bf16.mxu0 %v15427_v20  ;;  %v15432_v28 = vld [vmem:[%s19937_s17 + $0x88] sm:$0xff]   ;;  %v15436_v35 = vld [vmem:[%s19937_s17 + $0x90] sm:$0xff]   ;;  %v141_v14 = vshrl.u32 %v140_v13, 7  ;;  %s19955_s18 = smov 111  }
   0xe   :  { %15386 = vperm.xlu1 %15384, %v15385_v16   ;;  %v1729_v24 = vld [vmem:[%s19938_s20] sm:$0xff]  ;;  %13811 = vmatpush3.bf16.msra.mxu0 %v15428_v22  ;;  %v2657_v30 = vld [vmem:[%s19939_s30 + $0x8] sm:$0xff]  ;;  %v15437_v36 = vld [vmem:[%s19937_s17 + $0x58] sm:$0xff]  }
   0xf   :  { %v2656_v26 = vld [vmem:[%s19939_s30] sm:$0xff]  ;;  %13834 = vmatprep.subr.bf16.mxu1 %v15429_v23  ;;  %13812 = vmatprep.subr.bf16.mxu0 %v15431_v27  ;;  %v3373_v37 = vld [vmem:[%s19940_s14 + $0x8] sm:$0xff]  ;;  %v15438_v38 = vld [vmem:[%s19937_s17 + $0x18] sm:$0xff]   ;;  %v16483_v15 = vsub.s32 0, %v141_v14  ;;  %v16485_v16 = vsub.s32 1, %v141_v14 }
  0x10   :  { %13835 = vmatpush3.bf16.msra.mxu1 %v15430_v25  ;;  %v3372_v32 = vld [vmem:[%s19940_s14] sm:$0xff]  ;;  %v15439_v40 = vld [vmem:[%s19937_s17 + $0xd8] sm:$0xff]   ;;  %v15445_v51 = vld [vmem:[%s19937_s17 + $0x68] sm:$0xff]  }
  0x11   :  { %15380 = vperm.xlu0 %15373, %v15379_v12   ;;  %v13751_v33 = vld [vmem:[%s19941_s23] sm:$0xff]   ;;  %13836 = vmatprep.subr.bf16.mxu1 %v15433_v29  ;;  %v15440_v43 = vld [vmem:[%s19937_s17 + $0x98] sm:$0xff]   ;;  %v13801_v47 = vld [vmem:[%s19941_s23 + $0x8] sm:$0xff]  }
  0x12   :  { %15391 = vperm.xlu1 %15384, %v15390_v19   ;;  %13813 = vmatpush3.bf16.msra.mxu0 %v15432_v28  ;;  %v4334_v39 = vld [vmem:[%s19942_s22] sm:$0xff]  ;;  %v13752_v41 = vunpack.c.l.bf16 %v13751_v33  ;;  %v13753_v42 = vunpack.c.h.bf16 %v13751_v33  ;;  %v13802_v52 = vld [vmem:[%s19941_s23 + $0x10] sm:$0xff]   ;;  %v15446_v53 = vld [vmem:[%s19937_s17 + $0x28] sm:$0xff]   ;;  %v13756_v55 = vunpack.c.l.bf16 %v13801_v47  ;;  %v13757_v57 = vunpack.c.h.bf16 %v13801_v47 }
  0x13   :  { %13814 = vmatprep.subr.bf16.mxu0 %v15435_v34  ;;  %v15441_v44 = vld [vmem:[%s19937_s17 + $0x60] sm:$0xff]   ;;  %v13803_v54 = vld [vmem:[%s19941_s23 + $0x18] sm:$0xff]   ;;  %v15447_v56 = vld [vmem:[%s19937_s17 + $0xe8] sm:$0xff]   ;;  %v13761_v61 = vunpack.c.h.bf16 %v13802_v52  ;;  %v13760_v10 = vunpack.c.l.bf16 %v13802_v52 }
  0x14   :  { %13837 = vmatpush3.bf16.msra.mxu1 %v15434_v31  ;;  %v5330_v45 = vld [vmem:[%s19943_s16] sm:$0xff]  ;;  %v15395_v49 = vpack.i.bf16 %v13753_v42, %v13752_v41  ;;  %v15448_v58 = vld [vmem:[%s19937_s17 + $0xa8] sm:$0xff]   ;;  %v15449_v59 = vld [vmem:[%s19937_s17 + $0x70] sm:$0xff]   ;;  %v13764_v63 = vunpack.c.l.bf16 %v13803_v54  ;;  %v13765_v4 = vunpack.c.h.bf16 %v13803_v54 }
  0x15   :  { %136 = vperm.xlu0 %15373, %v93_v21   ;;  %13838 = vmatprep.subr.bf16.mxu1 %v15437_v36  ;;  %v15442_v46 = vld [vmem:[%s19937_s17 + $0x20] sm:$0xff]   ;;  %v15450_v62 = vld [vmem:[%s19937_s17 + $0x30] sm:$0xff]   ;;  %v15453_v3 = vld [vmem:[%s19937_s17 + $0x78] sm:$0xff]  }
  0x16   :  { %1732 = vperm.xlu1 %15384, %v1729_v24   ;;  %13815 = vmatpush3.bf16.msra.mxu0 %v15436_v35  ;;  %v15443_v48 = vld [vmem:[%s19937_s17 + $0xe0] sm:$0xff]   ;;  %v15451_v1 = vld [vmem:[%s19937_s17 + $0xf0] sm:$0xff]   ;;  %v15454_v5 = vld [vmem:[%s19937_s17 + $0x38] sm:$0xff]  }
  0x17   :  { %13816 = vmatprep.subr.bf16.mxu0 %v15439_v40  ;;  %v15444_v50 = vld [vmem:[%s19937_s17 + $0xa0] sm:$0xff]   ;;  %v15452_v2 = vld [vmem:[%s19937_s17 + $0xb0] sm:$0xff]   ;;  %v15455_v7 = vld [vmem:[%s19937_s17 + $0xf8] sm:$0xff]  }
  0x18   :  { %13839 = vmatpush3.bf16.msra.mxu1 %v15438_v38  ;;  %v5363_v60 = vld [vmem:[%s19941_s23 + $0x20] sm:$0xf]  ;;  %v15456_v8 = vld [vmem:[%s19937_s17 + $0xb8] sm:$0xff]   ;;  %v15461_v35 = vld [vmem:[%s19937_s17 + $0x1c8] sm:$0xff]  }
  0x19   :  { %2660 = vperm.xlu0 %15373, %v2656_v26   ;;  %13840 = vmatprep.subr.bf16.mxu1 %v15441_v44  ;;  %v5372_v6 = vunpack.c.l.bf16 %v5363_v60  ;;  %v15457_v9 = vld [vmem:[%s19937_s17 + $0x1c0] sm:$0xff]   ;;  %v15463_v44 = vld [vmem:[%s19937_s17 + $0x148] sm:$0xff]  }
  0x1a   :  { %2665 = vperm.xlu1 %15384, %v2657_v30   ;;  %13817 = vmatpush3.bf16.msra.mxu0 %v15440_v43  ;;  %v15459_v11 = vld [vmem:[%s19937_s17 + $0x140] sm:$0xff]   ;;  %v15462_v43 = vld [vmem:[%s19937_s17 + $0x188] sm:$0xff]  }
  0x1b   :  { %13818 = vmatprep.subr.bf16.mxu0 %v15443_v48  ;;  %v5756_v12 = vld [vmem:[%s19878_s21] sm:$0xff] }
  0x1c   :  { %13841 = vmatpush3.bf16.msra.mxu1 %v15442_v46  ;;  %v75_v17 = vld [vmem:[%s19879_s0] sm:$0x3] }
  0x1d   :  { %3376 = vperm.xlu0 %15373, %v3372_v32   ;;  %13842 = vmatprep.subr.bf16.mxu1 %v15445_v51  ;;  %v16491_v18 = vrot.slane %v75_v17, %v16483_v15  ;;  %v16494_v19 = vrot.slane %v75_v17, %v16485_v16  ;;  %v15458_v34 = vld [vmem:[%s19937_s17 + $0x180] sm:$0xff]  }
  0x1e   :  { %3381 = vperm.xlu1 %15384, %v3373_v37   ;;  %13819 = vmatpush3.bf16.msra.mxu0 %v15444_v50  ;;  %v15465_v50 = vld [vmem:[%s19937_s17 + $0x1d0] sm:$0xff]   ;;  %v15474_v17 = vld [vmem:[%s19937_s17 + $0x1a0] sm:$0xff]  }
  0x1f   :  { %13820 = vmatprep.subr.bf16.mxu0 %v15447_v56  ;;  %v15464_v56 = vld [vmem:[%s19937_s17 + $0x108] sm:$0xff]  }
  0x20   :  { %13843 = vmatpush3.bf16.msra.mxu1 %v15446_v53 }
  0x21   :  { %4337 = vperm.xlu0 %15373, %v4334_v39   ;;  %13844 = vmatprep.subr.bf16.mxu1 %v15449_v59  ;;  %v15460_v39 = vld [vmem:[%s19937_s17 + $0x100] sm:$0xff]   ;;  %v15466_v59 = vld [vmem:[%s19937_s17 + $0x190] sm:$0xff]  }
  0x22   :  { %5333 = vperm.xlu1 %15384, %v5330_v45   ;;  %13821 = vmatpush3.bf16.msra.mxu0 %v15448_v58 }
  0x23   :  { %13822 = vmatprep.subr.bf16.mxu0 %v15451_v1  ;;  %v15468_v1 = vld [vmem:[%s19937_s17 + $0x110] sm:$0xff]  }
  0x24   :  { %13845 = vmatpush3.bf16.msra.mxu1 %v15450_v62 }
  0x25   :  { %15396 = vperm.xlu0 %15373, %v15395_v49   ;;  %13846 = vmatprep.subr.bf16.mxu1 %v15453_v3 }
  0x26   :  { %5385 = vperm.xlu1 %15384, %v13756_v55   ;;  %13823 = vmatpush3.bf16.msra.mxu0 %v15452_v2  ;;  %v15469_v2 = vld [vmem:[%s19937_s17 + $0x1d8] sm:$0xff]  }
  0x27   :  { %13824 = vmatprep.subr.bf16.mxu0 %v15455_v7 }
  0x28   :  { %13847 = vmatpush3.bf16.msra.mxu1 %v15454_v5  ;;  %v15470_v5 = vld [vmem:[%s19937_s17 + $0x198] sm:$0xff]  }
  0x29   :  { %5390 = vperm.xlu0 %15373, %v13757_v57   ;;  %13876 = vmatprep.subr.bf16.mxu1 %v15457_v9  ;;  %v15473_v9 = vld [vmem:[%s19937_s17 + $0x1e0] sm:$0xff]  }
  0x2a   :  { %5400 = vperm.xlu1 %15384, %v13761_v61   ;;  %13825 = vmatpush3.bf16.msra.mxu0 %v15456_v8  ;;  %v15471_v8 = vld [vmem:[%s19937_s17 + $0x158] sm:$0xff]  }
  0x2b   :  { %13854 = vmatprep.subr.bf16.mxu0 %v15459_v11  ;;  %v15472_v11 = vld [vmem:[%s19937_s17 + $0x118] sm:$0xff]  }
  0x2d   :  { %5405 = vperm.xlu0 %15373, %v13764_v63   ;;  %v15467_v63 = vld [vmem:[%s19937_s17 + $0x150] sm:$0xff]  }
  0x2e   :  { %5410 = vperm.xlu1 %15384, %v13765_v4  }
  0x31   :  { %5415 = vperm.xlu0 %15373, %v5372_v6  }
  0x32   :  { %5395 = vperm.xlu1 %15384, %v13760_v10  }
  0x35   :  { %5759 = vperm.xlu0 %15373, %v5756_v12  }
  0x8c   :  { %v15376_v20 = vpop.permute.xlu0 %15375 }
  0x8d   :  { %v15378_v21 = vunpack.i.h.bf16 %v15376_v20  ;;  %v15377_v22 = vunpack.i.l.bf16 %v15376_v20  ;;  %v15387_v27 = vpop.permute.xlu1 %15386  ;;  %v15475_v20 = vld [vmem:[%s19937_s17 + $0x160] sm:$0xff]  }
  0x8e   :  { %v15388_v29 = vunpack.i.l.bf16 %v15387_v27  ;;  %v15389_v36 = vunpack.i.h.bf16 %v15387_v27  ;;  %v15481_v27 = vld [vmem:[%s19937_s17 + $0x1f0] sm:$0xff]  }
  0x8f   :  { %v150_v23 = vmul.f32 %v15377_v22, %v16491_v18  ;;  %v152_v24 = vmul.f32 %v15378_v21, %v16491_v18  ;;  %v151_v25 = vmul.f32 %v15377_v22, %v16494_v19  ;;  %v153_v26 = vmul.f32 %v15378_v21, %v16494_v19 }
  0x90   :  { %v15381_v28 = vpop.permute.xlu0 %15380  ;;  %v158_v49 = vmul.f32 %v15388_v29, %v16491_v18  ;;  %v159_v51 = vmul.f32 %v15388_v29, %v16494_v19  ;;  %v160_v52 = vmul.f32 %v15389_v36, %v16491_v18  ;;  %v161_v53 = vmul.f32 %v15389_v36, %v16494_v19  ;;  %v15482_v29 = vld [vmem:[%s19937_s17 + $0x1b0] sm:$0xff]   ;;  %v15488_v36 = vld [vmem:[%s19937_s17 + $0x138] sm:$0xff]  }
  0x91   :  { %v15383_v30 = vunpack.i.h.bf16 %v15381_v28  ;;  %v15382_v31 = vunpack.i.l.bf16 %v15381_v28  ;;  %v169_v32 = vpack.c.bf16 %v153_v26, %v151_v25  ;;  %v168_v33 = vpack.c.bf16 %v152_v24, %v150_v23  ;;  %v15392_v40 = vpop.permute.xlu1 %15391  ;;  %v15477_v23 = vld [vmem:[%s19937_s17 + $0x1e8] sm:$0xff]   ;;  %v15476_v24 = vld [vmem:[%s19937_s17 + $0x120] sm:$0xff]  }
  0x92   :  { %v15394_v45 = vunpack.i.h.bf16 %v15392_v40  ;;  %v15393_v54 = vunpack.i.l.bf16 %v15392_v40  ;;  %v16547_v3 = vpack.c.bf16 %v160_v52, %v158_v49  ;;  %v16549_v4 = vpack.c.bf16 %v161_v53, %v159_v51  ;;  %v15478_v25 = vld [vmem:[%s19937_s17 + $0x1a8] sm:$0xff]   ;;  %v15492_v40 = vld [vmem:[%s19937_s17 + $0x200] sm:$0xff]   ;;  %v15502_v49 = vld [vmem:[%s19937_s17 + $0x298] sm:$0xff]  }
  0x93   :  { %v155_v37 = vmul.f32 %v15382_v31, %v16494_v19  ;;  %v157_v38 = vmul.f32 %v15383_v30, %v16494_v19  ;;  %513 = vmatprep.mubr.bf16.mxu1 %v169_v32  ;;  %v246_v41 = vrot.slane %v169_v32, 4  ;;  %v245_v42 = vrot.slane %v168_v33, 4  ;;  %v15479_v26 = vld [vmem:[%s19937_s17 + $0x168] sm:$0xff]   ;;  %v15484_v32 = vld [vmem:[%s19937_s17 + $0x130] sm:$0xff]   ;;  %v15505_v51 = vld [vmem:[%s19937_s17 + $0x2e0] sm:$0xff]  }
  0x94   :  { %514 = vmatmul.mubr.bf16.vlgmr.msra.gmra.mrb[0].mxu1 %v168_v33  ;;  %v154_v46 = vmul.f32 %v15382_v31, %v16491_v18  ;;  %v156_v47 = vmul.f32 %v15383_v30, %v16491_v18  ;;  %v164_v57 = vmul.f32 %v15394_v45, %v16491_v18  ;;  %v165_v58 = vmul.f32 %v15394_v45, %v16494_v19  ;;  %v15480_v28 = vld [vmem:[%s19937_s17 + $0x128] sm:$0xff]   ;;  %v15483_v30 = vld [vmem:[%s19937_s17 + $0x170] sm:$0xff]   ;;  %v15485_v31 = vld [vmem:[%s19937_s17 + $0x1f8] sm:$0xff]  }
  0x95   :  { %13877 = vmatpush3.bf16.msra.mxu1 %v15458_v34  ;;  %v171_v48 = vpack.c.bf16 %v157_v38, %v155_v37  ;;  %377 = vmatprep.mubr.bf16.mxu0 %v246_v41  ;;  %v162_v60 = vmul.f32 %v15393_v54, %v16491_v18  ;;  %v163_v61 = vmul.f32 %v15393_v54, %v16494_v19  ;;  %v1073_v12 = vrot.slane %v16549_v4, 4  ;;  %v15486_v33 = vld [vmem:[%s19937_s17 + $0x1b8] sm:$0xff]   ;;  %v15490_v37 = vld [vmem:[%s19937_s17 + $0x280] sm:$0xff]   ;;  %v15494_v41 = vld [vmem:[%s19937_s17 + $0x288] sm:$0xff]  }
  0x96   :  { %13878 = vmatprep.subr.bf16.mxu1 %v15461_v35  ;;  %378 = vmatmul.mubr.bf16.vlgmr.msra.gmra.mrb[0].mxu0 %v245_v42  ;;  %v16536_v62 = vpack.c.bf16 %v156_v47, %v154_v46  ;;  %v1072_v14 = vrot.slane %v16547_v3, 4  ;;  %v15487_v34 = vld [vmem:[%s19937_s17 + $0x178] sm:$0xff]   ;;  %v15489_v35 = vld [vmem:[%s19937_s17 + $0x2c0] sm:$0xff]   ;;  %v15495_v42 = vld [vmem:[%s19937_s17 + $0x248] sm:$0xff]  }
  0x97   :  { %v727_v55 = vrot.slane %v171_v48, 4  ;;  %13855 = vmatpush3.bf16.msra.mxu0 %v15460_v39  ;;  %682 = vmatprep.mubr.bf16.mxu0 %v171_v48  ;;  %v16554_v6 = vpack.c.bf16 %v164_v57, %v162_v60  ;;  %v16556_v7 = vpack.c.bf16 %v165_v58, %v163_v61  ;;  %v15491_v38 = vld [vmem:[%s19937_s17 + $0x240] sm:$0xff]   ;;  %v15493_v39 = vld [vmem:[%s19937_s17 + $0x2c8] sm:$0xff]   ;;  %v15498_v45 = vld [vmem:[%s19937_s17 + $0x290] sm:$0xff]  }
  0x98   :  { %13856 = vmatprep.subr.bf16.mxu0 %v15463_v44  ;;  %v726_v10 = vrot.slane %v16536_v62, 4  ;;  %v15496_v44 = vld [vmem:[%s19937_s17 + $0x208] sm:$0xff]   ;;  %v15499_v46 = vld [vmem:[%s19937_s17 + $0x250] sm:$0xff]   ;;  %v15501_v47 = vld [vmem:[%s19937_s17 + $0x2d8] sm:$0xff]  }
  0x99   :  { %13879 = vmatpush3.bf16.msra.mxu1 %v15462_v43  ;;  %858 = vmatprep.mubr.bf16.mxu1 %v727_v55  ;;  %v1419_v21 = vrot.slane %v16556_v7, 4  ;;  %v1418_v22 = vrot.slane %v16554_v6, 4  ;;  %v15497_v43 = vld [vmem:[%s19937_s17 + $0x2d0] sm:$0xff]   ;;  %v15504_v52 = vld [vmem:[%s19937_s17 + $0x218] sm:$0xff]   ;;  %v15506_v53 = vld [vmem:[%s19937_s17 + $0x2a0] sm:$0xff]  }
  0x9a   :  { %13880 = vmatprep.subr.bf16.mxu1 %v15465_v50  ;;  %v15500_v48 = vld [vmem:[%s19937_s17 + $0x210] sm:$0xff]   ;;  %v15503_v50 = vld [vmem:[%s19937_s17 + $0x258] sm:$0xff]   ;;  %v15507_v54 = vld [vmem:[%s19937_s17 + $0x260] sm:$0xff]  }
  0x9b   :  { %13857 = vmatpush3.bf16.msra.mxu0 %v15464_v56  ;;  %v15509_v55 = vld [vmem:[%s19937_s17 + $0x2e8] sm:$0xff]   ;;  %v15508_v56 = vld [vmem:[%s19937_s17 + $0x220] sm:$0xff]   ;;  %v15514_v61 = vld [vmem:[%s19937_s17 + $0x2b0] sm:$0xff]  }
  0x9c   :  { %13858 = vmatprep.subr.bf16.mxu0 %v15467_v63  ;;  %v15510_v57 = vld [vmem:[%s19937_s17 + $0x2a8] sm:$0xff]   ;;  %v15517_v63 = vld [vmem:[%s19937_s17 + $0x2f8] sm:$0xff]  }
  0x9d   :  { %13881 = vmatpush3.bf16.msra.mxu1 %v15466_v59  ;;  %v15511_v58 = vld [vmem:[%s19937_s17 + $0x268] sm:$0xff]   ;;  %v15513_v59 = vld [vmem:[%s19937_s17 + $0x2f0] sm:$0xff]  }
  0x9e   :  { %13882 = vmatprep.subr.bf16.mxu1 %v15469_v2  ;;  %v15512_v60 = vld [vmem:[%s19937_s17 + $0x228] sm:$0xff]   ;;  %v15518_v2 = vld [vmem:[%s19937_s17 + $0x2b8] sm:$0xff]  }
  0x9f   :  { %13859 = vmatpush3.bf16.msra.mxu0 %v15468_v1  ;;  %v15516_v1 = vld [vmem:[%s19937_s17 + $0x230] sm:$0xff]  }
  0xa0   :  { %13860 = vmatprep.subr.bf16.mxu0 %v15471_v8  ;;  %v15520_v8 = vld [vmem:[%s19937_s17 + $0x238] sm:$0xff]  }
  0xa1   :  { %13883 = vmatpush3.bf16.msra.mxu1 %v15470_v5  ;;  %v15521_v5 = vld [vmem:[%s19937_s17 + $0x3c0] sm:$0xff]  }
  0xa2   :  { %13884 = vmatprep.subr.bf16.mxu1 %v15473_v9  ;;  %v15522_v9 = vld [vmem:[%s19937_s17 + $0x380] sm:$0xff]  }
  0xa3   :  { %13861 = vmatpush3.bf16.msra.mxu0 %v15472_v11  ;;  %v15525_v11 = vld [vmem:[%s19937_s17 + $0x3c8] sm:$0xff]  }
  0xa4   :  { %13862 = vmatprep.subr.bf16.mxu0 %v15475_v20  ;;  %v15527_v20 = vld [vmem:[%s19937_s17 + $0x348] sm:$0xff]  }
  0xa5   :  { %13885 = vmatpush3.bf16.msra.mxu1 %v15474_v17  ;;  %v15526_v17 = vld [vmem:[%s19937_s17 + $0x388] sm:$0xff]  }
  0xa6   :  { %13886 = vmatprep.subr.bf16.mxu1 %v15477_v23  ;;  %v15529_v23 = vld [vmem:[%s19937_s17 + $0x3d0] sm:$0xff]  }
  0xa7   :  { %13863 = vmatpush3.bf16.msra.mxu0 %v15476_v24  ;;  %v15528_v24 = vld [vmem:[%s19937_s17 + $0x308] sm:$0xff]  }
  0xa8   :  { %13864 = vmatprep.subr.bf16.mxu0 %v15479_v26  ;;  %v15534_v26 = vld [vmem:[%s19937_s17 + $0x398] sm:$0xff]  }
  0xa9   :  { %13887 = vmatpush3.bf16.msra.mxu1 %v15478_v25  ;;  %v15531_v25 = vld [vmem:[%s19937_s17 + $0x350] sm:$0xff]  }
  0xaa   :  { %13888 = vmatprep.subr.bf16.mxu1 %v15481_v27  ;;  %v15535_v27 = vld [vmem:[%s19937_s17 + $0x358] sm:$0xff]  }
  0xab   :  { %13865 = vmatpush3.bf16.msra.mxu0 %v15480_v28  ;;  %v15536_v28 = vld [vmem:[%s19937_s17 + $0x318] sm:$0xff]  }
  0xac   :  { %13866 = vmatprep.subr.bf16.mxu0 %v15483_v30  ;;  %v15539_v30 = vld [vmem:[%s19937_s17 + $0x360] sm:$0xff]  }
  0xad   :  { %13889 = vmatpush3.bf16.msra.mxu1 %v15482_v29  ;;  %v15538_v29 = vld [vmem:[%s19937_s17 + $0x3a0] sm:$0xff]  }
  0xae   :  { %13890 = vmatprep.subr.bf16.mxu1 %v15485_v31  ;;  %v15541_v31 = vld [vmem:[%s19937_s17 + $0x3e8] sm:$0xff]  }
  0xaf   :  { %13867 = vmatpush3.bf16.msra.mxu0 %v15484_v32  ;;  %v15540_v32 = vld [vmem:[%s19937_s17 + $0x320] sm:$0xff]  }
  0xb0   :  { %13868 = vmatprep.subr.bf16.mxu0 %v15487_v34  ;;  %v15543_v34 = vld [vmem:[%s19937_s17 + $0x368] sm:$0xff]  }
  0xb1   :  { %13891 = vmatpush3.bf16.msra.mxu1 %v15486_v33  ;;  %v15542_v33 = vld [vmem:[%s19937_s17 + $0x3a8] sm:$0xff]  }
  0xb2   :  { %13920 = vmatprep.subr.bf16.mxu1 %v15489_v35  ;;  %v15545_v35 = vld [vmem:[%s19937_s17 + $0x3f0] sm:$0xff]  }
  0xb3   :  { %13869 = vmatpush3.bf16.msra.mxu0 %v15488_v36  ;;  %v15544_v36 = vld [vmem:[%s19937_s17 + $0x328] sm:$0xff]  }
  0xb4   :  { %859 = vmatmul.mubr.bf16.vlgmr.msra.gmra.mrb[4].mxu1 %v726_v10  ;;  %13898 = vmatprep.subr.bf16.mxu0 %v15491_v38  ;;  %v15523_v10 = vld [vmem:[%s19937_s17 + $0x340] sm:$0xff]   ;;  %v15547_v38 = vld [vmem:[%s19937_s17 + $0x370] sm:$0xff]  }
  0xb5   :  { %13921 = vmatpush3.bf16.msra.mxu1 %v15490_v37  ;;  %1204 = vmatprep.mubr.bf16.mxu1 %v1073_v12  ;;  %v15524_v12 = vld [vmem:[%s19937_s17 + $0x300] sm:$0xff]   ;;  %v15546_v37 = vld [vmem:[%s19937_s17 + $0x3b0] sm:$0xff]  }
  0xb6   :  { %13922 = vmatprep.subr.bf16.mxu1 %v15493_v39  ;;  %683 = vmatmul.mubr.bf16.vlgmr.msra.gmra.mrb[4].mxu0 %v16536_v62  ;;  %v15515_v62 = vld [vmem:[%s19937_s17 + $0x270] sm:$0xff]   ;;  %v15549_v39 = vld [vmem:[%s19937_s17 + $0x3f8] sm:$0xff]  }
  0xb7   :  { %13899 = vmatpush3.bf16.msra.mxu0 %v15492_v40  ;;  %1028 = vmatprep.mubr.bf16.mxu0 %v16549_v4  ;;  %v15519_v4 = vld [vmem:[%s19937_s17 + $0x278] sm:$0xff]   ;;  %v15548_v40 = vld [vmem:[%s19937_s17 + $0x330] sm:$0xff]  }
  0xb8   :  { %13900 = vmatprep.subr.bf16.mxu0 %v15495_v42  ;;  %v15551_v42 = vld [vmem:[%s19937_s17 + $0x378] sm:$0xff]  }
  0xb9   :  { %13923 = vmatpush3.bf16.msra.mxu1 %v15494_v41  ;;  %v15550_v41 = vld [vmem:[%s19937_s17 + $0x3b8] sm:$0xff]  }
  0xba   :  { %13924 = vmatprep.subr.bf16.mxu1 %v15497_v43  ;;  %v15552_v43 = vld [vmem:[%s19937_s17 + $0x338] sm:$0xff]  }
  0xbb   :  { %13901 = vmatpush3.bf16.msra.mxu0 %v15496_v44  ;;  %v137_v44 = vpop.permute.xlu0 %136 }
  0xbc   :  { %13902 = vmatprep.subr.bf16.mxu0 %v15499_v46  ;;  %v167_v46 = vmul.f32 %v16494_v19, %v137_v44 }
  0xbd   :  { %13925 = vmatpush3.bf16.msra.mxu1 %v15498_v45  ;;  %v15553_v45 = vld [vmem:[%s19937_s17 + $0x440] sm:$0xff]  }
  0xbe   :  { %13926 = vmatprep.subr.bf16.mxu1 %v15501_v47  ;;  %v15554_v47 = vld [vmem:[%s19937_s17 + $0x400] sm:$0xff]  }
  0xbf   :  { %13903 = vmatpush3.bf16.msra.mxu0 %v15500_v48  ;;  %v15555_v48 = vld [vmem:[%s19937_s17 + $0x448] sm:$0xff]  }
  0xc0   :  { %13904 = vmatprep.subr.bf16.mxu0 %v15503_v50  ;;  %v15556_v50 = vld [vmem:[%s19937_s17 + $0x408] sm:$0xff]  }
  0xc1   :  { %13927 = vmatpush3.bf16.msra.mxu1 %v15502_v49  ;;  %v177_v49 = vpack.c.bf16 %v167_v46, %v167_v46 }
  0xc2   :  { %13928 = vmatprep.subr.bf16.mxu1 %v15505_v51  ;;  %v15557_v51 = vld [vmem:[%s19937_s17 + $0x450] sm:$0xff]  }
  0xc3   :  { %13905 = vmatpush3.bf16.msra.mxu0 %v15504_v52  ;;  %v15558_v52 = vld [vmem:[%s19937_s17 + $0x410] sm:$0xff]  }
  0xc4   :  { %13906 = vmatprep.subr.bf16.mxu0 %v15507_v54  ;;  %v15562_v54 = vld [vmem:[%s19937_s17 + $0x420] sm:$0xff]  }
  0xc5   :  { %13929 = vmatpush3.bf16.msra.mxu1 %v15506_v53  ;;  %v15561_v53 = vld [vmem:[%s19937_s17 + $0x460] sm:$0xff]  }
  0xc6   :  { %13930 = vmatprep.subr.bf16.mxu1 %v15509_v55  ;;  %v15563_v55 = vld [vmem:[%s19937_s17 + $0x468] sm:$0xff]  }
  0xc7   :  { %13907 = vmatpush3.bf16.msra.mxu0 %v15508_v56  ;;  %v15564_v56 = vld [vmem:[%s19937_s17 + $0x428] sm:$0xff]  }
  0xc8   :  { %13908 = vmatprep.subr.bf16.mxu0 %v15511_v58  ;;  %v15566_v58 = vld [vmem:[%s19937_s17 + $0x430] sm:$0xff]  }
  0xc9   :  { %13931 = vmatpush3.bf16.msra.mxu1 %v15510_v57  ;;  %v15565_v57 = vld [vmem:[%s19937_s17 + $0x470] sm:$0xff]  }
  0xca   :  { %13932 = vmatprep.subr.bf16.mxu1 %v15513_v59  ;;  %v15567_v59 = vld [vmem:[%s19937_s17 + $0x478] sm:$0xff]  }
  0xcb   :  { %13909 = vmatpush3.bf16.msra.mxu0 %v15512_v60  ;;  %v15568_v60 = vld [vmem:[%s19937_s17 + $0x438] sm:$0xff]  }
  0xcc   :  { %13910 = vmatprep.subr.bf16.mxu0 %v15515_v62 }
  0xcd   :  { %13933 = vmatpush3.bf16.msra.mxu1 %v15514_v61  ;;  %v166_v61 = vmul.f32 %v16491_v18, %v137_v44 }
  0xce   :  { %13934 = vmatprep.subr.bf16.mxu1 %v15517_v63 }
  0xcf   :  { %13911 = vmatpush3.bf16.msra.mxu0 %v15516_v1  ;;  %v176_v62 = vpack.c.bf16 %v166_v61, %v166_v61 }
  0xd0   :  { %13912 = vmatprep.subr.bf16.mxu0 %v15519_v4 }
  0xd1   :  { %13935 = vmatpush3.bf16.msra.mxu1 %v15518_v2 }
  0xd2   :  { %13964 = vmatprep.subr.bf16.mxu1 %v15521_v5 }
  0xd3   :  { %13913 = vmatpush3.bf16.msra.mxu0 %v15520_v8 }
  0xd4   :  { %1205 = vmatmul.mubr.bf16.vlgmr.msra.gmra.mrb[8].mxu1 %v1072_v14  ;;  %13942 = vmatprep.subr.bf16.mxu0 %v15523_v10  ;;  %v15530_v14 = vld [vmem:[%s19937_s17 + $0x390] sm:$0xff]  }
  0xd5   :  { %13965 = vmatpush3.bf16.msra.mxu1 %v15522_v9  ;;  %1550 = vmatprep.mubr.bf16.mxu1 %v1419_v21  ;;  %v15533_v21 = vld [vmem:[%s19937_s17 + $0x3d8] sm:$0xff]  }
  0xd6   :  { %13966 = vmatprep.subr.bf16.mxu1 %v15525_v11  ;;  %1029 = vmatmul.mubr.bf16.vlgmr.msra.gmra.mrb[8].mxu0 %v16547_v3  ;;  %v15532_v3 = vld [vmem:[%s19937_s17 + $0x310] sm:$0xff]  }
  0xd7   :  { %13943 = vmatpush3.bf16.msra.mxu0 %v15524_v12  ;;  %1374 = vmatprep.mubr.bf16.mxu0 %v16556_v7  ;;  %v15537_v7 = vld [vmem:[%s19937_s17 + $0x3e0] sm:$0xff]  }
  0xd8   :  { %13944 = vmatprep.subr.bf16.mxu0 %v15527_v20  ;;  %v19921_v20 = vmov 0.0  }
  0xd9   :  { %13967 = vmatpush3.bf16.msra.mxu1 %v15526_v17 }
  0xda   :  { %13968 = vmatprep.subr.bf16.mxu1 %v15529_v23 }
  0xdb   :  { %13945 = vmatpush3.bf16.msra.mxu0 %v15528_v24 }
  0xdc   :  { %13946 = vmatprep.subr.bf16.mxu0 %v15531_v25 }
  0xdd   :  { %13969 = vmatpush3.bf16.msra.mxu1 %v15530_v14 }
  0xde   :  { %13970 = vmatprep.subr.bf16.mxu1 %v15533_v21 }
  0xdf   :  { %13947 = vmatpush3.bf16.msra.mxu0 %v15532_v3 }
  0xe0   :  { %13948 = vmatprep.subr.bf16.mxu0 %v15535_v27 }
  0xe1   :  { %13971 = vmatpush3.bf16.msra.mxu1 %v15534_v26 }
  0xe2   :  { %13972 = vmatprep.subr.bf16.mxu1 %v15537_v7 }
  0xe3   :  { %13949 = vmatpush3.bf16.msra.mxu0 %v15536_v28 }
  0xe4   :  { %13950 = vmatprep.subr.bf16.mxu0 %v15539_v30 }
  0xe5   :  { %13973 = vmatpush3.bf16.msra.mxu1 %v15538_v29 }
  0xe6   :  { %13974 = vmatprep.subr.bf16.mxu1 %v15541_v31 }
  0xe7   :  { %13951 = vmatpush3.bf16.msra.mxu0 %v15540_v32 }
  0xe8   :  { %13952 = vmatprep.subr.bf16.mxu0 %v15543_v34 }
  0xe9   :  { %13975 = vmatpush3.bf16.msra.mxu1 %v15542_v33 }
  0xea   :  { %13976 = vmatprep.subr.bf16.mxu1 %v15545_v35 }
  0xeb   :  { %13953 = vmatpush3.bf16.msra.mxu0 %v15544_v36 }
  0xec   :  { %13954 = vmatprep.subr.bf16.mxu0 %v15547_v38 }
  0xed   :  { %13977 = vmatpush3.bf16.msra.mxu1 %v15546_v37 }
  0xee   :  { %13978 = vmatprep.subr.bf16.mxu1 %v15549_v39 }
  0xef   :  { %13955 = vmatpush3.bf16.msra.mxu0 %v15548_v40 }
  0xf0   :  { %13956 = vmatprep.subr.bf16.mxu0 %v15551_v42 }
  0xf1   :  { %13979 = vmatpush3.bf16.msra.mxu1 %v15550_v41 }
  0xf2   :  { %14498 = vmatprep.subr.bf16.mxu1 %v19921_v20 }
  0xf3   :  { %13957 = vmatpush3.bf16.msra.mxu0 %v15552_v43  ;;  %v15578_v43 = vld [vmem:[%s19881_s2 + $0x20] sm:$0xff]  }
  0xf4   :  { %1551 = vmatmul.mubr.bf16.vlgmr.msra.gmra.mrb[12].mxu1 %v1418_v22  ;;  %13986 = vmatprep.subr.bf16.mxu0 %v15553_v45  ;;  %v15559_v22 = vld [vmem:[%s19937_s17 + $0x458] sm:$0xff]  }
  0xf5   :  { %14500 = vmatprep.mubr.msk.bf16.mxu1 %vm16195_vm0, %v19921_v20 }
  0xf6   :  { %1375 = vmatmul.mubr.bf16.vlgmr.msra.gmra.mrb[12].mxu0 %v16554_v6  ;;  %v15560_v6 = vld [vmem:[%s19937_s17 + $0x418] sm:$0xff]  }
  0xf7   :  { %13987 = vmatpush3.bf16.msra.mxu0 %v15554_v47  ;;  %1720 = vmatprep.mubr.bf16.mxu0 %v177_v49 }
  0xf8   :  { %13988 = vmatprep.subr.bf16.mxu0 %v15555_v48 }
  0xfb   :  { %13989 = vmatpush3.bf16.msra.mxu0 %v15556_v50 }
  0xfc   :  { %13990 = vmatprep.subr.bf16.mxu0 %v15557_v51 }
  0xff   :  { %13991 = vmatpush3.bf16.msra.mxu0 %v15558_v52 }
 0x100   :  { %13992 = vmatprep.subr.bf16.mxu0 %v15559_v22 }
 0x103   :  { %13993 = vmatpush3.bf16.msra.mxu0 %v15560_v6 }
 0x104   :  { %13994 = vmatprep.subr.bf16.mxu0 %v15561_v53 }
 0x107   :  { %13995 = vmatpush3.bf16.msra.mxu0 %v15562_v54 }
 0x108   :  { %13996 = vmatprep.subr.bf16.mxu0 %v15563_v55 }
 0x10b   :  { %13997 = vmatpush3.bf16.msra.mxu0 %v15564_v56 }
 0x10c   :  { %13998 = vmatprep.subr.bf16.mxu0 %v15565_v57 }
 0x10f   :  { %13999 = vmatpush3.bf16.msra.mxu0 %v15566_v58 }
 0x110   :  { %14000 = vmatprep.subr.bf16.mxu0 %v15567_v59 }
 0x113   :  { %14001 = vmatpush3.bf16.msra.mxu0 %v15568_v60  ;;  %v1733_v60 = vpop.permute.xlu1 %1732 }
 0x114   :  { %14536 = vmatprep.subr.bf16.mxu0 %v19921_v20 }
 0x116   :  { %1721 = vmatmul.mubr.bf16.vlgmr.msra.gmra.mrb[16].mxu0 %v176_v62 }
 0x117   :  { %14544 = vmatprep.mubr.msk.bf16.mxu0 %vm16195_vm0, %v19921_v20  ;;  %14537 = vmatpush3.bf16.msra.mxu0 %v15578_v43 }
 0x118   :  { %14538 = vmatprep.subr.bf16.mxu0 %v19921_v20 }
 0x167   :  { %v13848_v63 = vpop.f32.mrb[0].mxu1 }
 0x168   :  { %v13849_v1 = vpop.f32.mrb[1].mxu1 }
 0x169   :  { %v13850_v2 = vadd.f32 %v13849_v1, %v13848_v63  ;;  %v13851_v4 = vpop.f32.mrb[2].mxu1  ;;  %v13826_v5 = vpop.f32.mrb[0].mxu0 }
 0x16a   :  { %v13852_v8 = vpop.f32.mrb[3].mxu1  ;;  %v13827_v9 = vpop.f32.mrb[1].mxu0  ;;  %v15569_v4 = vld [vmem:[%s19880_s8] sm:$0xff]  }
 0x16b   :  { %v13828_v10 = vadd.f32 %v13827_v9, %v13826_v5  ;;  %v13829_v11 = vpop.f32.mrb[2].mxu0  ;;  %v15570_v5 = vld [vmem:[%s19880_s8 + $0x8] sm:$0xff]   ;;  %v15571_v8 = vld [vmem:[%s19880_s8 + $0x10] sm:$0xff]   ;;  %v15572_v9 = vld [vmem:[%s19880_s8 + $0x18] sm:$0xff]  }
 0x16c   :  { %v13830_v12 = vpop.f32.mrb[3].mxu0  ;;  %v15574_v11 = vld [vmem:[%s19880_s8 + $0x28] sm:$0xff]  }
 0x16d   :  { %v516_v17 = vadd.f32 %v13850_v2, %v13828_v10  ;;  %v15573_v10 = vld [vmem:[%s19880_s8 + $0x20] sm:$0xff]   ;;  %v15575_v12 = vld [vmem:[%s19880_s8 + $0x30] sm:$0xff]  }
 0x187   :  { %v13892_v23 = vpop.f32.mrb[4].mxu1 }
 0x188   :  { %v13893_v24 = vpop.f32.mrb[5].mxu1 }
 0x189   :  { %v13894_v14 = vadd.f32 %v13893_v24, %v13892_v23  ;;  %v13895_v25 = vpop.f32.mrb[6].mxu1  ;;  %v13870_v21 = vpop.f32.mrb[4].mxu0  ;;  %v15577_v23 = vld [vmem:[%s19880_s8 + $0x40] sm:$0xff]   ;;  %v15579_v24 = vld [vmem:[%s19881_s2 + $0x28] sm:$0xff]  }
 0x18a   :  { %v13896_v3 = vpop.f32.mrb[7].mxu1  ;;  %v13871_v26 = vpop.f32.mrb[5].mxu0  ;;  %14539 = vmatpush3.bf16.msra.mxu0 %v15579_v24  ;;  %v15581_v25 = vld [vmem:[%s19881_s2 + $0x38] sm:$0xff]  }
 0x18b   :  { %v13872_v27 = vadd.f32 %v13871_v26, %v13870_v21  ;;  %v13873_v7 = vpop.f32.mrb[6].mxu0  ;;  %14540 = vmatprep.subr.bf16.mxu0 %v19921_v20  ;;  %v15585_v21 = vld [vmem:[%s19881_s2 + $0x60] sm:$0xff]   ;;  %v15589_v3 = vld [vmem:[%s19881_s2 + $0x68] sm:$0xff]   ;;  %v15591_v26 = vld [vmem:[%s19881_s2 + $0x70] sm:$0xff]  }
 0x18c   :  { %v13874_v28 = vpop.f32.mrb[7].mxu0 }
 0x18d   :  { %v690_v29 = vadd.f32 %v13872_v27, %v516_v17  ;;  %v15576_v17 = vld [vmem:[%s19880_s8 + $0x38] sm:$0xff]  }
 0x18e   :  { %v15593_v27 = vld [vmem:[%s19881_s2 + $0x78] sm:$0xff]  }
 0x18f   :  { %v866_v30 = vadd.f32 %v13894_v14, %v690_v29  ;;  %v15580_v14 = vld [vmem:[%s19881_s2 + $0x30] sm:$0xff]  }
 0x190   :  { %14541 = vmatpush3.bf16.msra.mxu0 %v15580_v14 }
 0x191   :  { %14542 = vmatprep.subr.bf16.mxu0 %v19921_v20 }
 0x194   :  { %14543 = vmatpush3.bf16.msra.mxu0 %v15581_v25 }
 0x195   :  { %14548 = vmatprep.subr.bf16.mxu0 %v19921_v20 }
 0x1a7   :  { %v13936_v31 = vpop.f32.mrb[8].mxu1 }
 0x1a8   :  { %v13937_v32 = vpop.f32.mrb[9].mxu1 }
 0x1a9   :  { %v13938_v33 = vadd.f32 %v13937_v32, %v13936_v31  ;;  %v13939_v34 = vpop.f32.mrb[10].mxu1  ;;  %v13914_v35 = vpop.f32.mrb[8].mxu0 }
 0x1aa   :  { %v13940_v36 = vpop.f32.mrb[11].mxu1  ;;  %v13915_v37 = vpop.f32.mrb[9].mxu0 }
 0x1ab   :  { %v13916_v38 = vadd.f32 %v13915_v37, %v13914_v35  ;;  %v13917_v39 = vpop.f32.mrb[10].mxu0  ;;  %v15582_v35 = vld [vmem:[%s19881_s2] sm:$0xff]  }
 0x1ac   :  { %v13918_v40 = vpop.f32.mrb[11].mxu0 }
 0x1ad   :  { %v1036_v41 = vadd.f32 %v13916_v38, %v866_v30  ;;  %v15583_v38 = vld [vmem:[%s19881_s2 + $0x8] sm:$0xff]  }
 0x1af   :  { %v1212_v42 = vadd.f32 %v13938_v33, %v1036_v41  ;;  %v15584_v41 = vld [vmem:[%s19881_s2 + $0x10] sm:$0xff]  }
 0x1c7   :  { %v13980_v44 = vpop.f32.mrb[12].mxu1 }
 0x1c8   :  { %v13981_v45 = vpop.f32.mrb[13].mxu1 }
 0x1c9   :  { %v13982_v46 = vadd.f32 %v13981_v45, %v13980_v44  ;;  %v13983_v47 = vpop.f32.mrb[14].mxu1  ;;  %v13958_v48 = vpop.f32.mrb[12].mxu0  ;;  %v15586_v45 = vld [vmem:[%s19881_s2 + $0x18] sm:$0xff]  }
 0x1ca   :  { %v13984_v49 = vpop.f32.mrb[15].mxu1  ;;  %v13959_v50 = vpop.f32.mrb[13].mxu0 }
 0x1cb   :  { %v13960_v51 = vadd.f32 %v13959_v50, %v13958_v48  ;;  %v13961_v52 = vpop.f32.mrb[14].mxu0  ;;  %v15587_v48 = vld [vmem:[%s19881_s2 + $0x40] sm:$0xff]  }
 0x1cc   :  { %v13962_v22 = vpop.f32.mrb[15].mxu0  ;;  %v15595_v52 = vld [vmem:[%s19881_s2 + $0xa0] sm:$0xff]  }
 0x1cd   :  { %v1382_v6 = vadd.f32 %v13960_v51, %v1212_v42  ;;  %v15588_v22 = vld [vmem:[%s19881_s2 + $0x48] sm:$0xff]  }
 0x1cf   :  { %v1558_v53 = vadd.f32 %v13982_v46, %v1382_v6  ;;  %v15597_v6 = vld [vmem:[%s19881_s2 + $0xa8] sm:$0xff]  }
 0x1e9   :  { %v14002_v54 = vpop.f32.mrb[16].mxu0 }
 0x1ea   :  { %v14003_v55 = vpop.f32.mrb[17].mxu0 }
 0x1eb   :  { %v14004_v56 = vadd.f32 %v14003_v55, %v14002_v54  ;;  %v14005_v57 = vpop.f32.mrb[18].mxu0  ;;  %v15590_v55 = vld [vmem:[%s19881_s2 + $0x50] sm:$0xff]  }
 0x1ec   :  { %v14006_v58 = vpop.f32.mrb[19].mxu0 }
 0x1ed   :  { %v1728_v59 = vadd.f32 %v14004_v56, %v1558_v53 }
 0x1ef   :  { %v1735_v61 = vadd.f32 %v1733_v60, %v1728_v59  ;;  %v15599_v59 = vld [vmem:[%s19881_s2 + $0xb0] sm:$0xff]   ;;  %v15592_v60 = vld [vmem:[%s19881_s2 + $0x58] sm:$0xff]  }
 0x1f1   :  { %vm1736_vm1 = vcmp.ge.f32.partialorder %v1735_v61, 0.0  ;;  %v1737_v62 = vmul.f32 0.2, %v1735_v61 }
 0x1f3   :  { %v1738_v63 = vsel %vm1736_vm1, %v1735_v61, %v1737_v62  ;;  %v15601_v61 = vld [vmem:[%s19881_s2 + $0xb8] sm:$0xff]  }
 0x1f4   :  { %v1739_v1 = vpack.c.bf16 %v1738_v63, %v1738_v63 }
 0x1f6   :  { %v16881_v2 = vsel %vm1831_vm2, %v1739_v1, 0  ;;  %v15594_v1 = vld [vmem:[%s19881_s2 + $0x80] sm:$0xff]  }
 0x1f7   :  { %14499 = vmatpush3.bf16.msra.mxu1 %v16881_v2 }
 0x1f8   :  { %14572 = vmatprep.subr.bf16.mxu1 %v19921_v20 }
 0x1fa   :  { %14501 = vmatmul.mubr.msk.bf16.vlgmr.msra.gmra.mrb[16].mxu1 %vm1803_vm3, %v15569_v4 }
 0x1fb   :  { %14504 = vmatprep.mubr.msk.bf16.mxu1 %vm16195_vm0, %v19921_v20  ;;  %14573 = vmatpush3.bf16.msra.mxu1 %v15585_v21  ;;  %v15607_v21 = vld [vmem:[%s19881_s2 + $0xf0] sm:$0xff]  }
 0x1fc   :  { %14574 = vmatprep.subr.bf16.mxu1 %v19921_v20 }
 0x1ff   :  { %14575 = vmatpush3.bf16.msra.mxu1 %v15589_v3  ;;  %v15600_v3 = vld [vmem:[%s19881_s2 + $0x98] sm:$0xff]  }
 0x200   :  { %14576 = vmatprep.subr.bf16.mxu1 %v19921_v20 }
 0x202   :  { %14505 = vmatmul.mubr.msk.bf16.gmra.mrb[20].mxu1 %vm1803_vm3, %v15570_v5 }
 0x203   :  { %14508 = vmatprep.mubr.msk.bf16.mxu1 %vm16195_vm0, %v19921_v20  ;;  %14577 = vmatpush3.bf16.msra.mxu1 %v15591_v26 }
 0x204   :  { %14578 = vmatprep.subr.bf16.mxu1 %v19921_v20 }
 0x207   :  { %14579 = vmatpush3.bf16.msra.mxu1 %v15593_v27  ;;  %v15609_v27 = vld [vmem:[%s19881_s2 + $0xf8] sm:$0xff]  }
 0x208   :  { %14596 = vmatprep.subr.bf16.mxu1 %v19921_v20 }
 0x20a   :  { %14509 = vmatmul.mubr.msk.bf16.gmra.mrb[24].mxu1 %vm1803_vm3, %v15571_v8 }
 0x20b   :  { %14512 = vmatprep.mubr.msk.bf16.mxu1 %vm16195_vm0, %v19921_v20 }
 0x212   :  { %14513 = vmatmul.mubr.msk.bf16.gmra.mrb[28].mxu1 %vm1803_vm3, %v15572_v9  ;;  %v15603_v9 = vld [vmem:[%s19881_s2 + $0xe0] sm:$0xff]  }
 0x213   :  { %14516 = vmatprep.mubr.msk.bf16.mxu1 %vm16195_vm0, %v19921_v20 }
 0x21a   :  { %14517 = vmatmul.mubr.msk.bf16.gmra.mrb[32].mxu1 %vm1803_vm3, %v15573_v10  ;;  %v15596_v10 = vld [vmem:[%s19881_s2 + $0x88] sm:$0xff]  }
 0x21b   :  { %14520 = vmatprep.mubr.msk.bf16.mxu1 %vm16195_vm0, %v19921_v20 }
 0x222   :  { %14521 = vmatmul.mubr.msk.bf16.gmra.mrb[36].mxu1 %vm1803_vm3, %v15574_v11  ;;  %v15605_v11 = vld [vmem:[%s19881_s2 + $0xe8] sm:$0xff]  }
 0x223   :  { %14524 = vmatprep.mubr.msk.bf16.mxu1 %vm16195_vm0, %v19921_v20 }
 0x22a   :  { %14525 = vmatmul.mubr.msk.bf16.gmra.mrb[40].mxu1 %vm1803_vm3, %v15575_v12 }
 0x22b   :  { %14528 = vmatprep.mubr.msk.bf16.mxu1 %vm16195_vm0, %v19921_v20 }
 0x232   :  { %14529 = vmatmul.mubr.msk.bf16.gmra.mrb[44].mxu1 %vm1803_vm3, %v15576_v17 }
 0x233   :  { %14532 = vmatprep.mubr.msk.bf16.mxu1 %vm16195_vm0, %v19921_v20 }
 0x23a   :  { %14533 = vmatmul.mubr.msk.bf16.gmra.mrb[48].mxu1 %vm1803_vm3, %v15577_v23  ;;  %v15598_v23 = vld [vmem:[%s19881_s2 + $0x90] sm:$0xff]  }
 0x23b   :  { %14580 = vmatprep.mubr.msk.bf16.mxu1 %vm16195_vm0, %v19921_v20 }
 0x2cd   :  { %v1869_v7 = vpop.f32.mrb[16].mxu1 }
 0x2ce   :  { %v14502_v28 = vpop.f32.mrb[17].mxu1 }
 0x2cf   :  { %v1872_v29 = vpop.f32.mrb[18].mxu1  ;;  %v15602_v28 = vld [vmem:[%s19881_s2 + $0xc0] sm:$0xff]  }
 0x2d0   :  { %v1940_v30 = vpack.c.bf16 %v1872_v29, %v1869_v7  ;;  %v14503_v31 = vpop.f32.mrb[19].mxu1 }
 0x2d5   :  { %v1877_v32 = vpop.f32.mrb[20].mxu1 }
 0x2d6   :  { %v14506_v33 = vpop.f32.mrb[21].mxu1 }
 0x2d7   :  { %v1880_v34 = vpop.f32.mrb[22].mxu1 }
 0x2d8   :  { %v1941_v36 = vpack.c.bf16 %v1880_v34, %v1877_v32  ;;  %v14507_v37 = vpop.f32.mrb[23].mxu1  ;;  %v15604_v32 = vld [vmem:[%s19881_s2 + $0xc8] sm:$0xff]  }
 0x2da   :  { %14545 = vmatmul.mubr.msk.bf16.vlgmr.msra.gmra.mrb[20].mxu0 %vm1990_vm4, %v1941_v36 }
 0x2db   :  { %14549 = vmatpush3.bf16.msra.mxu0 %v15582_v35  ;;  %14556 = vmatprep.mubr.msk.bf16.mxu0 %vm16195_vm0, %v19921_v20  ;;  %v15606_v35 = vld [vmem:[%s19881_s2 + $0xd0] sm:$0xff]  }
 0x2dc   :  { %14550 = vmatprep.subr.bf16.mxu0 %v19921_v20 }
 0x2dd   :  { %v1885_v39 = vpop.f32.mrb[24].mxu1 }
 0x2de   :  { %v14510_v40 = vpop.f32.mrb[25].mxu1 }
 0x2df   :  { %14551 = vmatpush3.bf16.msra.mxu0 %v15583_v38  ;;  %v1888_v42 = vpop.f32.mrb[26].mxu1  ;;  %v15610_v40 = vld [vmem:[%s19881_s2 + $0x100] sm:$0xff]  }
 0x2e0   :  { %14552 = vmatprep.subr.bf16.mxu0 %v19921_v20  ;;  %v1942_v43 = vpack.c.bf16 %v1888_v42, %v1885_v39  ;;  %v14511_v44 = vpop.f32.mrb[27].mxu1  ;;  %v15608_v39 = vld [vmem:[%s19881_s2 + $0xd8] sm:$0xff]   ;;  %v15612_v42 = vld [vmem:[%s19881_s2 + $0x110] sm:$0xff]  }
 0x2e3   :  { %14553 = vmatpush3.bf16.msra.mxu0 %v15584_v41  ;;  %v15611_v41 = vld [vmem:[%s19881_s2 + $0x108] sm:$0xff]  }
 0x2e4   :  { %14554 = vmatprep.subr.bf16.mxu0 %v19921_v20 }
 0x2e5   :  { %v1893_v46 = vpop.f32.mrb[28].mxu1 }
 0x2e6   :  { %v14514_v47 = vpop.f32.mrb[29].mxu1 }
 0x2e7   :  { %14555 = vmatpush3.bf16.msra.mxu0 %v15586_v45  ;;  %v1896_v49 = vpop.f32.mrb[30].mxu1 }
 0x2e8   :  { %14560 = vmatprep.subr.bf16.mxu0 %v19921_v20  ;;  %v1943_v50 = vpack.c.bf16 %v1896_v49, %v1893_v46  ;;  %v14515_v51 = vpop.f32.mrb[31].mxu1 }
 0x2ea   :  { %14557 = vmatmul.mubr.msk.bf16.vlgmr.msra.gmra.mrb[24].mxu0 %vm1990_vm4, %v1940_v30  ;;  %14581 = vmatmul.mubr.msk.bf16.vlgmr.msra.gmra.mrb[52].mxu1 %vm1990_vm4, %v1943_v50 }
 0x2eb   :  { %14561 = vmatpush3.bf16.msra.mxu0 %v15587_v48  ;;  %14568 = vmatprep.mubr.msk.bf16.mxu0 %vm16195_vm0, %v19921_v20 }
 0x2ec   :  { %14562 = vmatprep.subr.bf16.mxu0 %v19921_v20  ;;  %14597 = vmatpush3.bf16.msra.mxu1 %v15595_v52 }
 0x2ed   :  { %14598 = vmatprep.subr.bf16.mxu1 %v19921_v20  ;;  %v17004_v53 = vpop.f32.mrb[32].mxu1  ;;  %14604 = vmatprep.mubr.msk.bf16.mxu1 %vm16195_vm0, %v19921_v20 }
 0x2ee   :  { %v14518_v54 = vpop.f32.mrb[33].mxu1 }
 0x2ef   :  { %14563 = vmatpush3.bf16.msra.mxu0 %v15588_v22  ;;  %v1904_v56 = vpop.f32.mrb[34].mxu1 }
 0x2f0   :  { %14564 = vmatprep.subr.bf16.mxu0 %v19921_v20  ;;  %14599 = vmatpush3.bf16.msra.mxu1 %v15597_v6  ;;  %v1944_v57 = vpack.c.bf16 %v1904_v56, %v17004_v53  ;;  %v14519_v58 = vpop.f32.mrb[35].mxu1 }
 0x2f1   :  { %14600 = vmatprep.subr.bf16.mxu1 %v19921_v20 }
 0x2f3   :  { %14565 = vmatpush3.bf16.msra.mxu0 %v15590_v55 }
 0x2f4   :  { %14566 = vmatprep.subr.bf16.mxu0 %v19921_v20  ;;  %14601 = vmatpush3.bf16.msra.mxu1 %v15599_v59 }
 0x2f5   :  { %v1909_v62 = vpop.f32.mrb[36].mxu1  ;;  %14602 = vmatprep.subr.bf16.mxu1 %v19921_v20 }
 0x2f6   :  { %v14522_v63 = vpop.f32.mrb[37].mxu1 }
 0x2f7   :  { %14567 = vmatpush3.bf16.msra.mxu0 %v15592_v60  ;;  %v1912_v4 = vpop.f32.mrb[38].mxu1 }
 0x2f8   :  { %14584 = vmatprep.subr.bf16.mxu0 %v19921_v20  ;;  %v1945_v5 = vpack.c.bf16 %v1912_v4, %v1909_v62  ;;  %14603 = vmatpush3.bf16.msra.mxu1 %v15601_v61  ;;  %v14523_v8 = vpop.f32.mrb[39].mxu1 }
 0x2f9   :  { %14620 = vmatprep.subr.bf16.mxu1 %v19921_v20 }
 0x2fa   :  { %14569 = vmatmul.mubr.msk.bf16.vlgmr.msra.gmra.mrb[28].mxu0 %vm1990_vm4, %v1942_v43  ;;  %v15613_v43 = vld [vmem:[%s19881_s2 + $0x118] sm:$0xff]  }
 0x2fb   :  { %14585 = vmatpush3.bf16.msra.mxu0 %v15594_v1  ;;  %14592 = vmatprep.mubr.msk.bf16.mxu0 %vm16195_vm0, %v19921_v20 }
 0x2fc   :  { %14586 = vmatprep.subr.bf16.mxu0 %v19921_v20  ;;  %14605 = vmatmul.mubr.msk.bf16.vlgmr.msra.gmra.mrb[56].mxu1 %vm1990_vm4, %v1945_v5 }
 0x2fd   :  { %14621 = vmatpush3.bf16.msra.mxu1 %v15603_v9  ;;  %v1917_v12 = vpop.f32.mrb[40].mxu1  ;;  %14628 = vmatprep.mubr.msk.bf16.mxu1 %vm16195_vm0, %v19921_v20 }
 0x2fe   :  { %14622 = vmatprep.subr.bf16.mxu1 %v19921_v20  ;;  %v14526_v17 = vpop.f32.mrb[41].mxu1 }
 0x2ff   :  { %14587 = vmatpush3.bf16.msra.mxu0 %v15596_v10  ;;  %v1920_v24 = vpop.f32.mrb[42].mxu1 }
 0x300   :  { %14588 = vmatprep.subr.bf16.mxu0 %v19921_v20  ;;  %v1946_v14 = vpack.c.bf16 %v1920_v24, %v1917_v12  ;;  %v14527_v25 = vpop.f32.mrb[43].mxu1 }
 0x301   :  { %14623 = vmatpush3.bf16.msra.mxu1 %v15605_v11 }
 0x302   :  { %14624 = vmatprep.subr.bf16.mxu1 %v19921_v20 }
 0x303   :  { %14589 = vmatpush3.bf16.msra.mxu0 %v15598_v23 }
 0x304   :  { %14590 = vmatprep.subr.bf16.mxu0 %v19921_v20 }
 0x305   :  { %14625 = vmatpush3.bf16.msra.mxu1 %v15607_v21  ;;  %v1925_v26 = vpop.f32.mrb[44].mxu1 }
 0x306   :  { %v14530_v7 = vpop.f32.mrb[45].mxu1  ;;  %14626 = vmatprep.subr.bf16.mxu1 %v19921_v20 }
 0x307   :  { %14591 = vmatpush3.bf16.msra.mxu0 %v15600_v3  ;;  %v1928_v29 = vpop.f32.mrb[46].mxu1 }
 0x308   :  { %14608 = vmatprep.subr.bf16.mxu0 %v19921_v20  ;;  %v1947_v30 = vpack.c.bf16 %v1928_v29, %v1925_v26  ;;  %v14531_v31 = vpop.f32.mrb[47].mxu1 }
 0x309   :  { %14627 = vmatpush3.bf16.msra.mxu1 %v15609_v27 }
 0x30a   :  { %14593 = vmatmul.mubr.msk.bf16.vlgmr.msra.gmra.mrb[32].mxu0 %vm1990_vm4, %v1944_v57  ;;  %14644 = vmatprep.subr.bf16.mxu1 %v19921_v20 }
 0x30b   :  { %14609 = vmatpush3.bf16.msra.mxu0 %v15602_v28  ;;  %14616 = vmatprep.mubr.msk.bf16.mxu0 %vm16195_vm0, %v19921_v20 }
 0x30c   :  { %14610 = vmatprep.subr.bf16.mxu0 %v19921_v20  ;;  %14629 = vmatmul.mubr.msk.bf16.vlgmr.msra.gmra.mrb[60].mxu1 %vm1990_vm4, %v1947_v30 }
 0x30d   :  { %v1933_v33 = vpop.f32.mrb[48].mxu1  ;;  %14646 = vmatprep.mubr.msk.bf16.mxu1 %vm16195_vm0, %v19921_v20 }
 0x30e   :  { %v14534_v34 = vpop.f32.mrb[49].mxu1 }
 0x30f   :  { %14611 = vmatpush3.bf16.msra.mxu0 %v15604_v32  ;;  %v1936_v36 = vpop.f32.mrb[50].mxu1 }
 0x310   :  { %14612 = vmatprep.subr.bf16.mxu0 %v19921_v20  ;;  %v1948_v37 = vpack.c.bf16 %v1936_v36, %v1933_v33  ;;  %v14535_v38 = vpop.f32.mrb[51].mxu1 }
 0x313   :  { %14613 = vmatpush3.bf16.msra.mxu0 %v15606_v35 }
 0x314   :  { %14614 = vmatprep.subr.bf16.mxu0 %v19921_v20 }
 0x317   :  { %14615 = vmatpush3.bf16.msra.mxu0 %v15608_v39 }
 0x318   :  { %14632 = vmatprep.subr.bf16.mxu0 %v19921_v20 }
 0x31a   :  { %14617 = vmatmul.mubr.msk.bf16.vlgmr.msra.gmra.mrb[36].mxu0 %vm1990_vm4, %v1946_v14 }
 0x31b   :  { %14633 = vmatpush3.bf16.msra.mxu0 %v15610_v40  ;;  %14640 = vmatprep.mubr.msk.bf16.mxu0 %vm16195_vm0, %v19921_v20 }
 0x31c   :  { %14634 = vmatprep.subr.bf16.mxu0 %v19921_v20 }
 0x31f   :  { %14635 = vmatpush3.bf16.msra.mxu0 %v15611_v41 }
 0x320   :  { %14636 = vmatprep.subr.bf16.mxu0 %v19921_v20 }
 0x323   :  { %14637 = vmatpush3.bf16.msra.mxu0 %v15612_v42  ;;  %v2666_v42 = vpop.permute.xlu1 %2665 }
 0x324   :  { %14638 = vmatprep.subr.bf16.mxu0 %v19921_v20 }
 0x327   :  { %14639 = vmatpush3.bf16.msra.mxu0 %v15613_v43 }
 0x328   :  { %14682 = vmatprep.subr.bf16.mxu0 %v19921_v20 }
 0x32a   :  { %14641 = vmatmul.mubr.msk.bf16.vlgmr.msra.gmra.mrb[40].mxu0 %vm1990_vm4, %v1948_v37  ;;  %v2661_v37 = vpop.permute.xlu0 %2660 }
 0x32b   :  { %14684 = vmatprep.mubr.msk.bf16.mxu0 %vm16195_vm0, %v19921_v20 }
 0x3ad   :  { %v2028_v44 = vpop.f32.mrb[20].mxu0 }
 0x3ae   :  { %v14546_v45 = vpop.f32.mrb[21].mxu0 }
 0x3af   :  { %v2031_v46 = vpop.f32.mrb[22].mxu0 }
 0x3b0   :  { %v14547_v47 = vpop.f32.mrb[23].mxu0 }
 0x3bd   :  { %v2096_v48 = vpop.f32.mrb[24].mxu0  ;;  %v2252_v49 = vpop.f32.mrb[52].mxu1 }
 0x3be   :  { %v2097_v50 = vadd.f32 %v2096_v48, %v2028_v44  ;;  %v14558_v51 = vpop.f32.mrb[25].mxu0  ;;  %v14582_v52 = vpop.f32.mrb[53].mxu1 }
 0x3bf   :  { %v2099_v22 = vpop.f32.mrb[26].mxu0  ;;  %v2255_v6 = vpop.f32.mrb[54].mxu1  ;;  %v15616_v51 = vld [vmem:[%s19882_s9 + $0x10] sm:$0xff]   ;;  %v15617_v52 = vld [vmem:[%s19882_s9 + $0x18] sm:$0xff]  }
 0x3c0   :  { %v2100_v53 = vadd.f32 %v2099_v22, %v2031_v46  ;;  %v14559_v54 = vpop.f32.mrb[27].mxu0  ;;  %v14583_v55 = vpop.f32.mrb[55].mxu1  ;;  %v15618_v22 = vld [vmem:[%s19882_s9 + $0x20] sm:$0xff]  }
 0x3c1   :  { %v15621_v54 = vld [vmem:[%s19882_s9 + $0x38] sm:$0xff]   ;;  %v15622_v55 = vld [vmem:[%s19882_s9 + $0x40] sm:$0xff]  }
 0x3cd   :  { %v2173_v56 = vpop.f32.mrb[28].mxu0 }
 0x3ce   :  { %v2180_v57 = vadd.f32 %v2173_v56, %v2097_v50  ;;  %v14570_v58 = vpop.f32.mrb[29].mxu0  ;;  %v15615_v50 = vld [vmem:[%s19882_s9 + $0x8] sm:$0xff]  }
 0x3cf   :  { %v2176_v59 = vpop.f32.mrb[30].mxu0  ;;  %v2410_v60 = vpop.f32.mrb[56].mxu1  ;;  %v15623_v56 = vld [vmem:[%s19883_s3 + $0x8] sm:$0xff]  }
 0x3d0   :  { %v2181_v61 = vadd.f32 %v2176_v59, %v2100_v53  ;;  %v2259_v62 = vadd.f32 %v2252_v49, %v2180_v57  ;;  %v14571_v63 = vpop.f32.mrb[31].mxu0  ;;  %v14606_v1 = vpop.f32.mrb[57].mxu1  ;;  %v15614_v49 = vld [vmem:[%s19882_s9] sm:$0xff]   ;;  %v15620_v53 = vld [vmem:[%s19882_s9 + $0x30] sm:$0xff]   ;;  %14683 = vmatpush3.bf16.msra.mxu0 %v15623_v56  ;;  %v15635_v56 = vld [vmem:[%s19884_s11 + $0x18] sm:$0xff]  }
 0x3d1   :  { %v2413_v4 = vpop.f32.mrb[58].mxu1  ;;  %14688 = vmatprep.subr.bf16.mxu0 %v19921_v20  ;;  %v15627_v57 = vld [vmem:[%s19883_s3 + $0x40] sm:$0xff]  }
 0x3d2   :  { %v2260_v5 = vadd.f32 %v2255_v6, %v2181_v61  ;;  %v14607_v8 = vpop.f32.mrb[59].mxu1  ;;  %v15619_v6 = vld [vmem:[%s19882_s9 + $0x28] sm:$0xff]  }
 0x3dd   :  { %v2331_v9 = vpop.f32.mrb[32].mxu0 }
 0x3de   :  { %v2338_v10 = vadd.f32 %v2331_v9, %v2259_v62  ;;  %v14594_v11 = vpop.f32.mrb[33].mxu0 }
 0x3df   :  { %v2334_v12 = vpop.f32.mrb[34].mxu0  ;;  %v2568_v17 = vpop.f32.mrb[60].mxu1 }
 0x3e0   :  { %v2339_v23 = vadd.f32 %v2334_v12, %v2260_v5  ;;  %v2417_v24 = vadd.f32 %v2410_v60, %v2338_v10  ;;  %v14595_v14 = vpop.f32.mrb[35].mxu0  ;;  %v14630_v25 = vpop.f32.mrb[61].mxu1  ;;  %v15624_v5 = vld [vmem:[%s19883_s3] sm:$0xff]  }
 0x3e1   :  { %v2571_v21 = vpop.f32.mrb[62].mxu1 }
 0x3e2   :  { %v2418_v3 = vadd.f32 %v2413_v4, %v2339_v23  ;;  %v14631_v26 = vpop.f32.mrb[63].mxu1 }
 0x3ed   :  { %v2489_v27 = vpop.f32.mrb[36].mxu0 }
 0x3ee   :  { %v2496_v7 = vadd.f32 %v2489_v27, %v2417_v24  ;;  %v14618_v28 = vpop.f32.mrb[37].mxu0 }
 0x3ef   :  { %v2492_v29 = vpop.f32.mrb[38].mxu0 }
 0x3f0   :  { %v2497_v30 = vadd.f32 %v2492_v29, %v2418_v3  ;;  %v2575_v31 = vadd.f32 %v2568_v17, %v2496_v7  ;;  %v14619_v32 = vpop.f32.mrb[39].mxu0  ;;  %v15625_v17 = vld [vmem:[%s19883_s3 + $0x10] sm:$0xff]   ;;  %v15626_v3 = vld [vmem:[%s19883_s3 + $0x18] sm:$0xff]  }
 0x3f2   :  { %v2576_v33 = vadd.f32 %v2571_v21, %v2497_v30  ;;  %v15628_v30 = vld [vmem:[%s19883_s3 + $0x20] sm:$0xff]  }
 0x3fd   :  { %v2647_v34 = vpop.f32.mrb[40].mxu0 }
 0x3fe   :  { %v2654_v35 = vadd.f32 %v2647_v34, %v2575_v31  ;;  %v14642_v36 = vpop.f32.mrb[41].mxu0 }
 0x3ff   :  { %v2650_v38 = vpop.f32.mrb[42].mxu0  ;;  %v15629_v36 = vld [vmem:[%s19883_s3 + $0x28] sm:$0xff]  }
 0x400   :  { %v2668_v39 = vadd.f32 %v2661_v37, %v2654_v35  ;;  %v2655_v40 = vadd.f32 %v2650_v38, %v2576_v33  ;;  %v14643_v41 = vpop.f32.mrb[43].mxu0 }
 0x402   :  { %v2672_v43 = vmul.f32 0.2, %v2668_v39  ;;  %v2669_v44 = vadd.f32 %v2666_v42, %v2655_v40  ;;  %vm2670_vm5 = vcmp.ge.f32.partialorder %v2668_v39, 0.0  ;;  %v15630_v42 = vld [vmem:[%s19883_s3 + $0x30] sm:$0xff]  }
 0x404   :  { %vm2671_vm6 = vcmp.ge.f32.partialorder %v2669_v44, 0.0  ;;  %v2673_v45 = vmul.f32 0.2, %v2669_v44  ;;  %v2674_v46 = vsel %vm2670_vm5, %v2668_v39, %v2672_v43 }
 0x406   :  { %v2675_v47 = vsel %vm2671_vm6, %v2669_v44, %v2673_v45 }
 0x407   :  { %v2676_v48 = vpack.c.bf16 %v2675_v47, %v2674_v46 }
 0x409   :  { %14645 = vmatpush3.bf16.msra.mxu1 %v2676_v48  ;;  %v15631_v48 = vld [vmem:[%s19883_s3 + $0x38] sm:$0xff]  }
 0x40a   :  { %14730 = vmatprep.subr.bf16.mxu1 %v19921_v20 }
 0x40c   :  { %14647 = vmatmul.mubr.msk.bf16.vlgmr.msra.gmra.mrb[64].mxu1 %vm2740_vm7, %v15614_v49 }
 0x40d   :  { %14650 = vmatprep.mubr.msk.bf16.mxu1 %vm16195_vm0, %v19921_v20  ;;  %14731 = vmatpush3.bf16.msra.mxu1 %v15627_v57  ;;  %v15636_v57 = vld [vmem:[%s19884_s11 + $0x20] ss:$0 sps:$4 sm:$0xff]  }
 0x40e   :  { %14780 = vmatprep.subr.bf16.mxu1 %v19921_v20 }
 0x414   :  { %14651 = vmatmul.mubr.msk.bf16.gmra.mrb[68].mxu1 %vm2740_vm7, %v15615_v50 }
 0x415   :  { %14654 = vmatprep.mubr.msk.bf16.mxu1 %vm16195_vm0, %v19921_v20 }
 0x41c   :  { %14655 = vmatmul.mubr.msk.bf16.gmra.mrb[72].mxu1 %vm2740_vm7, %v15616_v51 }
 0x41d   :  { %14658 = vmatprep.mubr.msk.bf16.mxu1 %vm16195_vm0, %v19921_v20 }
 0x424   :  { %14659 = vmatmul.mubr.msk.bf16.gmra.mrb[76].mxu1 %vm2740_vm7, %v15617_v52 }
 0x425   :  { %14662 = vmatprep.mubr.msk.bf16.mxu1 %vm16195_vm0, %v19921_v20 }
 0x42c   :  { %14663 = vmatmul.mubr.msk.bf16.gmra.mrb[80].mxu1 %vm2740_vm7, %v15618_v22 }
 0x42d   :  { %14666 = vmatprep.mubr.msk.bf16.mxu1 %vm16195_vm0, %v19921_v20 }
 0x434   :  { %14667 = vmatmul.mubr.msk.bf16.gmra.mrb[84].mxu1 %vm2740_vm7, %v15619_v6 }
 0x435   :  { %14670 = vmatprep.mubr.msk.bf16.mxu1 %vm16195_vm0, %v19921_v20 }
 0x43c   :  { %14671 = vmatmul.mubr.msk.bf16.gmra.mrb[88].mxu1 %vm2740_vm7, %v15620_v53 }
 0x43d   :  { %14674 = vmatprep.mubr.msk.bf16.mxu1 %vm16195_vm0, %v19921_v20 }
 0x444   :  { %14675 = vmatmul.mubr.msk.bf16.gmra.mrb[92].mxu1 %vm2740_vm7, %v15621_v54  ;;  %v15632_v54 = vld [vmem:[%s19884_s11] sm:$0xff]  }
 0x445   :  { %14678 = vmatprep.mubr.msk.bf16.mxu1 %vm16195_vm0, %v19921_v20 }
 0x44c   :  { %14679 = vmatmul.mubr.msk.bf16.gmra.mrb[96].mxu1 %vm2740_vm7, %v15622_v55  ;;  %v15634_v55 = vld [vmem:[%s19884_s11 + $0x10] sm:$0xff]  }
 0x44d   :  { %14732 = vmatprep.mubr.msk.bf16.mxu1 %vm16195_vm0, %v19921_v20 }
 0x4df   :  { %v2802_v58 = vpop.f32.mrb[64].mxu1 }
 0x4e0   :  { %v14648_v59 = vpop.f32.mrb[65].mxu1 }
 0x4e1   :  { %v2805_v60 = vpop.f32.mrb[66].mxu1  ;;  %v15643_v59 = vld [vmem:[%s19886_s4 + $0x28] sm:$0xff]  }
 0x4e2   :  { %v2873_v61 = vpack.c.bf16 %v2805_v60, %v2802_v58  ;;  %v14649_v62 = vpop.f32.mrb[67].mxu1  ;;  %v15642_v58 = vld [vmem:[%s19886_s4 + $0x20] sm:$0xff]   ;;  %v15644_v60 = vld [vmem:[%s19886_s4 + $0x30] sm:$0xff]  }
 0x4e7   :  { %v2810_v63 = vpop.f32.mrb[68].mxu1 }
 0x4e8   :  { %v14652_v1 = vpop.f32.mrb[69].mxu1 }
 0x4e9   :  { %v2813_v4 = vpop.f32.mrb[70].mxu1 }
 0x4ea   :  { %v2874_v8 = vpack.c.bf16 %v2813_v4, %v2810_v63  ;;  %v14653_v9 = vpop.f32.mrb[71].mxu1 }
 0x4ec   :  { %14685 = vmatmul.mubr.msk.bf16.vlgmr.msra.gmra.mrb[44].mxu0 %vm2740_vm7, %v2874_v8 }
 0x4ed   :  { %14689 = vmatpush3.bf16.msra.mxu0 %v15624_v5  ;;  %14690 = vmatprep.mubr.msk.bf16.mxu0 %vm16195_vm0, %v19921_v20 }
 0x4ee   :  { %14694 = vmatprep.subr.bf16.mxu0 %v19921_v20 }
 0x4ef   :  { %v2818_v10 = vpop.f32.mrb[72].mxu1 }
 0x4f0   :  { %v14656_v11 = vpop.f32.mrb[73].mxu1 }
 0x4f1   :  { %v2821_v12 = vpop.f32.mrb[74].mxu1 }
 0x4f2   :  { %v2875_v23 = vpack.c.bf16 %v2821_v12, %v2818_v10  ;;  %v14657_v24 = vpop.f32.mrb[75].mxu1 }
 0x4f4   :  { %14691 = vmatmul.mubr.msk.bf16.vlgmr.msra.gmra.mrb[48].mxu0 %vm2740_vm7, %v2873_v61 }
 0x4f5   :  { %14695 = vmatpush3.bf16.msra.mxu0 %v15625_v17  ;;  %14696 = vmatprep.mubr.msk.bf16.mxu0 %vm16195_vm0, %v19921_v20 }
 0x4f6   :  { %14700 = vmatprep.subr.bf16.mxu0 %v19921_v20 }
 0x4f7   :  { %v2826_v14 = vpop.f32.mrb[76].mxu1 }
 0x4f8   :  { %v14660_v25 = vpop.f32.mrb[77].mxu1 }
 0x4f9   :  { %v2829_v21 = vpop.f32.mrb[78].mxu1 }
 0x4fa   :  { %v2876_v26 = vpack.c.bf16 %v2829_v21, %v2826_v14  ;;  %v14661_v27 = vpop.f32.mrb[79].mxu1 }
 0x4fc   :  { %14697 = vmatmul.mubr.msk.bf16.vlgmr.msra.gmra.mrb[52].mxu0 %vm2740_vm7, %v2875_v23 }
 0x4fd   :  { %14701 = vmatpush3.bf16.msra.mxu0 %v15626_v3  ;;  %14702 = vmatprep.mubr.msk.bf16.mxu0 %vm16195_vm0, %v19921_v20 }
 0x4fe   :  { %14706 = vmatprep.subr.bf16.mxu0 %v19921_v20 }
 0x4ff   :  { %v2834_v7 = vpop.f32.mrb[80].mxu1 }
 0x500   :  { %v14664_v28 = vpop.f32.mrb[81].mxu1 }
 0x501   :  { %v2837_v29 = vpop.f32.mrb[82].mxu1 }
 0x502   :  { %v2877_v31 = vpack.c.bf16 %v2837_v29, %v2834_v7  ;;  %v14665_v32 = vpop.f32.mrb[83].mxu1 }
 0x504   :  { %14703 = vmatmul.mubr.msk.bf16.vlgmr.msra.gmra.mrb[56].mxu0 %vm2740_vm7, %v2876_v26 }
 0x505   :  { %14707 = vmatpush3.bf16.msra.mxu0 %v15628_v30  ;;  %14708 = vmatprep.mubr.msk.bf16.mxu0 %vm16195_vm0, %v19921_v20 }
 0x506   :  { %14712 = vmatprep.subr.bf16.mxu0 %v19921_v20 }
 0x507   :  { %v2842_v33 = vpop.f32.mrb[84].mxu1 }
 0x508   :  { %v14668_v34 = vpop.f32.mrb[85].mxu1 }
 0x509   :  { %v2845_v35 = vpop.f32.mrb[86].mxu1 }
 0x50a   :  { %v2878_v37 = vpack.c.bf16 %v2845_v35, %v2842_v33  ;;  %v14669_v38 = vpop.f32.mrb[87].mxu1 }
 0x50c   :  { %14709 = vmatmul.mubr.msk.bf16.vlgmr.msra.gmra.mrb[60].mxu0 %vm2740_vm7, %v2877_v31 }
 0x50d   :  { %14713 = vmatpush3.bf16.msra.mxu0 %v15629_v36  ;;  %14714 = vmatprep.mubr.msk.bf16.mxu0 %vm16195_vm0, %v19921_v20 }
 0x50e   :  { %14718 = vmatprep.subr.bf16.mxu0 %v19921_v20 }
 0x50f   :  { %v2850_v39 = vpop.f32.mrb[88].mxu1 }
 0x510   :  { %v14672_v40 = vpop.f32.mrb[89].mxu1 }
 0x511   :  { %v2853_v41 = vpop.f32.mrb[90].mxu1 }
 0x512   :  { %v2879_v43 = vpack.c.bf16 %v2853_v41, %v2850_v39  ;;  %v14673_v44 = vpop.f32.mrb[91].mxu1 }
 0x514   :  { %14715 = vmatmul.mubr.msk.bf16.vlgmr.msra.gmra.mrb[64].mxu0 %vm2740_vm7, %v2878_v37 }
 0x515   :  { %14719 = vmatpush3.bf16.msra.mxu0 %v15630_v42  ;;  %14720 = vmatprep.mubr.msk.bf16.mxu0 %vm16195_vm0, %v19921_v20 }
 0x516   :  { %14724 = vmatprep.subr.bf16.mxu0 %v19921_v20 }
 0x517   :  { %v2858_v45 = vpop.f32.mrb[92].mxu1 }
 0x518   :  { %v14676_v46 = vpop.f32.mrb[93].mxu1 }
 0x519   :  { %v2861_v47 = vpop.f32.mrb[94].mxu1 }
 0x51a   :  { %v2880_v49 = vpack.c.bf16 %v2861_v47, %v2858_v45  ;;  %v14677_v50 = vpop.f32.mrb[95].mxu1 }
 0x51c   :  { %14721 = vmatmul.mubr.msk.bf16.vlgmr.msra.gmra.mrb[68].mxu0 %vm2740_vm7, %v2879_v43 }
 0x51d   :  { %14725 = vmatpush3.bf16.msra.mxu0 %v15631_v48  ;;  %14726 = vmatprep.mubr.msk.bf16.mxu0 %vm16195_vm0, %v19921_v20 }
 0x51e   :  { %14736 = vmatprep.subr.bf16.mxu0 %v19921_v20 }
 0x51f   :  { %v2866_v51 = vpop.f32.mrb[96].mxu1 }
 0x520   :  { %v14680_v52 = vpop.f32.mrb[97].mxu1 }
 0x521   :  { %v2869_v22 = vpop.f32.mrb[98].mxu1 }
 0x522   :  { %v2881_v6 = vpack.c.bf16 %v2869_v22, %v2866_v51  ;;  %v14681_v53 = vpop.f32.mrb[99].mxu1 }
 0x524   :  { %14727 = vmatmul.mubr.msk.bf16.vlgmr.msra.gmra.mrb[72].mxu0 %vm2740_vm7, %v2880_v49  ;;  %14733 = vmatmul.mubr.msk.bf16.vlgmr.msra.gmra.mrb[100].mxu1 %vm2740_vm7, %v2881_v6 }
 0x525   :  { %14737 = vmatpush3.bf16.msra.mxu0 %v16881_v2  ;;  %14738 = vmatprep.mubr.msk.bf16.mxu0 %vm16195_vm0, %v19921_v20  ;;  %v15633_v2 = vld [vmem:[%s19884_s11 + $0x8] sm:$0xff]  }
 0x526   :  { %14758 = vmatprep.subr.bf16.mxu0 %v19921_v20  ;;  %14788 = vmatprep.mubr.msk.bf16.mxu1 %vm16195_vm0, %v19921_v20 }
 0x527   :  { %14781 = vmatpush3.bf16.msra.mxu1 %v15642_v58  ;;  %v3382_v58 = vpop.permute.xlu1 %3381 }
 0x528   :  { %14782 = vmatprep.subr.bf16.mxu1 %v19921_v20 }
 0x52b   :  { %14783 = vmatpush3.bf16.msra.mxu1 %v15643_v59 }
 0x52c   :  { %14739 = vmatmul.mubr.msk.bf16.vlgmr.msra.gmra.mrb[76].mxu0 %vm1803_vm3, %v15632_v54  ;;  %14784 = vmatprep.subr.bf16.mxu1 %v19921_v20 }
 0x52d   :  { %14742 = vmatprep.mubr.msk.bf16.mxu0 %vm16195_vm0, %v19921_v20 }
 0x52f   :  { %14785 = vmatpush3.bf16.msra.mxu1 %v15644_v60 }
 0x530   :  { %14786 = vmatprep.subr.bf16.mxu1 %v19921_v20 }
 0x534   :  { %14743 = vmatmul.mubr.msk.bf16.gmra.mrb[80].mxu0 %vm1803_vm3, %v15633_v2 }
 0x535   :  { %14746 = vmatprep.mubr.msk.bf16.mxu0 %vm16195_vm0, %v19921_v20 }
 0x53c   :  { %14747 = vmatmul.mubr.msk.bf16.gmra.mrb[84].mxu0 %vm1803_vm3, %v15634_v55  ;;  %v3377_v55 = vpop.permute.xlu0 %3376 }
 0x53d   :  { %14750 = vmatprep.mubr.msk.bf16.mxu0 %vm16195_vm0, %v19921_v20 }
 0x544   :  { %14751 = vmatmul.mubr.msk.bf16.gmra.mrb[88].mxu0 %vm1803_vm3, %v15635_v56 }
 0x545   :  { %14754 = vmatprep.mubr.msk.bf16.mxu0 %vm16195_vm0, %v19921_v20 }
 0x54c   :  { %14755 = vmatmul.mubr.msk.bf16.gmra.mrb[92].mxu0 %vm1803_vm3, %v15636_v57 }
 0x54d   :  { %14760 = vmatprep.mubr.msk.bf16.mxu0 %vm16195_vm0, %v19921_v20 }
 0x5bf   :  { %v2930_v61 = vpop.f32.mrb[44].mxu0 }
 0x5c0   :  { %v14686_v62 = vpop.f32.mrb[45].mxu0 }
 0x5c1   :  { %v2933_v63 = vpop.f32.mrb[46].mxu0 }
 0x5c2   :  { %v14687_v1 = vpop.f32.mrb[47].mxu0 }
 0x5c7   :  { %v2980_v4 = vpop.f32.mrb[48].mxu0 }
 0x5c8   :  { %v2981_v5 = vadd.f32 %v2980_v4, %v2930_v61  ;;  %v14692_v8 = vpop.f32.mrb[49].mxu0  ;;  %v15637_v4 = vld [vmem:[%s19885_s10] sm:$0xff]  }
 0x5c9   :  { %v2983_v9 = vpop.f32.mrb[50].mxu0  ;;  %v15639_v8 = vld [vmem:[%s19885_s10 + $0x10] sm:$0xff]  }
 0x5ca   :  { %v2984_v10 = vadd.f32 %v2983_v9, %v2933_v63  ;;  %v14693_v11 = vpop.f32.mrb[51].mxu0  ;;  %v15640_v9 = vld [vmem:[%s19885_s10 + $0x18] sm:$0xff]  }
 0x5cb   :  { %v15645_v11 = vld [vmem:[%s19886_s4 + $0x38] sm:$0xff]  }
 0x5cc   :  { %14787 = vmatpush3.bf16.msra.mxu1 %v15645_v11  ;;  %v15674_v11 = vld [vmem:[%s19886_s4 + $0x100] sm:$0xff]  }
 0x5cd   :  { %14792 = vmatprep.subr.bf16.mxu1 %v19921_v20 }
 0x5cf   :  { %v3033_v12 = vpop.f32.mrb[52].mxu0 }
 0x5d0   :  { %v3040_v17 = vadd.f32 %v3033_v12, %v2981_v5  ;;  %v14698_v23 = vpop.f32.mrb[53].mxu0  ;;  %v15638_v5 = vld [vmem:[%s19885_s10 + $0x8] sm:$0xff]   ;;  %v15647_v12 = vld [vmem:[%s19886_s4 + $0xa0] sm:$0xff]  }
 0x5d1   :  { %v3036_v24 = vpop.f32.mrb[54].mxu0  ;;  %v15651_v23 = vld [vmem:[%s19886_s4 + $0xb0] sm:$0xff]  }
 0x5d2   :  { %v3041_v14 = vadd.f32 %v3036_v24, %v2984_v10  ;;  %v14699_v25 = vpop.f32.mrb[55].mxu0  ;;  %v15641_v10 = vld [vmem:[%s19885_s10 + $0x20] ss:$0 sps:$4 sm:$0xff]   ;;  %v15653_v24 = vld [vmem:[%s19886_s4 + $0xb8] sm:$0xff]  }
 0x5d7   :  { %v3088_v21 = vpop.f32.mrb[56].mxu0 }
 0x5d8   :  { %v3095_v3 = vadd.f32 %v3088_v21, %v3040_v17  ;;  %v14704_v26 = vpop.f32.mrb[57].mxu0  ;;  %v15649_v17 = vld [vmem:[%s19886_s4 + $0xa8] sm:$0xff]  }
 0x5d9   :  { %v3091_v27 = vpop.f32.mrb[58].mxu0 }
 0x5da   :  { %v3096_v7 = vadd.f32 %v3091_v27, %v3041_v14  ;;  %v14705_v28 = vpop.f32.mrb[59].mxu0  ;;  %v15646_v27 = vld [vmem:[%s19886_s4] sm:$0xff]  }
 0x5df   :  { %v3143_v29 = vpop.f32.mrb[60].mxu0 }
 0x5e0   :  { %v3150_v30 = vadd.f32 %v3143_v29, %v3095_v3  ;;  %v14710_v31 = vpop.f32.mrb[61].mxu0  ;;  %v15648_v29 = vld [vmem:[%s19886_s4 + $0x8] sm:$0xff]  }
 0x5e1   :  { %v3146_v32 = vpop.f32.mrb[62].mxu0 }
 0x5e2   :  { %v3151_v33 = vadd.f32 %v3146_v32, %v3096_v7  ;;  %v14711_v34 = vpop.f32.mrb[63].mxu0 }
 0x5e3   :  { %v15650_v34 = vld [vmem:[%s19886_s4 + $0x10] sm:$0xff]  }
 0x5e7   :  { %v3198_v35 = vpop.f32.mrb[64].mxu0 }
 0x5e8   :  { %v3205_v36 = vadd.f32 %v3198_v35, %v3150_v30  ;;  %v14716_v37 = vpop.f32.mrb[65].mxu0 }
 0x5e9   :  { %v3201_v38 = vpop.f32.mrb[66].mxu0 }
 0x5ea   :  { %v3206_v39 = vadd.f32 %v3201_v38, %v3151_v33  ;;  %v14717_v40 = vpop.f32.mrb[67].mxu0 }
 0x5ef   :  { %v3253_v41 = vpop.f32.mrb[68].mxu0 }
 0x5f0   :  { %v3260_v42 = vadd.f32 %v3253_v41, %v3205_v36  ;;  %v14722_v43 = vpop.f32.mrb[69].mxu0  ;;  %v15652_v36 = vld [vmem:[%s19886_s4 + $0x18] sm:$0xff]   ;;  %v15654_v41 = vld [vmem:[%s19886_s4 + $0x40] sm:$0xff]  }
 0x5f1   :  { %v3256_v44 = vpop.f32.mrb[70].mxu0 }
 0x5f2   :  { %v3261_v45 = vadd.f32 %v3256_v44, %v3206_v39  ;;  %v14723_v46 = vpop.f32.mrb[71].mxu0 }
 0x5f3   :  { %v15657_v46 = vld [vmem:[%s19886_s4 + $0xe8] sm:$0xff]  }
 0x5f7   :  { %v3308_v47 = vpop.f32.mrb[72].mxu0  ;;  %v3363_v48 = vpop.f32.mrb[100].mxu1 }
 0x5f8   :  { %v3315_v49 = vadd.f32 %v3308_v47, %v3260_v42  ;;  %v14728_v50 = vpop.f32.mrb[73].mxu0  ;;  %v14734_v51 = vpop.f32.mrb[101].mxu1  ;;  %v15655_v42 = vld [vmem:[%s19886_s4 + $0xe0] sm:$0xff]  }
 0x5f9   :  { %v3311_v52 = vpop.f32.mrb[74].mxu0  ;;  %v3366_v22 = vpop.f32.mrb[102].mxu1  ;;  %v15658_v51 = vld [vmem:[%s19886_s4 + $0x50] sm:$0xff]  }
 0x5fa   :  { %v3370_v6 = vadd.f32 %v3363_v48, %v3315_v49  ;;  %v3316_v53 = vadd.f32 %v3311_v52, %v3261_v45  ;;  %v14729_v54 = vpop.f32.mrb[75].mxu0  ;;  %v14735_v2 = vpop.f32.mrb[103].mxu1  ;;  %v15656_v45 = vld [vmem:[%s19886_s4 + $0x48] sm:$0xff]   ;;  %v15659_v52 = vld [vmem:[%s19886_s4 + $0xf0] sm:$0xff]  }
 0x5fc   :  { %v3384_v56 = vadd.f32 %v3377_v55, %v3370_v6  ;;  %v3371_v57 = vadd.f32 %v3366_v22, %v3316_v53  ;;  %v15660_v6 = vld [vmem:[%s19886_s4 + $0x58] sm:$0xff]  }
 0x5fd   :  { %v15661_v53 = vld [vmem:[%s19886_s4 + $0xf8] sm:$0xff]  }
 0x5fe   :  { %v3388_v59 = vmul.f32 0.2, %v3384_v56  ;;  %v3385_v60 = vadd.f32 %v3382_v58, %v3371_v57  ;;  %vm3386_vm8 = vcmp.ge.f32.partialorder %v3384_v56, 0.0  ;;  %v15663_v58 = vld [vmem:[%s19886_s4 + $0x68] sm:$0xff]  }
 0x600   :  { %vm3387_vm9 = vcmp.ge.f32.partialorder %v3385_v60, 0.0  ;;  %v3389_v61 = vmul.f32 0.2, %v3385_v60  ;;  %v3390_v62 = vsel %vm3386_vm8, %v3384_v56, %v3388_v59  ;;  %v15662_v56 = vld [vmem:[%s19886_s4 + $0x60] sm:$0xff]   ;;  %v15664_v59 = vld [vmem:[%s19886_s4 + $0x70] sm:$0xff]  }
 0x602   :  { %v3391_v63 = vsel %vm3387_vm9, %v3385_v60, %v3389_v61  ;;  %v15665_v60 = vld [vmem:[%s19886_s4 + $0x78] sm:$0xff]   ;;  %v15666_v61 = vld [vmem:[%s19886_s4 + $0x80] sm:$0xff]  }
 0x603   :  { %v3392_v1 = vpack.c.bf16 %v3391_v63, %v3390_v62  ;;  %v15667_v63 = vld [vmem:[%s19886_s4 + $0x88] sm:$0xff]  }
 0x605   :  { %14759 = vmatpush3.bf16.msra.mxu0 %v3392_v1  ;;  %v15668_v1 = vld [vmem:[%s19886_s4 + $0x90] sm:$0xff]  }
 0x606   :  { %14840 = vmatprep.subr.bf16.mxu0 %v19921_v20 }
 0x608   :  { %14761 = vmatmul.mubr.msk.bf16.vlgmr.msra.gmra.mrb[76].mxu0 %vm2740_vm7, %v15637_v4  ;;  %v15669_v4 = vld [vmem:[%s19886_s4 + $0x98] sm:$0xff]  }
 0x609   :  { %14764 = vmatprep.mubr.msk.bf16.mxu0 %vm16195_vm0, %v19921_v20  ;;  %14841 = vmatpush3.bf16.msra.mxu0 %v15647_v12  ;;  %v15675_v12 = vld [vmem:[%s19886_s4 + $0x108] sm:$0xff]  }
 0x60a   :  { %14842 = vmatprep.subr.bf16.mxu0 %v19921_v20 }
 0x60d   :  { %14843 = vmatpush3.bf16.msra.mxu0 %v15649_v17  ;;  %v15676_v17 = vld [vmem:[%s19886_s4 + $0x110] sm:$0xff]  }
 0x60e   :  { %14844 = vmatprep.subr.bf16.mxu0 %v19921_v20 }
 0x610   :  { %14765 = vmatmul.mubr.msk.bf16.gmra.mrb[80].mxu0 %vm2740_vm7, %v15638_v5  ;;  %v15670_v5 = vld [vmem:[%s19886_s4 + $0xc0] sm:$0xff]  }
 0x611   :  { %14768 = vmatprep.mubr.msk.bf16.mxu0 %vm16195_vm0, %v19921_v20  ;;  %14845 = vmatpush3.bf16.msra.mxu0 %v15651_v23  ;;  %v15677_v23 = vld [vmem:[%s19886_s4 + $0x118] sm:$0xff]  }
 0x612   :  { %14846 = vmatprep.subr.bf16.mxu0 %v19921_v20 }
 0x615   :  { %14847 = vmatpush3.bf16.msra.mxu0 %v15653_v24 }
 0x616   :  { %14864 = vmatprep.subr.bf16.mxu0 %v19921_v20 }
 0x618   :  { %14769 = vmatmul.mubr.msk.bf16.gmra.mrb[84].mxu0 %vm2740_vm7, %v15639_v8  ;;  %v15671_v8 = vld [vmem:[%s19886_s4 + $0xc8] sm:$0xff]  }
 0x619   :  { %14772 = vmatprep.mubr.msk.bf16.mxu0 %vm16195_vm0, %v19921_v20 }
 0x620   :  { %14773 = vmatmul.mubr.msk.bf16.gmra.mrb[88].mxu0 %vm2740_vm7, %v15640_v9  ;;  %v15672_v9 = vld [vmem:[%s19886_s4 + $0xd0] sm:$0xff]  }
 0x621   :  { %14776 = vmatprep.mubr.msk.bf16.mxu0 %vm16195_vm0, %v19921_v20 }
 0x628   :  { %14777 = vmatmul.mubr.msk.bf16.gmra.mrb[92].mxu0 %vm2740_vm7, %v15641_v10  ;;  %v15673_v10 = vld [vmem:[%s19886_s4 + $0xd8] sm:$0xff]  }
 0x629   :  { %14848 = vmatprep.mubr.msk.bf16.mxu0 %vm16195_vm0, %v19921_v20 }
 0x6db   :  { %v3593_v14 = vpop.f32.mrb[76].mxu0 }
 0x6dc   :  { %v14762_v25 = vpop.f32.mrb[77].mxu0 }
 0x6dd   :  { %v3596_v21 = vpop.f32.mrb[78].mxu0 }
 0x6de   :  { %v3631_v3 = vpack.c.bf16 %v3596_v21, %v3593_v14  ;;  %v14763_v26 = vpop.f32.mrb[79].mxu0 }
 0x6df   :  { %v15683_v26 = vld [vmem:[%s19888_s5 + $0x40] ss:$8 sps:$4 sm:$0xff]  }
 0x6e0   :  { %v3654_v7 = vrot.slane %v3631_v3, 4 }
 0x6e2   :  { %14789 = vmatmul.mubr.msk.bf16.vlgmr.msra.gmra.mrb[104].mxu1 %vm1990_vm4, %v3654_v7 }
 0x6e3   :  { %14793 = vmatpush3.bf16.msra.mxu1 %v15646_v27  ;;  %v3601_v28 = vpop.f32.mrb[80].mxu0  ;;  %14800 = vmatprep.mubr.msk.bf16.mxu1 %vm16195_vm0, %v19921_v20 }
 0x6e4   :  { %v14766_v30 = vpop.f32.mrb[81].mxu0  ;;  %14794 = vmatprep.subr.bf16.mxu1 %v19921_v20 }
 0x6e5   :  { %v3604_v31 = vpop.f32.mrb[82].mxu0 }
 0x6e6   :  { %v17332_v32 = vpack.c.bf16 %v3604_v31, %v3601_v28  ;;  %v14767_v33 = vpop.f32.mrb[83].mxu0  ;;  %v15685_v28 = vld [vmem:[%s19888_s5 + $0x44] ss:$8 sps:$4 sm:$0xff]  }
 0x6e7   :  { %14795 = vmatpush3.bf16.msra.mxu1 %v15648_v29 }
 0x6e8   :  { %14796 = vmatprep.subr.bf16.mxu1 %v19921_v20  ;;  %v3876_v62 = vrot.slane %v17332_v32, 4 }
 0x6eb   :  { %14797 = vmatpush3.bf16.msra.mxu1 %v15650_v34  ;;  %v3609_v35 = vpop.f32.mrb[84].mxu0 }
 0x6ec   :  { %v14770_v37 = vpop.f32.mrb[85].mxu0  ;;  %14798 = vmatprep.subr.bf16.mxu1 %v19921_v20 }
 0x6ed   :  { %v3612_v38 = vpop.f32.mrb[86].mxu0 }
 0x6ee   :  { %v17342_v39 = vpack.c.bf16 %v3612_v38, %v3609_v35  ;;  %v14771_v40 = vpop.f32.mrb[87].mxu0  ;;  %v15686_v35 = vld [vmem:[%s19888_s5 + $0x50] ss:$8 sps:$4 sm:$0xff]   ;;  %v15691_v38 = vld [vmem:[%s19888_s5 + $0x64] ss:$8 sps:$4 sm:$0xff]  }
 0x6ef   :  { %14799 = vmatpush3.bf16.msra.mxu1 %v15652_v36 }
 0x6f0   :  { %v4032_v43 = vrot.slane %v17342_v39, 4  ;;  %14804 = vmatprep.subr.bf16.mxu1 %v19921_v20 }
 0x6f2   :  { %14801 = vmatmul.mubr.msk.bf16.vlgmr.msra.gmra.mrb[108].mxu1 %vm1990_vm4, %v3631_v3  ;;  %14849 = vmatmul.mubr.msk.bf16.vlgmr.msra.gmra.mrb[96].mxu0 %vm1990_vm4, %v4032_v43 }
 0x6f3   :  { %14805 = vmatpush3.bf16.msra.mxu1 %v15654_v41  ;;  %14865 = vmatpush3.bf16.msra.mxu0 %v15655_v42  ;;  %v3617_v44 = vpop.f32.mrb[88].mxu0 }
 0x6f4   :  { %v14774_v47 = vpop.f32.mrb[89].mxu0  ;;  %14806 = vmatprep.subr.bf16.mxu1 %v19921_v20  ;;  %14866 = vmatprep.subr.bf16.mxu0 %v19921_v20 }
 0x6f5   :  { %v3620_v48 = vpop.f32.mrb[90].mxu0  ;;  %14812 = vmatprep.mubr.msk.bf16.mxu1 %vm16195_vm0, %v19921_v20  ;;  %14872 = vmatprep.mubr.msk.bf16.mxu0 %vm16195_vm0, %v19921_v20 }
 0x6f6   :  { %v17366_v49 = vpack.c.bf16 %v3620_v48, %v3617_v44  ;;  %v14775_v50 = vpop.f32.mrb[91].mxu0 }
 0x6f7   :  { %14807 = vmatpush3.bf16.msra.mxu1 %v15656_v45  ;;  %14867 = vmatpush3.bf16.msra.mxu0 %v15657_v46 }
 0x6f8   :  { %14808 = vmatprep.subr.bf16.mxu1 %v19921_v20  ;;  %14868 = vmatprep.subr.bf16.mxu0 %v19921_v20  ;;  %v4188_v57 = vrot.slane %v17366_v49, 4 }
 0x6fb   :  { %14809 = vmatpush3.bf16.msra.mxu1 %v15658_v51  ;;  %14869 = vmatpush3.bf16.msra.mxu0 %v15659_v52  ;;  %v17376_v22 = vpop.f32.mrb[92].mxu0 }
 0x6fc   :  { %v14778_v54 = vpop.f32.mrb[93].mxu0  ;;  %14810 = vmatprep.subr.bf16.mxu1 %v19921_v20  ;;  %14870 = vmatprep.subr.bf16.mxu0 %v19921_v20  ;;  %v3635_v24 = vpack.c.bf16 %v17376_v22, %v17376_v22 }
 0x6fd   :  { %v3628_v2 = vpop.f32.mrb[94].mxu0 }
 0x6fe   :  { %v14779_v55 = vpop.f32.mrb[95].mxu0 }
 0x6ff   :  { %14811 = vmatpush3.bf16.msra.mxu1 %v15660_v6  ;;  %14871 = vmatpush3.bf16.msra.mxu0 %v15661_v53 }
 0x700   :  { %14816 = vmatprep.subr.bf16.mxu1 %v19921_v20  ;;  %14888 = vmatprep.subr.bf16.mxu0 %v19921_v20 }
 0x702   :  { %14813 = vmatmul.mubr.msk.bf16.vlgmr.msra.gmra.mrb[112].mxu1 %vm1990_vm4, %v17332_v32  ;;  %14873 = vmatmul.mubr.msk.bf16.vlgmr.msra.gmra.mrb[100].mxu0 %vm1990_vm4, %v4188_v57  ;;  %v15688_v32 = vld [vmem:[%s19888_s5 + $0x54] ss:$8 sps:$4 sm:$0xff]  }
 0x703   :  { %14817 = vmatpush3.bf16.msra.mxu1 %v15662_v56  ;;  %14824 = vmatprep.mubr.msk.bf16.mxu1 %vm16195_vm0, %v19921_v20 }
 0x704   :  { %14818 = vmatprep.subr.bf16.mxu1 %v19921_v20  ;;  %14890 = vmatprep.mubr.msk.bf16.mxu0 %vm16195_vm0, %v19921_v20 }
 0x707   :  { %14819 = vmatpush3.bf16.msra.mxu1 %v15663_v58 }
 0x708   :  { %14820 = vmatprep.subr.bf16.mxu1 %v19921_v20 }
 0x70b   :  { %14821 = vmatpush3.bf16.msra.mxu1 %v15664_v59 }
 0x70c   :  { %14822 = vmatprep.subr.bf16.mxu1 %v19921_v20 }
 0x70f   :  { %14823 = vmatpush3.bf16.msra.mxu1 %v15665_v60 }
 0x710   :  { %14828 = vmatprep.subr.bf16.mxu1 %v19921_v20 }
 0x712   :  { %14825 = vmatmul.mubr.msk.bf16.vlgmr.msra.gmra.mrb[116].mxu1 %vm1990_vm4, %v3876_v62 }
 0x713   :  { %14829 = vmatpush3.bf16.msra.mxu1 %v15666_v61  ;;  %14836 = vmatprep.mubr.msk.bf16.mxu1 %vm16195_vm0, %v19921_v20 }
 0x714   :  { %14830 = vmatprep.subr.bf16.mxu1 %v19921_v20 }
 0x717   :  { %14831 = vmatpush3.bf16.msra.mxu1 %v15667_v63 }
 0x718   :  { %14832 = vmatprep.subr.bf16.mxu1 %v19921_v20 }
 0x71b   :  { %14833 = vmatpush3.bf16.msra.mxu1 %v15668_v1 }
 0x71c   :  { %14834 = vmatprep.subr.bf16.mxu1 %v19921_v20 }
 0x71f   :  { %14835 = vmatpush3.bf16.msra.mxu1 %v15669_v4 }
 0x720   :  { %14852 = vmatprep.subr.bf16.mxu1 %v19921_v20 }
 0x722   :  { %14837 = vmatmul.mubr.msk.bf16.vlgmr.msra.gmra.mrb[120].mxu1 %vm1990_vm4, %v17342_v39  ;;  %v15689_v39 = vld [vmem:[%s19888_s5 + $0x60] ss:$8 sps:$4 sm:$0xff]  }
 0x723   :  { %14853 = vmatpush3.bf16.msra.mxu1 %v15670_v5  ;;  %14860 = vmatprep.mubr.msk.bf16.mxu1 %vm16195_vm0, %v19921_v20  ;;  %v4338_v5 = vpop.permute.xlu0 %4337 }
 0x724   :  { %14854 = vmatprep.subr.bf16.mxu1 %v19921_v20 }
 0x727   :  { %14855 = vmatpush3.bf16.msra.mxu1 %v15671_v8 }
 0x728   :  { %14856 = vmatprep.subr.bf16.mxu1 %v19921_v20 }
 0x72b   :  { %14857 = vmatpush3.bf16.msra.mxu1 %v15672_v9 }
 0x72c   :  { %14858 = vmatprep.subr.bf16.mxu1 %v19921_v20 }
 0x72f   :  { %14859 = vmatpush3.bf16.msra.mxu1 %v15673_v10 }
 0x730   :  { %14876 = vmatprep.subr.bf16.mxu1 %v19921_v20 }
 0x732   :  { %14861 = vmatmul.mubr.msk.bf16.vlgmr.msra.gmra.mrb[124].mxu1 %vm1990_vm4, %v17366_v49 }
 0x733   :  { %14877 = vmatpush3.bf16.msra.mxu1 %v15674_v11  ;;  %14884 = vmatprep.mubr.msk.bf16.mxu1 %vm16195_vm0, %v19921_v20 }
 0x734   :  { %14878 = vmatprep.subr.bf16.mxu1 %v19921_v20 }
 0x737   :  { %14879 = vmatpush3.bf16.msra.mxu1 %v15675_v12 }
 0x738   :  { %14880 = vmatprep.subr.bf16.mxu1 %v19921_v20 }
 0x73b   :  { %14881 = vmatpush3.bf16.msra.mxu1 %v15676_v17 }
 0x73c   :  { %14882 = vmatprep.subr.bf16.mxu1 %v19921_v20 }
 0x73f   :  { %14883 = vmatpush3.bf16.msra.mxu1 %v15677_v23 }
 0x740   :  { %4534 = vmatprep.subr.bf16.mxu1 %v15685_v28  ;;  %v15695_v28 = vld [vmem:[%s19888_s5 + $0x80] ss:$8 sps:$4 sm:$0xff]  }
 0x742   :  { %14885 = vmatmul.mubr.msk.bf16.vlgmr.msra.gmra.mrb[128].mxu1 %vm1990_vm4, %v3635_v24  ;;  %v15678_v24 = vld [vmem:[%s19887_s12] sm:$0xff]  }
 0x743   :  { %4566 = vmatprep.mubr.bf16.mxu1 %v19919_v0  ;;  %4535 = vmatpush1.bf16.msra.mxu1 %v15683_v26  ;;  %v15694_v26 = vld [vmem:[%s19888_s5 + $0x74] ss:$8 sps:$4 sm:$0xff]  }
 0x744   :  { %4536 = vmatprep.subr.bf16.mxu1 %v15688_v32  ;;  %v15709_v32 = vld [vmem:[%s19888_s5 + $0xa4] ss:$8 sps:$4 sm:$0xff]  }
 0x747   :  { %4537 = vmatpush1.bf16.msra.mxu1 %v15686_v35  ;;  %v15713_v35 = vld [vmem:[%s19888_s5 + $0xb0] ss:$8 sps:$4 sm:$0xff]  }
 0x748   :  { %4538 = vmatprep.subr.bf16.mxu1 %v15691_v38 }
 0x74b   :  { %4539 = vmatpush1.bf16.msra.mxu1 %v15689_v39 }
 0x74c   :  { %4540 = vmatprep.subr.bf16.mxu1 %v15694_v26  ;;  %v15749_v26 = vld [vmem:[%s19888_s5 + $0x190] ss:$8 sps:$4 sm:$0xff]  }
 0x7b5   :  { %v3716_v14 = vpop.f32.mrb[104].mxu1 }
 0x7b6   :  { %v14790_v25 = vpop.f32.mrb[105].mxu1 }
 0x7b7   :  { %v3719_v21 = vpop.f32.mrb[106].mxu1  ;;  %v15680_v25 = vld [vmem:[%s19887_s12 + $0x10] sm:$0xff]  }
 0x7b8   :  { %v14791_v3 = vpop.f32.mrb[107].mxu1  ;;  %v15681_v21 = vld [vmem:[%s19887_s12 + $0x18] sm:$0xff]  }
 0x7b9   :  { %v15682_v3 = vld [vmem:[%s19887_s12 + $0x20] ss:$0 sps:$4 sm:$0xff]  }
 0x7c5   :  { %v3783_v27 = vpop.f32.mrb[108].mxu1  ;;  %v4094_v7 = vpop.f32.mrb[96].mxu0 }
 0x7c6   :  { %v3784_v29 = vadd.f32 %v3783_v27, %v3716_v14  ;;  %v14802_v30 = vpop.f32.mrb[109].mxu1  ;;  %v14850_v31 = vpop.f32.mrb[97].mxu0  ;;  %v15679_v14 = vld [vmem:[%s19887_s12 + $0x8] sm:$0xff]   ;;  %v15692_v27 = vld [vmem:[%s19888_s5 + $0x70] ss:$8 sps:$4 sm:$0xff]  }
 0x7c7   :  { %v3786_v33 = vpop.f32.mrb[110].mxu1  ;;  %v4097_v34 = vpop.f32.mrb[98].mxu0  ;;  %4541 = vmatpush1.bf16.msra.mxu1 %v15692_v27  ;;  %v15703_v30 = vld [vmem:[%s19888_s5 + $0x94] ss:$8 sps:$4 sm:$0xff]   ;;  %v15701_v31 = vld [vmem:[%s19888_s5 + $0x90] ss:$8 sps:$4 sm:$0xff]  }
 0x7c8   :  { %v14803_v36 = vpop.f32.mrb[111].mxu1  ;;  %v14851_v37 = vpop.f32.mrb[99].mxu0  ;;  %v15707_v33 = vld [vmem:[%s19888_s5 + $0xa0] ss:$8 sps:$4 sm:$0xff]   ;;  %v15715_v34 = vld [vmem:[%s19888_s5 + $0xb4] ss:$8 sps:$4 sm:$0xff]  }
 0x7c9   :  { %v15721_v36 = vld [vmem:[%s19888_s5 + $0x104] ss:$8 sps:$4 sm:$0xff]  }
 0x7ca   :  { %v15757_v27 = vld [vmem:[%s19888_s5 + $0x1a4] ss:$8 sps:$4 sm:$0xff]  }
 0x7d5   :  { %v3859_v40 = vpop.f32.mrb[112].mxu1  ;;  %v4250_v41 = vpop.f32.mrb[100].mxu0 }
 0x7d6   :  { %v3865_v42 = vadd.f32 %v3859_v40, %v3784_v29  ;;  %v14814_v43 = vpop.f32.mrb[113].mxu1  ;;  %v14874_v44 = vpop.f32.mrb[101].mxu0  ;;  %v15700_v29 = vld [vmem:[%s19888_s5 + $0x4] ss:$8 sps:$4 sm:$0xff]  }
 0x7d7   :  { %v3862_v45 = vpop.f32.mrb[114].mxu1  ;;  %v4253_v46 = vpop.f32.mrb[102].mxu0  ;;  %4618 = vmatprep.subr.bf16.mxu1 %v15700_v29  ;;  %v15706_v44 = vld [vmem:[%s19888_s5 + $0x14] ss:$8 sps:$4 sm:$0xff]   ;;  %v15748_v29 = vld [vmem:[%s19888_s5 + $0x144] ss:$8 sps:$4 sm:$0xff]  }
 0x7d8   :  { %v14815_v47 = vpop.f32.mrb[115].mxu1  ;;  %v14875_v48 = vpop.f32.mrb[103].mxu0  ;;  %v15704_v45 = vld [vmem:[%s19888_s5 + $0x10] ss:$8 sps:$4 sm:$0xff]  }
 0x7d9   :  { %v15712_v47 = vld [vmem:[%s19888_s5 + $0x24] ss:$8 sps:$4 sm:$0xff]  }
 0x7e5   :  { %v3938_v49 = vpop.f32.mrb[116].mxu1 }
 0x7e6   :  { %v3944_v50 = vadd.f32 %v3938_v49, %v3865_v42  ;;  %v14826_v51 = vpop.f32.mrb[117].mxu1  ;;  %v15698_v42 = vld [vmem:[%s19888_s5] ss:$8 sps:$4 sm:$0xff]  }
 0x7e7   :  { %v3941_v52 = vpop.f32.mrb[118].mxu1 }
 0x7e8   :  { %v14827_v22 = vpop.f32.mrb[119].mxu1 }
 0x7e9   :  { %v15727_v22 = vld [vmem:[%s19888_s5 + $0x114] ss:$8 sps:$4 sm:$0xff]  }
 0x7f5   :  { %v4015_v6 = vpop.f32.mrb[120].mxu1 }
 0x7f6   :  { %v4021_v53 = vadd.f32 %v4015_v6, %v3944_v50  ;;  %v14838_v54 = vpop.f32.mrb[121].mxu1  ;;  %v15719_v50 = vld [vmem:[%s19888_s5 + $0x100] ss:$8 sps:$4 sm:$0xff]  }
 0x7f7   :  { %v4018_v2 = vpop.f32.mrb[122].mxu1  ;;  %v15710_v6 = vld [vmem:[%s19888_s5 + $0x20] ss:$8 sps:$4 sm:$0xff]   ;;  %v15725_v54 = vld [vmem:[%s19888_s5 + $0x110] ss:$8 sps:$4 sm:$0xff]  }
 0x7f8   :  { %v14839_v55 = vpop.f32.mrb[123].mxu1  ;;  %v4100_v56 = vadd.f32 %v4094_v7, %v4021_v53  ;;  %v15697_v7 = vld [vmem:[%s19888_s5 + $0x84] ss:$8 sps:$4 sm:$0xff]   ;;  %v15718_v53 = vld [vmem:[%s19888_s5 + $0x34] ss:$8 sps:$4 sm:$0xff]  }
 0x7f9   :  { %v15733_v2 = vld [vmem:[%s19888_s5 + $0x124] ss:$8 sps:$4 sm:$0xff]   ;;  %v15716_v55 = vld [vmem:[%s19888_s5 + $0x30] ss:$8 sps:$4 sm:$0xff]  }
 0x805   :  { %v4171_v57 = vpop.f32.mrb[124].mxu1 }
 0x806   :  { %v4177_v58 = vadd.f32 %v4171_v57, %v4100_v56  ;;  %v14862_v59 = vpop.f32.mrb[125].mxu1  ;;  %v15724_v57 = vld [vmem:[%s19888_s5 + $0xc4] ss:$8 sps:$4 sm:$0xff]  }
 0x807   :  { %v4174_v60 = vpop.f32.mrb[126].mxu1  ;;  %v15731_v59 = vld [vmem:[%s19888_s5 + $0x120] ss:$8 sps:$4 sm:$0xff]  }
 0x808   :  { %v14863_v61 = vpop.f32.mrb[127].mxu1  ;;  %v4256_v62 = vadd.f32 %v4250_v41, %v4177_v58 }
 0x809   :  { %v15739_v61 = vld [vmem:[%s19888_s5 + $0x134] ss:$8 sps:$4 sm:$0xff]  }
 0x815   :  { %v4327_v63 = vpop.f32.mrb[128].mxu1 }
 0x816   :  { %v4333_v1 = vadd.f32 %v4327_v63, %v4256_v62  ;;  %v14886_v4 = vpop.f32.mrb[129].mxu1 }
 0x817   :  { %v4330_v8 = vpop.f32.mrb[130].mxu1  ;;  %v15730_v4 = vld [vmem:[%s19888_s5 + $0xd4] ss:$8 sps:$4 sm:$0xff]  }
 0x818   :  { %v4340_v9 = vadd.f32 %v4338_v5, %v4333_v1  ;;  %v14887_v10 = vpop.f32.mrb[131].mxu1  ;;  %v15722_v1 = vld [vmem:[%s19888_s5 + $0xc0] ss:$8 sps:$4 sm:$0xff]   ;;  %v15737_v5 = vld [vmem:[%s19888_s5 + $0x130] ss:$8 sps:$4 sm:$0xff]  }
 0x819   :  { %v15745_v8 = vld [vmem:[%s19888_s5 + $0x184] ss:$8 sps:$4 sm:$0xff]  }
 0x81a   :  { %vm4341_vm10 = vcmp.ge.f32.partialorder %v4340_v9, 0.0  ;;  %v4342_v11 = vmul.f32 0.2, %v4340_v9 }
 0x81c   :  { %v4343_v12 = vsel %vm4341_vm10, %v4340_v9, %v4342_v11  ;;  %v15728_v9 = vld [vmem:[%s19888_s5 + $0xd0] ss:$8 sps:$4 sm:$0xff]   ;;  %v15736_v11 = vld [vmem:[%s19888_s5 + $0xe4] ss:$8 sps:$4 sm:$0xff]  }
 0x81d   :  { %v4344_v17 = vpack.c.bf16 %v4343_v12, %v4343_v12 }
 0x81f   :  { %v4393_v23 = vsel %vm1831_vm2, %v4344_v17, 0  ;;  %v15743_v17 = vld [vmem:[%s19888_s5 + $0x180] ss:$8 sps:$4 sm:$0xff]  }
 0x820   :  { %14889 = vmatpush3.bf16.msra.mxu0 %v4393_v23 }
 0x821   :  { %4711 = vmatprep.subr.bf16.mxu0 %v15697_v7  ;;  %v15740_v7 = vld [vmem:[%s19888_s5 + $0xf0] ss:$8 sps:$4 sm:$0xff]  }
 0x823   :  { %14891 = vmatmul.mubr.msk.bf16.vlgmr.msra.gmra.mrb[104].mxu0 %vm1803_vm3, %v15678_v24  ;;  %v15751_v24 = vld [vmem:[%s19888_s5 + $0x194] ss:$8 sps:$4 sm:$0xff]  }
 0x824   :  { %14894 = vmatprep.mubr.msk.bf16.mxu0 %vm16195_vm0, %v19921_v20  ;;  %4712 = vmatpush1.bf16.msra.mxu0 %v15695_v28 }
 0x825   :  { %4713 = vmatprep.subr.bf16.mxu0 %v15703_v30 }
 0x828   :  { %4714 = vmatpush1.bf16.msra.mxu0 %v15701_v31  ;;  %v15755_v31 = vld [vmem:[%s19888_s5 + $0x1a0] ss:$8 sps:$4 sm:$0xff]  }
 0x829   :  { %4715 = vmatprep.subr.bf16.mxu0 %v15709_v32 }
 0x82b   :  { %14895 = vmatmul.mubr.msk.bf16.gmra.mrb[108].mxu0 %vm1803_vm3, %v15679_v14 }
 0x82c   :  { %14898 = vmatprep.mubr.msk.bf16.mxu0 %vm16195_vm0, %v19921_v20  ;;  %4716 = vmatpush1.bf16.msra.mxu0 %v15707_v33  ;;  %v15763_v33 = vld [vmem:[%s19888_s5 + $0x1b4] ss:$8 sps:$4 sm:$0xff]  }
 0x82d   :  { %4717 = vmatprep.subr.bf16.mxu0 %v15715_v34 }
 0x830   :  { %4718 = vmatpush1.bf16.msra.mxu0 %v15713_v35  ;;  %v15746_v35 = vld [vmem:[%s19888_s5 + $0x140] ss:$8 sps:$4 sm:$0xff]  }
 0x831   :  { %4903 = vmatprep.subr.bf16.mxu0 %v15721_v36 }
 0x833   :  { %14899 = vmatmul.mubr.msk.bf16.gmra.mrb[112].mxu0 %vm1803_vm3, %v15680_v25 }
 0x834   :  { %14902 = vmatprep.mubr.msk.bf16.mxu0 %vm16195_vm0, %v19921_v20 }
 0x83b   :  { %14903 = vmatmul.mubr.msk.bf16.gmra.mrb[116].mxu0 %vm1803_vm3, %v15681_v21  ;;  %v15734_v21 = vld [vmem:[%s19888_s5 + $0xe0] ss:$8 sps:$4 sm:$0xff]  }
 0x83c   :  { %14906 = vmatprep.mubr.msk.bf16.mxu0 %vm16195_vm0, %v19921_v20 }
 0x843   :  { %14907 = vmatmul.mubr.msk.bf16.gmra.mrb[120].mxu0 %vm1803_vm3, %v15682_v3  ;;  %v15742_v3 = vld [vmem:[%s19888_s5 + $0xf4] ss:$8 sps:$4 sm:$0xff]  }
 0x844   :  { %4743 = vmatprep.mubr.bf16.mxu0 %v19919_v0 }
 0x8f6   :  { %v4429_v37 = vpop.f32.mrb[104].mxu0 }
 0x8f7   :  { %v14892_v38 = vpop.f32.mrb[105].mxu0 }
 0x8f8   :  { %v4432_v39 = vpop.f32.mrb[106].mxu0  ;;  %v15761_v38 = vld [vmem:[%s19888_s5 + $0x1b0] ss:$8 sps:$4 sm:$0xff]  }
 0x8f9   :  { %v4467_v40 = vpack.c.bf16 %v4432_v39, %v4429_v37  ;;  %v14893_v41 = vpop.f32.mrb[107].mxu0  ;;  %v15754_v37 = vld [vmem:[%s19888_s5 + $0x154] ss:$8 sps:$4 sm:$0xff]   ;;  %v15769_v39 = vld [vmem:[%s19888_s5 + $0x204] ss:$8 sps:$4 sm:$0xff]  }
 0x8fa   :  { %v15760_v41 = vld [vmem:[%s19888_s5 + $0x164] ss:$8 sps:$4 sm:$0xff]  }
 0x8fb   :  { %v4490_v43 = vrot.slane %v4467_v40, 4 }
 0x8fd   :  { %12682 = vmatmul.mubr.msk.bf16.vlgmr.msra.gmra.mrb[132].mxu1 %vm1990_vm4, %v4490_v43  ;;  %v15775_v43 = vld [vmem:[%s19888_s5 + $0x214] ss:$8 sps:$4 sm:$0xff]  }
 0x8fe   :  { %4619 = vmatpush1.bf16.msra.mxu1 %v15698_v42  ;;  %v4437_v46 = vpop.f32.mrb[108].mxu0  ;;  %4650 = vmatprep.mubr.bf16.mxu1 %v19919_v0  ;;  %v15767_v42 = vld [vmem:[%s19888_s5 + $0x200] ss:$8 sps:$4 sm:$0xff]  }
 0x8ff   :  { %4620 = vmatprep.subr.bf16.mxu1 %v15706_v44  ;;  %v14896_v48 = vpop.f32.mrb[109].mxu0  ;;  %v15758_v44 = vld [vmem:[%s19888_s5 + $0x160] ss:$8 sps:$4 sm:$0xff]  }
 0x900   :  { %v4440_v49 = vpop.f32.mrb[110].mxu0  ;;  %v15764_v48 = vld [vmem:[%s19888_s5 + $0x170] ss:$8 sps:$4 sm:$0xff]  }
 0x901   :  { %v17576_v51 = vpack.c.bf16 %v4440_v49, %v4437_v46  ;;  %v14897_v52 = vpop.f32.mrb[111].mxu0  ;;  %v15773_v46 = vld [vmem:[%s19888_s5 + $0x210] ss:$8 sps:$4 sm:$0xff]   ;;  %v15772_v49 = vld [vmem:[%s19888_s5 + $0x1c4] ss:$8 sps:$4 sm:$0xff]  }
 0x902   :  { %4621 = vmatpush1.bf16.msra.mxu1 %v15704_v45  ;;  %v15766_v45 = vld [vmem:[%s19888_s5 + $0x174] ss:$8 sps:$4 sm:$0xff]   ;;  %v15770_v52 = vld [vmem:[%s19888_s5 + $0x1c0] ss:$8 sps:$4 sm:$0xff]  }
 0x903   :  { %4622 = vmatprep.subr.bf16.mxu1 %v15712_v47  ;;  %12708 = vmatmul.mubr.msk.bf16.vlgmr.msra.gmra.mrb[124].mxu0 %vm1990_vm4, %v17576_v51  ;;  %v4764_v36 = vrot.slane %v17576_v51, 4  ;;  %v15781_v47 = vld [vmem:[%s19888_s5 + $0x224] ss:$8 sps:$4 sm:$0xff]   ;;  %v15787_v51 = vld [vmem:[%s19888_s5 + $0x234] ss:$8 sps:$4 sm:$0xff]  }
 0x904   :  { %4904 = vmatpush1.bf16.msra.mxu0 %v15719_v50  ;;  %4935 = vmatprep.mubr.bf16.mxu0 %v19919_v0  ;;  %v15779_v50 = vld [vmem:[%s19888_s5 + $0x220] ss:$8 sps:$4 sm:$0xff]  }
 0x905   :  { %4905 = vmatprep.subr.bf16.mxu0 %v15727_v22 }
 0x906   :  { %4623 = vmatpush1.bf16.msra.mxu1 %v15710_v6  ;;  %v4445_v56 = vpop.f32.mrb[112].mxu0  ;;  %v15778_v6 = vld [vmem:[%s19888_s5 + $0x1d4] ss:$8 sps:$4 sm:$0xff]  }
 0x907   :  { %4624 = vmatprep.subr.bf16.mxu1 %v15718_v53  ;;  %v14900_v58 = vpop.f32.mrb[113].mxu0  ;;  %v15785_v53 = vld [vmem:[%s19888_s5 + $0x230] ss:$8 sps:$4 sm:$0xff]  }
 0x908   :  { %4906 = vmatpush1.bf16.msra.mxu0 %v15725_v54  ;;  %v4448_v60 = vpop.f32.mrb[114].mxu0  ;;  %v15776_v54 = vld [vmem:[%s19888_s5 + $0x1d0] ss:$8 sps:$4 sm:$0xff]  }
 0x909   :  { %4907 = vmatprep.subr.bf16.mxu0 %v15733_v2  ;;  %v17608_v62 = vpack.c.bf16 %v4448_v60, %v4445_v56  ;;  %v14901_v63 = vpop.f32.mrb[115].mxu0  ;;  %v15784_v2 = vld [vmem:[%s19888_s5 + $0x1e4] ss:$8 sps:$4 sm:$0xff]   ;;  %v15782_v56 = vld [vmem:[%s19888_s5 + $0x1e0] ss:$8 sps:$4 sm:$0xff]  }
 0x90a   :  { %4625 = vmatpush1.bf16.msra.mxu1 %v15716_v55  ;;  %v15788_v58 = vld [vmem:[%s19888_s5 + $0x1f0] ss:$8 sps:$4 sm:$0xff]  }
 0x90b   :  { %4808 = vmatprep.subr.bf16.mxu1 %v15724_v57  ;;  %v4956_v22 = vrot.slane %v17608_v62, 4  ;;  %v15790_v57 = vld [vmem:[%s19888_s5 + $0x1f4] ss:$8 sps:$4 sm:$0xff]  }
 0x90c   :  { %4908 = vmatpush1.bf16.msra.mxu0 %v15731_v59 }
 0x90d   :  { %12691 = vmatmul.mubr.msk.bf16.vlgmr.msra.gmra.mrb[136].mxu1 %vm1990_vm4, %v4467_v40  ;;  %4909 = vmatprep.subr.bf16.mxu0 %v15739_v61  ;;  %v15752_v40 = vld [vmem:[%s19888_s5 + $0x150] ss:$8 sps:$4 sm:$0xff]  }
 0x90e   :  { %4809 = vmatpush1.bf16.msra.mxu1 %v15722_v1  ;;  %4840 = vmatprep.mubr.bf16.mxu1 %v19919_v0  ;;  %v4453_v10 = vpop.f32.mrb[116].mxu0 }
 0x90f   :  { %4810 = vmatprep.subr.bf16.mxu1 %v15730_v4  ;;  %v14904_v12 = vpop.f32.mrb[117].mxu0 }
 0x910   :  { %4910 = vmatpush1.bf16.msra.mxu0 %v15737_v5  ;;  %v4456_v23 = vpop.f32.mrb[118].mxu0 }
 0x911   :  { %5095 = vmatprep.subr.bf16.mxu0 %v15745_v8  ;;  %v17636_v14 = vpack.c.bf16 %v4456_v23, %v4453_v10  ;;  %v14905_v25 = vpop.f32.mrb[119].mxu0 }
 0x912   :  { %4811 = vmatpush1.bf16.msra.mxu1 %v15728_v9 }
 0x913   :  { %4812 = vmatprep.subr.bf16.mxu1 %v15736_v11  ;;  %12742 = vmatmul.mubr.msk.bf16.vlgmr.msra.gmra.mrb[128].mxu0 %vm1990_vm4, %v17608_v62  ;;  %v5148_v59 = vrot.slane %v17636_v14, 4 }
 0x914   :  { %5096 = vmatpush1.bf16.msra.mxu0 %v15743_v17  ;;  %5127 = vmatprep.mubr.bf16.mxu0 %v19919_v0 }
 0x915   :  { %5097 = vmatprep.subr.bf16.mxu0 %v15751_v24 }
 0x916   :  { %4813 = vmatpush1.bf16.msra.mxu1 %v15734_v21  ;;  %v17656_v28 = vpop.f32.mrb[120].mxu0 }
 0x917   :  { %4814 = vmatprep.subr.bf16.mxu1 %v15742_v3  ;;  %v14908_v30 = vpop.f32.mrb[121].mxu0  ;;  %v4471_v55 = vpack.c.bf16 %v17656_v28, %v17656_v28 }
 0x918   :  { %5098 = vmatpush1.bf16.msra.mxu0 %v15749_v26  ;;  %v4464_v32 = vpop.f32.mrb[122].mxu0 }
 0x919   :  { %5099 = vmatprep.subr.bf16.mxu0 %v15757_v27  ;;  %v14909_v34 = vpop.f32.mrb[123].mxu0 }
 0x91a   :  { %4815 = vmatpush1.bf16.msra.mxu1 %v15740_v7 }
 0x91b   :  { %5000 = vmatprep.subr.bf16.mxu1 %v15748_v29 }
 0x91c   :  { %5100 = vmatpush1.bf16.msra.mxu0 %v15755_v31 }
 0x91d   :  { %12725 = vmatmul.mubr.msk.bf16.vlgmr.msra.gmra.mrb[140].mxu1 %vm1990_vm4, %v4764_v36  ;;  %5101 = vmatprep.subr.bf16.mxu0 %v15763_v33 }
 0x91e   :  { %5001 = vmatpush1.bf16.msra.mxu1 %v15746_v35  ;;  %5032 = vmatprep.mubr.bf16.mxu1 %v19919_v0 }
 0x91f   :  { %5002 = vmatprep.subr.bf16.mxu1 %v15754_v37 }
 0x920   :  { %5102 = vmatpush1.bf16.msra.mxu0 %v15761_v38 }
 0x921   :  { %5287 = vmatprep.subr.bf16.mxu0 %v15769_v39 }
 0x922   :  { %5003 = vmatpush1.bf16.msra.mxu1 %v15752_v40 }
 0x923   :  { %5004 = vmatprep.subr.bf16.mxu1 %v15760_v41  ;;  %12776 = vmatmul.mubr.msk.bf16.vlgmr.msra.gmra.mrb[132].mxu0 %vm1990_vm4, %v17636_v14 }
 0x924   :  { %5288 = vmatpush1.bf16.msra.mxu0 %v15767_v42  ;;  %5319 = vmatprep.mubr.bf16.mxu0 %v19919_v0 }
 0x925   :  { %5289 = vmatprep.subr.bf16.mxu0 %v15775_v43 }
 0x926   :  { %5005 = vmatpush1.bf16.msra.mxu1 %v15758_v44 }
 0x927   :  { %5006 = vmatprep.subr.bf16.mxu1 %v15766_v45 }
 0x928   :  { %5290 = vmatpush1.bf16.msra.mxu0 %v15773_v46 }
 0x929   :  { %5291 = vmatprep.subr.bf16.mxu0 %v15781_v47 }
 0x92a   :  { %5007 = vmatpush1.bf16.msra.mxu1 %v15764_v48 }
 0x92b   :  { %5192 = vmatprep.subr.bf16.mxu1 %v15772_v49 }
 0x92c   :  { %5292 = vmatpush1.bf16.msra.mxu0 %v15779_v50 }
 0x92d   :  { %12759 = vmatmul.mubr.msk.bf16.vlgmr.msra.gmra.mrb[144].mxu1 %vm1990_vm4, %v4956_v22  ;;  %5293 = vmatprep.subr.bf16.mxu0 %v15787_v51 }
 0x92e   :  { %5193 = vmatpush1.bf16.msra.mxu1 %v15770_v52  ;;  %5224 = vmatprep.mubr.bf16.mxu1 %v19919_v0 }
 0x92f   :  { %5194 = vmatprep.subr.bf16.mxu1 %v15778_v6 }
 0x930   :  { %5294 = vmatpush1.bf16.msra.mxu0 %v15785_v53 }
 0x932   :  { %5195 = vmatpush1.bf16.msra.mxu1 %v15776_v54 }
 0x933   :  { %5196 = vmatprep.subr.bf16.mxu1 %v15784_v2  ;;  %12810 = vmatmul.mubr.msk.bf16.vlgmr.msra.gmra.mrb[136].mxu0 %vm1990_vm4, %v4471_v55  ;;  %v5334_v2 = vpop.permute.xlu1 %5333 }
 0x934   :  { %5857 = vmatprep.mubr.bf16.mxu0 %v19919_v0 }
 0x936   :  { %5197 = vmatpush1.bf16.msra.mxu1 %v15782_v56 }
 0x937   :  { %5198 = vmatprep.subr.bf16.mxu1 %v15790_v57 }
 0x93a   :  { %5199 = vmatpush1.bf16.msra.mxu1 %v15788_v58 }
 0x93d   :  { %12793 = vmatmul.mubr.msk.bf16.vlgmr.msra.gmra.mrb[148].mxu1 %vm1990_vm4, %v5148_v59 }
 0x93e   :  { %5512 = vmatprep.mubr.bf16.mxu1 %v19919_v0 }
 0x9d0   :  { %v4568_v60 = vpop.f32.mrb[132].mxu1 }
 0x9d1   :  { %v4570_v61 = vpop.f32.mrb[133].mxu1 }
 0x9d2   :  { %v4572_v62 = vpop.f32.mrb[134].mxu1 }
 0x9d3   :  { %v4573_v63 = vpop.f32.mrb[135].mxu1 }
 0x9d6   :  { %v4745_v1 = vpop.f32.mrb[124].mxu0 }
 0x9d7   :  { %v4747_v4 = vpop.f32.mrb[125].mxu0 }
 0x9d8   :  { %v4749_v5 = vpop.f32.mrb[126].mxu0 }
 0x9d9   :  { %v4750_v8 = vpop.f32.mrb[127].mxu0  ;;  %v15792_v5 = vld [vmem:[%s19889_s13 + $0x8] sm:$0xff]  }
 0x9da   :  { %v15793_v8 = vld [vmem:[%s19889_s13 + $0x10] sm:$0xff]  }
 0x9e0   :  { %v4652_v9 = vpop.f32.mrb[136].mxu1 }
 0x9e1   :  { %v4653_v10 = vadd.f32 %v4652_v9, %v4568_v60  ;;  %v4654_v11 = vpop.f32.mrb[137].mxu1  ;;  %v15794_v9 = vld [vmem:[%s19889_s13 + $0x18] sm:$0xff]  }
 0x9e2   :  { %v4655_v12 = vadd.f32 %v4654_v11, %v4570_v61  ;;  %v4656_v17 = vpop.f32.mrb[138].mxu1  ;;  %v15397_v11 = vpop.permute.xlu0 %15396 }
 0x9e3   :  { %v4657_v23 = vpop.f32.mrb[139].mxu1  ;;  %v4752_v24 = vadd.f32 %v4745_v1, %v4653_v10  ;;  %v15795_v10 = vld [vmem:[%s19889_s13 + $0x20] ss:$0 sps:$4 sm:$0xff]   ;;  %v15398_v17 = vunpack.i.l.bf16 %v15397_v11 }
 0x9e4   :  { %v4753_v14 = vadd.f32 %v4747_v4, %v4655_v12  ;;  %v15791_v4 = vld [vmem:[%s19889_s13] sm:$0xff]   ;;  %v5386_v12 = vpop.permute.xlu1 %5385  ;;  %v15399_v23 = vunpack.i.h.bf16 %v15397_v11 }
 0x9e6   :  { %v4937_v25 = vpop.f32.mrb[128].mxu0 }
 0x9e7   :  { %v4939_v21 = vpop.f32.mrb[129].mxu0 }
 0x9e8   :  { %v4941_v3 = vpop.f32.mrb[130].mxu0 }
 0x9e9   :  { %v4942_v26 = vpop.f32.mrb[131].mxu0 }
 0x9f0   :  { %v4842_v27 = vpop.f32.mrb[140].mxu1 }
 0x9f1   :  { %v4849_v7 = vadd.f32 %v4842_v27, %v4752_v24  ;;  %v4844_v28 = vpop.f32.mrb[141].mxu1  ;;  %v5418_v24 = vmul.f32 %v15398_v17, %v16491_v18  ;;  %v5420_v27 = vmul.f32 %v15399_v23, %v16491_v18 }
 0x9f2   :  { %v4850_v29 = vadd.f32 %v4844_v28, %v4753_v14  ;;  %v4846_v30 = vpop.f32.mrb[142].mxu1  ;;  %v5401_v14 = vpop.permute.xlu1 %5400 }
 0x9f3   :  { %v4847_v31 = vpop.f32.mrb[143].mxu1  ;;  %v4944_v32 = vadd.f32 %v4937_v25, %v4849_v7 }
 0x9f4   :  { %v4945_v33 = vadd.f32 %v4939_v21, %v4850_v29  ;;  %v5419_v21 = vmul.f32 %v15398_v17, %v16494_v19  ;;  %v5421_v29 = vmul.f32 %v15399_v23, %v16494_v19  ;;  %v15802_v23 = vld [vmem:[%s19937_s17 + $0xd8] sm:$0xff]  }
 0x9f6   :  { %v5129_v34 = vpop.f32.mrb[132].mxu0 }
 0x9f7   :  { %v5131_v35 = vpop.f32.mrb[133].mxu0 }
 0x9f8   :  { %v5133_v36 = vpop.f32.mrb[134].mxu0 }
 0x9f9   :  { %v5134_v37 = vpop.f32.mrb[135].mxu0  ;;  %v5423_v36 = vmul.f32 %v5386_v12, %v16494_v19 }
 0xa00   :  { %v5034_v38 = vpop.f32.mrb[144].mxu1 }
 0xa01   :  { %v5041_v39 = vadd.f32 %v5034_v38, %v4944_v32  ;;  %v5036_v40 = vpop.f32.mrb[145].mxu1 }
 0xa02   :  { %v5042_v41 = vadd.f32 %v5036_v40, %v4945_v33  ;;  %v5038_v42 = vpop.f32.mrb[146].mxu1  ;;  %v5391_v33 = vpop.permute.xlu0 %5390 }
 0xa03   :  { %v5039_v43 = vpop.f32.mrb[147].mxu1  ;;  %v5136_v44 = vadd.f32 %v5129_v34, %v5041_v39  ;;  %v5411_v34 = vpop.permute.xlu1 %5410  ;;  %v5424_v38 = vmul.f32 %v5391_v33, %v16491_v18 }
 0xa04   :  { %v5137_v45 = vadd.f32 %v5131_v35, %v5042_v41  ;;  %v5422_v35 = vmul.f32 %v5386_v12, %v16491_v18  ;;  %v5425_v41 = vmul.f32 %v5391_v33, %v16494_v19  ;;  %v5433_v11 = vmul.f32 %v5411_v34, %v16494_v19 }
 0xa06   :  { %v5321_v46 = vpop.f32.mrb[136].mxu0 }
 0xa07   :  { %v5323_v47 = vpop.f32.mrb[137].mxu0 }
 0xa08   :  { %v5325_v48 = vpop.f32.mrb[138].mxu0 }
 0xa09   :  { %v5326_v49 = vpop.f32.mrb[139].mxu0  ;;  %v15796_v48 = vld [vmem:[%s19937_s17 + $0xc0] sm:$0xff]  }
 0xa10   :  { %v5226_v50 = vpop.f32.mrb[148].mxu1 }
 0xa11   :  { %v5233_v51 = vadd.f32 %v5226_v50, %v5136_v44  ;;  %v5228_v52 = vpop.f32.mrb[149].mxu1  ;;  %v15797_v50 = vld [vmem:[%s19937_s17 + $0x80] sm:$0xff]  }
 0xa12   :  { %v5234_v22 = vadd.f32 %v5228_v52, %v5137_v45  ;;  %v5230_v6 = vpop.f32.mrb[150].mxu1 }
 0xa13   :  { %v5328_v53 = vadd.f32 %v5321_v46, %v5233_v51  ;;  %v5231_v54 = vpop.f32.mrb[151].mxu1  ;;  %v5396_v46 = vpop.permute.xlu1 %5395 }
 0xa14   :  { %v5329_v55 = vadd.f32 %v5323_v47, %v5234_v22  ;;  %v5426_v49 = vmul.f32 %v5396_v46, %v16491_v18  ;;  %v5427_v51 = vmul.f32 %v5396_v46, %v16494_v19  ;;  %v5428_v22 = vmul.f32 %v5401_v14, %v16491_v18 }
 0xa15   :  { %v5336_v56 = vadd.f32 %v5334_v2, %v5328_v53  ;;  %v5429_v54 = vmul.f32 %v5401_v14, %v16494_v19 }
 0xa16   :  { %v5337_v57 = vadd.f32 %v5334_v2, %v5329_v55 }
 0xa17   :  { %v5340_v58 = vmul.f32 0.2, %v5336_v56  ;;  %vm5338_vm11 = vcmp.ge.f32.partialorder %v5336_v56, 0.0 }
 0xa18   :  { %vm5339_vm12 = vcmp.ge.f32.partialorder %v5337_v57, 0.0  ;;  %v5341_v59 = vmul.f32 0.2, %v5337_v57 }
 0xa19   :  { %v5342_v60 = vsel %vm5338_vm11, %v5336_v56, %v5340_v58  ;;  %v15798_v56 = vld [vmem:[%s19937_s17 + $0xc8] sm:$0xff]  }
 0xa1a   :  { %v5343_v61 = vsel %vm5339_vm12, %v5337_v57, %v5341_v59  ;;  %v5344_v62 = vpack.c.bf16 %v5342_v60, %v5342_v60  ;;  %v15799_v59 = vld [vmem:[%s19937_s17 + $0x88] sm:$0xff]   ;;  %v5406_v60 = vpop.permute.xlu0 %5405 }
 0xa1b   :  { %v5345_v63 = vpack.c.bf16 %v5343_v61, %v5343_v61 }
 0xa1c   :  { %v5475_v1 = vsel %vm1831_vm2, %v5344_v62, 0  ;;  %v15800_v62 = vld [vmem:[%s19937_s17 + $0xd0] sm:$0xff]  }
 0xa1d   :  { %12816 = vmatprep.subr.msk.bf16.mxu1 %vm1831_vm2, %v5345_v63  ;;  %v5430_v63 = vmul.f32 %v5406_v60, %v16491_v18 }
 0xa1e   :  { %5481 = vmatpush1.bf16.msra.mxu1 %v5475_v1  ;;  %v15801_v1 = vld [vmem:[%s19937_s17 + $0x90] sm:$0xff]  }
 0xa1f   :  { %14154 = vmatprep.subr.bf16.mxu1 %v15796_v48 }
 0xa21   :  { %12817 = vmatmul.mubr.msk.bf16.vlgmr.msra.gmra.mrb[152].mxu1 %vm1803_vm3, %v15791_v4  ;;  %v5431_v4 = vmul.f32 %v5406_v60, %v16494_v19  ;;  %v9309_v60 = vld [vmem:[%s19940_s14] sm:$0xff] }
 0xa22   :  { %5522 = vmatprep.mubr.bf16.mxu1 %v19919_v0  ;;  %14155 = vmatpush3.bf16.msra.mxu1 %v15797_v50  ;;  %v15809_v50 = vld [vmem:[%s19937_s17 + $0xf0] sm:$0xff]  }
 0xa23   :  { %14156 = vmatprep.subr.bf16.mxu1 %v15798_v56  ;;  %v15812_v56 = vld [vmem:[%s19937_s17 + $0xb8] sm:$0xff]  }
 0xa26   :  { %14157 = vmatpush3.bf16.msra.mxu1 %v15799_v59  ;;  %v15816_v59 = vld [vmem:[%s19937_s17 + $0x140] sm:$0xff]  }
 0xa27   :  { %14158 = vmatprep.subr.bf16.mxu1 %v15800_v62  ;;  %v13783_v62 = vld [vmem:[%s19941_s23] sm:$0xff]  }
 0xa29   :  { %12818 = vmatmul.mubr.msk.bf16.gmra.mrb[156].mxu1 %vm1803_vm3, %v15792_v5 }
 0xa2a   :  { %5532 = vmatprep.mubr.bf16.mxu1 %v19919_v0  ;;  %14159 = vmatpush3.bf16.msra.mxu1 %v15801_v1  ;;  %v13785_v1 = vunpack.c.h.bf16 %v13783_v62 }
 0xa2b   :  { %14160 = vmatprep.subr.bf16.mxu1 %v15802_v23  ;;  %v13809_v23 = vld [vmem:[%s19941_s23 + $0x18] sm:$0xff]  }
 0xa31   :  { %12819 = vmatmul.mubr.msk.bf16.gmra.mrb[160].mxu1 %vm1803_vm3, %v15793_v8  ;;  %v5432_v8 = vmul.f32 %v5411_v34, %v16491_v18 }
 0xa32   :  { %5542 = vmatprep.mubr.bf16.mxu1 %v19919_v0 }
 0xa39   :  { %12820 = vmatmul.mubr.msk.bf16.gmra.mrb[164].mxu1 %vm1803_vm3, %v15794_v9 }
 0xa3a   :  { %5552 = vmatprep.mubr.bf16.mxu1 %v19919_v0 }
 0xa41   :  { %12821 = vmatmul.mubr.msk.bf16.gmra.mrb[168].mxu1 %vm1803_vm3, %v15795_v10 }
 0xaf4   :  { %v5514_v25 = vpop.f32.mrb[152].mxu1 }
 0xaf5   :  { %v5515_v3 = vadd.f32 %v5514_v25, %v5418_v24  ;;  %v5516_v26 = vpop.f32.mrb[153].mxu1  ;;  %v5416_v24 = vpop.permute.xlu0 %5415 }
 0xaf6   :  { %v5517_v7 = vadd.f32 %v5516_v26, %v5419_v21  ;;  %v5518_v28 = vpop.f32.mrb[154].mxu1  ;;  %v15803_v21 = vld [vmem:[%s19937_s17 + $0x98] sm:$0xff]   ;;  %v13767_v26 = vld [vmem:[%s19936_s24] sm:$0xff]   ;;  %v5435_v34 = vmul.f32 %v5416_v24, %v16494_v19  ;;  %v15806_v19 = vld [vmem:[%s19937_s17 + $0xe8] sm:$0xff]  }
 0xaf7   :  { %v5519_v30 = vadd.f32 %v5518_v28, %v5420_v27  ;;  %v5520_v31 = vpop.f32.mrb[155].mxu1  ;;  %5561 = vrot.lane.b32.xlu0 %v5515_v3, %s16196_s1  ;;  %v13804_v27 = vld [vmem:[%s19936_s24 + $0x8] sm:$0xff]   ;;  %14161 = vmatpush3.bf16.msra.mxu1 %v15803_v21  ;;  %v15804_v28 = vld [vmem:[%s19937_s17 + $0xe0] sm:$0xff]  }
 0xaf8   :  { %v5521_v32 = vadd.f32 %v5520_v31, %v5421_v29  ;;  %5563 = vrot.lane.b32.xlu1 %v5517_v7, %s16196_s1  ;;  %v5434_v7 = vmul.f32 %v5416_v24, %v16491_v18  ;;  %v15805_v29 = vld [vmem:[%s19937_s17 + $0xa0] sm:$0xff]   ;;  %v13769_v31 = vunpack.c.h.bf16 %v13767_v26  ;;  %v13773_v33 = vunpack.c.h.bf16 %v13804_v27  ;;  %14162 = vmatprep.subr.bf16.mxu1 %v15804_v28 }
 0xaf9   :  { %v13796_v24 = vunpack.c.l.bf16 %v13809_v23 }
 0xafb   :  { %5586 = vrot.lane.b32.xlu0 %v5519_v30, %s19911_s26  ;;  %v13768_v30 = vunpack.c.l.bf16 %v13767_v26  ;;  %14163 = vmatpush3.bf16.msra.mxu1 %v15805_v29  ;;  %v11660_v26 = vld [vmem:[%s19878_s21] sm:$0xff]  ;;  %s19951_s21 = smov 1  }
 0xafc   :  { %v5524_v37 = vpop.f32.mrb[156].mxu1  ;;  %5588 = vrot.lane.b32.xlu1 %v5521_v32, %s19911_s26  ;;  %v13772_v32 = vunpack.c.l.bf16 %v13804_v27  ;;  %s19915_s26 = smov 111   ;;  %14164 = vmatprep.subr.bf16.mxu1 %v15806_v19  ;;  %v17924_v27 = vpop.permute.xlu0 %5759 }
 0xafd   :  { %v5525_v39 = vadd.f32 %v5524_v37, %v5422_v35  ;;  %v5526_v40 = vpop.f32.mrb[157].mxu1  ;;  %v13805_v37 = vld [vmem:[%s19936_s24 + $0x10] sm:$0xff]  }
 0xafe   :  { %v5527_v42 = vadd.f32 %v5526_v40, %v5423_v36  ;;  %v5528_v43 = vpop.f32.mrb[158].mxu1  ;;  %v13777_v46 = vunpack.c.h.bf16 %v13805_v37 }
 0xaff   :  { %v5529_v44 = vadd.f32 %v5528_v43, %v5424_v38  ;;  %v5530_v45 = vpop.f32.mrb[159].mxu1  ;;  %5610 = vrot.lane.b32.xlu0 %v5525_v39, %s19909_s15  ;;  %v13806_v38 = vld [vmem:[%s19936_s24 + $0x18] sm:$0xff]   ;;  %v15405_v43 = vpack.i.bf16 %v13773_v33, %v13772_v32 }
 0xb00   :  { %v5531_v47 = vadd.f32 %v5530_v45, %v5425_v41  ;;  %5612 = vrot.lane.b32.xlu1 %v5527_v42, %s19909_s15  ;;  %v15400_v42 = vpack.i.bf16 %v13769_v31, %v13768_v30  ;;  %v13776_v45 = vunpack.c.l.bf16 %v13805_v37  ;;  %v13781_v48 = vunpack.c.h.bf16 %v13806_v38 }
 0xb01   :  { %v17927_v31 = vand.u32 127, %v140_v13 }
 0xb03   :  { %5634 = vrot.lane.b32.xlu0 %v5529_v44, %s19905_s28  ;;  %v15807_v44 = vld [vmem:[%s19937_s17 + $0xa8] sm:$0xff]   ;;  %vm5590_vm13 = vcmp.lt.s32.totalorder %v17927_v31, 16  ;;  %vm5567_vm14 = vcmp.lt.s32.totalorder %v17927_v31, 17  ;;  %vm5614_vm15 = vcmp.lt.s32.totalorder %v17927_v31, 15  ;;  %vm5638_vm1 = vcmp.lt.s32.totalorder %v17927_v31, 1 }
 0xb04   :  { %v5534_v52 = vpop.f32.mrb[160].mxu1  ;;  %5636 = vrot.lane.b32.xlu1 %v5531_v47, %s19905_s28  ;;  %v13780_v47 = vunpack.c.l.bf16 %v13806_v38  ;;  %14165 = vmatpush3.bf16.msra.mxu1 %v15807_v44  ;;  %vm5664_vm5 = vcmp.lt.s32.totalorder %v17927_v31, 127  ;;  %vm5688_vm6 = vcmp.lt.s32.totalorder %v17927_v31, 113  ;;  %vm5712_vm8 = vcmp.lt.s32.totalorder %v17927_v31, 112 }
 0xb05   :  { %v17806_v6 = vadd.f32 %v5534_v52, %v5426_v49  ;;  %v5536_v53 = vpop.f32.mrb[161].mxu1  ;;  %v6049_v49 = vld [vmem:[%s19936_s24 + $0x20] sm:$0xf]  ;;  %14166 = vmatprep.subr.bf16.mxu1 %v15809_v50  ;;  %vm5736_vm9 = vcmp.lt.s32.totalorder %v17927_v31, 111 }
 0xb06   :  { %v17809_v2 = vadd.f32 %v5536_v53, %v5427_v51  ;;  %v5538_v55 = vpop.f32.mrb[162].mxu1  ;;  %v15410_v51 = vpack.i.bf16 %v13777_v46, %v13776_v45  ;;  %v15415_v52 = vpack.i.bf16 %v13781_v48, %v13780_v47  ;;  %v6058_v53 = vunpack.c.l.bf16 %v6049_v49 }
 0xb07   :  { %v5539_v57 = vadd.f32 %v5538_v55, %v5428_v22  ;;  %v5540_v58 = vpop.f32.mrb[163].mxu1  ;;  %v15810_v22 = vld [vmem:[%s19937_s17 + $0xb0] sm:$0xff]   ;;  %v7686_v55 = vld [vmem:[%s19938_s20] sm:$0xff] }
 0xb08   :  { %v5541_v61 = vadd.f32 %v5540_v58, %v5429_v54  ;;  %14167 = vmatpush3.bf16.msra.mxu1 %v15810_v22  ;;  %v15811_v54 = vld [vmem:[%s19937_s17 + $0xf8] sm:$0xff]   ;;  %v8603_v58 = vld [vmem:[%s19939_s30 + $0x8] sm:$0xff] }
 0xb09   :  { %5660 = vrot.lane.b32.xlu0 %v5539_v57, %s19907_s29  ;;  %14168 = vmatprep.subr.bf16.mxu1 %v15811_v54  ;;  %v8602_v57 = vld [vmem:[%s19939_s30] sm:$0xff] }
 0xb0a   :  { %5662 = vrot.lane.b32.xlu1 %v5541_v61, %s19907_s29  ;;  %v9310_v61 = vld [vmem:[%s19940_s14 + $0x8] sm:$0xff]  ;;  %s19956_s14 = sld [smem:[#allocation13_spill]]  ;;  %s19959_s29 = sld [smem:[#allocation14_spill]] }
 0xb0c   :  { %v5544_v5 = vpop.f32.mrb[164].mxu1  ;;  %14169 = vmatpush3.bf16.msra.mxu1 %v15812_v56 }
 0xb0d   :  { %v5545_v9 = vadd.f32 %v5544_v5, %v5430_v63  ;;  %v5546_v10 = vpop.f32.mrb[165].mxu1  ;;  %14198 = vmatprep.subr.bf16.mxu1 %v15816_v59  ;;  %v13784_v63 = vunpack.c.l.bf16 %v13783_v62  ;;  %v11251_v5 = vld [vmem:[%s19943_s16] sm:$0xff] }
 0xb0e   :  { %v5547_v12 = vadd.f32 %v5546_v10, %v5431_v4  ;;  %v5548_v17 = vpop.f32.mrb[166].mxu1  ;;  %v10263_v4 = vld [vmem:[%s19942_s22] sm:$0xff] }
 0xb0f   :  { %v5549_v14 = vadd.f32 %v5548_v17, %v5432_v8  ;;  %v5550_v25 = vpop.f32.mrb[167].mxu1  ;;  %5684 = vrot.lane.b32.xlu0 %v5545_v9, %s19913_s27  ;;  %v13807_v8 = vld [vmem:[%s19941_s23 + $0x8] sm:$0xff]   ;;  %v15420_v9 = vpack.i.bf16 %v13785_v1, %v13784_v63 }
 0xb10   :  { %v5551_v3 = vadd.f32 %v5550_v25, %v5433_v11  ;;  %5686 = vrot.lane.b32.xlu1 %v5547_v12, %s19913_s27  ;;  %s19917_s27 = smov 112   ;;  %v13788_v10 = vunpack.c.l.bf16 %v13807_v8  ;;  %v13808_v11 = vld [vmem:[%s19941_s23 + $0x10] sm:$0xff]   ;;  %v13789_v12 = vunpack.c.h.bf16 %v13807_v8  ;;  %v11284_v25 = vld [vmem:[%s19941_s23 + $0x20] sm:$0xf] }
 0xb11   :  { %v13793_v17 = vunpack.c.h.bf16 %v13808_v11  ;;  %v11293_v21 = vunpack.c.l.bf16 %v11284_v25 }
 0xb13   :  { %5708 = vrot.lane.b32.xlu0 %v5549_v14, %s19917_s27  ;;  %v13797_v14 = vunpack.c.h.bf16 %v13809_v23  ;;  %v12827_v23 = vld [vmem:[%s19891_s6 + $0xe] sm:$0x3] }
 0xb14   :  { %v5554_v35 = vpop.f32.mrb[168].mxu1  ;;  %5710 = vrot.lane.b32.xlu1 %v5551_v3, %s19917_s27  ;;  %v13792_v3 = vunpack.c.l.bf16 %v13808_v11  ;;  %s19950_s27 = smov 15  }
 0xb15   :  { %v5555_v18 = vadd.f32 %v5554_v35, %v5434_v7  ;;  %v5556_v36 = vpop.f32.mrb[169].mxu1  ;;  %v5570_v35 = vld [vmem:[%s19891_s6] sm:$0x3] }
 0xb16   :  { %v5557_v39 = vadd.f32 %v5556_v36, %v5435_v34  ;;  %v5558_v40 = vpop.f32.mrb[170].mxu1  ;;  %v12822_v34 = vld [vmem:[%s19891_s6 + $0x2] sm:$0x3]  ;;  %v17948_v37 = vrot.slane %v5570_v35, %v16483_v15  ;;  %v17958_v19 = vrot.slane %v5570_v35, %v16485_v16 }
 0xb17   :  { %v5559_v41 = vpop.f32.mrb[171].mxu1  ;;  %v17941_v13 = vrot.slane %v12822_v34, %v16483_v15  ;;  %v17944_v36 = vrot.slane %v12822_v34, %v16485_v16  ;;  %v12824_v40 = vld [vmem:[%s19891_s6 + $0x6] sm:$0x3] }
 0xb18   :  { %5732 = vrot.lane.b32.xlu1 %v5555_v18, %s19915_s26  ;;  %5734 = vrot.lane.b32.xlu0 %v5557_v39, %s19915_s26  ;;  %v12823_v18 = vld [vmem:[%s19891_s6 + $0x4] sm:$0x3]  ;;  %s19946_s26 = sld [smem:[#allocation12_spill]] }
 0xb19   :  { %v17961_v41 = vrot.slane %v12823_v18, %v16483_v15 }
 0xb1c   :  { %15401 = vperm.xlu1 %15384, %v15400_v42   ;;  %15406 = vperm.xlu0 %15373, %v15405_v43   ;;  %v17964_v42 = vrot.slane %v12823_v18, %v16485_v16 }
 0xb20   :  { %15411 = vperm.xlu1 %15384, %v15410_v51   ;;  %15416 = vperm.xlu0 %15373, %v15415_v52   ;;  %v17978_v51 = vrot.slane %v12824_v40, %v16483_v15  ;;  %v17981_v52 = vrot.slane %v12824_v40, %v16485_v16 }
 0xb24   :  { %6101 = vperm.xlu1 %15384, %v6058_v53   ;;  %7689 = vperm.xlu0 %15373, %v7686_v55  }
 0xb28   :  { %8606 = vperm.xlu1 %15384, %v8602_v57   ;;  %8611 = vperm.xlu0 %15373, %v8603_v58   ;;  %v12825_v58 = vld [vmem:[%s19891_s6 + $0xa] sm:$0x3] }
 0xb2c   :  { %9313 = vperm.xlu1 %15384, %v9309_v60   ;;  %9318 = vperm.xlu0 %15373, %v9310_v61  }
 0xb30   :  { %10266 = vperm.xlu1 %15384, %v10263_v4   ;;  %11254 = vperm.xlu0 %15373, %v11251_v5   ;;  %v17998_v4 = vrot.slane %v12825_v58, %v16483_v15  ;;  %v12826_v5 = vld [vmem:[%s19891_s6 + $0xc] sm:$0x3] }
 0xb31   :  { %v18015_v25 = vrot.slane %v12826_v5, %v16483_v15 }
 0xb34   :  { %15421 = vperm.xlu1 %15384, %v15420_v9   ;;  %11306 = vperm.xlu0 %15373, %v13788_v10   ;;  %v18004_v10 = vrot.slane %v12825_v58, %v16485_v16 }
 0xb38   :  { %11311 = vperm.xlu1 %15384, %v13789_v12   ;;  %11321 = vperm.xlu0 %15373, %v13793_v17  }
 0xb3c   :  { %11326 = vperm.xlu1 %15384, %v13796_v24   ;;  %11331 = vperm.xlu0 %15373, %v13797_v14  }
 0xb40   :  { %11336 = vperm.xlu1 %15384, %v11293_v21   ;;  %11316 = vperm.xlu0 %15373, %v13792_v3   ;;  %v18018_v21 = vrot.slane %v12826_v5, %v16485_v16 }
 0xb44   :  { %11663 = vperm.xlu1 %15384, %v11660_v26  }
 0xb69   :  { %v5562_v7 = vpop.permute.xlu0 %5561 }
 0xb6a   :  { %v5564_v28 = vpop.permute.xlu1 %5563 }
 0xb6b   :  { %v5568_v45 = vsel %vm5567_vm14, %v5562_v7, %v5564_v28  ;;  %v5569_v46 = vsel %vm5567_vm14, %v5564_v28, %v5562_v7 }
 0xb6c   :  { %v5582_v54 = vmul.f32 %v17948_v37, %v5569_v46  ;;  %v5583_v55 = vmul.f32 %v17958_v19, %v5568_v45 }
 0xb6d   :  { %v5587_v29 = vpop.permute.xlu0 %5586 }
 0xb6e   :  { %v5589_v30 = vpop.permute.xlu1 %5588 }
 0xb6f   :  { %v5591_v38 = vsel %vm5590_vm13, %v5587_v29, %v5589_v30  ;;  %v5592_v39 = vsel %vm5590_vm13, %v5589_v30, %v5587_v29  ;;  %v18028_v30 = vrot.slane %v12827_v23, %v16483_v15 }
 0xb70   :  { %v5606_v49 = vmul.f32 %v17941_v13, %v5592_v39  ;;  %v5607_v50 = vmul.f32 %v17944_v36, %v5591_v38 }
 0xb71   :  { %v5611_v32 = vpop.permute.xlu0 %5610 }
 0xb72   :  { %v5613_v33 = vpop.permute.xlu1 %5612  ;;  %v5608_v60 = vadd.f32 %v5606_v49, %v5582_v54  ;;  %v5609_v61 = vadd.f32 %v5607_v50, %v5583_v55 }
 0xb73   :  { %v5615_v47 = vsel %vm5614_vm15, %v5611_v32, %v5613_v33  ;;  %v5616_v48 = vsel %vm5614_vm15, %v5613_v33, %v5611_v32  ;;  %v18031_v32 = vrot.slane %v12827_v23, %v16485_v16  ;;  %v12828_v33 = vld [vmem:[%s19891_s6 + $0x10] sm:$0x3]  ;;  %v12840_v23 = vld [vmem:[%s19879_s0 + $0x2] sm:$0x3] }
 0xb74   :  { %v5630_v56 = vmul.f32 %v17961_v41, %v5616_v48  ;;  %v5631_v57 = vmul.f32 %v17964_v42, %v5615_v47  ;;  %v18046_v45 = vrot.slane %v12828_v33, %v16483_v15  ;;  %v18049_v46 = vrot.slane %v12828_v33, %v16485_v16 }
 0xb75   :  { %v5635_v43 = vpop.permute.xlu0 %5634 }
 0xb76   :  { %v5637_v44 = vpop.permute.xlu1 %5636  ;;  %v5632_v8 = vadd.f32 %v5630_v56, %v5608_v60  ;;  %v5633_v9 = vadd.f32 %v5631_v57, %v5609_v61  ;;  %19944 = vst [vmem:[#allocation2_spill] sm:$0xff] %v18046_v45  ;;  %19945 = vst [vmem:[#allocation3_spill] sm:$0xff] %v18049_v46 }
 0xb77   :  { %v5639_v22 = vsel %vm5638_vm1, %v5635_v43, %v5637_v44  ;;  %v5640_v53 = vsel %vm5638_vm1, %v5637_v44, %v5635_v43 }
 0xb78   :  { %v5654_v62 = vmul.f32 %v17978_v51, %v5640_v53  ;;  %v5655_v63 = vmul.f32 %v17981_v52, %v5639_v22 }
 0xb7a   :  { %v5656_v24 = vadd.f32 %v5654_v62, %v5632_v8  ;;  %v5657_v14 = vadd.f32 %v5655_v63, %v5633_v9 }
 0xb7b   :  { %v5661_v59 = vpop.permute.xlu0 %5660 }
 0xb7c   :  { %v5663_v1 = vpop.permute.xlu1 %5662  ;;  %v5658_v35 = vadd.f32 %v5656_v24, %v17806_v6  ;;  %v5659_v18 = vadd.f32 %v5657_v14, %v17809_v2  ;;  %v15808_v24 = vld [vmem:[%s19946_s26] sm:$0xff]  }
 0xb7d   :  { %v5665_v11 = vsel %vm5664_vm5, %v5661_v59, %v5663_v1  ;;  %v5666_v12 = vsel %vm5664_vm5, %v5663_v1, %v5661_v59  ;;  %v15815_v14 = vld [vmem:[%s19937_s17] sm:$0xff]  }
 0xb7e   :  { %v5680_v28 = vmul.f32 %v17998_v4, %v5665_v11  ;;  %v5681_v29 = vmul.f32 %v18004_v10, %v5666_v12 }
 0xb80   :  { %v5682_v6 = vadd.f32 %v5680_v28, %v5658_v35  ;;  %v5683_v47 = vadd.f32 %v5681_v29, %v5659_v18  ;;  %v15819_v35 = vld [vmem:[%s19937_s17 + $0x8] sm:$0xff]   ;;  %v15822_v18 = vld [vmem:[%s19937_s17 + $0x50] sm:$0xff]  }
 0xb81   :  { %v5685_v17 = vpop.permute.xlu0 %5684 }
 0xb82   :  { %v5687_v3 = vpop.permute.xlu1 %5686 }
 0xb83   :  { %v5689_v26 = vsel %vm5688_vm6, %v5685_v17, %v5687_v3  ;;  %v5690_v7 = vsel %vm5688_vm6, %v5687_v3, %v5685_v17  ;;  %v15813_v17 = vld [vmem:[%s19937_s17 + $0x40] sm:$0xff]   ;;  %v15818_v3 = vld [vmem:[%s19937_s17 + $0x48] sm:$0xff]  }
 0xb84   :  { %v5704_v38 = vmul.f32 %v18015_v25, %v5689_v26  ;;  %v5705_v39 = vmul.f32 %v18018_v21, %v5690_v7  ;;  %v18079_v26 = vrot.slane %v12840_v23, %v16483_v15  ;;  %v18082_v7 = vrot.slane %v12840_v23, %v16485_v16  ;;  %v15830_v23 = vld [vmem:[%s19937_s17 + $0x118] sm:$0xff]  }
 0xb85   :  { %v5709_v34 = vpop.permute.xlu0 %5708 }
 0xb86   :  { %v5711_v40 = vpop.permute.xlu1 %5710  ;;  %v5706_v49 = vadd.f32 %v5704_v38, %v5682_v6  ;;  %v5707_v50 = vadd.f32 %v5705_v39, %v5683_v47  ;;  %v15814_v47 = vld [vmem:[%s19946_s26 + $0x8] sm:$0xff]  }
 0xb87   :  { %v5713_v43 = vsel %vm5712_vm8, %v5709_v34, %v5711_v40  ;;  %v5714_v44 = vsel %vm5712_vm8, %v5711_v40, %v5709_v34 }
 0xb88   :  { %v5728_v2 = vmul.f32 %v18028_v30, %v5713_v43  ;;  %v5729_v48 = vmul.f32 %v18031_v32, %v5714_v44 }
 0xb8a   :  { %v5733_v22 = vpop.permute.xlu1 %5732  ;;  %v5735_v53 = vpop.permute.xlu0 %5734  ;;  %v5730_v56 = vadd.f32 %v5728_v2, %v5706_v49  ;;  %v5731_v57 = vadd.f32 %v5729_v48, %v5707_v50  ;;  %v15824_v49 = vld [vmem:[%s19937_s17 + $0x10] sm:$0xff]   ;;  %v15827_v50 = vld [vmem:[%s19937_s17 + $0x58] sm:$0xff]  }
 0xb8b   :  { %v5737_v54 = vsel %vm5736_vm9, %v5733_v22, %v5735_v53  ;;  %v5738_v55 = vsel %vm5736_vm9, %v5735_v53, %v5733_v22 }
 0xb8c   :  { %v5752_v58 = vmul.f32 %v18046_v45, %v5737_v54  ;;  %v5753_v59 = vmul.f32 %v18049_v46, %v5738_v55 }
 0xb8e   :  { %v5754_v60 = vadd.f32 %v5752_v58, %v5730_v56  ;;  %v5755_v61 = vadd.f32 %v5753_v59, %v5731_v57  ;;  %v15817_v56 = vld [vmem:[%s19937_s17 + $0x100] sm:$0xff]   ;;  %v15820_v57 = vld [vmem:[%s19937_s17 + $0x148] sm:$0xff]   ;;  %v15828_v58 = vld [vmem:[%s19937_s17 + $0x18] sm:$0xff]  }
 0xb90   :  { %v5762_v62 = vadd.f32 %v17924_v27, %v5754_v60  ;;  %v5763_v63 = vadd.f32 %v17924_v27, %v5755_v61  ;;  %v15823_v60 = vld [vmem:[%s19946_s26 + $0x10] sm:$0xff]   ;;  %v15831_v61 = vld [vmem:[%s19937_s17 + $0x60] sm:$0xff]  }
 0xb92   :  { %v5767_v1 = vmul.f32 0.2, %v5763_v63  ;;  %vm5765_vm10 = vcmp.ge.f32.partialorder %v5763_v63, 0.0  ;;  %vm5764_vm11 = vcmp.ge.f32.partialorder %v5762_v62, 0.0  ;;  %v5766_v5 = vmul.f32 0.2, %v5762_v62 }
 0xb94   :  { %v5769_v8 = vsel %vm5765_vm10, %v5763_v63, %v5767_v1  ;;  %v5768_v9 = vsel %vm5764_vm11, %v5762_v62, %v5766_v5  ;;  %v15821_v62 = vld [vmem:[%s19937_s17 + $0x108] sm:$0xff]   ;;  %v15825_v63 = vld [vmem:[%s19937_s17 + $0x150] sm:$0xff]   ;;  %v15833_v1 = vld [vmem:[%s19937_s17 + $0x20] sm:$0xff]  }
 0xb95   :  { %v5771_v11 = vpack.c.bf16 %v5769_v8, %v5769_v8  ;;  %v5770_v12 = vpack.c.bf16 %v5768_v9, %v5768_v9  ;;  %v15836_v5 = vld [vmem:[%s19937_s17 + $0x68] sm:$0xff]   ;;  %v15826_v8 = vld [vmem:[%s19937_s17 + $0x110] sm:$0xff]   ;;  %v15829_v9 = vld [vmem:[%s19937_s17 + $0x158] sm:$0xff]  }
 0xb97   :  { %12834 = vmatprep.subr.msk.bf16.mxu0 %vm1831_vm2, %v5771_v11  ;;  %v5820_v27 = vsel %vm1831_vm2, %v5770_v12, 0  ;;  %v15837_v11 = vld [vmem:[%s19937_s17 + $0x28] sm:$0xff]   ;;  %v15832_v12 = vld [vmem:[%s19946_s26 + $0x18] sm:$0xff]  }
 0xb98   :  { %5826 = vmatpush1.bf16.msra.mxu0 %v5820_v27  ;;  %v15834_v27 = vld [vmem:[%s19937_s17 + $0x160] sm:$0xff]  }
 0xb99   :  { %14176 = vmatprep.subr.bf16.mxu0 %v15813_v17  ;;  %v15840_v17 = vld [vmem:[%s19937_s17 + $0x70] sm:$0xff]  }
 0xb9b   :  { %v15402_v28 = vpop.permute.xlu1 %15401  ;;  %12835 = vmatmul.mubr.msk.bf16.vlgmr.msra.gmra.mrb[140].mxu0 %vm1803_vm3, %v15808_v24  ;;  %v18085_v34 = vpop.permute.xlu0 %15406  ;;  %v15842_v24 = vld [vmem:[%s19937_s17 + $0x30] sm:$0xff]  }
 0xb9c   :  { %v15404_v29 = vunpack.i.h.bf16 %v15402_v28  ;;  %v15403_v33 = vunpack.i.l.bf16 %v15402_v28  ;;  %5867 = vmatprep.mubr.bf16.mxu0 %v19919_v0  ;;  %14177 = vmatpush3.bf16.msra.mxu0 %v15815_v14  ;;  %v15409_v44 = vunpack.i.h.bf16 %v18085_v34  ;;  %v15408_v6 = vunpack.i.l.bf16 %v18085_v34  ;;  %v15845_v14 = vld [vmem:[%s19937_s17 + $0x78] sm:$0xff]   ;;  %v15838_v28 = vld [vmem:[%s19937_s17 + $0x168] sm:$0xff]  }
 0xb9d   :  { %14178 = vmatprep.subr.bf16.mxu0 %v15818_v3  ;;  %v15835_v3 = vld [vmem:[%s19937_s17 + $0x120] sm:$0xff]   ;;  %v15854_v34 = vld [vmem:[%s19937_s17 + $0x188] sm:$0xff]  }
 0xb9e   :  { %v6117_v38 = vmul.f32 %v15404_v29, %v18079_v26  ;;  %v6118_v39 = vmul.f32 %v15404_v29, %v18082_v7  ;;  %v6115_v40 = vmul.f32 %v15403_v33, %v18079_v26  ;;  %v6116_v43 = vmul.f32 %v15403_v33, %v18082_v7  ;;  %v15846_v29 = vld [vmem:[%s19937_s17 + $0x38] sm:$0xff]   ;;  %v15841_v33 = vld [vmem:[%s19946_s26 + $0x20] ss:$0 sps:$4 sm:$0xff]  }
 0xb9f   :  { %v6122_v22 = vmul.f32 %v15409_v44, %v18082_v7  ;;  %v6120_v53 = vmul.f32 %v15408_v6, %v18082_v7 }
 0xba0   :  { %v18103_v2 = vpack.c.bf16 %v6117_v38, %v6115_v40  ;;  %14179 = vmatpush3.bf16.msra.mxu0 %v15819_v35  ;;  %v18105_v48 = vpack.c.bf16 %v6118_v39, %v6116_v43  ;;  %v15849_v35 = vld [vmem:[%s19937_s17 + $0x1c0] sm:$0xff]   ;;  %v15843_v38 = vld [vmem:[%s19937_s17 + $0x170] sm:$0xff]   ;;  %v18206_v39 = vpop.permute.xlu1 %15411  ;;  %v15847_v43 = vld [vmem:[%s19937_s17 + $0x178] sm:$0xff]  }
 0xba1   :  { %14180 = vmatprep.subr.bf16.mxu0 %v15822_v18  ;;  %v18132_v59 = vpack.c.bf16 %v6122_v22, %v6120_v53  ;;  %v15839_v18 = vld [vmem:[%s19937_s17 + $0x128] sm:$0xff]   ;;  %v15844_v40 = vld [vmem:[%s19937_s17 + $0x130] sm:$0xff]   ;;  %v6121_v53 = vmul.f32 %v15409_v44, %v18079_v26  ;;  %v15852_v44 = vld [vmem:[%s19937_s17 + $0x200] sm:$0xff]  }
 0xba2   :  { %v6209_v54 = vrot.slane %v18103_v2, 4  ;;  %v6210_v55 = vrot.slane %v18105_v48, 4  ;;  %v15853_v22 = vld [vmem:[%s19937_s17 + $0x1c8] sm:$0xff]  }
 0xba3   :  { %12836 = vmatmul.mubr.msk.bf16.gmra.mrb[144].mxu0 %vm1803_vm3, %v15814_v47  ;;  %v15414_v47 = vunpack.i.h.bf16 %v18206_v39 }
 0xba4   :  { %5877 = vmatprep.mubr.bf16.mxu0 %v19919_v0  ;;  %14181 = vmatpush3.bf16.msra.mxu0 %v15824_v49  ;;  %v15413_v49 = vunpack.i.l.bf16 %v18206_v39  ;;  %v15886_v39 = vld [vmem:[%s19937_s17 + $0x288] sm:$0xff]  }
 0xba5   :  { %14182 = vmatprep.subr.bf16.mxu0 %v15827_v50  ;;  %6341 = vmatprep.mubr.bf16.mxu1 %v6210_v55  ;;  %v15850_v50 = vld [vmem:[%s19937_s17 + $0x180] sm:$0xff]   ;;  %v6689_v55 = vrot.slane %v18132_v59, 4 }
 0xba6   :  { %6342 = vmatmul.mubr.bf16.vlgmr.msra.gmra.mrb[172].mxu1 %v6209_v54  ;;  %v6119_v54 = vmul.f32 %v15408_v6, %v18079_v26 }
 0xba7   :  { %14199 = vmatpush3.bf16.msra.mxu1 %v15817_v56  ;;  %6645 = vmatprep.mubr.bf16.mxu1 %v18132_v59  ;;  %v15851_v56 = vld [vmem:[%s19937_s17 + $0x240] sm:$0xff]   ;;  %v15855_v59 = vld [vmem:[%s19937_s17 + $0x248] sm:$0xff]  }
 0xba8   :  { %14200 = vmatprep.subr.bf16.mxu1 %v15820_v57  ;;  %14183 = vmatpush3.bf16.msra.mxu0 %v15828_v58  ;;  %v6126_v57 = vmul.f32 %v15414_v47, %v18082_v7  ;;  %v6124_v58 = vmul.f32 %v15413_v49, %v18082_v7  ;;  %v18249_v6 = vpack.c.bf16 %v6121_v53, %v6119_v54  ;;  %v15882_v54 = vld [vmem:[%s19937_s17 + $0x280] sm:$0xff]  }
 0xba9   :  { %14184 = vmatprep.subr.bf16.mxu0 %v15831_v61  ;;  %v15858_v61 = vld [vmem:[%s19937_s17 + $0x190] sm:$0xff]  }
 0xbab   :  { %12837 = vmatmul.mubr.msk.bf16.gmra.mrb[148].mxu0 %vm1803_vm3, %v15823_v60  ;;  %14201 = vmatpush3.bf16.msra.mxu1 %v15821_v62  ;;  %v18257_v60 = vpack.c.bf16 %v6126_v57, %v6124_v58  ;;  %v15856_v62 = vld [vmem:[%s19937_s17 + $0x208] sm:$0xff]   ;;  %v6125_v58 = vmul.f32 %v15414_v47, %v18079_v26  ;;  %v15884_v47 = vld [vmem:[%s19937_s17 + $0x300] sm:$0xff]  }
 0xbac   :  { %5887 = vmatprep.mubr.bf16.mxu0 %v19919_v0  ;;  %14202 = vmatprep.subr.bf16.mxu1 %v15825_v63  ;;  %v15861_v63 = vld [vmem:[%s19937_s17 + $0x1d8] sm:$0xff]   ;;  %v15885_v57 = vld [vmem:[%s19937_s17 + $0x2c8] sm:$0xff]  }
 0xbad   :  { %14185 = vmatpush3.bf16.msra.mxu0 %v15833_v1  ;;  %v15859_v1 = vld [vmem:[%s19937_s17 + $0x250] sm:$0xff]  }
 0xbae   :  { %14186 = vmatprep.subr.bf16.mxu0 %v15836_v5  ;;  %v15862_v5 = vld [vmem:[%s19937_s17 + $0x198] sm:$0xff]  }
 0xbaf   :  { %14203 = vmatpush3.bf16.msra.mxu1 %v15826_v8  ;;  %v15860_v8 = vld [vmem:[%s19937_s17 + $0x210] sm:$0xff]  }
 0xbb0   :  { %14204 = vmatprep.subr.bf16.mxu1 %v15829_v9  ;;  %v15865_v9 = vld [vmem:[%s19937_s17 + $0x1e0] sm:$0xff]  }
 0xbb1   :  { %14187 = vmatpush3.bf16.msra.mxu0 %v15837_v11  ;;  %v15863_v11 = vld [vmem:[%s19937_s17 + $0x258] sm:$0xff]  }
 0xbb2   :  { %14188 = vmatprep.subr.bf16.mxu0 %v15840_v17  ;;  %v15864_v17 = vld [vmem:[%s19937_s17 + $0x218] sm:$0xff]  }
 0xbb3   :  { %12838 = vmatmul.mubr.msk.bf16.gmra.mrb[152].mxu0 %vm1803_vm3, %v15832_v12  ;;  %14205 = vmatpush3.bf16.msra.mxu1 %v15830_v23  ;;  %v15866_v12 = vld [vmem:[%s19937_s17 + $0x1a0] sm:$0xff]   ;;  %v15869_v23 = vld [vmem:[%s19937_s17 + $0x1e8] sm:$0xff]  }
 0xbb4   :  { %5897 = vmatprep.mubr.bf16.mxu0 %v19919_v0  ;;  %14206 = vmatprep.subr.bf16.mxu1 %v15834_v27  ;;  %v15867_v27 = vld [vmem:[%s19937_s17 + $0x260] sm:$0xff]  }
 0xbb5   :  { %14189 = vmatpush3.bf16.msra.mxu0 %v15842_v24  ;;  %v15870_v24 = vld [vmem:[%s19937_s17 + $0x1a8] sm:$0xff]  }
 0xbb6   :  { %14190 = vmatprep.subr.bf16.mxu0 %v15845_v14  ;;  %v15868_v14 = vld [vmem:[%s19937_s17 + $0x220] sm:$0xff]  }
 0xbb7   :  { %14207 = vmatpush3.bf16.msra.mxu1 %v15835_v3  ;;  %v15873_v3 = vld [vmem:[%s19937_s17 + $0x1f0] sm:$0xff]  }
 0xbb8   :  { %14208 = vmatprep.subr.bf16.mxu1 %v15838_v28  ;;  %v15871_v28 = vld [vmem:[%s19937_s17 + $0x268] sm:$0xff]  }
 0xbb9   :  { %14191 = vmatpush3.bf16.msra.mxu0 %v15846_v29  ;;  %v15874_v29 = vld [vmem:[%s19937_s17 + $0x1b0] sm:$0xff]  }
 0xbba   :  { %14220 = vmatprep.subr.bf16.mxu0 %v15849_v35  ;;  %v15877_v35 = vld [vmem:[%s19937_s17 + $0x1f8] sm:$0xff]  }
 0xbbb   :  { %12839 = vmatmul.mubr.msk.bf16.gmra.mrb[156].mxu0 %vm1803_vm3, %v15841_v33  ;;  %14209 = vmatpush3.bf16.msra.mxu1 %v15839_v18  ;;  %v15872_v33 = vld [vmem:[%s19937_s17 + $0x228] sm:$0xff]   ;;  %v15875_v18 = vld [vmem:[%s19937_s17 + $0x270] sm:$0xff]  }
 0xbbc   :  { %6477 = vmatprep.mubr.bf16.mxu0 %v18105_v48  ;;  %14210 = vmatprep.subr.bf16.mxu1 %v15843_v38  ;;  %v15848_v48 = vld [vmem:[%s19937_s17 + $0x138] sm:$0xff]   ;;  %v18321_v38 = vpop.permute.xlu0 %15416 }
 0xbbd   :  { %v15418_v53 = vunpack.i.l.bf16 %v18321_v38 }
 0xbbf   :  { %14211 = vmatpush3.bf16.msra.mxu1 %v15844_v40  ;;  %v15878_v40 = vld [vmem:[%s19937_s17 + $0x1b8] sm:$0xff]  }
 0xbc0   :  { %14212 = vmatprep.subr.bf16.mxu1 %v15847_v43  ;;  %v15876_v43 = vld [vmem:[%s19937_s17 + $0x230] sm:$0xff]  }
 0xbc3   :  { %6478 = vmatmul.mubr.bf16.vlgmr.msra.gmra.mrb[160].mxu0 %v18103_v2  ;;  %14213 = vmatpush3.bf16.msra.mxu1 %v15848_v48  ;;  %v15857_v2 = vld [vmem:[%s19937_s17 + $0x1d0] sm:$0xff]   ;;  %v15879_v48 = vld [vmem:[%s19937_s17 + $0x278] sm:$0xff]  }
 0xbc4   :  { %14221 = vmatpush3.bf16.msra.mxu0 %v15850_v50  ;;  %6820 = vmatprep.mubr.bf16.mxu0 %v6689_v55  ;;  %v15881_v50 = vld [vmem:[%s19937_s17 + $0x2c0] sm:$0xff]   ;;  %v15880_v55 = vld [vmem:[%s19937_s17 + $0x238] sm:$0xff]  }
 0xbc5   :  { %14222 = vmatprep.subr.bf16.mxu0 %v15853_v22  ;;  %14242 = vmatprep.subr.bf16.mxu1 %v15851_v56  ;;  %v15419_v22 = vunpack.i.h.bf16 %v18321_v38  ;;  %v6688_v56 = vrot.slane %v18249_v6, 4  ;;  %v15916_v38 = vld [vmem:[%s19937_s17 + $0x400] sm:$0xff]  }
 0xbc6   :  { %6646 = vmatmul.mubr.bf16.vlgmr.msra.gmra.mrb[176].mxu1 %v18249_v6  ;;  %v15883_v6 = vld [vmem:[%s19937_s17 + $0x340] sm:$0xff]  }
 0xbc7   :  { %14243 = vmatpush3.bf16.msra.mxu1 %v15852_v44  ;;  %6989 = vmatprep.mubr.bf16.mxu1 %v18257_v60  ;;  %v7033_v44 = vrot.slane %v18257_v60, 4  ;;  %v15887_v60 = vld [vmem:[%s19937_s17 + $0x348] sm:$0xff]  }
 0xbc8   :  { %14223 = vmatpush3.bf16.msra.mxu0 %v15854_v34  ;;  %14244 = vmatprep.subr.bf16.mxu1 %v15855_v59  ;;  %v6123_v34 = vmul.f32 %v15413_v49, %v18079_v26  ;;  %v6130_v59 = vmul.f32 %v15419_v22, %v18082_v7 }
 0xbc9   :  { %14224 = vmatprep.subr.bf16.mxu0 %v15857_v2  ;;  %v6128_v2 = vmul.f32 %v15418_v53, %v18082_v7 }
 0xbca   :  { %v18369_v49 = vpack.c.bf16 %v6125_v58, %v6123_v34  ;;  %v15912_v58 = vld [vmem:[%s19937_s17 + $0x338] sm:$0xff]  }
 0xbcb   :  { %14245 = vmatpush3.bf16.msra.mxu1 %v15856_v62  ;;  %v18377_v62 = vpack.c.bf16 %v6130_v59, %v6128_v2  ;;  %v6127_v59 = vmul.f32 %v15418_v53, %v18079_v26 }
 0xbcc   :  { %14225 = vmatpush3.bf16.msra.mxu0 %v15858_v61  ;;  %14246 = vmatprep.subr.bf16.mxu1 %v15859_v1  ;;  %v15889_v61 = vld [vmem:[%s19937_s17 + $0x2d0] sm:$0xff]   ;;  %v15888_v1 = vld [vmem:[%s19937_s17 + $0x308] sm:$0xff]   ;;  %v7032_v34 = vrot.slane %v18369_v49, 4 }
 0xbcd   :  { %14226 = vmatprep.subr.bf16.mxu0 %v15861_v63  ;;  %v15890_v63 = vld [vmem:[%s19937_s17 + $0x290] sm:$0xff]   ;;  %v7377_v2 = vrot.slane %v18377_v62, 4 }
 0xbcf   :  { %14247 = vmatpush3.bf16.msra.mxu1 %v15860_v8  ;;  %v15891_v8 = vld [vmem:[%s19937_s17 + $0x350] sm:$0xff]  }
 0xbd0   :  { %14227 = vmatpush3.bf16.msra.mxu0 %v15862_v5  ;;  %14248 = vmatprep.subr.bf16.mxu1 %v15863_v11  ;;  %v15893_v5 = vld [vmem:[%s19937_s17 + $0x2d8] sm:$0xff]   ;;  %v15892_v11 = vld [vmem:[%s19937_s17 + $0x310] sm:$0xff]  }
 0xbd1   :  { %14228 = vmatprep.subr.bf16.mxu0 %v15865_v9  ;;  %v15894_v9 = vld [vmem:[%s19937_s17 + $0x298] sm:$0xff]  }
 0xbd3   :  { %14249 = vmatpush3.bf16.msra.mxu1 %v15864_v17  ;;  %v15895_v17 = vld [vmem:[%s19937_s17 + $0x358] sm:$0xff]  }
 0xbd4   :  { %14229 = vmatpush3.bf16.msra.mxu0 %v15866_v12  ;;  %14250 = vmatprep.subr.bf16.mxu1 %v15867_v27  ;;  %v15897_v12 = vld [vmem:[%s19937_s17 + $0x2e0] sm:$0xff]   ;;  %v15896_v27 = vld [vmem:[%s19937_s17 + $0x318] sm:$0xff]  }
 0xbd5   :  { %14230 = vmatprep.subr.bf16.mxu0 %v15869_v23  ;;  %v15898_v23 = vld [vmem:[%s19937_s17 + $0x2a0] sm:$0xff]  }
 0xbd7   :  { %14251 = vmatpush3.bf16.msra.mxu1 %v15868_v14  ;;  %v15899_v14 = vld [vmem:[%s19937_s17 + $0x360] sm:$0xff]  }
 0xbd8   :  { %14231 = vmatpush3.bf16.msra.mxu0 %v15870_v24  ;;  %14252 = vmatprep.subr.bf16.mxu1 %v15871_v28  ;;  %v15901_v24 = vld [vmem:[%s19937_s17 + $0x2e8] sm:$0xff]   ;;  %v15900_v28 = vld [vmem:[%s19937_s17 + $0x320] sm:$0xff]  }
 0xbd9   :  { %14232 = vmatprep.subr.bf16.mxu0 %v15873_v3  ;;  %v15902_v3 = vld [vmem:[%s19937_s17 + $0x2a8] sm:$0xff]  }
 0xbdb   :  { %14253 = vmatpush3.bf16.msra.mxu1 %v15872_v33  ;;  %v15903_v33 = vld [vmem:[%s19937_s17 + $0x368] sm:$0xff]  }
 0xbdc   :  { %14233 = vmatpush3.bf16.msra.mxu0 %v15874_v29  ;;  %14254 = vmatprep.subr.bf16.mxu1 %v15875_v18  ;;  %v15905_v29 = vld [vmem:[%s19937_s17 + $0x2f0] sm:$0xff]   ;;  %v15904_v18 = vld [vmem:[%s19937_s17 + $0x328] sm:$0xff]  }
 0xbdd   :  { %14234 = vmatprep.subr.bf16.mxu0 %v15877_v35  ;;  %v15906_v35 = vld [vmem:[%s19937_s17 + $0x2b0] sm:$0xff]  }
 0xbdf   :  { %14255 = vmatpush3.bf16.msra.mxu1 %v15876_v43  ;;  %v15907_v43 = vld [vmem:[%s19937_s17 + $0x370] sm:$0xff]  }
 0xbe0   :  { %14235 = vmatpush3.bf16.msra.mxu0 %v15878_v40  ;;  %14256 = vmatprep.subr.bf16.mxu1 %v15879_v48  ;;  %v15909_v40 = vld [vmem:[%s19937_s17 + $0x2f8] sm:$0xff]   ;;  %v15908_v48 = vld [vmem:[%s19937_s17 + $0x330] sm:$0xff]  }
 0xbe1   :  { %14264 = vmatprep.subr.bf16.mxu0 %v15881_v50  ;;  %v15910_v50 = vld [vmem:[%s19937_s17 + $0x2b8] sm:$0xff]  }
 0xbe3   :  { %6821 = vmatmul.mubr.bf16.vlgmr.msra.gmra.mrb[164].mxu0 %v6688_v56  ;;  %14257 = vmatpush3.bf16.msra.mxu1 %v15880_v55  ;;  %v15911_v55 = vld [vmem:[%s19937_s17 + $0x378] sm:$0xff]   ;;  %v18453_v56 = vpop.permute.xlu1 %6101 }
 0xbe4   :  { %14265 = vmatpush3.bf16.msra.mxu0 %v15882_v54  ;;  %7164 = vmatprep.mubr.bf16.mxu0 %v7033_v44  ;;  %v15913_v54 = vld [vmem:[%s19937_s17 + $0x3c0] sm:$0xff]   ;;  %v15917_v44 = vld [vmem:[%s19937_s17 + $0x3c8] sm:$0xff]  }
 0xbe5   :  { %14266 = vmatprep.subr.bf16.mxu0 %v15885_v57  ;;  %14286 = vmatprep.subr.bf16.mxu1 %v15883_v6  ;;  %v15914_v57 = vld [vmem:[%s19937_s17 + $0x380] sm:$0xff]   ;;  %v6129_v6 = vmul.f32 %v15419_v22, %v18079_v26  ;;  %v15918_v22 = vld [vmem:[%s19937_s17 + $0x388] sm:$0xff]  }
 0xbe6   :  { %6990 = vmatmul.mubr.bf16.vlgmr.msra.gmra.mrb[180].mxu1 %v18369_v49  ;;  %v15919_v49 = vld [vmem:[%s19937_s17 + $0x448] sm:$0xff]  }
 0xbe7   :  { %14287 = vmatpush3.bf16.msra.mxu1 %v15884_v47  ;;  %7333 = vmatprep.mubr.bf16.mxu1 %v18377_v62  ;;  %v6132_v47 = vmul.f32 %v18082_v7, %v18453_v56  ;;  %v6139_v53 = vpack.c.bf16 %v6129_v6, %v6127_v59  ;;  %v15922_v62 = vld [vmem:[%s19937_s17 + $0x390] sm:$0xff]  }
 0xbe8   :  { %14267 = vmatpush3.bf16.msra.mxu0 %v15886_v39  ;;  %14288 = vmatprep.subr.bf16.mxu1 %v15887_v60  ;;  %v15915_v39 = vld [vmem:[%s19937_s17 + $0x440] sm:$0xff]   ;;  %v15921_v60 = vld [vmem:[%s19937_s17 + $0x3d0] sm:$0xff]  }
 0xbe9   :  { %14268 = vmatprep.subr.bf16.mxu0 %v15889_v61  ;;  %v6142_v61 = vpack.c.bf16 %v6132_v47, %v6132_v47 }
 0xbeb   :  { %14289 = vmatpush3.bf16.msra.mxu1 %v15888_v1  ;;  %v15925_v1 = vld [vmem:[%s19937_s17 + $0x3d8] sm:$0xff]  }
 0xbec   :  { %14269 = vmatpush3.bf16.msra.mxu0 %v15890_v63  ;;  %14290 = vmatprep.subr.bf16.mxu1 %v15891_v8  ;;  %v15920_v63 = vld [vmem:[%s19937_s17 + $0x408] sm:$0xff]   ;;  %v15926_v8 = vld [vmem:[%s19937_s17 + $0x398] sm:$0xff]  }
 0xbed   :  { %14270 = vmatprep.subr.bf16.mxu0 %v15893_v5  ;;  %v15923_v5 = vld [vmem:[%s19937_s17 + $0x450] sm:$0xff]  }
 0xbef   :  { %14291 = vmatpush3.bf16.msra.mxu1 %v15892_v11  ;;  %v15929_v11 = vld [vmem:[%s19937_s17 + $0x3e0] sm:$0xff]  }
 0xbf0   :  { %14271 = vmatpush3.bf16.msra.mxu0 %v15894_v9  ;;  %14292 = vmatprep.subr.bf16.mxu1 %v15895_v17  ;;  %v15924_v9 = vld [vmem:[%s19937_s17 + $0x410] sm:$0xff]   ;;  %v15930_v17 = vld [vmem:[%s19937_s17 + $0x3a0] sm:$0xff]  }
 0xbf1   :  { %14272 = vmatprep.subr.bf16.mxu0 %v15897_v12  ;;  %v15927_v12 = vld [vmem:[%s19937_s17 + $0x458] sm:$0xff]  }
 0xbf3   :  { %14293 = vmatpush3.bf16.msra.mxu1 %v15896_v27  ;;  %v15933_v27 = vld [vmem:[%s19937_s17 + $0x3e8] sm:$0xff]  }
 0xbf4   :  { %14273 = vmatpush3.bf16.msra.mxu0 %v15898_v23  ;;  %14294 = vmatprep.subr.bf16.mxu1 %v15899_v14  ;;  %v15928_v23 = vld [vmem:[%s19937_s17 + $0x418] sm:$0xff]   ;;  %v15934_v14 = vld [vmem:[%s19937_s17 + $0x3a8] sm:$0xff]  }
 0xbf5   :  { %14274 = vmatprep.subr.bf16.mxu0 %v15901_v24  ;;  %v15931_v24 = vld [vmem:[%s19937_s17 + $0x460] sm:$0xff]  }
 0xbf7   :  { %14295 = vmatpush3.bf16.msra.mxu1 %v15900_v28  ;;  %v15937_v28 = vld [vmem:[%s19937_s17 + $0x3f0] sm:$0xff]  }
 0xbf8   :  { %14275 = vmatpush3.bf16.msra.mxu0 %v15902_v3  ;;  %14296 = vmatprep.subr.bf16.mxu1 %v15903_v33  ;;  %v15932_v3 = vld [vmem:[%s19937_s17 + $0x420] sm:$0xff]   ;;  %v15938_v33 = vld [vmem:[%s19937_s17 + $0x3b0] sm:$0xff]  }
 0xbf9   :  { %14276 = vmatprep.subr.bf16.mxu0 %v15905_v29  ;;  %v15935_v29 = vld [vmem:[%s19937_s17 + $0x468] sm:$0xff]  }
 0xbfb   :  { %14297 = vmatpush3.bf16.msra.mxu1 %v15904_v18  ;;  %v15941_v18 = vld [vmem:[%s19937_s17 + $0x3f8] sm:$0xff]  }
 0xbfc   :  { %14277 = vmatpush3.bf16.msra.mxu0 %v15906_v35  ;;  %14298 = vmatprep.subr.bf16.mxu1 %v15907_v43  ;;  %v15936_v35 = vld [vmem:[%s19937_s17 + $0x428] sm:$0xff]   ;;  %v15942_v43 = vld [vmem:[%s19937_s17 + $0x3b8] sm:$0xff]  }
 0xbfd   :  { %14278 = vmatprep.subr.bf16.mxu0 %v15909_v40  ;;  %v15939_v40 = vld [vmem:[%s19937_s17 + $0x470] sm:$0xff]  }
 0xbff   :  { %14299 = vmatpush3.bf16.msra.mxu1 %v15908_v48  ;;  %v15943_v48 = vld [vmem:[%s19937_s17 + $0x478] sm:$0xff]  }
 0xc00   :  { %14279 = vmatpush3.bf16.msra.mxu0 %v15910_v50  ;;  %14300 = vmatprep.subr.bf16.mxu1 %v15911_v55  ;;  %v15940_v50 = vld [vmem:[%s19937_s17 + $0x430] sm:$0xff]   ;;  %v7376_v55 = vrot.slane %v6139_v53, 4 }
 0xc01   :  { %14308 = vmatprep.subr.bf16.mxu0 %v15913_v54  ;;  %v15944_v54 = vld [vmem:[%s19937_s17 + $0x438] sm:$0xff]  }
 0xc03   :  { %7165 = vmatmul.mubr.bf16.vlgmr.msra.gmra.mrb[168].mxu0 %v7032_v34  ;;  %14301 = vmatpush3.bf16.msra.mxu1 %v15912_v58 }
 0xc04   :  { %14309 = vmatpush3.bf16.msra.mxu0 %v15914_v57  ;;  %7508 = vmatprep.mubr.bf16.mxu0 %v7377_v2  ;;  %v6131_v57 = vmul.f32 %v18079_v26, %v18453_v56 }
 0xc05   :  { %14310 = vmatprep.subr.bf16.mxu0 %v15917_v44  ;;  %14330 = vmatprep.subr.bf16.mxu1 %v15915_v39 }
 0xc06   :  { %7334 = vmatmul.mubr.bf16.vlgmr.msra.gmra.mrb[184].mxu1 %v6139_v53  ;;  %v6141_v58 = vpack.c.bf16 %v6131_v57, %v6131_v57 }
 0xc07   :  { %14331 = vmatpush3.bf16.msra.mxu1 %v15916_v38  ;;  %7677 = vmatprep.mubr.bf16.mxu1 %v6142_v61 }
 0xc08   :  { %14311 = vmatpush3.bf16.msra.mxu0 %v15918_v22  ;;  %14332 = vmatprep.subr.bf16.mxu1 %v15919_v49 }
 0xc09   :  { %14312 = vmatprep.subr.bf16.mxu0 %v15921_v60 }
 0xc0b   :  { %14333 = vmatpush3.bf16.msra.mxu1 %v15920_v63 }
 0xc0c   :  { %14313 = vmatpush3.bf16.msra.mxu0 %v15922_v62  ;;  %14334 = vmatprep.subr.bf16.mxu1 %v15923_v5 }
 0xc0d   :  { %14314 = vmatprep.subr.bf16.mxu0 %v15925_v1 }
 0xc0f   :  { %14335 = vmatpush3.bf16.msra.mxu1 %v15924_v9 }
 0xc10   :  { %14315 = vmatpush3.bf16.msra.mxu0 %v15926_v8  ;;  %14336 = vmatprep.subr.bf16.mxu1 %v15927_v12 }
 0xc11   :  { %14316 = vmatprep.subr.bf16.mxu0 %v15929_v11 }
 0xc13   :  { %14337 = vmatpush3.bf16.msra.mxu1 %v15928_v23 }
 0xc14   :  { %14317 = vmatpush3.bf16.msra.mxu0 %v15930_v17  ;;  %14338 = vmatprep.subr.bf16.mxu1 %v15931_v24 }
 0xc15   :  { %14318 = vmatprep.subr.bf16.mxu0 %v15933_v27 }
 0xc17   :  { %14339 = vmatpush3.bf16.msra.mxu1 %v15932_v3 }
 0xc18   :  { %14319 = vmatpush3.bf16.msra.mxu0 %v15934_v14  ;;  %14340 = vmatprep.subr.bf16.mxu1 %v15935_v29 }
 0xc19   :  { %14320 = vmatprep.subr.bf16.mxu0 %v15937_v28 }
 0xc1b   :  { %14341 = vmatpush3.bf16.msra.mxu1 %v15936_v35 }
 0xc1c   :  { %14321 = vmatpush3.bf16.msra.mxu0 %v15938_v33  ;;  %14342 = vmatprep.subr.bf16.mxu1 %v15939_v40 }
 0xc1d   :  { %14322 = vmatprep.subr.bf16.mxu0 %v15941_v18 }
 0xc1f   :  { %14343 = vmatpush3.bf16.msra.mxu1 %v15940_v50 }
 0xc20   :  { %14323 = vmatpush3.bf16.msra.mxu0 %v15942_v43  ;;  %14344 = vmatprep.subr.bf16.mxu1 %v15943_v48 }
 0xc21   :  { %14910 = vmatprep.subr.bf16.mxu0 %v19921_v20 }
 0xc23   :  { %7509 = vmatmul.mubr.bf16.vlgmr.msra.gmra.mrb[172].mxu0 %v7376_v55  ;;  %14345 = vmatpush3.bf16.msra.mxu1 %v15944_v54 }
 0xc24   :  { %14912 = vmatprep.mubr.msk.bf16.mxu0 %vm16195_vm0, %v19921_v20  ;;  %14948 = vmatprep.subr.bf16.mxu1 %v19921_v20 }
 0xc26   :  { %7678 = vmatmul.mubr.bf16.vlgmr.msra.gmra.mrb[188].mxu1 %v6141_v58 }
 0xc27   :  { %14956 = vmatprep.mubr.msk.bf16.mxu1 %vm16195_vm0, %v19921_v20 }
 0xc6e   :  { %v18569_v34 = vpop.f32.mrb[140].mxu0 }
 0xc6f   :  { %v18571_v44 = vpop.f32.mrb[141].mxu0 }
 0xc70   :  { %v18573_v6 = vpop.f32.mrb[142].mxu0 }
 0xc71   :  { %v18575_v56 = vpop.f32.mrb[143].mxu0 }
 0xc76   :  { %v18577_v59 = vpop.f32.mrb[144].mxu0 }
 0xc77   :  { %v18579_v2 = vpop.f32.mrb[145].mxu0 }
 0xc78   :  { %v18581_v39 = vpop.f32.mrb[146].mxu0 }
 0xc79   :  { %v18583_v47 = vpop.f32.mrb[147].mxu0  ;;  %v14170_v22 = vpop.f32.mrb[172].mxu1 }
 0xc7a   :  { %v14171_v38 = vpop.f32.mrb[173].mxu1 }
 0xc7b   :  { %v14172_v53 = vadd.f32 %v14171_v38, %v14170_v22  ;;  %v14173_v49 = vpop.f32.mrb[174].mxu1 }
 0xc7c   :  { %v14174_v60 = vpop.f32.mrb[175].mxu1 }
 0xc7e   :  { %v18585_v61 = vpop.f32.mrb[148].mxu0 }
 0xc7f   :  { %v18587_v62 = vpop.f32.mrb[149].mxu0 }
 0xc80   :  { %v18589_v63 = vpop.f32.mrb[150].mxu0 }
 0xc81   :  { %v18591_v1 = vpop.f32.mrb[151].mxu0 }
 0xc86   :  { %v18593_v5 = vpop.f32.mrb[152].mxu0 }
 0xc87   :  { %v18595_v8 = vpop.f32.mrb[153].mxu0 }
 0xc88   :  { %v18597_v9 = vpop.f32.mrb[154].mxu0 }
 0xc89   :  { %v18599_v11 = vpop.f32.mrb[155].mxu0 }
 0xc8e   :  { %v18601_v12 = vpop.f32.mrb[156].mxu0 }
 0xc8f   :  { %v18603_v17 = vpop.f32.mrb[157].mxu0 }
 0xc90   :  { %v5903_v23 = vpop.f32.mrb[158].mxu0 }
 0xc91   :  { %v5904_v27 = vpop.f32.mrb[159].mxu0 }
 0xc96   :  { %v14192_v24 = vpop.f32.mrb[160].mxu0 }
 0xc97   :  { %v14193_v14 = vpop.f32.mrb[161].mxu0 }
 0xc98   :  { %v14194_v3 = vadd.f32 %v14193_v14, %v14192_v24  ;;  %v14195_v28 = vpop.f32.mrb[162].mxu0 }
 0xc99   :  { %v14196_v29 = vpop.f32.mrb[163].mxu0  ;;  %v14214_v35 = vpop.f32.mrb[176].mxu1 }
 0xc9a   :  { %v6480_v33 = vadd.f32 %v14194_v3, %v14172_v53  ;;  %v14215_v18 = vpop.f32.mrb[177].mxu1  ;;  %v15954_v53 = vld [vmem:[%s19881_s2 + $0x20] sm:$0xff]  }
 0xc9b   :  { %v14216_v40 = vadd.f32 %v14215_v18, %v14214_v35  ;;  %v14217_v43 = vpop.f32.mrb[178].mxu1  ;;  %14949 = vmatpush3.bf16.msra.mxu1 %v15954_v53 }
 0xc9c   :  { %v14218_v50 = vpop.f32.mrb[179].mxu1  ;;  %14950 = vmatprep.subr.bf16.mxu1 %v19921_v20 }
 0xc9d   :  { %v6653_v48 = vadd.f32 %v14216_v40, %v6480_v33 }
 0xcb6   :  { %v14236_v54 = vpop.f32.mrb[164].mxu0 }
 0xcb7   :  { %v14237_v55 = vpop.f32.mrb[165].mxu0 }
 0xcb8   :  { %v14238_v57 = vadd.f32 %v14237_v55, %v14236_v54  ;;  %v14239_v58 = vpop.f32.mrb[166].mxu0 }
 0xcb9   :  { %v14240_v22 = vpop.f32.mrb[167].mxu0  ;;  %v14258_v49 = vpop.f32.mrb[180].mxu1 }
 0xcba   :  { %v6828_v38 = vadd.f32 %v14238_v57, %v6653_v48  ;;  %v14259_v60 = vpop.f32.mrb[181].mxu1 }
 0xcbb   :  { %v14260_v23 = vadd.f32 %v14259_v60, %v14258_v49  ;;  %v14261_v27 = vpop.f32.mrb[182].mxu1 }
 0xcbc   :  { %v14262_v24 = vpop.f32.mrb[183].mxu1 }
 0xcbd   :  { %v6997_v14 = vadd.f32 %v14260_v23, %v6828_v38 }
 0xcd6   :  { %v14280_v3 = vpop.f32.mrb[168].mxu0 }
 0xcd7   :  { %v14281_v28 = vpop.f32.mrb[169].mxu0 }
 0xcd8   :  { %v14282_v29 = vadd.f32 %v14281_v28, %v14280_v3  ;;  %v14283_v33 = vpop.f32.mrb[170].mxu0 }
 0xcd9   :  { %v14284_v35 = vpop.f32.mrb[171].mxu0  ;;  %v14302_v40 = vpop.f32.mrb[184].mxu1 }
 0xcda   :  { %v7172_v18 = vadd.f32 %v14282_v29, %v6997_v14  ;;  %v14303_v43 = vpop.f32.mrb[185].mxu1  ;;  %v7690_v33 = vpop.permute.xlu0 %7689 }
 0xcdb   :  { %v14304_v50 = vadd.f32 %v14303_v43, %v14302_v40  ;;  %v14305_v48 = vpop.f32.mrb[186].mxu1  ;;  %v15945_v43 = vld [vmem:[%s19880_s8] sm:$0xff]  }
 0xcdc   :  { %v14306_v54 = vpop.f32.mrb[187].mxu1  ;;  %v15947_v48 = vld [vmem:[%s19880_s8 + $0x10] sm:$0xff]  }
 0xcdd   :  { %v7341_v55 = vadd.f32 %v14304_v50, %v7172_v18  ;;  %v15946_v50 = vld [vmem:[%s19880_s8 + $0x8] sm:$0xff]   ;;  %v15948_v54 = vld [vmem:[%s19880_s8 + $0x18] sm:$0xff]  }
 0xcf6   :  { %v14324_v57 = vpop.f32.mrb[172].mxu0 }
 0xcf7   :  { %v14325_v58 = vpop.f32.mrb[173].mxu0 }
 0xcf8   :  { %v14326_v22 = vadd.f32 %v14325_v58, %v14324_v57  ;;  %v14327_v38 = vpop.f32.mrb[174].mxu0  ;;  %v15950_v57 = vld [vmem:[%s19880_s8 + $0x28] sm:$0xff]   ;;  %v15951_v58 = vld [vmem:[%s19880_s8 + $0x30] sm:$0xff]  }
 0xcf9   :  { %v14328_v49 = vpop.f32.mrb[175].mxu0  ;;  %v14346_v23 = vpop.f32.mrb[188].mxu1  ;;  %v15953_v38 = vld [vmem:[%s19880_s8 + $0x40] sm:$0xff]  }
 0xcfa   :  { %v7516_v60 = vadd.f32 %v14326_v22, %v7341_v55  ;;  %v14347_v27 = vpop.f32.mrb[189].mxu1  ;;  %v15949_v55 = vld [vmem:[%s19880_s8 + $0x20] sm:$0xff]   ;;  %v15952_v22 = vld [vmem:[%s19880_s8 + $0x38] sm:$0xff]   ;;  %v15955_v49 = vld [vmem:[%s19881_s2 + $0x28] sm:$0xff]  }
 0xcfb   :  { %v14348_v24 = vadd.f32 %v14347_v27, %v14346_v23  ;;  %v14349_v53 = vpop.f32.mrb[190].mxu1  ;;  %14951 = vmatpush3.bf16.msra.mxu1 %v15955_v49  ;;  %v15957_v23 = vld [vmem:[%s19881_s2 + $0x38] sm:$0xff]   ;;  %v15961_v27 = vld [vmem:[%s19881_s2 + $0x60] sm:$0xff]  }
 0xcfc   :  { %v14350_v3 = vpop.f32.mrb[191].mxu1  ;;  %14952 = vmatprep.subr.bf16.mxu1 %v19921_v20  ;;  %v15967_v53 = vld [vmem:[%s19881_s2 + $0x70] sm:$0xff]  }
 0xcfd   :  { %v7685_v28 = vadd.f32 %v14348_v24, %v7516_v60  ;;  %v15956_v60 = vld [vmem:[%s19881_s2 + $0x30] sm:$0xff]   ;;  %v15965_v24 = vld [vmem:[%s19881_s2 + $0x68] sm:$0xff]   ;;  %v15969_v3 = vld [vmem:[%s19881_s2 + $0x78] sm:$0xff]  }
 0xcff   :  { %v7692_v14 = vadd.f32 %v7690_v33, %v7685_v28  ;;  %14953 = vmatpush3.bf16.msra.mxu1 %v15956_v60 }
 0xd00   :  { %14954 = vmatprep.subr.bf16.mxu1 %v19921_v20 }
 0xd01   :  { %v7694_v29 = vmul.f32 0.2, %v7692_v14  ;;  %vm7693_vm12 = vcmp.ge.f32.partialorder %v7692_v14, 0.0 }
 0xd03   :  { %v7695_v35 = vsel %vm7693_vm12, %v7692_v14, %v7694_v29  ;;  %14955 = vmatpush3.bf16.msra.mxu1 %v15957_v23 }
 0xd04   :  { %v7696_v40 = vpack.c.bf16 %v7695_v35, %v7695_v35  ;;  %14960 = vmatprep.subr.bf16.mxu1 %v19921_v20 }
 0xd06   :  { %v18610_v18 = vsel %vm1831_vm2, %v7696_v40, 0 }
 0xd07   :  { %14911 = vmatpush3.bf16.msra.mxu0 %v18610_v18 }
 0xd08   :  { %14984 = vmatprep.subr.bf16.mxu0 %v19921_v20 }
 0xd0a   :  { %14913 = vmatmul.mubr.msk.bf16.vlgmr.msra.gmra.mrb[176].mxu0 %vm1803_vm3, %v15945_v43 }
 0xd0b   :  { %14916 = vmatprep.mubr.msk.bf16.mxu0 %vm16195_vm0, %v19921_v20  ;;  %14985 = vmatpush3.bf16.msra.mxu0 %v15961_v27  ;;  %v15962_v27 = vld [vmem:[%s19881_s2 + $0x18] sm:$0xff]  }
 0xd0c   :  { %14986 = vmatprep.subr.bf16.mxu0 %v19921_v20 }
 0xd0f   :  { %14987 = vmatpush3.bf16.msra.mxu0 %v15965_v24 }
 0xd10   :  { %14988 = vmatprep.subr.bf16.mxu0 %v19921_v20 }
 0xd12   :  { %14917 = vmatmul.mubr.msk.bf16.gmra.mrb[180].mxu0 %vm1803_vm3, %v15946_v50 }
 0xd13   :  { %14920 = vmatprep.mubr.msk.bf16.mxu0 %vm16195_vm0, %v19921_v20  ;;  %14989 = vmatpush3.bf16.msra.mxu0 %v15967_v53 }
 0xd14   :  { %14990 = vmatprep.subr.bf16.mxu0 %v19921_v20 }
 0xd17   :  { %14991 = vmatpush3.bf16.msra.mxu0 %v15969_v3  ;;  %v15963_v3 = vld [vmem:[%s19881_s2 + $0x40] sm:$0xff]  }
 0xd18   :  { %15008 = vmatprep.subr.bf16.mxu0 %v19921_v20 }
 0xd1a   :  { %14921 = vmatmul.mubr.msk.bf16.gmra.mrb[184].mxu0 %vm1803_vm3, %v15947_v48  ;;  %v15958_v48 = vld [vmem:[%s19881_s2] sm:$0xff]  }
 0xd1b   :  { %14924 = vmatprep.mubr.msk.bf16.mxu0 %vm16195_vm0, %v19921_v20 }
 0xd22   :  { %14925 = vmatmul.mubr.msk.bf16.gmra.mrb[188].mxu0 %vm1803_vm3, %v15948_v54 }
 0xd23   :  { %14928 = vmatprep.mubr.msk.bf16.mxu0 %vm16195_vm0, %v19921_v20 }
 0xd2a   :  { %14929 = vmatmul.mubr.msk.bf16.gmra.mrb[192].mxu0 %vm1803_vm3, %v15949_v55 }
 0xd2b   :  { %14932 = vmatprep.mubr.msk.bf16.mxu0 %vm16195_vm0, %v19921_v20 }
 0xd32   :  { %14933 = vmatmul.mubr.msk.bf16.gmra.mrb[196].mxu0 %vm1803_vm3, %v15950_v57  ;;  %v15959_v57 = vld [vmem:[%s19881_s2 + $0x8] sm:$0xff]  }
 0xd33   :  { %14936 = vmatprep.mubr.msk.bf16.mxu0 %vm16195_vm0, %v19921_v20 }
 0xd3a   :  { %14937 = vmatmul.mubr.msk.bf16.gmra.mrb[200].mxu0 %vm1803_vm3, %v15951_v58 }
 0xd3b   :  { %14940 = vmatprep.mubr.msk.bf16.mxu0 %vm16195_vm0, %v19921_v20 }
 0xd42   :  { %14941 = vmatmul.mubr.msk.bf16.gmra.mrb[204].mxu0 %vm1803_vm3, %v15952_v22 }
 0xd43   :  { %14944 = vmatprep.mubr.msk.bf16.mxu0 %vm16195_vm0, %v19921_v20 }
 0xd4a   :  { %14945 = vmatmul.mubr.msk.bf16.gmra.mrb[208].mxu0 %vm1803_vm3, %v15953_v38  ;;  %v15960_v38 = vld [vmem:[%s19881_s2 + $0x10] sm:$0xff]  }
 0xd4b   :  { %14992 = vmatprep.mubr.msk.bf16.mxu0 %vm16195_vm0, %v19921_v20 }
 0xddd   :  { %v7824_v28 = vpop.f32.mrb[176].mxu0 }
 0xdde   :  { %v14914_v33 = vpop.f32.mrb[177].mxu0 }
 0xddf   :  { %v7827_v14 = vpop.f32.mrb[178].mxu0 }
 0xde0   :  { %v7895_v29 = vpack.c.bf16 %v7827_v14, %v7824_v28  ;;  %v14915_v35 = vpop.f32.mrb[179].mxu0 }
 0xde1   :  { %v15971_v35 = vld [vmem:[%s19881_s2 + $0xa0] sm:$0xff]  }
 0xde5   :  { %v7832_v40 = vpop.f32.mrb[180].mxu0 }
 0xde6   :  { %v14918_v43 = vpop.f32.mrb[181].mxu0 }
 0xde7   :  { %v7835_v50 = vpop.f32.mrb[182].mxu0  ;;  %v15973_v43 = vld [vmem:[%s19881_s2 + $0xa8] sm:$0xff]  }
 0xde8   :  { %v7896_v54 = vpack.c.bf16 %v7835_v50, %v7832_v40  ;;  %v14919_v55 = vpop.f32.mrb[183].mxu0  ;;  %v15964_v40 = vld [vmem:[%s19881_s2 + $0x48] sm:$0xff]  }
 0xdea   :  { %14957 = vmatmul.mubr.msk.bf16.vlgmr.msra.gmra.mrb[192].mxu1 %vm1990_vm4, %v7896_v54 }
 0xdeb   :  { %14961 = vmatpush3.bf16.msra.mxu1 %v15958_v48  ;;  %14968 = vmatprep.mubr.msk.bf16.mxu1 %vm16195_vm0, %v19921_v20  ;;  %v15966_v48 = vld [vmem:[%s19881_s2 + $0x50] sm:$0xff]  }
 0xdec   :  { %14962 = vmatprep.subr.bf16.mxu1 %v19921_v20 }
 0xded   :  { %v7840_v58 = vpop.f32.mrb[184].mxu0 }
 0xdee   :  { %v14922_v22 = vpop.f32.mrb[185].mxu0 }
 0xdef   :  { %14963 = vmatpush3.bf16.msra.mxu1 %v15959_v57  ;;  %v7843_v49 = vpop.f32.mrb[186].mxu0  ;;  %v15968_v22 = vld [vmem:[%s19881_s2 + $0x58] sm:$0xff]  }
 0xdf0   :  { %14964 = vmatprep.subr.bf16.mxu1 %v19921_v20  ;;  %v7897_v60 = vpack.c.bf16 %v7843_v49, %v7840_v58  ;;  %v14923_v23 = vpop.f32.mrb[187].mxu0  ;;  %v15975_v58 = vld [vmem:[%s19881_s2 + $0xb0] sm:$0xff]  }
 0xdf3   :  { %14965 = vmatpush3.bf16.msra.mxu1 %v15960_v38  ;;  %v15977_v38 = vld [vmem:[%s19881_s2 + $0xb8] sm:$0xff]  }
 0xdf4   :  { %14966 = vmatprep.subr.bf16.mxu1 %v19921_v20 }
 0xdf5   :  { %v7848_v24 = vpop.f32.mrb[188].mxu0 }
 0xdf6   :  { %v14926_v53 = vpop.f32.mrb[189].mxu0 }
 0xdf7   :  { %14967 = vmatpush3.bf16.msra.mxu1 %v15962_v27  ;;  %v7851_v28 = vpop.f32.mrb[190].mxu0  ;;  %v15970_v27 = vld [vmem:[%s19881_s2 + $0x80] sm:$0xff]  }
 0xdf8   :  { %14972 = vmatprep.subr.bf16.mxu1 %v19921_v20  ;;  %v7898_v33 = vpack.c.bf16 %v7851_v28, %v7848_v24  ;;  %v14927_v14 = vpop.f32.mrb[191].mxu0  ;;  %v15979_v28 = vld [vmem:[%s19881_s2 + $0xe0] sm:$0xff]  }
 0xdf9   :  { %v15981_v14 = vld [vmem:[%s19881_s2 + $0xe8] sm:$0xff]  }
 0xdfa   :  { %14969 = vmatmul.mubr.msk.bf16.vlgmr.msra.gmra.mrb[196].mxu1 %vm1990_vm4, %v7895_v29  ;;  %14993 = vmatmul.mubr.msk.bf16.vlgmr.msra.gmra.mrb[212].mxu0 %vm1990_vm4, %v7898_v33  ;;  %v15972_v33 = vld [vmem:[%s19881_s2 + $0x88] sm:$0xff]  }
 0xdfb   :  { %14973 = vmatpush3.bf16.msra.mxu1 %v15963_v3  ;;  %14980 = vmatprep.mubr.msk.bf16.mxu1 %vm16195_vm0, %v19921_v20 }
 0xdfc   :  { %14974 = vmatprep.subr.bf16.mxu1 %v19921_v20  ;;  %15009 = vmatpush3.bf16.msra.mxu0 %v15971_v35 }
 0xdfd   :  { %15010 = vmatprep.subr.bf16.mxu0 %v19921_v20  ;;  %v18733_v29 = vpop.f32.mrb[192].mxu0  ;;  %15016 = vmatprep.mubr.msk.bf16.mxu0 %vm16195_vm0, %v19921_v20 }
 0xdfe   :  { %v14930_v50 = vpop.f32.mrb[193].mxu0 }
 0xdff   :  { %14975 = vmatpush3.bf16.msra.mxu1 %v15964_v40  ;;  %v7859_v54 = vpop.f32.mrb[194].mxu0  ;;  %v15974_v40 = vld [vmem:[%s19881_s2 + $0x90] sm:$0xff]  }
 0xe00   :  { %14976 = vmatprep.subr.bf16.mxu1 %v19921_v20  ;;  %15011 = vmatpush3.bf16.msra.mxu0 %v15973_v43  ;;  %v7899_v55 = vpack.c.bf16 %v7859_v54, %v18733_v29  ;;  %v14931_v57 = vpop.f32.mrb[195].mxu0  ;;  %v15976_v54 = vld [vmem:[%s19881_s2 + $0x98] sm:$0xff]  }
 0xe01   :  { %15012 = vmatprep.subr.bf16.mxu0 %v19921_v20 }
 0xe03   :  { %14977 = vmatpush3.bf16.msra.mxu1 %v15966_v48  ;;  %v15983_v48 = vld [vmem:[%s19881_s2 + $0xf0] sm:$0xff]  }
 0xe04   :  { %14978 = vmatprep.subr.bf16.mxu1 %v19921_v20  ;;  %15013 = vmatpush3.bf16.msra.mxu0 %v15975_v58  ;;  %v15985_v58 = vld [vmem:[%s19881_s2 + $0xf8] sm:$0xff]  }
 0xe05   :  { %v7864_v49 = vpop.f32.mrb[196].mxu0  ;;  %15014 = vmatprep.subr.bf16.mxu0 %v19921_v20 }
 0xe06   :  { %v14934_v23 = vpop.f32.mrb[197].mxu0 }
 0xe07   :  { %14979 = vmatpush3.bf16.msra.mxu1 %v15968_v22  ;;  %v7867_v24 = vpop.f32.mrb[198].mxu0 }
 0xe08   :  { %14996 = vmatprep.subr.bf16.mxu1 %v19921_v20  ;;  %v7900_v53 = vpack.c.bf16 %v7867_v24, %v7864_v49  ;;  %15015 = vmatpush3.bf16.msra.mxu0 %v15977_v38  ;;  %v14935_v3 = vpop.f32.mrb[199].mxu0  ;;  %v15978_v38 = vld [vmem:[%s19881_s2 + $0xc0] sm:$0xff]   ;;  %v15980_v24 = vld [vmem:[%s19881_s2 + $0xc8] sm:$0xff]  }
 0xe09   :  { %15032 = vmatprep.subr.bf16.mxu0 %v19921_v20 }
 0xe0a   :  { %14981 = vmatmul.mubr.msk.bf16.vlgmr.msra.gmra.mrb[200].mxu1 %vm1990_vm4, %v7897_v60 }
 0xe0b   :  { %14997 = vmatpush3.bf16.msra.mxu1 %v15970_v27  ;;  %15004 = vmatprep.mubr.msk.bf16.mxu1 %vm16195_vm0, %v19921_v20 }
 0xe0c   :  { %14998 = vmatprep.subr.bf16.mxu1 %v19921_v20  ;;  %15017 = vmatmul.mubr.msk.bf16.vlgmr.msra.gmra.mrb[216].mxu0 %vm1990_vm4, %v7900_v53 }
 0xe0d   :  { %15033 = vmatpush3.bf16.msra.mxu0 %v15979_v28  ;;  %v7872_v35 = vpop.f32.mrb[200].mxu0  ;;  %15040 = vmatprep.mubr.msk.bf16.mxu0 %vm16195_vm0, %v19921_v20 }
 0xe0e   :  { %15034 = vmatprep.subr.bf16.mxu0 %v19921_v20  ;;  %v14938_v60 = vpop.f32.mrb[201].mxu0 }
 0xe0f   :  { %14999 = vmatpush3.bf16.msra.mxu1 %v15972_v33  ;;  %v7875_v43 = vpop.f32.mrb[202].mxu0  ;;  %v15986_v60 = vld [vmem:[%s19881_s2 + $0x100] sm:$0xff]  }
 0xe10   :  { %15000 = vmatprep.subr.bf16.mxu1 %v19921_v20  ;;  %v7901_v29 = vpack.c.bf16 %v7875_v43, %v7872_v35  ;;  %v14939_v50 = vpop.f32.mrb[203].mxu0  ;;  %v15984_v35 = vld [vmem:[%s19881_s2 + $0xd8] sm:$0xff]   ;;  %v15988_v43 = vld [vmem:[%s19881_s2 + $0x110] sm:$0xff]  }
 0xe11   :  { %15035 = vmatpush3.bf16.msra.mxu0 %v15981_v14 }
 0xe12   :  { %15036 = vmatprep.subr.bf16.mxu0 %v19921_v20 }
 0xe13   :  { %15001 = vmatpush3.bf16.msra.mxu1 %v15974_v40  ;;  %v15987_v40 = vld [vmem:[%s19881_s2 + $0x108] sm:$0xff]  }
 0xe14   :  { %15002 = vmatprep.subr.bf16.mxu1 %v19921_v20 }
 0xe15   :  { %15037 = vmatpush3.bf16.msra.mxu0 %v15983_v48  ;;  %v7880_v57 = vpop.f32.mrb[204].mxu0 }
 0xe16   :  { %v14942_v22 = vpop.f32.mrb[205].mxu0  ;;  %15038 = vmatprep.subr.bf16.mxu0 %v19921_v20 }
 0xe17   :  { %15003 = vmatpush3.bf16.msra.mxu1 %v15976_v54  ;;  %v7883_v49 = vpop.f32.mrb[206].mxu0 }
 0xe18   :  { %15020 = vmatprep.subr.bf16.mxu1 %v19921_v20  ;;  %v7902_v23 = vpack.c.bf16 %v7883_v49, %v7880_v57  ;;  %v14943_v27 = vpop.f32.mrb[207].mxu0 }
 0xe19   :  { %15039 = vmatpush3.bf16.msra.mxu0 %v15985_v58 }
 0xe1a   :  { %15005 = vmatmul.mubr.msk.bf16.vlgmr.msra.gmra.mrb[204].mxu1 %vm1990_vm4, %v7899_v55  ;;  %15056 = vmatprep.subr.bf16.mxu0 %v19921_v20  ;;  %v15982_v55 = vld [vmem:[%s19881_s2 + $0xd0] sm:$0xff]  }
 0xe1b   :  { %15021 = vmatpush3.bf16.msra.mxu1 %v15978_v38  ;;  %15028 = vmatprep.mubr.msk.bf16.mxu1 %vm16195_vm0, %v19921_v20 }
 0xe1c   :  { %15022 = vmatprep.subr.bf16.mxu1 %v19921_v20  ;;  %15041 = vmatmul.mubr.msk.bf16.vlgmr.msra.gmra.mrb[220].mxu0 %vm1990_vm4, %v7902_v23 }
 0xe1d   :  { %v7888_v53 = vpop.f32.mrb[208].mxu0  ;;  %15058 = vmatprep.mubr.msk.bf16.mxu0 %vm16195_vm0, %v19921_v20 }
 0xe1e   :  { %v14946_v3 = vpop.f32.mrb[209].mxu0 }
 0xe1f   :  { %15023 = vmatpush3.bf16.msra.mxu1 %v15980_v24  ;;  %v7891_v28 = vpop.f32.mrb[210].mxu0 }
 0xe20   :  { %15024 = vmatprep.subr.bf16.mxu1 %v19921_v20  ;;  %v7903_v33 = vpack.c.bf16 %v7891_v28, %v7888_v53  ;;  %v14947_v14 = vpop.f32.mrb[211].mxu0 }
 0xe23   :  { %15025 = vmatpush3.bf16.msra.mxu1 %v15982_v55 }
 0xe24   :  { %15026 = vmatprep.subr.bf16.mxu1 %v19921_v20 }
 0xe27   :  { %15027 = vmatpush3.bf16.msra.mxu1 %v15984_v35 }
 0xe28   :  { %15044 = vmatprep.subr.bf16.mxu1 %v19921_v20 }
 0xe2a   :  { %15029 = vmatmul.mubr.msk.bf16.vlgmr.msra.gmra.mrb[208].mxu1 %vm1990_vm4, %v7901_v29  ;;  %v15989_v29 = vld [vmem:[%s19881_s2 + $0x118] sm:$0xff]   ;;  %s19953_s2 = smov 113  }
 0xe2b   :  { %15045 = vmatpush3.bf16.msra.mxu1 %v15986_v60  ;;  %15052 = vmatprep.mubr.msk.bf16.mxu1 %vm16195_vm0, %v19921_v20 }
 0xe2c   :  { %15046 = vmatprep.subr.bf16.mxu1 %v19921_v20 }
 0xe2f   :  { %15047 = vmatpush3.bf16.msra.mxu1 %v15987_v40 }
 0xe30   :  { %15048 = vmatprep.subr.bf16.mxu1 %v19921_v20 }
 0xe33   :  { %15049 = vmatpush3.bf16.msra.mxu1 %v15988_v43 }
 0xe34   :  { %15050 = vmatprep.subr.bf16.mxu1 %v19921_v20 }
 0xe37   :  { %15051 = vmatpush3.bf16.msra.mxu1 %v15989_v29 }
 0xe38   :  { %15094 = vmatprep.subr.bf16.mxu1 %v19921_v20 }
 0xe3a   :  { %15053 = vmatmul.mubr.msk.bf16.vlgmr.msra.gmra.mrb[212].mxu1 %vm1990_vm4, %v7903_v33 }
 0xe3b   :  { %15096 = vmatprep.mubr.msk.bf16.mxu1 %vm16195_vm0, %v19921_v20 }
 0xebd   :  { %v7981_v50 = vpop.f32.mrb[192].mxu1 }
 0xebe   :  { %v14958_v48 = vpop.f32.mrb[193].mxu1 }
 0xebf   :  { %v7984_v54 = vpop.f32.mrb[194].mxu1 }
 0xec0   :  { %v14959_v57 = vpop.f32.mrb[195].mxu1 }
 0xecd   :  { %v8049_v58 = vpop.f32.mrb[196].mxu1  ;;  %v8203_v22 = vpop.f32.mrb[212].mxu0 }
 0xece   :  { %v8050_v38 = vadd.f32 %v8049_v58, %v7981_v50  ;;  %v14970_v49 = vpop.f32.mrb[197].mxu1  ;;  %v14994_v23 = vpop.f32.mrb[213].mxu0 }
 0xecf   :  { %v8052_v27 = vpop.f32.mrb[198].mxu1  ;;  %v8206_v24 = vpop.f32.mrb[214].mxu0 }
 0xed0   :  { %v8053_v53 = vadd.f32 %v8052_v27, %v7984_v54  ;;  %v14971_v3 = vpop.f32.mrb[199].mxu1  ;;  %v14995_v55 = vpop.f32.mrb[215].mxu0 }
 0xedd   :  { %v8125_v28 = vpop.f32.mrb[200].mxu1 }
 0xede   :  { %v8132_v14 = vadd.f32 %v8125_v28, %v8050_v38  ;;  %v14982_v33 = vpop.f32.mrb[201].mxu1 }
 0xedf   :  { %v8128_v35 = vpop.f32.mrb[202].mxu1  ;;  %v8359_v60 = vpop.f32.mrb[216].mxu0 }
 0xee0   :  { %v8133_v40 = vadd.f32 %v8128_v35, %v8053_v53  ;;  %v8210_v43 = vadd.f32 %v8203_v22, %v8132_v14  ;;  %v14983_v29 = vpop.f32.mrb[203].mxu1  ;;  %v15018_v48 = vpop.f32.mrb[217].mxu0 }
 0xee1   :  { %v8362_v57 = vpop.f32.mrb[218].mxu0 }
 0xee2   :  { %v8211_v0 = vadd.f32 %v8206_v24, %v8133_v40  ;;  %v15019_v20 = vpop.f32.mrb[219].mxu0 }
 0xeed   :  { %v8281_v50 = vpop.f32.mrb[204].mxu1 }
 0xeee   :  { %v8288_v58 = vadd.f32 %v8281_v50, %v8210_v43  ;;  %v15006_v49 = vpop.f32.mrb[205].mxu1  ;;  %v8607_v50 = vpop.permute.xlu1 %8606 }
 0xeef   :  { %v8284_v23 = vpop.f32.mrb[206].mxu1  ;;  %v8515_v46 = vpop.f32.mrb[220].mxu0 }
 0xef0   :  { %v8289_v54 = vadd.f32 %v8284_v23, %v8211_v0  ;;  %v8366_v27 = vadd.f32 %v8359_v60, %v8288_v58  ;;  %v15007_v3 = vpop.f32.mrb[207].mxu1  ;;  %v15042_v55 = vpop.f32.mrb[221].mxu0 }
 0xef1   :  { %v8518_v38 = vpop.f32.mrb[222].mxu0  ;;  %v8612_v23 = vpop.permute.xlu0 %8611 }
 0xef2   :  { %v8367_v28 = vadd.f32 %v8362_v57, %v8289_v54  ;;  %v15043_v33 = vpop.f32.mrb[223].mxu0 }
 0xef3   :  { %v15992_v33 = vld [vmem:[%s19882_s9 + $0x10] sm:$0xff]  }
 0xefd   :  { %v8437_v45 = vpop.f32.mrb[208].mxu1 }
 0xefe   :  { %v8444_v53 = vadd.f32 %v8437_v45, %v8366_v27  ;;  %v15030_v22 = vpop.f32.mrb[209].mxu1 }
 0xeff   :  { %v8440_v14 = vpop.f32.mrb[210].mxu1  ;;  %v15994_v22 = vld [vmem:[%s19882_s9 + $0x20] sm:$0xff]  }
 0xf00   :  { %v8445_v35 = vadd.f32 %v8440_v14, %v8367_v28  ;;  %v8522_v29 = vadd.f32 %v8515_v46, %v8444_v53  ;;  %v15031_v24 = vpop.f32.mrb[211].mxu1  ;;  %v15990_v46 = vld [vmem:[%s19882_s9] sm:$0xff]   ;;  %v15991_v28 = vld [vmem:[%s19882_s9 + $0x8] sm:$0xff]   ;;  %v15993_v53 = vld [vmem:[%s19882_s9 + $0x18] sm:$0xff]  }
 0xf01   :  { %v15995_v14 = vld [vmem:[%s19882_s9 + $0x28] sm:$0xff]   ;;  %v15998_v24 = vld [vmem:[%s19882_s9 + $0x40] sm:$0xff]  }
 0xf02   :  { %v8523_v20 = vadd.f32 %v8518_v38, %v8445_v35  ;;  %v19947_v38 = vmov 0.0   ;;  %v15996_v35 = vld [vmem:[%s19882_s9 + $0x30] sm:$0xff]  }
 0xf0d   :  { %v8593_v40 = vpop.f32.mrb[212].mxu1 }
 0xf0e   :  { %v8600_v43 = vadd.f32 %v8593_v40, %v8522_v29  ;;  %v15054_v48 = vpop.f32.mrb[213].mxu1  ;;  %v15997_v29 = vld [vmem:[%s19882_s9 + $0x38] sm:$0xff]   ;;  %v16003_v40 = vld [vmem:[%s19883_s3 + $0x40] sm:$0xff]  }
 0xf0f   :  { %v8596_v49 = vpop.f32.mrb[214].mxu1 }
 0xf10   :  { %v8614_v0 = vadd.f32 %v8607_v50, %v8600_v43  ;;  %v8601_v60 = vadd.f32 %v8596_v49, %v8523_v20  ;;  %v15055_v58 = vpop.f32.mrb[215].mxu1  ;;  %v15999_v20 = vld [vmem:[%s19883_s3 + $0x8] sm:$0xff]  }
 0xf11   :  { %15095 = vmatpush3.bf16.msra.mxu1 %v15999_v20 }
 0xf12   :  { %v8618_v3 = vmul.f32 0.2, %v8614_v0  ;;  %v8615_v57 = vadd.f32 %v8612_v23, %v8601_v60  ;;  %vm8616_vm10 = vcmp.ge.f32.partialorder %v8614_v0, 0.0  ;;  %15100 = vmatprep.subr.bf16.mxu1 %v19947_v38 }
 0xf14   :  { %vm8617_vm11 = vcmp.ge.f32.partialorder %v8615_v57, 0.0  ;;  %v8619_v45 = vmul.f32 0.2, %v8615_v57  ;;  %v8620_v54 = vsel %vm8616_vm10, %v8614_v0, %v8618_v3  ;;  %v16000_v3 = vld [vmem:[%s19883_s3] sm:$0xff]  }
 0xf16   :  { %v8621_v27 = vsel %vm8617_vm11, %v8615_v57, %v8619_v45 }
 0xf17   :  { %v8622_v55 = vpack.c.bf16 %v8621_v27, %v8620_v54 }
 0xf19   :  { %15057 = vmatpush3.bf16.msra.mxu0 %v8622_v55 }
 0xf1a   :  { %15142 = vmatprep.subr.bf16.mxu0 %v19947_v38 }
 0xf1c   :  { %15059 = vmatmul.mubr.msk.bf16.vlgmr.msra.gmra.mrb[224].mxu0 %vm2740_vm7, %v15990_v46  ;;  %v16001_v46 = vld [vmem:[%s19883_s3 + $0x10] sm:$0xff]  }
 0xf1d   :  { %15062 = vmatprep.mubr.msk.bf16.mxu0 %vm16195_vm0, %v19947_v38  ;;  %15143 = vmatpush3.bf16.msra.mxu0 %v16003_v40 }
 0xf1e   :  { %15192 = vmatprep.subr.bf16.mxu0 %v19947_v38 }
 0xf24   :  { %15063 = vmatmul.mubr.msk.bf16.gmra.mrb[228].mxu0 %vm2740_vm7, %v15991_v28 }
 0xf25   :  { %15066 = vmatprep.mubr.msk.bf16.mxu0 %vm16195_vm0, %v19947_v38 }
 0xf2c   :  { %15067 = vmatmul.mubr.msk.bf16.gmra.mrb[232].mxu0 %vm2740_vm7, %v15992_v33 }
 0xf2d   :  { %15070 = vmatprep.mubr.msk.bf16.mxu0 %vm16195_vm0, %v19947_v38 }
 0xf34   :  { %15071 = vmatmul.mubr.msk.bf16.gmra.mrb[236].mxu0 %vm2740_vm7, %v15993_v53 }
 0xf35   :  { %15074 = vmatprep.mubr.msk.bf16.mxu0 %vm16195_vm0, %v19947_v38 }
 0xf3c   :  { %15075 = vmatmul.mubr.msk.bf16.gmra.mrb[240].mxu0 %vm2740_vm7, %v15994_v22 }
 0xf3d   :  { %15078 = vmatprep.mubr.msk.bf16.mxu0 %vm16195_vm0, %v19947_v38 }
 0xf44   :  { %15079 = vmatmul.mubr.msk.bf16.gmra.mrb[244].mxu0 %vm2740_vm7, %v15995_v14 }
 0xf45   :  { %15082 = vmatprep.mubr.msk.bf16.mxu0 %vm16195_vm0, %v19947_v38 }
 0xf4c   :  { %15083 = vmatmul.mubr.msk.bf16.gmra.mrb[248].mxu0 %vm2740_vm7, %v15996_v35  ;;  %v16002_v35 = vld [vmem:[%s19883_s3 + $0x18] sm:$0xff]  }
 0xf4d   :  { %15086 = vmatprep.mubr.msk.bf16.mxu0 %vm16195_vm0, %v19947_v38 }
 0xf54   :  { %15087 = vmatmul.mubr.msk.bf16.gmra.mrb[252].mxu0 %vm2740_vm7, %v15997_v29 }
 0xf55   :  { %15090 = vmatprep.mubr.msk.bf16.mxu0 %vm16195_vm0, %v19947_v38 }
 0xf5c   :  { %15091 = vmatmul.mubr.msk.bf16.gmra.mrb[0].mxu0 %vm2740_vm7, %v15998_v24 }
 0xf5d   :  { %15144 = vmatprep.mubr.msk.bf16.mxu0 %vm16195_vm0, %v19947_v38 }
 0xfef   :  { %v8747_v43 = vpop.f32.mrb[224].mxu0 }
 0xff0   :  { %v15060_v48 = vpop.f32.mrb[225].mxu0 }
 0xff1   :  { %v8750_v50 = vpop.f32.mrb[226].mxu0  ;;  %v16004_v48 = vld [vmem:[%s19883_s3 + $0x20] sm:$0xff]  }
 0xff2   :  { %v8818_v49 = vpack.c.bf16 %v8750_v50, %v8747_v43  ;;  %v15061_v0 = vpop.f32.mrb[227].mxu0 }
 0xff7   :  { %v8755_v60 = vpop.f32.mrb[228].mxu0 }
 0xff8   :  { %v15064_v58 = vpop.f32.mrb[229].mxu0 }
 0xff9   :  { %v8758_v23 = vpop.f32.mrb[230].mxu0 }
 0xffa   :  { %v8819_v57 = vpack.c.bf16 %v8758_v23, %v8755_v60  ;;  %v15065_v45 = vpop.f32.mrb[231].mxu0  ;;  %v16005_v23 = vld [vmem:[%s19883_s3 + $0x28] sm:$0xff]  }
 0xffc   :  { %15097 = vmatmul.mubr.msk.bf16.vlgmr.msra.gmra.mrb[216].mxu1 %vm2740_vm7, %v8819_v57 }
 0xffd   :  { %15101 = vmatpush3.bf16.msra.mxu1 %v16000_v3  ;;  %15102 = vmatprep.mubr.msk.bf16.mxu1 %vm16195_vm0, %v19947_v38 }
 0xffe   :  { %15106 = vmatprep.subr.bf16.mxu1 %v19947_v38 }
 0xfff   :  { %v8763_v54 = vpop.f32.mrb[232].mxu0 }
0x1000   :  { %v15068_v27 = vpop.f32.mrb[233].mxu0 }
0x1001   :  { %v8766_v55 = vpop.f32.mrb[234].mxu0 }
0x1002   :  { %v8820_v28 = vpack.c.bf16 %v8766_v55, %v8763_v54  ;;  %v15069_v33 = vpop.f32.mrb[235].mxu0  ;;  %v16006_v55 = vld [vmem:[%s19883_s3 + $0x30] sm:$0xff]  }
0x1004   :  { %15103 = vmatmul.mubr.msk.bf16.vlgmr.msra.gmra.mrb[220].mxu1 %vm2740_vm7, %v8818_v49 }
0x1005   :  { %15107 = vmatpush3.bf16.msra.mxu1 %v16001_v46  ;;  %15108 = vmatprep.mubr.msk.bf16.mxu1 %vm16195_vm0, %v19947_v38 }
0x1006   :  { %15112 = vmatprep.subr.bf16.mxu1 %v19947_v38 }
0x1007   :  { %v8771_v53 = vpop.f32.mrb[236].mxu0 }
0x1008   :  { %v15072_v22 = vpop.f32.mrb[237].mxu0 }
0x1009   :  { %v8774_v14 = vpop.f32.mrb[238].mxu0 }
0x100a   :  { %v8821_v29 = vpack.c.bf16 %v8774_v14, %v8771_v53  ;;  %v15073_v24 = vpop.f32.mrb[239].mxu0  ;;  %v16007_v14 = vld [vmem:[%s19883_s3 + $0x38] sm:$0xff]  }
0x100c   :  { %15109 = vmatmul.mubr.msk.bf16.vlgmr.msra.gmra.mrb[224].mxu1 %vm2740_vm7, %v8820_v28 }
0x100d   :  { %15113 = vmatpush3.bf16.msra.mxu1 %v16002_v35  ;;  %15114 = vmatprep.mubr.msk.bf16.mxu1 %vm16195_vm0, %v19947_v38 }
0x100e   :  { %15118 = vmatprep.subr.bf16.mxu1 %v19947_v38 }
0x100f   :  { %v8779_v20 = vpop.f32.mrb[240].mxu0 }
0x1010   :  { %v15076_v40 = vpop.f32.mrb[241].mxu0 }
0x1011   :  { %v8782_v43 = vpop.f32.mrb[242].mxu0 }
0x1012   :  { %v8822_v50 = vpack.c.bf16 %v8782_v43, %v8779_v20  ;;  %v15077_v49 = vpop.f32.mrb[243].mxu0 }
0x1013   :  { %v16010_v49 = vld [vmem:[%s19884_s11 + $0x10] sm:$0xff]  }
0x1014   :  { %15115 = vmatmul.mubr.msk.bf16.vlgmr.msra.gmra.mrb[228].mxu1 %vm2740_vm7, %v8821_v29 }
0x1015   :  { %15119 = vmatpush3.bf16.msra.mxu1 %v16004_v48  ;;  %15120 = vmatprep.mubr.msk.bf16.mxu1 %vm16195_vm0, %v19947_v38 }
0x1016   :  { %15124 = vmatprep.subr.bf16.mxu1 %v19947_v38 }
0x1017   :  { %v8787_v0 = vpop.f32.mrb[244].mxu0 }
0x1018   :  { %v15080_v60 = vpop.f32.mrb[245].mxu0 }
0x1019   :  { %v8790_v58 = vpop.f32.mrb[246].mxu0  ;;  %v16012_v60 = vld [vmem:[%s19884_s11 + $0x20] ss:$0 sps:$4 sm:$0xff]  }
0x101a   :  { %v8823_v3 = vpack.c.bf16 %v8790_v58, %v8787_v0  ;;  %v15081_v57 = vpop.f32.mrb[247].mxu0  ;;  %v16011_v0 = vld [vmem:[%s19884_s11 + $0x18] sm:$0xff]   ;;  %v16018_v58 = vld [vmem:[%s19886_s4 + $0x20] sm:$0xff]  }
0x101c   :  { %15121 = vmatmul.mubr.msk.bf16.vlgmr.msra.gmra.mrb[232].mxu1 %vm2740_vm7, %v8822_v50  ;;  %v16008_v50 = vld [vmem:[%s19884_s11] sm:$0xff]  }
0x101d   :  { %15125 = vmatpush3.bf16.msra.mxu1 %v16005_v23  ;;  %15126 = vmatprep.mubr.msk.bf16.mxu1 %vm16195_vm0, %v19947_v38  ;;  %v16019_v23 = vld [vmem:[%s19886_s4 + $0x28] sm:$0xff]  }
0x101e   :  { %15130 = vmatprep.subr.bf16.mxu1 %v19947_v38 }
0x101f   :  { %v8795_v45 = vpop.f32.mrb[248].mxu0 }
0x1020   :  { %v15084_v54 = vpop.f32.mrb[249].mxu0 }
0x1021   :  { %v8798_v27 = vpop.f32.mrb[250].mxu0 }
0x1022   :  { %v8824_v46 = vpack.c.bf16 %v8798_v27, %v8795_v45  ;;  %v15085_v28 = vpop.f32.mrb[251].mxu0 }
0x1024   :  { %15127 = vmatmul.mubr.msk.bf16.vlgmr.msra.gmra.mrb[236].mxu1 %vm2740_vm7, %v8823_v3  ;;  %v16020_v3 = vld [vmem:[%s19886_s4 + $0x30] sm:$0xff]  }
0x1025   :  { %15131 = vmatpush3.bf16.msra.mxu1 %v16006_v55  ;;  %15132 = vmatprep.mubr.msk.bf16.mxu1 %vm16195_vm0, %v19947_v38 }
0x1026   :  { %15136 = vmatprep.subr.bf16.mxu1 %v19947_v38 }
0x1027   :  { %v8803_v33 = vpop.f32.mrb[252].mxu0 }
0x1028   :  { %v15088_v53 = vpop.f32.mrb[253].mxu0 }
0x1029   :  { %v8806_v22 = vpop.f32.mrb[254].mxu0 }
0x102a   :  { %v8825_v35 = vpack.c.bf16 %v8806_v22, %v8803_v33  ;;  %v15089_v29 = vpop.f32.mrb[255].mxu0 }
0x102c   :  { %15133 = vmatmul.mubr.msk.bf16.vlgmr.msra.gmra.mrb[240].mxu1 %vm2740_vm7, %v8824_v46 }
0x102d   :  { %15137 = vmatpush3.bf16.msra.mxu1 %v16007_v14  ;;  %15138 = vmatprep.mubr.msk.bf16.mxu1 %vm16195_vm0, %v19947_v38 }
0x102e   :  { %15148 = vmatprep.subr.bf16.mxu1 %v19947_v38 }
0x102f   :  { %v8811_v24 = vpop.f32.mrb[0].mxu0 }
0x1030   :  { %v15092_v20 = vpop.f32.mrb[1].mxu0 }
0x1031   :  { %v8814_v40 = vpop.f32.mrb[2].mxu0 }
0x1032   :  { %v8826_v43 = vpack.c.bf16 %v8814_v40, %v8811_v24  ;;  %v15093_v48 = vpop.f32.mrb[3].mxu0 }
0x1034   :  { %15139 = vmatmul.mubr.msk.bf16.vlgmr.msra.gmra.mrb[244].mxu1 %vm2740_vm7, %v8825_v35  ;;  %15145 = vmatmul.mubr.msk.bf16.vlgmr.msra.gmra.mrb[4].mxu0 %vm2740_vm7, %v8826_v43 }
0x1035   :  { %15149 = vmatpush3.bf16.msra.mxu1 %v18610_v18  ;;  %15150 = vmatprep.mubr.msk.bf16.mxu1 %vm16195_vm0, %v19947_v38  ;;  %v16009_v18 = vld [vmem:[%s19884_s11 + $0x8] sm:$0xff]  }
0x1036   :  { %15170 = vmatprep.subr.bf16.mxu1 %v19947_v38  ;;  %15200 = vmatprep.mubr.msk.bf16.mxu0 %vm16195_vm0, %v19947_v38 }
0x1037   :  { %15193 = vmatpush3.bf16.msra.mxu0 %v16018_v58 }
0x1038   :  { %15194 = vmatprep.subr.bf16.mxu0 %v19947_v38 }
0x103b   :  { %15195 = vmatpush3.bf16.msra.mxu0 %v16019_v23 }
0x103c   :  { %15151 = vmatmul.mubr.msk.bf16.vlgmr.msra.gmra.mrb[248].mxu1 %vm1803_vm3, %v16008_v50  ;;  %15196 = vmatprep.subr.bf16.mxu0 %v19947_v38 }
0x103d   :  { %15154 = vmatprep.mubr.msk.bf16.mxu1 %vm16195_vm0, %v19947_v38 }
0x103f   :  { %15197 = vmatpush3.bf16.msra.mxu0 %v16020_v3 }
0x1040   :  { %15198 = vmatprep.subr.bf16.mxu0 %v19947_v38 }
0x1044   :  { %15155 = vmatmul.mubr.msk.bf16.gmra.mrb[252].mxu1 %vm1803_vm3, %v16009_v18 }
0x1045   :  { %15158 = vmatprep.mubr.msk.bf16.mxu1 %vm16195_vm0, %v19947_v38 }
0x104c   :  { %15159 = vmatmul.mubr.msk.bf16.gmra.mrb[0].mxu1 %vm1803_vm3, %v16010_v49 }
0x104d   :  { %15162 = vmatprep.mubr.msk.bf16.mxu1 %vm16195_vm0, %v19947_v38 }
0x1054   :  { %15163 = vmatmul.mubr.msk.bf16.gmra.mrb[4].mxu1 %vm1803_vm3, %v16011_v0 }
0x1055   :  { %15166 = vmatprep.mubr.msk.bf16.mxu1 %vm16195_vm0, %v19947_v38 }
0x105c   :  { %15167 = vmatmul.mubr.msk.bf16.gmra.mrb[8].mxu1 %vm1803_vm3, %v16012_v60 }
0x105d   :  { %15172 = vmatprep.mubr.msk.bf16.mxu1 %vm16195_vm0, %v19947_v38 }
0x10cf   :  { %v8874_v57 = vpop.f32.mrb[216].mxu1 }
0x10d0   :  { %v15098_v45 = vpop.f32.mrb[217].mxu1 }
0x10d1   :  { %v8877_v54 = vpop.f32.mrb[218].mxu1 }
0x10d2   :  { %v15099_v27 = vpop.f32.mrb[219].mxu1 }
0x10d7   :  { %v8924_v55 = vpop.f32.mrb[220].mxu1 }
0x10d8   :  { %v8925_v46 = vadd.f32 %v8924_v55, %v8874_v57  ;;  %v15104_v28 = vpop.f32.mrb[221].mxu1 }
0x10d9   :  { %v8927_v33 = vpop.f32.mrb[222].mxu1 }
0x10da   :  { %v8928_v53 = vadd.f32 %v8927_v33, %v8877_v54  ;;  %v15105_v22 = vpop.f32.mrb[223].mxu1 }
0x10df   :  { %v8976_v14 = vpop.f32.mrb[224].mxu1 }
0x10e0   :  { %v8983_v35 = vadd.f32 %v8976_v14, %v8925_v46  ;;  %v15110_v29 = vpop.f32.mrb[225].mxu1 }
0x10e1   :  { %v8979_v24 = vpop.f32.mrb[226].mxu1 }
0x10e2   :  { %v8984_v20 = vadd.f32 %v8979_v24, %v8928_v53  ;;  %v15111_v40 = vpop.f32.mrb[227].mxu1 }
0x10e7   :  { %v9030_v43 = vpop.f32.mrb[228].mxu1 }
0x10e8   :  { %v9037_v48 = vadd.f32 %v9030_v43, %v8983_v35  ;;  %v15116_v50 = vpop.f32.mrb[229].mxu1 }
0x10e9   :  { %v9033_v18 = vpop.f32.mrb[230].mxu1 }
0x10ea   :  { %v9038_v49 = vadd.f32 %v9033_v18, %v8984_v20  ;;  %v15117_v0 = vpop.f32.mrb[231].mxu1 }
0x10ef   :  { %v9084_v60 = vpop.f32.mrb[232].mxu1 }
0x10f0   :  { %v9091_v58 = vadd.f32 %v9084_v60, %v9037_v48  ;;  %v15122_v23 = vpop.f32.mrb[233].mxu1 }
0x10f1   :  { %v9087_v3 = vpop.f32.mrb[234].mxu1 }
0x10f2   :  { %v9092_v57 = vadd.f32 %v9087_v3, %v9038_v49  ;;  %v15123_v45 = vpop.f32.mrb[235].mxu1  ;;  %v9314_v3 = vpop.permute.xlu1 %9313 }
0x10f7   :  { %v9138_v54 = vpop.f32.mrb[236].mxu1 }
0x10f8   :  { %v9145_v27 = vadd.f32 %v9138_v54, %v9091_v58  ;;  %v15128_v55 = vpop.f32.mrb[237].mxu1  ;;  %v9319_v54 = vpop.permute.xlu0 %9318 }
0x10f9   :  { %v9141_v46 = vpop.f32.mrb[238].mxu1 }
0x10fa   :  { %v9146_v28 = vadd.f32 %v9141_v46, %v9092_v57  ;;  %v15129_v33 = vpop.f32.mrb[239].mxu1 }
0x10ff   :  { %v9192_v53 = vpop.f32.mrb[240].mxu1 }
0x1100   :  { %v9199_v22 = vadd.f32 %v9192_v53, %v9145_v27  ;;  %v15134_v14 = vpop.f32.mrb[241].mxu1 }
0x1101   :  { %v9195_v35 = vpop.f32.mrb[242].mxu1  ;;  %v16014_v14 = vld [vmem:[%s19885_s10 + $0x8] sm:$0xff]  }
0x1102   :  { %v9200_v29 = vadd.f32 %v9195_v35, %v9146_v28  ;;  %v15135_v24 = vpop.f32.mrb[243].mxu1  ;;  %v16015_v35 = vld [vmem:[%s19885_s10 + $0x10] sm:$0xff]  }
0x1103   :  { %v16017_v24 = vld [vmem:[%s19885_s10 + $0x20] ss:$0 sps:$4 sm:$0xff]  }
0x1107   :  { %v9246_v20 = vpop.f32.mrb[244].mxu1  ;;  %v9300_v40 = vpop.f32.mrb[4].mxu0 }
0x1108   :  { %v9253_v43 = vadd.f32 %v9246_v20, %v9199_v22  ;;  %v15140_v48 = vpop.f32.mrb[245].mxu1  ;;  %v15146_v50 = vpop.f32.mrb[5].mxu0  ;;  %v16013_v22 = vld [vmem:[%s19885_s10] sm:$0xff]   ;;  %v16021_v20 = vld [vmem:[%s19886_s4 + $0x38] sm:$0xff]  }
0x1109   :  { %v9249_v18 = vpop.f32.mrb[246].mxu1  ;;  %v9303_v49 = vpop.f32.mrb[6].mxu0  ;;  %15199 = vmatpush3.bf16.msra.mxu0 %v16021_v20  ;;  %v16027_v48 = vld [vmem:[%s19886_s4 + $0xb0] sm:$0xff]   ;;  %v16029_v50 = vld [vmem:[%s19886_s4 + $0xb8] sm:$0xff]   ;;  %v16031_v20 = vld [vmem:[%s19886_s4 + $0xe0] sm:$0xff]  }
0x110a   :  { %v9307_v0 = vadd.f32 %v9300_v40, %v9253_v43  ;;  %v9254_v60 = vadd.f32 %v9249_v18, %v9200_v29  ;;  %v15141_v58 = vpop.f32.mrb[247].mxu1  ;;  %v15147_v23 = vpop.f32.mrb[7].mxu0  ;;  %v16016_v29 = vld [vmem:[%s19885_s10 + $0x18] sm:$0xff]   ;;  %15204 = vmatprep.subr.bf16.mxu0 %v19947_v38  ;;  %v16023_v40 = vld [vmem:[%s19886_s4 + $0xa0] sm:$0xff]   ;;  %v16025_v43 = vld [vmem:[%s19886_s4 + $0xa8] sm:$0xff]   ;;  %s19954_s10 = smov 112  }
0x110b   :  { %v16022_v23 = vld [vmem:[%s19886_s4] sm:$0xff]  }
0x110c   :  { %v9321_v57 = vadd.f32 %v9314_v3, %v9307_v0  ;;  %v9308_v45 = vadd.f32 %v9303_v49, %v9254_v60 }
0x110e   :  { %v9325_v27 = vmul.f32 0.2, %v9321_v57  ;;  %v9322_v55 = vadd.f32 %v9319_v54, %v9308_v45  ;;  %vm9323_vm12 = vcmp.ge.f32.partialorder %v9321_v57, 0.0  ;;  %v16024_v45 = vld [vmem:[%s19886_s4 + $0x8] sm:$0xff]  }
0x1110   :  { %vm9324_vm10 = vcmp.ge.f32.partialorder %v9322_v55, 0.0  ;;  %v9326_v46 = vmul.f32 0.2, %v9322_v55  ;;  %v9327_v28 = vsel %vm9323_vm12, %v9321_v57, %v9325_v27 }
0x1112   :  { %v9328_v33 = vsel %vm9324_vm10, %v9322_v55, %v9326_v46 }
0x1113   :  { %v9329_v53 = vpack.c.bf16 %v9328_v33, %v9327_v28  ;;  %v16026_v28 = vld [vmem:[%s19886_s4 + $0x10] sm:$0xff]  }
0x1115   :  { %15171 = vmatpush3.bf16.msra.mxu1 %v9329_v53  ;;  %v16028_v53 = vld [vmem:[%s19886_s4 + $0x18] sm:$0xff]  }
0x1116   :  { %15252 = vmatprep.subr.bf16.mxu1 %v19947_v38 }
0x1118   :  { %15173 = vmatmul.mubr.msk.bf16.vlgmr.msra.gmra.mrb[248].mxu1 %vm2740_vm7, %v16013_v22 }
0x1119   :  { %15176 = vmatprep.mubr.msk.bf16.mxu1 %vm16195_vm0, %v19947_v38  ;;  %15253 = vmatpush3.bf16.msra.mxu1 %v16023_v40 }
0x111a   :  { %15254 = vmatprep.subr.bf16.mxu1 %v19947_v38 }
0x111d   :  { %15255 = vmatpush3.bf16.msra.mxu1 %v16025_v43 }
0x111e   :  { %15256 = vmatprep.subr.bf16.mxu1 %v19947_v38 }
0x1120   :  { %15177 = vmatmul.mubr.msk.bf16.gmra.mrb[252].mxu1 %vm2740_vm7, %v16014_v14 }
0x1121   :  { %15180 = vmatprep.mubr.msk.bf16.mxu1 %vm16195_vm0, %v19947_v38  ;;  %15257 = vmatpush3.bf16.msra.mxu1 %v16027_v48  ;;  %v16032_v48 = vld [vmem:[%s19886_s4 + $0x48] sm:$0xff]  }
0x1122   :  { %15258 = vmatprep.subr.bf16.mxu1 %v19947_v38 }
0x1125   :  { %15259 = vmatpush3.bf16.msra.mxu1 %v16029_v50  ;;  %v16033_v50 = vld [vmem:[%s19886_s4 + $0xe8] sm:$0xff]  }
0x1126   :  { %15276 = vmatprep.subr.bf16.mxu1 %v19947_v38 }
0x1128   :  { %15181 = vmatmul.mubr.msk.bf16.gmra.mrb[0].mxu1 %vm2740_vm7, %v16015_v35 }
0x1129   :  { %15184 = vmatprep.mubr.msk.bf16.mxu1 %vm16195_vm0, %v19947_v38 }
0x1130   :  { %15185 = vmatmul.mubr.msk.bf16.gmra.mrb[4].mxu1 %vm2740_vm7, %v16016_v29 }
0x1131   :  { %15188 = vmatprep.mubr.msk.bf16.mxu1 %vm16195_vm0, %v19947_v38 }
0x1138   :  { %15189 = vmatmul.mubr.msk.bf16.gmra.mrb[8].mxu1 %vm2740_vm7, %v16017_v24  ;;  %v16030_v24 = vld [vmem:[%s19886_s4 + $0x40] sm:$0xff]  }
0x1139   :  { %15260 = vmatprep.mubr.msk.bf16.mxu1 %vm16195_vm0, %v19947_v38 }
0x11eb   :  { %v9530_v18 = vpop.f32.mrb[248].mxu1 }
0x11ec   :  { %v15174_v49 = vpop.f32.mrb[249].mxu1 }
0x11ed   :  { %v9533_v0 = vpop.f32.mrb[250].mxu1 }
0x11ee   :  { %v9568_v60 = vpack.c.bf16 %v9533_v0, %v9530_v18  ;;  %v15175_v58 = vpop.f32.mrb[251].mxu1 }
0x11ef   :  { %v16034_v58 = vld [vmem:[%s19886_s4 + $0x50] sm:$0xff]  }
0x11f0   :  { %v9590_v3 = vrot.slane %v9568_v60, 4 }
0x11f2   :  { %15201 = vmatmul.mubr.msk.bf16.vlgmr.msra.gmra.mrb[8].mxu0 %vm1990_vm4, %v9590_v3 }
0x11f3   :  { %15205 = vmatpush3.bf16.msra.mxu0 %v16022_v23  ;;  %v9538_v57 = vpop.f32.mrb[252].mxu1  ;;  %15212 = vmatprep.mubr.msk.bf16.mxu0 %vm16195_vm0, %v19947_v38  ;;  %v16035_v23 = vld [vmem:[%s19886_s4 + $0xf0] sm:$0xff]  }
0x11f4   :  { %v15178_v54 = vpop.f32.mrb[253].mxu1  ;;  %15206 = vmatprep.subr.bf16.mxu0 %v19947_v38 }
0x11f5   :  { %v9541_v27 = vpop.f32.mrb[254].mxu1 }
0x11f6   :  { %v19061_v55 = vpack.c.bf16 %v9541_v27, %v9538_v57  ;;  %v15179_v46 = vpop.f32.mrb[255].mxu1  ;;  %v16036_v57 = vld [vmem:[%s19886_s4 + $0x58] sm:$0xff]  }
0x11f7   :  { %15207 = vmatpush3.bf16.msra.mxu0 %v16024_v45  ;;  %v16037_v45 = vld [vmem:[%s19886_s4 + $0xf8] sm:$0xff]  }
0x11f8   :  { %15208 = vmatprep.subr.bf16.mxu0 %v19947_v38 }
0x11fb   :  { %15209 = vmatpush3.bf16.msra.mxu0 %v16026_v28  ;;  %v9546_v33 = vpop.f32.mrb[0].mxu1  ;;  %v16038_v28 = vld [vmem:[%s19886_s4 + $0x60] sm:$0xff]  }
0x11fc   :  { %v15182_v22 = vpop.f32.mrb[1].mxu1  ;;  %15210 = vmatprep.subr.bf16.mxu0 %v19947_v38 }
0x11fd   :  { %v9549_v14 = vpop.f32.mrb[2].mxu1  ;;  %v16040_v22 = vld [vmem:[%s19886_s4 + $0x70] sm:$0xff]  }
0x11fe   :  { %v19071_v35 = vpack.c.bf16 %v9549_v14, %v9546_v33  ;;  %v15183_v29 = vpop.f32.mrb[3].mxu1  ;;  %v16041_v14 = vld [vmem:[%s19886_s4 + $0x78] sm:$0xff]  }
0x11ff   :  { %15211 = vmatpush3.bf16.msra.mxu0 %v16028_v53  ;;  %v16039_v53 = vld [vmem:[%s19886_s4 + $0x68] sm:$0xff]   ;;  %v16042_v29 = vld [vmem:[%s19886_s4 + $0x80] sm:$0xff]  }
0x1200   :  { %v9964_v40 = vrot.slane %v19071_v35, 4  ;;  %15216 = vmatprep.subr.bf16.mxu0 %v19947_v38 }
0x1202   :  { %15213 = vmatmul.mubr.msk.bf16.vlgmr.msra.gmra.mrb[12].mxu0 %vm1990_vm4, %v9568_v60  ;;  %15261 = vmatmul.mubr.msk.bf16.vlgmr.msra.gmra.mrb[12].mxu1 %vm1990_vm4, %v9964_v40  ;;  %v16044_v40 = vld [vmem:[%s19886_s4 + $0x90] sm:$0xff]  }
0x1203   :  { %15217 = vmatpush3.bf16.msra.mxu0 %v16030_v24  ;;  %15277 = vmatpush3.bf16.msra.mxu1 %v16031_v20  ;;  %v9554_v43 = vpop.f32.mrb[4].mxu1  ;;  %v9810_v24 = vrot.slane %v19061_v55, 4  ;;  %v16043_v20 = vld [vmem:[%s19886_s4 + $0x88] sm:$0xff]  }
0x1204   :  { %v15186_v18 = vpop.f32.mrb[5].mxu1  ;;  %15218 = vmatprep.subr.bf16.mxu0 %v19947_v38  ;;  %15278 = vmatprep.subr.bf16.mxu1 %v19947_v38 }
0x1205   :  { %v9557_v49 = vpop.f32.mrb[6].mxu1  ;;  %15224 = vmatprep.mubr.msk.bf16.mxu0 %vm16195_vm0, %v19947_v38  ;;  %15284 = vmatprep.mubr.msk.bf16.mxu1 %vm16195_vm0, %v19947_v38  ;;  %v16050_v18 = vld [vmem:[%s19886_s4 + $0x100] sm:$0xff]  }
0x1206   :  { %v19095_v0 = vpack.c.bf16 %v9557_v49, %v9554_v43  ;;  %v15187_v60 = vpop.f32.mrb[7].mxu1  ;;  %v16046_v43 = vld [vmem:[%s19886_s4 + $0xc0] sm:$0xff]   ;;  %v16051_v49 = vld [vmem:[%s19886_s4 + $0x108] sm:$0xff]  }
0x1207   :  { %15219 = vmatpush3.bf16.msra.mxu0 %v16032_v48  ;;  %15279 = vmatpush3.bf16.msra.mxu1 %v16033_v50  ;;  %v16047_v48 = vld [vmem:[%s19886_s4 + $0xc8] sm:$0xff]   ;;  %v16048_v50 = vld [vmem:[%s19886_s4 + $0xd0] sm:$0xff]  }
0x1208   :  { %15220 = vmatprep.subr.bf16.mxu0 %v19947_v38  ;;  %15280 = vmatprep.subr.bf16.mxu1 %v19947_v38  ;;  %v10118_v33 = vrot.slane %v19095_v0, 4  ;;  %v16052_v60 = vld [vmem:[%s19886_s4 + $0x110] sm:$0xff]  }
0x120b   :  { %15221 = vmatpush3.bf16.msra.mxu0 %v16034_v58  ;;  %15281 = vmatpush3.bf16.msra.mxu1 %v16035_v23  ;;  %v19105_v3 = vpop.f32.mrb[8].mxu1  ;;  %v19948_v23 = vmov 0  }
0x120c   :  { %v15190_v54 = vpop.f32.mrb[9].mxu1  ;;  %15222 = vmatprep.subr.bf16.mxu0 %v19947_v38  ;;  %15282 = vmatprep.subr.bf16.mxu1 %v19947_v38  ;;  %v9572_v58 = vpack.c.bf16 %v19105_v3, %v19105_v3  ;;  %v16064_v3 = vld [vmem:[%s19888_s5 + $0x54] ss:$8 sps:$4 sm:$0xff]  }
0x120d   :  { %v9565_v27 = vpop.f32.mrb[10].mxu1 }
0x120e   :  { %v15191_v46 = vpop.f32.mrb[11].mxu1 }
0x120f   :  { %15223 = vmatpush3.bf16.msra.mxu0 %v16036_v57  ;;  %15283 = vmatpush3.bf16.msra.mxu1 %v16037_v45  ;;  %v16059_v46 = vld [vmem:[%s19888_s5 + $0x40] ss:$8 sps:$4 sm:$0xff]  }
0x1210   :  { %15228 = vmatprep.subr.bf16.mxu0 %v19947_v38  ;;  %15300 = vmatprep.subr.bf16.mxu1 %v19947_v38 }
0x1212   :  { %15225 = vmatmul.mubr.msk.bf16.vlgmr.msra.gmra.mrb[16].mxu0 %vm1990_vm4, %v19061_v55  ;;  %15285 = vmatmul.mubr.msk.bf16.vlgmr.msra.gmra.mrb[16].mxu1 %vm1990_vm4, %v10118_v33  ;;  %v16045_v55 = vld [vmem:[%s19886_s4 + $0x98] sm:$0xff]  }
0x1213   :  { %15229 = vmatpush3.bf16.msra.mxu0 %v16038_v28  ;;  %15236 = vmatprep.mubr.msk.bf16.mxu0 %vm16195_vm0, %v19947_v38  ;;  %v16061_v28 = vld [vmem:[%s19888_s5 + $0x44] ss:$8 sps:$4 sm:$0xff]  }
0x1214   :  { %15230 = vmatprep.subr.bf16.mxu0 %v19947_v38  ;;  %15302 = vmatprep.mubr.msk.bf16.mxu1 %vm16195_vm0, %v19947_v38 }
0x1217   :  { %15231 = vmatpush3.bf16.msra.mxu0 %v16039_v53 }
0x1218   :  { %15232 = vmatprep.subr.bf16.mxu0 %v19947_v38 }
0x121b   :  { %15233 = vmatpush3.bf16.msra.mxu0 %v16040_v22 }
0x121c   :  { %15234 = vmatprep.subr.bf16.mxu0 %v19947_v38 }
0x121f   :  { %15235 = vmatpush3.bf16.msra.mxu0 %v16041_v14 }
0x1220   :  { %15240 = vmatprep.subr.bf16.mxu0 %v19947_v38 }
0x1222   :  { %15237 = vmatmul.mubr.msk.bf16.vlgmr.msra.gmra.mrb[20].mxu0 %vm1990_vm4, %v9810_v24  ;;  %v16062_v24 = vld [vmem:[%s19888_s5 + $0x50] ss:$8 sps:$4 sm:$0xff]  }
0x1223   :  { %15241 = vmatpush3.bf16.msra.mxu0 %v16042_v29  ;;  %15248 = vmatprep.mubr.msk.bf16.mxu0 %vm16195_vm0, %v19947_v38 }
0x1224   :  { %15242 = vmatprep.subr.bf16.mxu0 %v19947_v38 }
0x1227   :  { %15243 = vmatpush3.bf16.msra.mxu0 %v16043_v20 }
0x1228   :  { %15244 = vmatprep.subr.bf16.mxu0 %v19947_v38 }
0x122b   :  { %15245 = vmatpush3.bf16.msra.mxu0 %v16044_v40 }
0x122c   :  { %15246 = vmatprep.subr.bf16.mxu0 %v19947_v38 }
0x122f   :  { %15247 = vmatpush3.bf16.msra.mxu0 %v16045_v55  ;;  %v16067_v55 = vld [vmem:[%s19888_s5 + $0x64] ss:$8 sps:$4 sm:$0xff]  }
0x1230   :  { %15264 = vmatprep.subr.bf16.mxu0 %v19947_v38 }
0x1232   :  { %15249 = vmatmul.mubr.msk.bf16.vlgmr.msra.gmra.mrb[24].mxu0 %vm1990_vm4, %v19071_v35  ;;  %v16049_v35 = vld [vmem:[%s19886_s4 + $0xd8] sm:$0xff]  }
0x1233   :  { %15265 = vmatpush3.bf16.msra.mxu0 %v16046_v43  ;;  %15272 = vmatprep.mubr.msk.bf16.mxu0 %vm16195_vm0, %v19947_v38 }
0x1234   :  { %15266 = vmatprep.subr.bf16.mxu0 %v19947_v38 }
0x1237   :  { %15267 = vmatpush3.bf16.msra.mxu0 %v16047_v48 }
0x1238   :  { %15268 = vmatprep.subr.bf16.mxu0 %v19947_v38 }
0x123b   :  { %15269 = vmatpush3.bf16.msra.mxu0 %v16048_v50  ;;  %v16065_v50 = vld [vmem:[%s19888_s5 + $0x60] ss:$8 sps:$4 sm:$0xff]  }
0x123c   :  { %15270 = vmatprep.subr.bf16.mxu0 %v19947_v38 }
0x123f   :  { %15271 = vmatpush3.bf16.msra.mxu0 %v16049_v35 }
0x1240   :  { %15288 = vmatprep.subr.bf16.mxu0 %v19947_v38 }
0x1242   :  { %15273 = vmatmul.mubr.msk.bf16.vlgmr.msra.gmra.mrb[28].mxu0 %vm1990_vm4, %v19095_v0  ;;  %v16053_v0 = vld [vmem:[%s19886_s4 + $0x118] sm:$0xff]  }
0x1243   :  { %15289 = vmatpush3.bf16.msra.mxu0 %v16050_v18  ;;  %15296 = vmatprep.mubr.msk.bf16.mxu0 %vm16195_vm0, %v19947_v38 }
0x1244   :  { %15290 = vmatprep.subr.bf16.mxu0 %v19947_v38 }
0x1247   :  { %15291 = vmatpush3.bf16.msra.mxu0 %v16051_v49 }
0x1248   :  { %15292 = vmatprep.subr.bf16.mxu0 %v19947_v38 }
0x124b   :  { %15293 = vmatpush3.bf16.msra.mxu0 %v16052_v60 }
0x124c   :  { %15294 = vmatprep.subr.bf16.mxu0 %v19947_v38 }
0x124f   :  { %15295 = vmatpush3.bf16.msra.mxu0 %v16053_v0 }
0x1250   :  { %10462 = vmatprep.subr.bf16.mxu0 %v16061_v28 }
0x1252   :  { %15297 = vmatmul.mubr.msk.bf16.vlgmr.msra.gmra.mrb[32].mxu0 %vm1990_vm4, %v9572_v58 }
0x1253   :  { %10494 = vmatprep.mubr.bf16.mxu0 %v19948_v23  ;;  %10463 = vmatpush1.bf16.msra.mxu0 %v16059_v46 }
0x1254   :  { %10464 = vmatprep.subr.bf16.mxu0 %v16064_v3 }
0x1257   :  { %10465 = vmatpush1.bf16.msra.mxu0 %v16062_v24 }
0x1258   :  { %10466 = vmatprep.subr.bf16.mxu0 %v16067_v55 }
0x125b   :  { %10467 = vmatpush1.bf16.msra.mxu0 %v16065_v50 }
0x12c5   :  { %v9652_v57 = vpop.f32.mrb[8].mxu0 }
0x12c6   :  { %v15202_v45 = vpop.f32.mrb[9].mxu0 }
0x12c7   :  { %v9655_v54 = vpop.f32.mrb[10].mxu0 }
0x12c8   :  { %v15203_v27 = vpop.f32.mrb[11].mxu0 }
0x12d5   :  { %v9719_v33 = vpop.f32.mrb[12].mxu0  ;;  %v10026_v53 = vpop.f32.mrb[12].mxu1 }
0x12d6   :  { %v9720_v22 = vadd.f32 %v9719_v33, %v9652_v57  ;;  %v15214_v14 = vpop.f32.mrb[13].mxu0  ;;  %v15262_v29 = vpop.f32.mrb[13].mxu1 }
0x12d7   :  { %v9722_v20 = vpop.f32.mrb[14].mxu0  ;;  %v10029_v40 = vpop.f32.mrb[14].mxu1 }
0x12d8   :  { %v15215_v43 = vpop.f32.mrb[15].mxu0  ;;  %v15263_v48 = vpop.f32.mrb[15].mxu1 }
0x12e5   :  { %v9794_v35 = vpop.f32.mrb[16].mxu0  ;;  %v10180_v18 = vpop.f32.mrb[16].mxu1 }
0x12e6   :  { %v9800_v49 = vadd.f32 %v9794_v35, %v9720_v22  ;;  %v15226_v60 = vpop.f32.mrb[17].mxu0  ;;  %v15286_v0 = vpop.f32.mrb[17].mxu1 }
0x12e7   :  { %v9797_v58 = vpop.f32.mrb[18].mxu0  ;;  %v10183_v57 = vpop.f32.mrb[18].mxu1 }
0x12e8   :  { %v15227_v45 = vpop.f32.mrb[19].mxu0  ;;  %v15287_v54 = vpop.f32.mrb[19].mxu1 }
0x12e9   :  { %v10267_v45 = vpop.permute.xlu1 %10266 }
0x12f5   :  { %v9872_v27 = vpop.f32.mrb[20].mxu0 }
0x12f6   :  { %v9878_v46 = vadd.f32 %v9872_v27, %v9800_v49  ;;  %v15238_v28 = vpop.f32.mrb[21].mxu0 }
0x12f7   :  { %v9875_v3 = vpop.f32.mrb[22].mxu0 }
0x12f8   :  { %v15239_v33 = vpop.f32.mrb[23].mxu0 }
0x1305   :  { %v9948_v14 = vpop.f32.mrb[24].mxu0 }
0x1306   :  { %v9954_v29 = vadd.f32 %v9948_v14, %v9878_v46  ;;  %v15250_v24 = vpop.f32.mrb[25].mxu0  ;;  %v16056_v14 = vld [vmem:[%s19887_s12 + $0x10] sm:$0xff]  }
0x1307   :  { %v9951_v20 = vpop.f32.mrb[26].mxu0  ;;  %v16058_v24 = vld [vmem:[%s19887_s12 + $0x20] ss:$0 sps:$4 sm:$0xff]  }
0x1308   :  { %v15251_v40 = vpop.f32.mrb[27].mxu0  ;;  %v10032_v55 = vadd.f32 %v10026_v53, %v9954_v29  ;;  %v16054_v53 = vld [vmem:[%s19887_s12] sm:$0xff]   ;;  %v16057_v29 = vld [vmem:[%s19887_s12 + $0x18] sm:$0xff]  }
0x1309   :  { %v16070_v20 = vld [vmem:[%s19888_s5 + $0x74] ss:$8 sps:$4 sm:$0xff]   ;;  %v16068_v40 = vld [vmem:[%s19888_s5 + $0x70] ss:$8 sps:$4 sm:$0xff]  }
0x130a   :  { %10468 = vmatprep.subr.bf16.mxu0 %v16070_v20 }
0x130b   :  { %10469 = vmatpush1.bf16.msra.mxu0 %v16068_v40  ;;  %v16106_v40 = vld [vmem:[%s19888_s5 + $0x114] ss:$8 sps:$4 sm:$0xff]  }
0x1315   :  { %v10102_v43 = vpop.f32.mrb[28].mxu0 }
0x1316   :  { %v10108_v48 = vadd.f32 %v10102_v43, %v10032_v55  ;;  %v15274_v22 = vpop.f32.mrb[29].mxu0  ;;  %v16073_v55 = vld [vmem:[%s19888_s5 + $0x4] ss:$8 sps:$4 sm:$0xff]   ;;  %v16074_v43 = vld [vmem:[%s19888_s5 + $0x80] ss:$8 sps:$4 sm:$0xff]  }
0x1317   :  { %v10105_v50 = vpop.f32.mrb[30].mxu0  ;;  %10546 = vmatprep.subr.bf16.mxu0 %v16073_v55  ;;  %v16080_v22 = vld [vmem:[%s19888_s5 + $0x90] ss:$8 sps:$4 sm:$0xff]   ;;  %v16083_v55 = vld [vmem:[%s19888_s5 + $0x20] ss:$8 sps:$4 sm:$0xff]  }
0x1318   :  { %v15275_v35 = vpop.f32.mrb[31].mxu0  ;;  %v10186_v60 = vadd.f32 %v10180_v18, %v10108_v48  ;;  %v16055_v18 = vld [vmem:[%s19887_s12 + $0x8] sm:$0xff]   ;;  %v16082_v48 = vld [vmem:[%s19888_s5 + $0x94] ss:$8 sps:$4 sm:$0xff]  }
0x1319   :  { %v16088_v50 = vld [vmem:[%s19888_s5 + $0xa4] ss:$8 sps:$4 sm:$0xff]   ;;  %v16086_v35 = vld [vmem:[%s19888_s5 + $0xa0] ss:$8 sps:$4 sm:$0xff]  }
0x1325   :  { %v10256_v0 = vpop.f32.mrb[32].mxu0 }
0x1326   :  { %v10262_v58 = vadd.f32 %v10256_v0, %v10186_v60  ;;  %v15298_v57 = vpop.f32.mrb[33].mxu0  ;;  %v16094_v60 = vld [vmem:[%s19888_s5 + $0xb4] ss:$8 sps:$4 sm:$0xff]   ;;  %v16092_v0 = vld [vmem:[%s19888_s5 + $0xb0] ss:$8 sps:$4 sm:$0xff]  }
0x1327   :  { %v10259_v49 = vpop.f32.mrb[34].mxu0 }
0x1328   :  { %v10269_v54 = vadd.f32 %v10267_v45, %v10262_v58  ;;  %v15299_v27 = vpop.f32.mrb[35].mxu0  ;;  %v16100_v58 = vld [vmem:[%s19888_s5 + $0x104] ss:$8 sps:$4 sm:$0xff]  }
0x132a   :  { %vm10270_vm7 = vcmp.ge.f32.partialorder %v10269_v54, 0.0  ;;  %v10271_v28 = vmul.f32 0.2, %v10269_v54 }
0x132c   :  { %v10272_v46 = vsel %vm10270_vm7, %v10269_v54, %v10271_v28  ;;  %v16071_v28 = vld [vmem:[%s19888_s5] ss:$8 sps:$4 sm:$0xff]  }
0x132d   :  { %v10273_v3 = vpack.c.bf16 %v10272_v46, %v10272_v46 }
0x132f   :  { %v10322_v33 = vsel %vm1831_vm2, %v10273_v3, 0  ;;  %v16079_v3 = vld [vmem:[%s19888_s5 + $0x14] ss:$8 sps:$4 sm:$0xff]  }
0x1330   :  { %15301 = vmatpush3.bf16.msra.mxu1 %v10322_v33  ;;  %v16077_v33 = vld [vmem:[%s19888_s5 + $0x10] ss:$8 sps:$4 sm:$0xff]  }
0x1333   :  { %15303 = vmatmul.mubr.msk.bf16.vlgmr.msra.gmra.mrb[20].mxu1 %vm1803_vm3, %v16054_v53 }
0x1334   :  { %15306 = vmatprep.mubr.msk.bf16.mxu1 %vm16195_vm0, %v19947_v38 }
0x133b   :  { %15307 = vmatmul.mubr.msk.bf16.gmra.mrb[24].mxu1 %vm1803_vm3, %v16055_v18  ;;  %v16085_v18 = vld [vmem:[%s19888_s5 + $0x24] ss:$8 sps:$4 sm:$0xff]  }
0x133c   :  { %15310 = vmatprep.mubr.msk.bf16.mxu1 %vm16195_vm0, %v19947_v38 }
0x1343   :  { %15311 = vmatmul.mubr.msk.bf16.gmra.mrb[28].mxu1 %vm1803_vm3, %v16056_v14 }
0x1344   :  { %15314 = vmatprep.mubr.msk.bf16.mxu1 %vm16195_vm0, %v19947_v38 }
0x134b   :  { %15315 = vmatmul.mubr.msk.bf16.gmra.mrb[32].mxu1 %vm1803_vm3, %v16057_v29 }
0x134c   :  { %15318 = vmatprep.mubr.msk.bf16.mxu1 %vm16195_vm0, %v19947_v38  ;;  %v16076_v38 = vld [vmem:[%s19888_s5 + $0x84] ss:$8 sps:$4 sm:$0xff]  }
0x134d   :  { %10638 = vmatprep.subr.bf16.mxu1 %v16076_v38 }
0x134e   :  { %10639 = vmatpush1.bf16.msra.mxu1 %v16074_v43  ;;  %v16091_v43 = vld [vmem:[%s19888_s5 + $0x34] ss:$8 sps:$4 sm:$0xff]  }
0x134f   :  { %10640 = vmatprep.subr.bf16.mxu1 %v16082_v48  ;;  %v16104_v48 = vld [vmem:[%s19888_s5 + $0x110] ss:$8 sps:$4 sm:$0xff]  }
0x1352   :  { %10641 = vmatpush1.bf16.msra.mxu1 %v16080_v22  ;;  %v16112_v22 = vld [vmem:[%s19888_s5 + $0x124] ss:$8 sps:$4 sm:$0xff]  }
0x1353   :  { %15319 = vmatmul.mubr.msk.bf16.gmra.mrb[36].mxu1 %vm1803_vm3, %v16058_v24  ;;  %10642 = vmatprep.subr.bf16.mxu1 %v16088_v50  ;;  %v16098_v24 = vld [vmem:[%s19888_s5 + $0x100] ss:$8 sps:$4 sm:$0xff]   ;;  %v16089_v50 = vld [vmem:[%s19888_s5 + $0x30] ss:$8 sps:$4 sm:$0xff]  }
0x1354   :  { %10670 = vmatprep.mubr.bf16.mxu1 %v19948_v23 }
0x1356   :  { %10643 = vmatpush1.bf16.msra.mxu1 %v16086_v35 }
0x1357   :  { %10644 = vmatprep.subr.bf16.mxu1 %v16094_v60  ;;  %v16097_v60 = vld [vmem:[%s19888_s5 + $0xc4] ss:$8 sps:$4 sm:$0xff]  }
0x135a   :  { %10645 = vmatpush1.bf16.msra.mxu1 %v16092_v0 }
0x135b   :  { %10828 = vmatprep.subr.bf16.mxu1 %v16100_v58  ;;  %v16110_v58 = vld [vmem:[%s19888_s5 + $0x120] ss:$8 sps:$4 sm:$0xff]  }
0x1406   :  { %v10358_v57 = vpop.f32.mrb[20].mxu1 }
0x1407   :  { %v15304_v45 = vpop.f32.mrb[21].mxu1 }
0x1408   :  { %v10361_v49 = vpop.f32.mrb[22].mxu1  ;;  %v16118_v45 = vld [vmem:[%s19888_s5 + $0x134] ss:$8 sps:$4 sm:$0xff]  }
0x1409   :  { %v10396_v54 = vpack.c.bf16 %v10361_v49, %v10358_v57  ;;  %v15305_v27 = vpop.f32.mrb[23].mxu1 }
0x140b   :  { %v10418_v46 = vrot.slane %v10396_v54, 4 }
0x140d   :  { %13575 = vmatmul.mubr.msk.bf16.vlgmr.msra.gmra.mrb[36].mxu0 %vm1990_vm4, %v10418_v46  ;;  %v16103_v46 = vld [vmem:[%s19888_s5 + $0xd4] ss:$8 sps:$4 sm:$0xff]  }
0x140e   :  { %10547 = vmatpush1.bf16.msra.mxu0 %v16071_v28  ;;  %v10366_v53 = vpop.f32.mrb[24].mxu1  ;;  %10578 = vmatprep.mubr.bf16.mxu0 %v19948_v23  ;;  %v16095_v28 = vld [vmem:[%s19888_s5 + $0xc0] ss:$8 sps:$4 sm:$0xff]  }
0x140f   :  { %10548 = vmatprep.subr.bf16.mxu0 %v16079_v3  ;;  %v15308_v14 = vpop.f32.mrb[25].mxu1  ;;  %v16116_v3 = vld [vmem:[%s19888_s5 + $0x130] ss:$8 sps:$4 sm:$0xff]  }
0x1410   :  { %v10369_v29 = vpop.f32.mrb[26].mxu1  ;;  %v16109_v14 = vld [vmem:[%s19888_s5 + $0xe4] ss:$8 sps:$4 sm:$0xff]  }
0x1411   :  { %v19305_v20 = vpack.c.bf16 %v10369_v29, %v10366_v53  ;;  %v15309_v38 = vpop.f32.mrb[27].mxu1  ;;  %v16101_v53 = vld [vmem:[%s19888_s5 + $0xd0] ss:$8 sps:$4 sm:$0xff]  }
0x1412   :  { %10549 = vmatpush1.bf16.msra.mxu0 %v16077_v33  ;;  %v16124_v33 = vld [vmem:[%s19888_s5 + $0x184] ss:$8 sps:$4 sm:$0xff]  }
0x1413   :  { %10550 = vmatprep.subr.bf16.mxu0 %v16085_v18  ;;  %13601 = vmatmul.mubr.msk.bf16.vlgmr.msra.gmra.mrb[40].mxu1 %vm1990_vm4, %v19305_v20 }
0x1414   :  { %10829 = vmatpush1.bf16.msra.mxu1 %v16098_v24  ;;  %10860 = vmatprep.mubr.bf16.mxu1 %v19948_v23 }
0x1415   :  { %10830 = vmatprep.subr.bf16.mxu1 %v16106_v40  ;;  %v16130_v40 = vld [vmem:[%s19888_s5 + $0x194] ss:$8 sps:$4 sm:$0xff]  }
0x1416   :  { %10551 = vmatpush1.bf16.msra.mxu0 %v16083_v55  ;;  %v10374_v35 = vpop.f32.mrb[28].mxu1 }
0x1417   :  { %10552 = vmatprep.subr.bf16.mxu0 %v16091_v43  ;;  %v15312_v0 = vpop.f32.mrb[29].mxu1  ;;  %v16107_v43 = vld [vmem:[%s19888_s5 + $0xe0] ss:$8 sps:$4 sm:$0xff]  }
0x1418   :  { %10831 = vmatpush1.bf16.msra.mxu1 %v16104_v48  ;;  %v10377_v57 = vpop.f32.mrb[30].mxu1  ;;  %v16115_v48 = vld [vmem:[%s19888_s5 + $0xf4] ss:$8 sps:$4 sm:$0xff]   ;;  %v16121_v0 = vld [vmem:[%s19888_s5 + $0x144] ss:$8 sps:$4 sm:$0xff]  }
0x1419   :  { %10832 = vmatprep.subr.bf16.mxu1 %v16112_v22  ;;  %v19337_v49 = vpack.c.bf16 %v10377_v57, %v10374_v35  ;;  %v15313_v27 = vpop.f32.mrb[31].mxu1  ;;  %v16128_v22 = vld [vmem:[%s19888_s5 + $0x190] ss:$8 sps:$4 sm:$0xff]   ;;  %v16134_v57 = vld [vmem:[%s19888_s5 + $0x1a0] ss:$8 sps:$4 sm:$0xff]  }
0x141a   :  { %10553 = vmatpush1.bf16.msra.mxu0 %v16089_v50  ;;  %v16136_v50 = vld [vmem:[%s19888_s5 + $0x1a4] ss:$8 sps:$4 sm:$0xff]   ;;  %v16113_v35 = vld [vmem:[%s19888_s5 + $0xf0] ss:$8 sps:$4 sm:$0xff]   ;;  %v16142_v27 = vld [vmem:[%s19888_s5 + $0x1b4] ss:$8 sps:$4 sm:$0xff]  }
0x141b   :  { %10734 = vmatprep.subr.bf16.mxu0 %v16097_v60 }
0x141c   :  { %10833 = vmatpush1.bf16.msra.mxu1 %v16110_v58 }
0x141d   :  { %13584 = vmatmul.mubr.msk.bf16.vlgmr.msra.gmra.mrb[40].mxu0 %vm1990_vm4, %v10396_v54  ;;  %10834 = vmatprep.subr.bf16.mxu1 %v16118_v45  ;;  %v16122_v54 = vld [vmem:[%s19888_s5 + $0x180] ss:$8 sps:$4 sm:$0xff]  }
0x141e   :  { %10735 = vmatpush1.bf16.msra.mxu0 %v16095_v28  ;;  %10766 = vmatprep.mubr.bf16.mxu0 %v19948_v23  ;;  %v10382_v18 = vpop.f32.mrb[32].mxu1 }
0x141f   :  { %10736 = vmatprep.subr.bf16.mxu0 %v16103_v46  ;;  %v15316_v29 = vpop.f32.mrb[33].mxu1  ;;  %v16119_v46 = vld [vmem:[%s19888_s5 + $0x140] ss:$8 sps:$4 sm:$0xff]  }
0x1420   :  { %10835 = vmatpush1.bf16.msra.mxu1 %v16116_v3  ;;  %v10385_v24 = vpop.f32.mrb[34].mxu1  ;;  %v10690_v3 = vrot.slane %v19305_v20, 4  ;;  %v16125_v20 = vld [vmem:[%s19888_s5 + $0x150] ss:$8 sps:$4 sm:$0xff]   ;;  %v16146_v29 = vld [vmem:[%s19888_s5 + $0x200] ss:$8 sps:$4 sm:$0xff]  }
0x1421   :  { %11018 = vmatprep.subr.bf16.mxu1 %v16124_v33  ;;  %v19365_v38 = vpack.c.bf16 %v10385_v24, %v10382_v18  ;;  %v15317_v55 = vpop.f32.mrb[35].mxu1  ;;  %v16127_v33 = vld [vmem:[%s19888_s5 + $0x154] ss:$8 sps:$4 sm:$0xff]   ;;  %v16148_v18 = vld [vmem:[%s19888_s5 + $0x204] ss:$8 sps:$4 sm:$0xff]  }
0x1422   :  { %10737 = vmatpush1.bf16.msra.mxu0 %v16101_v53  ;;  %v16140_v53 = vld [vmem:[%s19888_s5 + $0x1b0] ss:$8 sps:$4 sm:$0xff]   ;;  %v16131_v24 = vld [vmem:[%s19888_s5 + $0x160] ss:$8 sps:$4 sm:$0xff]  }
0x1423   :  { %10738 = vmatprep.subr.bf16.mxu0 %v16109_v14  ;;  %13635 = vmatmul.mubr.msk.bf16.vlgmr.msra.gmra.mrb[44].mxu1 %vm1990_vm4, %v19337_v49  ;;  %v16133_v14 = vld [vmem:[%s19888_s5 + $0x164] ss:$8 sps:$4 sm:$0xff]   ;;  %v16152_v55 = vld [vmem:[%s19888_s5 + $0x210] ss:$8 sps:$4 sm:$0xff]  }
0x1424   :  { %11019 = vmatpush1.bf16.msra.mxu1 %v16122_v54  ;;  %11050 = vmatprep.mubr.bf16.mxu1 %v19948_v23  ;;  %v16154_v54 = vld [vmem:[%s19888_s5 + $0x214] ss:$8 sps:$4 sm:$0xff]  }
0x1425   :  { %11020 = vmatprep.subr.bf16.mxu1 %v16130_v40  ;;  %v16139_v40 = vld [vmem:[%s19888_s5 + $0x174] ss:$8 sps:$4 sm:$0xff]  }
0x1426   :  { %10739 = vmatpush1.bf16.msra.mxu0 %v16107_v43  ;;  %v19385_v60 = vpop.f32.mrb[36].mxu1  ;;  %v16160_v43 = vld [vmem:[%s19888_s5 + $0x224] ss:$8 sps:$4 sm:$0xff]  }
0x1427   :  { %10740 = vmatprep.subr.bf16.mxu0 %v16115_v48  ;;  %v15320_v58 = vpop.f32.mrb[37].mxu1  ;;  %v16137_v48 = vld [vmem:[%s19888_s5 + $0x170] ss:$8 sps:$4 sm:$0xff]  }
0x1428   :  { %11021 = vmatpush1.bf16.msra.mxu1 %v16128_v22  ;;  %v10393_v45 = vpop.f32.mrb[38].mxu1  ;;  %v16145_v22 = vld [vmem:[%s19888_s5 + $0x1c4] ss:$8 sps:$4 sm:$0xff]   ;;  %v10880_v58 = vrot.slane %v19337_v49, 4 }
0x1429   :  { %11022 = vmatprep.subr.bf16.mxu1 %v16136_v50  ;;  %v15321_v28 = vpop.f32.mrb[39].mxu1  ;;  %v16158_v50 = vld [vmem:[%s19888_s5 + $0x220] ss:$8 sps:$4 sm:$0xff]   ;;  %v16164_v45 = vld [vmem:[%s19888_s5 + $0x230] ss:$8 sps:$4 sm:$0xff]  }
0x142a   :  { %10741 = vmatpush1.bf16.msra.mxu0 %v16113_v35  ;;  %v16166_v35 = vld [vmem:[%s19888_s5 + $0x234] ss:$8 sps:$4 sm:$0xff]   ;;  %v16157_v49 = vld [vmem:[%s19888_s5 + $0x1e4] ss:$8 sps:$4 sm:$0xff]   ;;  %v10400_v28 = vpack.c.bf16 %v19385_v60, %v19385_v60  ;;  %v16161_v60 = vld [vmem:[%s19888_s5 + $0x1f0] ss:$8 sps:$4 sm:$0xff]  }
0x142b   :  { %10924 = vmatprep.subr.bf16.mxu0 %v16121_v0  ;;  %v16143_v0 = vld [vmem:[%s19888_s5 + $0x1c0] ss:$8 sps:$4 sm:$0xff]  }
0x142c   :  { %11023 = vmatpush1.bf16.msra.mxu1 %v16134_v57  ;;  %v16151_v57 = vld [vmem:[%s19888_s5 + $0x1d4] ss:$8 sps:$4 sm:$0xff]  }
0x142d   :  { %13618 = vmatmul.mubr.msk.bf16.vlgmr.msra.gmra.mrb[44].mxu0 %vm1990_vm4, %v10690_v3  ;;  %11024 = vmatprep.subr.bf16.mxu1 %v16142_v27  ;;  %v16149_v27 = vld [vmem:[%s19888_s5 + $0x1d0] ss:$8 sps:$4 sm:$0xff]   ;;  %v16163_v3 = vld [vmem:[%s19888_s5 + $0x1f4] ss:$8 sps:$4 sm:$0xff]  }
0x142e   :  { %10925 = vmatpush1.bf16.msra.mxu0 %v16119_v46  ;;  %10956 = vmatprep.mubr.bf16.mxu0 %v19948_v23  ;;  %v16155_v46 = vld [vmem:[%s19888_s5 + $0x1e0] ss:$8 sps:$4 sm:$0xff]  }
0x142f   :  { %10926 = vmatprep.subr.bf16.mxu0 %v16127_v33  ;;  %v11070_v33 = vrot.slane %v19365_v38, 4 }
0x1430   :  { %11025 = vmatpush1.bf16.msra.mxu1 %v16140_v53 }
0x1431   :  { %11208 = vmatprep.subr.bf16.mxu1 %v16148_v18 }
0x1432   :  { %10927 = vmatpush1.bf16.msra.mxu0 %v16125_v20 }
0x1433   :  { %10928 = vmatprep.subr.bf16.mxu0 %v16133_v14  ;;  %13669 = vmatmul.mubr.msk.bf16.vlgmr.msra.gmra.mrb[48].mxu1 %vm1990_vm4, %v19365_v38 }
0x1434   :  { %11209 = vmatpush1.bf16.msra.mxu1 %v16146_v29  ;;  %11240 = vmatprep.mubr.bf16.mxu1 %v19948_v23 }
0x1435   :  { %11210 = vmatprep.subr.bf16.mxu1 %v16154_v54 }
0x1436   :  { %10929 = vmatpush1.bf16.msra.mxu0 %v16131_v24 }
0x1437   :  { %10930 = vmatprep.subr.bf16.mxu0 %v16139_v40 }
0x1438   :  { %11211 = vmatpush1.bf16.msra.mxu1 %v16152_v55 }
0x1439   :  { %11212 = vmatprep.subr.bf16.mxu1 %v16160_v43 }
0x143a   :  { %10931 = vmatpush1.bf16.msra.mxu0 %v16137_v48 }
0x143b   :  { %11114 = vmatprep.subr.bf16.mxu0 %v16145_v22 }
0x143c   :  { %11213 = vmatpush1.bf16.msra.mxu1 %v16158_v50 }
0x143d   :  { %13652 = vmatmul.mubr.msk.bf16.vlgmr.msra.gmra.mrb[48].mxu0 %vm1990_vm4, %v10880_v58  ;;  %11214 = vmatprep.subr.bf16.mxu1 %v16166_v35 }
0x143e   :  { %11115 = vmatpush1.bf16.msra.mxu0 %v16143_v0  ;;  %11146 = vmatprep.mubr.bf16.mxu0 %v19948_v23 }
0x143f   :  { %11116 = vmatprep.subr.bf16.mxu0 %v16151_v57 }
0x1440   :  { %11215 = vmatpush1.bf16.msra.mxu1 %v16164_v45 }
0x1442   :  { %11117 = vmatpush1.bf16.msra.mxu0 %v16149_v27 }
0x1443   :  { %11118 = vmatprep.subr.bf16.mxu0 %v16157_v49  ;;  %13703 = vmatmul.mubr.msk.bf16.vlgmr.msra.gmra.mrb[52].mxu1 %vm1990_vm4, %v10400_v28 }
0x1444   :  { %11761 = vmatprep.mubr.bf16.mxu1 %v19948_v23 }
0x1446   :  { %11119 = vmatpush1.bf16.msra.mxu0 %v16155_v46 }
0x1447   :  { %11120 = vmatprep.subr.bf16.mxu0 %v16163_v3 }
0x144a   :  { %11121 = vmatpush1.bf16.msra.mxu0 %v16161_v60 }
0x144d   :  { %13686 = vmatmul.mubr.msk.bf16.vlgmr.msra.gmra.mrb[52].mxu0 %vm1990_vm4, %v11070_v33 }
0x144e   :  { %11433 = vmatprep.mubr.bf16.mxu0 %v19948_v23 }
0x14e0   :  { %v10496_v53 = vpop.f32.mrb[36].mxu0 }
0x14e1   :  { %v10498_v18 = vpop.f32.mrb[37].mxu0 }
0x14e2   :  { %v10500_v20 = vpop.f32.mrb[38].mxu0 }
0x14e3   :  { %v10501_v14 = vpop.f32.mrb[39].mxu0 }
0x14e6   :  { %v10672_v29 = vpop.f32.mrb[40].mxu1 }
0x14e7   :  { %v10674_v54 = vpop.f32.mrb[41].mxu1 }
0x14e8   :  { %v10676_v24 = vpop.f32.mrb[42].mxu1 }
0x14e9   :  { %v10677_v40 = vpop.f32.mrb[43].mxu1 }
0x14f0   :  { %v10580_v55 = vpop.f32.mrb[40].mxu0 }
0x14f1   :  { %v10581_v43 = vadd.f32 %v10580_v55, %v10496_v53  ;;  %v10582_v48 = vpop.f32.mrb[41].mxu0 }
0x14f2   :  { %v10583_v22 = vadd.f32 %v10582_v48, %v10498_v18  ;;  %v10584_v50 = vpop.f32.mrb[42].mxu0 }
0x14f3   :  { %v10585_v35 = vpop.f32.mrb[43].mxu0  ;;  %v10679_v0 = vadd.f32 %v10672_v29, %v10581_v43 }
0x14f4   :  { %v10680_v38 = vadd.f32 %v10674_v54, %v10583_v22 }
0x14f6   :  { %v10862_v58 = vpop.f32.mrb[44].mxu1 }
0x14f7   :  { %v10864_v57 = vpop.f32.mrb[45].mxu1 }
0x14f8   :  { %v10866_v45 = vpop.f32.mrb[46].mxu1 }
0x14f9   :  { %v10867_v27 = vpop.f32.mrb[47].mxu1 }
0x1500   :  { %v10768_v49 = vpop.f32.mrb[44].mxu0 }
0x1501   :  { %v10775_v28 = vadd.f32 %v10768_v49, %v10679_v0  ;;  %v10770_v46 = vpop.f32.mrb[45].mxu0 }
0x1502   :  { %v10776_v3 = vadd.f32 %v10770_v46, %v10680_v38  ;;  %v10772_v60 = vpop.f32.mrb[46].mxu0 }
0x1503   :  { %v10869_v33 = vadd.f32 %v10862_v58, %v10775_v28  ;;  %v10773_v20 = vpop.f32.mrb[47].mxu0 }
0x1504   :  { %v10870_v14 = vadd.f32 %v10864_v57, %v10776_v3  ;;  %v11255_v20 = vpop.permute.xlu0 %11254 }
0x1506   :  { %v11052_v24 = vpop.f32.mrb[48].mxu1 }
0x1507   :  { %v11054_v53 = vpop.f32.mrb[49].mxu1 }
0x1508   :  { %v11056_v40 = vpop.f32.mrb[50].mxu1 }
0x1509   :  { %v11057_v18 = vpop.f32.mrb[51].mxu1 }
0x1510   :  { %v10958_v55 = vpop.f32.mrb[48].mxu0 }
0x1511   :  { %v10965_v48 = vadd.f32 %v10958_v55, %v10869_v33  ;;  %v10960_v29 = vpop.f32.mrb[49].mxu0 }
0x1512   :  { %v10966_v54 = vadd.f32 %v10960_v29, %v10870_v14  ;;  %v10962_v43 = vpop.f32.mrb[50].mxu0 }
0x1513   :  { %v11059_v22 = vadd.f32 %v11052_v24, %v10965_v48  ;;  %v10963_v50 = vpop.f32.mrb[51].mxu0  ;;  %v16167_v43 = vld [vmem:[%s19889_s13] sm:$0xff]  }
0x1514   :  { %v11060_v35 = vadd.f32 %v11054_v53, %v10966_v54  ;;  %v16169_v50 = vld [vmem:[%s19889_s13 + $0x10] sm:$0xff]  }
0x1516   :  { %v11242_v45 = vpop.f32.mrb[52].mxu1 }
0x1517   :  { %v11244_v0 = vpop.f32.mrb[53].mxu1 }
0x1518   :  { %v11246_v27 = vpop.f32.mrb[54].mxu1 }
0x1519   :  { %v11247_v38 = vpop.f32.mrb[55].mxu1  ;;  %v11307_v27 = vpop.permute.xlu0 %11306 }
0x1520   :  { %v11148_v49 = vpop.f32.mrb[52].mxu0 }
0x1521   :  { %v11155_v58 = vadd.f32 %v11148_v49, %v11059_v22  ;;  %v11150_v28 = vpop.f32.mrb[53].mxu0  ;;  %v16168_v22 = vld [vmem:[%s19889_s13 + $0x8] sm:$0xff]  }
0x1522   :  { %v11156_v57 = vadd.f32 %v11150_v28, %v11060_v35  ;;  %v11152_v46 = vpop.f32.mrb[54].mxu0  ;;  %v16170_v35 = vld [vmem:[%s19889_s13 + $0x18] sm:$0xff]   ;;  %v11322_v28 = vpop.permute.xlu0 %11321 }
0x1523   :  { %v11249_v3 = vadd.f32 %v11242_v45, %v11155_v58  ;;  %v11153_v60 = vpop.f32.mrb[55].mxu0  ;;  %v16171_v45 = vld [vmem:[%s19889_s13 + $0x20] ss:$0 sps:$4 sm:$0xff]   ;;  %s19949_s13 = smov 16  }
0x1524   :  { %v11250_v40 = vadd.f32 %v11244_v0, %v11156_v57  ;;  %v15422_v0 = vpop.permute.xlu1 %15421 }
0x1525   :  { %v11257_v33 = vadd.f32 %v11255_v20, %v11249_v3  ;;  %v15423_v38 = vunpack.i.l.bf16 %v15422_v0  ;;  %v15424_v49 = vunpack.i.h.bf16 %v15422_v0 }
0x1526   :  { %v11258_v18 = vadd.f32 %v11255_v20, %v11250_v40 }
0x1527   :  { %vm11259_vm0 = vcmp.ge.f32.partialorder %v11257_v33, 0.0  ;;  %v11261_v14 = vmul.f32 0.2, %v11257_v33  ;;  %v11339_v58 = vmul.f32 %v15423_v38, %v18079_v26  ;;  %v11340_v46 = vmul.f32 %v15423_v38, %v18082_v7 }
0x1528   :  { %vm11260_vm4 = vcmp.ge.f32.partialorder %v11258_v18, 0.0  ;;  %v11262_v24 = vmul.f32 0.2, %v11258_v18  ;;  %v11341_v20 = vmul.f32 %v15424_v49, %v18079_v26 }
0x1529   :  { %v11263_v53 = vsel %vm11259_vm0, %v11257_v33, %v11261_v14 }
0x152a   :  { %v11264_v55 = vsel %vm11260_vm4, %v11258_v18, %v11262_v24  ;;  %v11265_v48 = vpack.c.bf16 %v11263_v53, %v11263_v53  ;;  %v11342_v18 = vmul.f32 %v15424_v49, %v18082_v7 }
0x152b   :  { %v11266_v29 = vpack.c.bf16 %v11264_v55, %v11264_v55  ;;  %v11312_v55 = vpop.permute.xlu1 %11311 }
0x152c   :  { %v11396_v54 = vsel %vm1831_vm2, %v11265_v48, 0  ;;  %v11332_v48 = vpop.permute.xlu0 %11331 }
0x152d   :  { %13709 = vmatprep.subr.msk.bf16.mxu0 %vm1831_vm2, %v11266_v29  ;;  %v11343_v29 = vmul.f32 %v11307_v27, %v18079_v26 }
0x152e   :  { %11402 = vmatpush1.bf16.msra.mxu0 %v11396_v54  ;;  %v11344_v54 = vmul.f32 %v11307_v27, %v18082_v7 }
0x1531   :  { %13710 = vmatmul.mubr.msk.bf16.vlgmr.msra.gmra.mrb[56].mxu0 %vm1803_vm3, %v16167_v43 }
0x1532   :  { %11443 = vmatprep.mubr.bf16.mxu0 %v19948_v23 }
0x1539   :  { %13711 = vmatmul.mubr.msk.bf16.gmra.mrb[60].mxu0 %vm1803_vm3, %v16168_v22  ;;  %v11345_v22 = vmul.f32 %v11312_v55, %v18079_v26 }
0x153a   :  { %11453 = vmatprep.mubr.bf16.mxu0 %v19948_v23 }
0x1541   :  { %13712 = vmatmul.mubr.msk.bf16.gmra.mrb[64].mxu0 %vm1803_vm3, %v16169_v50 }
0x1542   :  { %11463 = vmatprep.mubr.bf16.mxu0 %v19948_v23 }
0x1549   :  { %13713 = vmatmul.mubr.msk.bf16.gmra.mrb[68].mxu0 %vm1803_vm3, %v16170_v35 }
0x154a   :  { %11473 = vmatprep.mubr.bf16.mxu0 %v19948_v23 }
0x1551   :  { %13714 = vmatmul.mubr.msk.bf16.gmra.mrb[72].mxu0 %vm1803_vm3, %v16171_v45  ;;  %v11346_v45 = vmul.f32 %v11312_v55, %v18082_v7 }
0x1604   :  { %v11435_v57 = vpop.f32.mrb[56].mxu0 }
0x1605   :  { %v11436_v3 = vadd.f32 %v11435_v57, %v11339_v58  ;;  %v11437_v60 = vpop.f32.mrb[57].mxu0  ;;  %v11317_v57 = vpop.permute.xlu0 %11316 }
0x1606   :  { %v11438_v40 = vadd.f32 %v11437_v60, %v11340_v46  ;;  %v11439_v33 = vpop.f32.mrb[58].mxu0  ;;  %v11347_v27 = vmul.f32 %v11317_v57, %v18079_v26 }
0x1607   :  { %v11440_v14 = vadd.f32 %v11439_v33, %v11341_v20  ;;  %v11441_v24 = vpop.f32.mrb[59].mxu0  ;;  %11482 = vrot.lane.b32.xlu1 %v11436_v3, %s16196_s1  ;;  %v11348_v3 = vmul.f32 %v11317_v57, %v18082_v7  ;;  %v11349_v20 = vmul.f32 %v11322_v28, %v18079_v26 }
0x1608   :  { %v11442_v53 = vadd.f32 %v11441_v24, %v11342_v18  ;;  %11484 = vrot.lane.b32.xlu0 %v11438_v40, %s16196_s1  ;;  %v11350_v18 = vmul.f32 %v11322_v28, %v18082_v7 }
0x160b   :  { %11504 = vrot.lane.b32.xlu1 %v11440_v14, %s19949_s13 }
0x160c   :  { %v11445_v43 = vpop.f32.mrb[60].mxu0  ;;  %11506 = vrot.lane.b32.xlu0 %v11442_v53, %s19949_s13 }
0x160d   :  { %v11446_v50 = vadd.f32 %v11445_v43, %v11343_v29  ;;  %v11447_v35 = vpop.f32.mrb[61].mxu0  ;;  %v11327_v29 = vpop.permute.xlu1 %11326 }
0x160e   :  { %v11448_v0 = vadd.f32 %v11447_v35, %v11344_v54  ;;  %v11449_v38 = vpop.f32.mrb[62].mxu0  ;;  %v11351_v43 = vmul.f32 %v11327_v29, %v18079_v26  ;;  %v11353_v35 = vmul.f32 %v11332_v48, %v18079_v26 }
0x160f   :  { %v11450_v49 = vadd.f32 %v11449_v38, %v11345_v22  ;;  %v11451_v58 = vpop.f32.mrb[63].mxu0  ;;  %11526 = vrot.lane.b32.xlu1 %v11446_v50, %s19950_s27  ;;  %v11352_v22 = vmul.f32 %v11327_v29, %v18082_v7 }
0x1610   :  { %v11452_v46 = vadd.f32 %v11451_v58, %v11346_v45  ;;  %11528 = vrot.lane.b32.xlu0 %v11448_v0, %s19950_s27  ;;  %v11354_v0 = vmul.f32 %v11332_v48, %v18082_v7 }
0x1613   :  { %11548 = vrot.lane.b32.xlu1 %v11450_v49, %s19951_s21 }
0x1614   :  { %v11455_v60 = vpop.f32.mrb[64].mxu0  ;;  %11550 = vrot.lane.b32.xlu0 %v11452_v46, %s19951_s21  ;;  %v11337_v46 = vpop.permute.xlu1 %11336 }
0x1615   :  { %v19529_v40 = vadd.f32 %v11455_v60, %v11347_v27  ;;  %v11457_v33 = vpop.f32.mrb[65].mxu0  ;;  %v11356_v60 = vmul.f32 %v11337_v46, %v18082_v7  ;;  %v11892_v7 = vld [vmem:[%s19956_s14] sm:$0xf] }
0x1616   :  { %v19532_v14 = vadd.f32 %v11457_v33, %v11348_v3  ;;  %v11459_v24 = vpop.f32.mrb[66].mxu0  ;;  %v11355_v3 = vmul.f32 %v11337_v46, %v18079_v26  ;;  %v5988_v26 = vld [vmem:[%s19956_s14] sm:$0xf] }
0x1617   :  { %v11460_v53 = vadd.f32 %v11459_v24, %v11349_v20  ;;  %v11461_v55 = vpop.f32.mrb[67].mxu0 }
0x1618   :  { %v11462_v54 = vadd.f32 %v11461_v55, %v11350_v18 }
0x1619   :  { %11572 = vrot.lane.b32.xlu1 %v11460_v53, %s19952_s7 }
0x161a   :  { %11574 = vrot.lane.b32.xlu0 %v11462_v54, %s19952_s7 }
0x161c   :  { %v11465_v50 = vpop.f32.mrb[68].mxu0 }
0x161d   :  { %v11466_v45 = vadd.f32 %v11465_v50, %v11351_v43  ;;  %v11467_v28 = vpop.f32.mrb[69].mxu0 }
0x161e   :  { %v11468_v38 = vadd.f32 %v11467_v28, %v11352_v22  ;;  %v11469_v49 = vpop.f32.mrb[70].mxu0 }
0x161f   :  { %v11470_v58 = vadd.f32 %v11469_v49, %v11353_v35  ;;  %v11471_v57 = vpop.f32.mrb[71].mxu0  ;;  %11594 = vrot.lane.b32.xlu1 %v11466_v45, %s19953_s2 }
0x1620   :  { %v11472_v27 = vadd.f32 %v11471_v57, %v11354_v0  ;;  %11596 = vrot.lane.b32.xlu0 %v11468_v38, %s19953_s2 }
0x1623   :  { %11616 = vrot.lane.b32.xlu1 %v11470_v58, %s19954_s10 }
0x1624   :  { %v11475_v20 = vpop.f32.mrb[72].mxu0  ;;  %11618 = vrot.lane.b32.xlu0 %v11472_v27, %s19954_s10 }
0x1625   :  { %v11476_v48 = vadd.f32 %v11475_v20, %v11355_v3  ;;  %v11477_v33 = vpop.f32.mrb[73].mxu0 }
0x1626   :  { %v11478_v18 = vadd.f32 %v11477_v33, %v11356_v60  ;;  %v11479_v24 = vpop.f32.mrb[74].mxu0  ;;  %v13718_v33 = vld [vmem:[%s19891_s6 + $0xa] sm:$0x3] }
0x1627   :  { %v11480_v53 = vpop.f32.mrb[75].mxu0 }
0x1628   :  { %11638 = vrot.lane.b32.xlu0 %v11476_v48, %s19955_s18  ;;  %11640 = vrot.lane.b32.xlu1 %v11478_v18, %s19955_s18 }
0x162c   :  { %5906 = vrot.lane.b32.xlu0 %v18569_v34, %s16196_s1  ;;  %5908 = vrot.lane.b32.xlu1 %v18571_v44, %s16196_s1  ;;  %v19586_v34 = vpop.permute.xlu1 %11663 }
0x1630   :  { %5916 = vrot.lane.b32.xlu0 %v18573_v6, %s19949_s13  ;;  %5918 = vrot.lane.b32.xlu1 %v18575_v56, %s19949_s13 }
0x1634   :  { %5926 = vrot.lane.b32.xlu0 %v18577_v59, %s19950_s27  ;;  %5928 = vrot.lane.b32.xlu1 %v18579_v2, %s19950_s27 }
0x1638   :  { %5936 = vrot.lane.b32.xlu0 %v18581_v39, %s19951_s21  ;;  %5938 = vrot.lane.b32.xlu1 %v18583_v47, %s19951_s21  ;;  %v13715_v47 = vld [vmem:[%s19891_s6 + $0x2] sm:$0x3] }
0x163c   :  { %5948 = vrot.lane.b32.xlu0 %v18589_v63, %s19952_s7  ;;  %5950 = vrot.lane.b32.xlu1 %v18591_v1, %s19952_s7  ;;  %v11488_v63 = vld [vmem:[%s19891_s6] sm:$0x3]  ;;  %v13716_v1 = vld [vmem:[%s19891_s6 + $0x4] sm:$0x3] }
0x163d   :  { %v19614_v55 = vrot.slane %v11488_v63, %v16485_v16  ;;  %v19617_v29 = vrot.slane %v13716_v1, %v16483_v15  ;;  %v19620_v54 = vrot.slane %v13716_v1, %v16485_v16  ;;  %v13720_v1 = vld [vmem:[%s19891_s6 + $0xe] sm:$0x3] }
0x1640   :  { %5958 = vrot.lane.b32.xlu0 %v18593_v5, %s19953_s2  ;;  %5960 = vrot.lane.b32.xlu1 %v18595_v8, %s19953_s2  ;;  %v19598_v5 = vrot.slane %v13715_v47, %v16483_v15  ;;  %v19601_v8 = vrot.slane %v13715_v47, %v16485_v16 }
0x1644   :  { %5968 = vrot.lane.b32.xlu0 %v18597_v9, %s19954_s10  ;;  %5970 = vrot.lane.b32.xlu1 %v18599_v11, %s19954_s10 }
0x1648   :  { %5991 = vperm.xlu0 %15373, %v5988_v26   ;;  %11895 = vperm.xlu1 %15384, %v11892_v7  }
0x164c   :  { %5978 = vrot.lane.b32.xlu0 %v18601_v12, %s19955_s18  ;;  %5980 = vrot.lane.b32.xlu1 %v18603_v17, %s19955_s18  ;;  %v13717_v12 = vld [vmem:[%s19891_s6 + $0x6] sm:$0x3]  ;;  %v19611_v17 = vrot.slane %v11488_v63, %v16483_v15 }
0x164d   :  { %v19633_v49 = vrot.slane %v13717_v12, %v16483_v15  ;;  %v19636_v58 = vrot.slane %v13717_v12, %v16485_v16 }
0x1679   :  { %v11483_v44 = vpop.permute.xlu1 %11482 }
0x167a   :  { %v11485_v6 = vpop.permute.xlu0 %11484 }
0x167b   :  { %v11486_v50 = vsel %vm5567_vm14, %v11483_v44, %v11485_v6  ;;  %v11487_v35 = vsel %vm5567_vm14, %v11485_v6, %v11483_v44  ;;  %v13719_v44 = vld [vmem:[%s19891_s6 + $0xc] sm:$0x3] }
0x167c   :  { %v11500_v27 = vmul.f32 %v19611_v17, %v11487_v35  ;;  %v11501_v3 = vmul.f32 %v19614_v55, %v11486_v50  ;;  %v19668_v12 = vrot.slane %v13719_v44, %v16483_v15 }
0x167d   :  { %v11505_v56 = vpop.permute.xlu1 %11504 }
0x167e   :  { %v11507_v59 = vpop.permute.xlu0 %11506 }
0x167f   :  { %v11508_v9 = vsel %vm5590_vm13, %v11505_v56, %v11507_v59  ;;  %v11509_v11 = vsel %vm5590_vm13, %v11507_v59, %v11505_v56  ;;  %v19655_v59 = vrot.slane %v13718_v33, %v16483_v15 }
0x1680   :  { %v11522_v0 = vmul.f32 %v19598_v5, %v11509_v11  ;;  %v11523_v38 = vmul.f32 %v19601_v8, %v11508_v9 }
0x1681   :  { %v11527_v2 = vpop.permute.xlu1 %11526 }
0x1682   :  { %v11529_v39 = vpop.permute.xlu0 %11528  ;;  %v11524_v18 = vadd.f32 %v11522_v0, %v11500_v27  ;;  %v11525_v24 = vadd.f32 %v11523_v38, %v11501_v3  ;;  %v19680_v0 = vrot.slane %v13720_v1, %v16483_v15  ;;  %v19683_v38 = vrot.slane %v13720_v1, %v16485_v16 }
0x1683   :  { %v11530_v45 = vsel %vm5614_vm15, %v11527_v2, %v11529_v39  ;;  %v11531_v28 = vsel %vm5614_vm15, %v11529_v39, %v11527_v2  ;;  %v19658_v2 = vrot.slane %v13718_v33, %v16485_v16 }
0x1684   :  { %v11544_v60 = vmul.f32 %v19617_v29, %v11531_v28  ;;  %v11545_v20 = vmul.f32 %v19620_v54, %v11530_v45 }
0x1685   :  { %v11549_v43 = vpop.permute.xlu1 %11548 }
0x1686   :  { %v11551_v22 = vpop.permute.xlu0 %11550  ;;  %v11546_v6 = vadd.f32 %v11544_v60, %v11524_v18  ;;  %v11547_v56 = vadd.f32 %v11545_v20, %v11525_v24 }
0x1687   :  { %v11552_v57 = vsel %vm5638_vm1, %v11549_v43, %v11551_v22  ;;  %v11553_v46 = vsel %vm5638_vm1, %v11551_v22, %v11549_v43  ;;  %v19671_v43 = vrot.slane %v13719_v44, %v16485_v16 }
0x1688   :  { %v11566_v53 = vmul.f32 %v19633_v49, %v11553_v46  ;;  %v11567_v26 = vmul.f32 %v19636_v58, %v11552_v57  ;;  %v13721_v57 = vld [vmem:[%s19891_s6 + $0x10] sm:$0x3] }
0x1689   :  { %v19697_v24 = vrot.slane %v13721_v57, %v16483_v15 }
0x168a   :  { %v11568_v9 = vadd.f32 %v11566_v53, %v11546_v6  ;;  %v11569_v11 = vadd.f32 %v11567_v26, %v11547_v56  ;;  %v19700_v53 = vrot.slane %v13721_v57, %v16485_v16 }
0x168b   :  { %v11573_v48 = vpop.permute.xlu1 %11572 }
0x168c   :  { %v11575_v7 = vpop.permute.xlu0 %11574  ;;  %v11570_v27 = vadd.f32 %v11568_v9, %v19529_v40  ;;  %v11571_v3 = vadd.f32 %v11569_v11, %v19532_v14 }
0x168d   :  { %v11576_v39 = vsel %vm5664_vm5, %v11573_v48, %v11575_v7  ;;  %v11577_v47 = vsel %vm5664_vm5, %v11575_v7, %v11573_v48 }
0x168e   :  { %v11590_v45 = vmul.f32 %v19655_v59, %v11576_v39  ;;  %v11591_v28 = vmul.f32 %v19658_v2, %v11577_v47 }
0x1690   :  { %v11592_v40 = vadd.f32 %v11590_v45, %v11570_v27  ;;  %v11593_v26 = vadd.f32 %v11591_v28, %v11571_v3 }
0x1691   :  { %v11595_v63 = vpop.permute.xlu1 %11594 }
0x1692   :  { %v11597_v22 = vpop.permute.xlu0 %11596 }
0x1693   :  { %v11598_v50 = vsel %vm5688_vm6, %v11595_v63, %v11597_v22  ;;  %v11599_v35 = vsel %vm5688_vm6, %v11597_v22, %v11595_v63 }
0x1694   :  { %v11612_v60 = vmul.f32 %v19668_v12, %v11598_v50  ;;  %v11613_v20 = vmul.f32 %v19671_v43, %v11599_v35 }
0x1695   :  { %v11617_v46 = vpop.permute.xlu1 %11616 }
0x1696   :  { %v11619_v48 = vpop.permute.xlu0 %11618  ;;  %v11614_v44 = vadd.f32 %v11612_v60, %v11592_v40  ;;  %v11615_v6 = vadd.f32 %v11613_v20, %v11593_v26  ;;  %v16172_v40 = vld [vmem:[%s19946_s26] sm:$0xff]  }
0x1697   :  { %v11620_v33 = vsel %vm5712_vm8, %v11617_v46, %v11619_v48  ;;  %v11621_v18 = vsel %vm5712_vm8, %v11619_v48, %v11617_v46 }
0x1698   :  { %v11634_v14 = vmul.f32 %v19680_v0, %v11620_v33  ;;  %v11635_v7 = vmul.f32 %v19683_v38, %v11621_v18 }
0x169a   :  { %v11639_v56 = vpop.permute.xlu0 %11638  ;;  %v11641_v39 = vpop.permute.xlu1 %11640  ;;  %v11636_v63 = vadd.f32 %v11634_v14, %v11614_v44  ;;  %v11637_v1 = vadd.f32 %v11635_v7, %v11615_v6  ;;  %v16173_v14 = vld [vmem:[%s19946_s26 + $0x8] sm:$0xff]  }
0x169b   :  { %v11642_v47 = vsel %vm5736_vm9, %v11639_v56, %v11641_v39  ;;  %v11643_v15 = vsel %vm5736_vm9, %v11641_v39, %v11639_v56 }
0x169c   :  { %v11656_v16 = vmul.f32 %v19697_v24, %v11642_v47  ;;  %v11657_v9 = vmul.f32 %v19700_v53, %v11643_v15  ;;  %v16174_v15 = vld [vmem:[%s19946_s26 + $0x10] sm:$0xff]  }
0x169e   :  { %v11658_v11 = vadd.f32 %v11656_v16, %v11636_v63  ;;  %v11659_v22 = vadd.f32 %v11657_v9, %v11637_v1  ;;  %v5907_v50 = vpop.permute.xlu0 %5906  ;;  %v5909_v35 = vpop.permute.xlu1 %5908 }
0x169f   :  { %v5910_v63 = vsel %vm5567_vm14, %v5907_v50, %v5909_v35  ;;  %v5911_v1 = vsel %vm5567_vm14, %v5909_v35, %v5907_v50 }
0x16a0   :  { %v11666_v45 = vadd.f32 %v19586_v34, %v11658_v11  ;;  %v11667_v28 = vadd.f32 %v19586_v34, %v11659_v22  ;;  %v5913_v50 = vmul.f32 %v5910_v63, %v17958_v19  ;;  %v16175_v19 = vld [vmem:[%s19946_s26 + $0x18] sm:$0xff]  }
0x16a2   :  { %v11671_v57 = vmul.f32 0.2, %v11667_v28  ;;  %vm11669_vm11 = vcmp.ge.f32.partialorder %v11667_v28, 0.0  ;;  %vm11668_vm12 = vcmp.ge.f32.partialorder %v11666_v45, 0.0  ;;  %v11670_v46 = vmul.f32 0.2, %v11666_v45  ;;  %v5917_v60 = vpop.permute.xlu0 %5916  ;;  %v5919_v20 = vpop.permute.xlu1 %5918 }
0x16a3   :  { %v5920_v6 = vsel %vm5590_vm13, %v5917_v60, %v5919_v20  ;;  %v5921_v56 = vsel %vm5590_vm13, %v5919_v20, %v5917_v60 }
0x16a4   :  { %v11673_v27 = vsel %vm11669_vm11, %v11667_v28, %v11671_v57  ;;  %v11672_v3 = vsel %vm11668_vm12, %v11666_v45, %v11670_v46  ;;  %v5922_v11 = vmul.f32 %v5921_v56, %v17941_v13  ;;  %v5923_v22 = vmul.f32 %v5920_v6, %v17944_v36 }
0x16a5   :  { %v11675_v48 = vpack.c.bf16 %v11673_v27, %v11673_v27  ;;  %v11674_v33 = vpack.c.bf16 %v11672_v3, %v11672_v3  ;;  %v5912_v57 = vmul.f32 %v5911_v1, %v17948_v37 }
0x16a6   :  { %v5927_v34 = vpop.permute.xlu0 %5926  ;;  %v5929_v26 = vpop.permute.xlu1 %5928  ;;  %v5925_v36 = vadd.f32 %v5923_v22, %v5913_v50  ;;  %v19958_v50 = vld [vmem:[#allocation3_spill] sm:$0xff] }
0x16a7   :  { %13727 = vmatprep.subr.msk.bf16.mxu1 %vm1831_vm2, %v11675_v48  ;;  %v11724_v18 = vsel %vm1831_vm2, %v11674_v33, 0  ;;  %v5930_v16 = vsel %vm5614_vm15, %v5927_v34, %v5929_v26  ;;  %v5931_v9 = vsel %vm5614_vm15, %v5929_v26, %v5927_v34  ;;  %v5924_v13 = vadd.f32 %v5922_v11, %v5912_v57 }
0x16a8   :  { %11730 = vmatpush1.bf16.msra.mxu1 %v11724_v18  ;;  %v5932_v35 = vmul.f32 %v5931_v9, %v17961_v41  ;;  %v5933_v46 = vmul.f32 %v5930_v16, %v17964_v42 }
0x16aa   :  { %v5937_v7 = vpop.permute.xlu0 %5936  ;;  %v5939_v44 = vpop.permute.xlu1 %5938  ;;  %v5934_v48 = vadd.f32 %v5932_v35, %v5924_v13  ;;  %v5935_v37 = vadd.f32 %v5933_v46, %v5925_v36 }
0x16ab   :  { %13728 = vmatmul.mubr.msk.bf16.vlgmr.msra.gmra.mrb[56].mxu1 %vm1803_vm3, %v16172_v40  ;;  %v5940_v45 = vsel %vm5638_vm1, %v5937_v7, %v5939_v44  ;;  %v5941_v28 = vsel %vm5638_vm1, %v5939_v44, %v5937_v7 }
0x16ac   :  { %11771 = vmatprep.mubr.bf16.mxu1 %v19948_v23  ;;  %v5942_v27 = vmul.f32 %v5941_v28, %v17978_v51  ;;  %v5943_v3 = vmul.f32 %v5940_v45, %v17981_v52  ;;  %v19957_v28 = vld [vmem:[#allocation2_spill] sm:$0xff] }
0x16ae   :  { %v5949_v39 = vpop.permute.xlu0 %5948  ;;  %v5951_v47 = vpop.permute.xlu1 %5950  ;;  %v5944_v41 = vadd.f32 %v5942_v27, %v5934_v48  ;;  %v5945_v42 = vadd.f32 %v5943_v3, %v5935_v37 }
0x16af   :  { %v5952_v33 = vsel %vm5664_vm5, %v5949_v39, %v5951_v47  ;;  %v5953_v18 = vsel %vm5664_vm5, %v5951_v47, %v5949_v39 }
0x16b0   :  { %v5946_v26 = vadd.f32 %v5944_v41, %v18585_v61  ;;  %v5954_v7 = vmul.f32 %v5952_v33, %v17998_v4  ;;  %v5955_v44 = vmul.f32 %v5953_v18, %v18004_v10  ;;  %v16176_v61 = vld [vmem:[%s19946_s26 + $0x20] ss:$0 sps:$4 sm:$0xff]  }
0x16b2   :  { %v5959_v60 = vpop.permute.xlu0 %5958  ;;  %v5961_v20 = vpop.permute.xlu1 %5960  ;;  %v5956_v4 = vadd.f32 %v5954_v7, %v5946_v26 }
0x16b3   :  { %13729 = vmatmul.mubr.msk.bf16.gmra.mrb[60].mxu1 %vm1803_vm3, %v16173_v14  ;;  %v5962_v52 = vsel %vm5688_vm6, %v5959_v60, %v5961_v20  ;;  %v5963_v34 = vsel %vm5688_vm6, %v5961_v20, %v5959_v60  ;;  %v5947_v14 = vadd.f32 %v5945_v42, %v18587_v62 }
0x16b4   :  { %11781 = vmatprep.mubr.bf16.mxu1 %v19948_v23  ;;  %v5964_v39 = vmul.f32 %v5962_v52, %v18015_v25  ;;  %v5965_v47 = vmul.f32 %v5963_v34, %v18018_v21 }
0x16b5   :  { %v5957_v62 = vadd.f32 %v5955_v44, %v5947_v14 }
0x16b6   :  { %v5969_v40 = vpop.permute.xlu0 %5968  ;;  %v5971_v51 = vpop.permute.xlu1 %5970  ;;  %v5966_v1 = vadd.f32 %v5964_v39, %v5956_v4 }
0x16b7   :  { %v5972_v6 = vsel %vm5712_vm8, %v5969_v40, %v5971_v51  ;;  %v5973_v56 = vsel %vm5712_vm8, %v5971_v51, %v5969_v40  ;;  %v5967_v16 = vadd.f32 %v5965_v47, %v5957_v62 }
0x16b8   :  { %v5974_v10 = vmul.f32 %v5972_v6, %v18028_v30  ;;  %v5975_v63 = vmul.f32 %v5973_v56, %v18031_v32 }
0x16ba   :  { %v5976_v22 = vadd.f32 %v5974_v10, %v5966_v1  ;;  %v5977_v45 = vadd.f32 %v5975_v63, %v5967_v16 }
0x16bb   :  { %13730 = vmatmul.mubr.msk.bf16.gmra.mrb[64].mxu1 %vm1803_vm3, %v16174_v15 }
0x16bc   :  { %11791 = vmatprep.mubr.bf16.mxu1 %v19948_v23 }
0x16c3   :  { %13731 = vmatmul.mubr.msk.bf16.gmra.mrb[68].mxu1 %vm1803_vm3, %v16175_v19 }
0x16c4   :  { %11801 = vmatprep.mubr.bf16.mxu1 %v19948_v23 }
0x16c7   :  { %v5992_v15 = vpop.permute.xlu0 %5991  ;;  %v19776_v23 = vpop.permute.xlu1 %11895 }
0x16cb   :  { %v5979_v9 = vpop.permute.xlu0 %5978  ;;  %13732 = vmatmul.mubr.msk.bf16.gmra.mrb[72].mxu1 %vm1803_vm3, %v16176_v61  ;;  %v5981_v25 = vpop.permute.xlu1 %5980 }
0x16cc   :  { %v5982_v21 = vsel %vm5736_vm9, %v5979_v9, %v5981_v25  ;;  %v5983_v11 = vsel %vm5736_vm9, %v5981_v25, %v5979_v9 }
0x16cd   :  { %v5984_v57 = vmul.f32 %v5982_v21, %v19957_v28  ;;  %v5985_v30 = vmul.f32 %v5983_v11, %v19958_v50 }
0x16cf   :  { %v5986_v35 = vadd.f32 %v5984_v57, %v5976_v22  ;;  %v5987_v32 = vadd.f32 %v5985_v30, %v5977_v45 }
0x16d1   :  { %v5994_v46 = vadd.f32 %v5992_v15, %v5986_v35  ;;  %v5995_v13 = vadd.f32 %v5992_v15, %v5987_v32 }
0x16d3   :  { %v5996_v36 = vsel %vm1831_vm2, %v5994_v46, -inf  ;;  %v6003_v27 = vsel %vm1831_vm2, %v5995_v13, -inf }
0x16d4   :  { %v5997_v3 = vrot.slane %v5996_v36, 4  ;;  %v6004_v60 = vrot.slane %v6003_v27, 4 }
0x16d6   :  { %v5998_v20 = vmax.f32 %v5996_v36, %v5997_v3  ;;  %v6005_v48 = vmax.f32 %v6003_v27, %v6004_v60 }
0x16d8   :  { %v5999_v37 = vrot.slane %v5998_v20, 2  ;;  %v6006_v19 = vrot.slane %v6005_v48, 2 }
0x16da   :  { %v6000_v41 = vmax.f32 %v5998_v20, %v5999_v37  ;;  %v6007_v42 = vmax.f32 %v6005_v48, %v6006_v19 }
0x16dc   :  { %v6001_v33 = vrot.slane %v6000_v41, 1  ;;  %v6008_v18 = vrot.slane %v6007_v42, 1 }
0x16de   :  { %v6002_v40 = vmax.f32 %v6000_v41, %v6001_v33  ;;  %v6009_v51 = vmax.f32 %v6007_v42, %v6008_v18 }
0x16e0   :  { %v6010_v52 = vsub.f32 %v5994_v46, %v6002_v40  ;;  %v6011_v34 = vsub.f32 %v5995_v13, %v6009_v51 }
0x16e2   :  { %v6012_v26 = vmul.f32 1.442695, %v6010_v52  ;;  %v6014_v14 = vmul.f32 1.442695, %v6011_v34 }
0x16e4   :  { %16177 = vpow2.f32 %v6012_v26 }
0x16e5   :  { %16179 = vpow2.f32 %v6014_v14 }
0x16ee   :  { %v16178_v7 = vpop.eup %16177 }
0x16ef   :  { %v16180_v44 = vpop.eup %16179  ;;  %v6016_v6 = vsel %vm1831_vm2, %v16178_v7, 0.0 }
0x16f0   :  { %v6017_v56 = vrot.slane %v6016_v6, 4  ;;  %v6023_v39 = vsel %vm1831_vm2, %v16180_v44, 0.0 }
0x16f1   :  { %v6024_v47 = vrot.slane %v6023_v39, 4 }
0x16f2   :  { %v6018_v15 = vadd.f32 %v6017_v56, %v6016_v6 }
0x16f3   :  { %v6025_v61 = vadd.f32 %v6024_v47, %v6023_v39 }
0x16f4   :  { %v6019_v4 = vrot.slane %v6018_v15, 2 }
0x16f5   :  { %v6026_v62 = vrot.slane %v6025_v61, 2 }
0x16f6   :  { %v6020_v10 = vadd.f32 %v6019_v4, %v6018_v15 }
0x16f7   :  { %v6027_v63 = vadd.f32 %v6026_v62, %v6025_v61 }
0x16f8   :  { %v6021_v1 = vrot.slane %v6020_v10, 1 }
0x16f9   :  { %v6028_v16 = vrot.slane %v6027_v63, 1 }
0x16fa   :  { %v6022_v9 = vadd.f32 %v6021_v1, %v6020_v10 }
0x16fb   :  { %v6029_v25 = vadd.f32 %v6028_v16, %v6027_v63 }
0x16fc   :  { %16181 = vrcp.f32 %v6022_v9 }
0x16fd   :  { %16183 = vrcp.f32 %v6029_v25 }
0x1706   :  { %v16182_v21 = vpop.eup %16181 }
0x1707   :  { %v16184_v11 = vpop.eup %16183  ;;  %v6031_v22 = vmul.f32 %v16182_v21, %v16178_v7 }
0x1708   :  { %v6033_v45 = vmul.f32 %v16184_v11, %v16180_v44 }
0x170a   :  { %v6036_v28 = vcombine.low %v6031_v22, %v6033_v45 }
0x170c   :  { %6038 = vst [vmem:[%s19959_s29] sm:$0x77] %v6036_v28 }
0x177e   :  { %v11763_v57 = vpop.f32.mrb[56].mxu1 }
0x177f   :  { %v11765_v50 = vpop.f32.mrb[57].mxu1  ;;  %11810 = vrot.lane.b32.xlu0 %v11763_v57, %s16196_s1 }
0x1780   :  { %11812 = vrot.lane.b32.xlu1 %v11765_v50, %s16196_s1  ;;  %v11767_v30 = vpop.f32.mrb[58].mxu1 }
0x1781   :  { %v11769_v35 = vpop.f32.mrb[59].mxu1 }
0x1783   :  { %11820 = vrot.lane.b32.xlu0 %v11767_v30, %s19949_s13 }
0x1784   :  { %11822 = vrot.lane.b32.xlu1 %v11769_v35, %s19949_s13 }
0x1786   :  { %v11773_v32 = vpop.f32.mrb[60].mxu1 }
0x1787   :  { %v11775_v46 = vpop.f32.mrb[61].mxu1  ;;  %11830 = vrot.lane.b32.xlu0 %v11773_v32, %s19950_s27 }
0x1788   :  { %11832 = vrot.lane.b32.xlu1 %v11775_v46, %s19950_s27  ;;  %v11777_v13 = vpop.f32.mrb[62].mxu1 }
0x1789   :  { %v11779_v36 = vpop.f32.mrb[63].mxu1 }
0x178b   :  { %11840 = vrot.lane.b32.xlu0 %v11777_v13, %s19951_s21 }
0x178c   :  { %11842 = vrot.lane.b32.xlu1 %v11779_v36, %s19951_s21 }
0x178e   :  { %v11783_v27 = vpop.f32.mrb[64].mxu1 }
0x178f   :  { %v11785_v3 = vpop.f32.mrb[65].mxu1 }
0x1790   :  { %v11787_v60 = vpop.f32.mrb[66].mxu1 }
0x1791   :  { %v11789_v20 = vpop.f32.mrb[67].mxu1  ;;  %11852 = vrot.lane.b32.xlu0 %v11787_v60, %s19952_s7 }
0x1792   :  { %11854 = vrot.lane.b32.xlu1 %v11789_v20, %s19952_s7 }
0x1796   :  { %v11793_v48 = vpop.f32.mrb[68].mxu1 }
0x1797   :  { %v11795_v37 = vpop.f32.mrb[69].mxu1  ;;  %11862 = vrot.lane.b32.xlu0 %v11793_v48, %s19953_s2 }
0x1798   :  { %11864 = vrot.lane.b32.xlu1 %v11795_v37, %s19953_s2  ;;  %v11797_v19 = vpop.f32.mrb[70].mxu1 }
0x1799   :  { %v11799_v41 = vpop.f32.mrb[71].mxu1 }
0x179b   :  { %11874 = vrot.lane.b32.xlu0 %v11799_v41, %s19954_s10 }
0x179c   :  { %11872 = vrot.lane.b32.xlu1 %v11797_v19, %s19954_s10 }
0x179e   :  { %v11803_v42 = vpop.f32.mrb[72].mxu1 }
0x179f   :  { %v11805_v33 = vpop.f32.mrb[73].mxu1  ;;  %11882 = vrot.lane.b32.xlu0 %v11803_v42, %s19955_s18 }
0x17a0   :  { %11884 = vrot.lane.b32.xlu1 %v11805_v33, %s19955_s18  ;;  %v11807_v18 = vpop.f32.mrb[74].mxu1 }
0x17a1   :  { %v11808_v40 = vpop.f32.mrb[75].mxu1 }
0x17f1   :  { %v11811_v51 = vpop.permute.xlu0 %11810 }
0x17f2   :  { %v11813_v52 = vpop.permute.xlu1 %11812 }
0x17f3   :  { %v11814_v47 = vsel %vm5567_vm14, %v11811_v51, %v11813_v52  ;;  %v11815_v15 = vsel %vm5567_vm14, %v11813_v52, %v11811_v51 }
0x17f4   :  { %v11816_v16 = vmul.f32 %v11815_v15, %v19611_v17  ;;  %v11817_v9 = vmul.f32 %v11814_v47, %v19614_v55 }
0x17f5   :  { %v11821_v34 = vpop.permute.xlu0 %11820 }
0x17f6   :  { %v11823_v26 = vpop.permute.xlu1 %11822 }
0x17f7   :  { %v11824_v44 = vsel %vm5590_vm13, %v11821_v34, %v11823_v26  ;;  %v11825_v6 = vsel %vm5590_vm13, %v11823_v26, %v11821_v34 }
0x17f8   :  { %v11826_v62 = vmul.f32 %v11825_v6, %v19598_v5  ;;  %v11827_v10 = vmul.f32 %v11824_v44, %v19601_v8 }
0x17f9   :  { %v11831_v14 = vpop.permute.xlu0 %11830 }
0x17fa   :  { %v11833_v7 = vpop.permute.xlu1 %11832  ;;  %v11828_v22 = vadd.f32 %v11826_v62, %v11816_v16  ;;  %v11829_v45 = vadd.f32 %v11827_v10, %v11817_v9 }
0x17fb   :  { %v11834_v61 = vsel %vm5614_vm15, %v11831_v14, %v11833_v7  ;;  %v11835_v4 = vsel %vm5614_vm15, %v11833_v7, %v11831_v14 }
0x17fc   :  { %v11836_v25 = vmul.f32 %v11835_v4, %v19617_v29  ;;  %v11837_v21 = vmul.f32 %v11834_v61, %v19620_v54 }
0x17fd   :  { %v11841_v56 = vpop.permute.xlu0 %11840 }
0x17fe   :  { %v11843_v39 = vpop.permute.xlu1 %11842  ;;  %v11838_v57 = vadd.f32 %v11836_v25, %v11828_v22  ;;  %v11839_v50 = vadd.f32 %v11837_v21, %v11829_v45 }
0x17ff   :  { %v11844_v63 = vsel %vm5638_vm1, %v11841_v56, %v11843_v39  ;;  %v11845_v1 = vsel %vm5638_vm1, %v11843_v39, %v11841_v56 }
0x1800   :  { %v11846_v5 = vmul.f32 %v11845_v1, %v19633_v49  ;;  %v11847_v8 = vmul.f32 %v11844_v63, %v19636_v58 }
0x1802   :  { %v11848_v29 = vadd.f32 %v11846_v5, %v11838_v57  ;;  %v11849_v35 = vadd.f32 %v11847_v8, %v11839_v50 }
0x1803   :  { %v11853_v11 = vpop.permute.xlu0 %11852 }
0x1804   :  { %v11855_v28 = vpop.permute.xlu1 %11854  ;;  %v11850_v36 = vadd.f32 %v11848_v29, %v11783_v27  ;;  %v11851_v60 = vadd.f32 %v11849_v35, %v11785_v3 }
0x1805   :  { %v11856_v30 = vsel %vm5664_vm5, %v11853_v11, %v11855_v28  ;;  %v11857_v17 = vsel %vm5664_vm5, %v11855_v28, %v11853_v11 }
0x1806   :  { %v11858_v58 = vmul.f32 %v11856_v30, %v19655_v59  ;;  %v11859_v46 = vmul.f32 %v11857_v17, %v19658_v2 }
0x1808   :  { %v11860_v42 = vadd.f32 %v11858_v58, %v11850_v36  ;;  %v11861_v33 = vadd.f32 %v11859_v46, %v11851_v60 }
0x1809   :  { %v11863_v55 = vpop.permute.xlu0 %11862 }
0x180a   :  { %v11865_v54 = vpop.permute.xlu1 %11864 }
0x180b   :  { %v11866_v32 = vsel %vm5688_vm6, %v11863_v55, %v11865_v54  ;;  %v11867_v49 = vsel %vm5688_vm6, %v11865_v54, %v11863_v55 }
0x180c   :  { %v11868_v20 = vmul.f32 %v11866_v32, %v19668_v12  ;;  %v11869_v48 = vmul.f32 %v11867_v49, %v19671_v43 }
0x180d   :  { %v11875_v13 = vpop.permute.xlu0 %11874 }
0x180e   :  { %v11873_v37 = vpop.permute.xlu1 %11872  ;;  %v11870_v27 = vadd.f32 %v11868_v20, %v11860_v42  ;;  %v11871_v3 = vadd.f32 %v11869_v48, %v11861_v33 }
0x180f   :  { %v11876_v19 = vsel %vm5712_vm8, %v11873_v37, %v11875_v13  ;;  %v11877_v41 = vsel %vm5712_vm8, %v11875_v13, %v11873_v37 }
0x1810   :  { %v11878_v59 = vmul.f32 %v11876_v19, %v19680_v0  ;;  %v11879_v2 = vmul.f32 %v11877_v41, %v19683_v38 }
0x1811   :  { %v11883_v18 = vpop.permute.xlu0 %11882 }
0x1812   :  { %v11885_v40 = vpop.permute.xlu1 %11884  ;;  %v11880_v51 = vadd.f32 %v11878_v59, %v11870_v27  ;;  %v11881_v52 = vadd.f32 %v11879_v2, %v11871_v3 }
0x1813   :  { %v11886_v12 = vsel %vm5736_vm9, %v11883_v18, %v11885_v40  ;;  %v11887_v43 = vsel %vm5736_vm9, %v11885_v40, %v11883_v18 }
0x1814   :  { %v11888_v34 = vmul.f32 %v11886_v12, %v19697_v24  ;;  %v11889_v26 = vmul.f32 %v11887_v43, %v19700_v53 }
0x1816   :  { %v11890_v14 = vadd.f32 %v11888_v34, %v11880_v51  ;;  %v11891_v0 = vadd.f32 %v11889_v26, %v11881_v52 }
0x1818   :  { %v11898_v38 = vadd.f32 %v19776_v23, %v11890_v14  ;;  %v11899_v7 = vadd.f32 %v19776_v23, %v11891_v0 }
0x181a   :  { %v11900_v44 = vsel %vm1831_vm2, %v11898_v38, -inf  ;;  %v11907_v6 = vsel %vm1831_vm2, %v11899_v7, -inf }
0x181b   :  { %v11901_v56 = vrot.slane %v11900_v44, 4  ;;  %v11908_v39 = vrot.slane %v11907_v6, 4 }
0x181d   :  { %v11902_v31 = vmax.f32 %v11900_v44, %v11901_v56  ;;  %v11909_v47 = vmax.f32 %v11907_v6, %v11908_v39 }
0x181f   :  { %v11903_v15 = vrot.slane %v11902_v31, 2  ;;  %v11910_v61 = vrot.slane %v11909_v47, 2 }
0x1821   :  { %v11904_v4 = vmax.f32 %v11902_v31, %v11903_v15  ;;  %v11911_v24 = vmax.f32 %v11909_v47, %v11910_v61 }
0x1823   :  { %v11905_v62 = vrot.slane %v11904_v4, 1  ;;  %v11912_v53 = vrot.slane %v11911_v24, 1 }
0x1825   :  { %v11906_v10 = vmax.f32 %v11904_v4, %v11905_v62  ;;  %v11913_v63 = vmax.f32 %v11911_v24, %v11912_v53 }
0x1827   :  { %v11914_v1 = vsub.f32 %v11898_v38, %v11906_v10  ;;  %v11915_v16 = vsub.f32 %v11899_v7, %v11913_v63 }
0x1829   :  { %v11916_v9 = vmul.f32 1.442695, %v11914_v1  ;;  %v11918_v23 = vmul.f32 1.442695, %v11915_v16 }
0x182b   :  { %16185 = vpow2.f32 %v11916_v9 }
0x182c   :  { %16187 = vpow2.f32 %v11918_v23 }
0x1835   :  { %v16186_v25 = vpop.eup %16185 }
0x1836   :  { %v16188_v21 = vpop.eup %16187  ;;  %v11920_v11 = vsel %vm1831_vm2, %v16186_v25, 0.0 }
0x1837   :  { %v11921_v22 = vrot.slane %v11920_v11, 4  ;;  %v11927_v45 = vsel %vm1831_vm2, %v16188_v21, 0.0 }
0x1838   :  { %v11928_v5 = vrot.slane %v11927_v45, 4 }
0x1839   :  { %v11922_v8 = vadd.f32 %v11921_v22, %v11920_v11 }
0x183a   :  { %v11929_v28 = vadd.f32 %v11928_v5, %v11927_v45 }
0x183b   :  { %v11923_v57 = vrot.slane %v11922_v8, 2 }
0x183c   :  { %v11930_v50 = vrot.slane %v11929_v28, 2 }
0x183d   :  { %v11924_v30 = vadd.f32 %v11923_v57, %v11922_v8 }
0x183e   :  { %v11931_v17 = vadd.f32 %v11930_v50, %v11929_v28 }
0x183f   :  { %v11925_v55 = vrot.slane %v11924_v30, 1 }
0x1840   :  { %v11932_v29 = vrot.slane %v11931_v17, 1 }
0x1841   :  { %v11926_v35 = vadd.f32 %v11925_v55, %v11924_v30 }
0x1842   :  { %v11933_v54 = vadd.f32 %v11932_v29, %v11931_v17 }
0x1843   :  { %16189 = vrcp.f32 %v11926_v35 }
0x1844   :  { %16191 = vrcp.f32 %v11933_v54 }
0x184d   :  { %v16190_v32 = vpop.eup %16189 }
0x184e   :  { %v16192_v49 = vpop.eup %16191  ;;  %v11935_v58 = vmul.f32 %v16190_v32, %v16186_v25 }
0x184f   :  { %v11937_v46 = vmul.f32 %v16192_v49, %v16188_v21 }
0x1851   :  { %v11940_v13 = vcombine.low %v11935_v58, %v11937_v46 }
0x1853   :  { %13733 = vst [vmem:[%s19959_s29 + $0x8] sm:$0x77] %v11940_v13 }

</bundles_post_ra>
